<compile_context>
chip_gen: v5e
topology: v5e:2x2
jax: 0.10.0
libtpu: 0.0.40
codegen_flags: <defaults>
</compile_context>

<pallas_src>
import functools

import numpy as np
import jax
import jax.numpy as jnp
from jax.experimental import pallas as pl
from jax.experimental.pallas import tpu as pltpu


# ----------------------------------------------------------------------------
# small helpers
# ----------------------------------------------------------------------------

def _round_up(v, m):
    return (v + m - 1) // m * m


def _apply_act(acc, act):
    if act == 'leaky':
        return jnp.where(acc >= 0.0, acc, 0.2 * acc)
    if act == 'sigmoid':
        # numerically safe, exact division (no approx reciprocal)
        z = jnp.exp(-jnp.abs(acc))
        r = 1.0 / (1.0 + z)
        return jnp.where(acc >= 0.0, r, 1.0 - r)
    if act == 'tanh':
        return jnp.tanh(acc)
    return acc


def _pick_th(ho, wo):
    """Rows of output per grid step (must divide ho)."""
    if ho * wo <= 512:
        return ho
    for cand in range(min(ho, max(1, 512 // wo)), 0, -1):
        if ho % cand == 0 and (cand * wo) % 16 == 0:
            return cand
    return ho


# ----------------------------------------------------------------------------
# Pallas kernels
# ----------------------------------------------------------------------------

def _tap_conv_kernel(*refs, k, dil, th, wo, cin, act, mode, nextra):
    """stride-1 conv: whole padded sample resident in VMEM, in-kernel tap gather.

    refs = (x_ref(Hp,Wp,Cin) bf16, w_ref(k*k*Cin,Cout) bf16, b_ref(1,Cout) f32,
            *extras(tm,Cout) bf16, o_ref(tm,Cout) bf16, tapbuf(tm,Cin) bf16)
    """
    x_ref, w_ref, b_ref = refs[0], refs[1], refs[2]
    extras = refs[3:3 + nextra]
    o_ref = refs[3 + nextra]
    tapbuf = refs[4 + nextra]

    cout = o_ref.shape[-1]
    tm = th * wo
    base = pl.program_id(1) * th

    acc = jnp.zeros((tm, cout), jnp.float32)
    for kh in range(k):
        row0 = base + kh * dil
        for kw in range(k):
            t = kh * k + kw
            # gather this tap into the (tm, cin) VMEM scratch (no reshapes)
            for h in range(th):
                tapbuf[pl.ds(h * wo, wo), :] = \
                    x_ref[row0 + h, pl.ds(kw * dil, wo), :]
            acc = acc + jnp.dot(tapbuf[...],
                                w_ref[pl.ds(t * cin, cin), :],
                                preferred_element_type=jnp.float32)

    acc = acc + b_ref[...]
    if mode == 'sff':
        d = extras[0][...].astype(jnp.float32)
        rr = extras[1][...].astype(jnp.float32)
        out = d + (rr - d) * acc             # mask = raw conv output (no act)
    else:
        out = _apply_act(acc, act)
        for e in extras:                      # fused residual add(s)
            out = out + e[...].astype(jnp.float32)
    o_ref[...] = out.astype(o_ref.dtype)


def _gemm_kernel(x_ref, w_ref, b_ref, o_ref, *, act):
    """Plain GEMM with fused bias + activation (1x1 / stride-2 conv path)."""
    acc = jnp.dot(x_ref[...], w_ref[...], preferred_element_type=jnp.float32)
    acc = acc + b_ref[...]
    o_ref[...] = _apply_act(acc, act).astype(o_ref.dtype)


def _adain_kernel(c_ref, s_ref, o_ref):
    H, W, C = c_ref.shape
    n = H * W
    c = c_ref[...].astype(jnp.float32)
    s = s_ref[...].astype(jnp.float32)
    c_mean = jnp.mean(c, axis=(0, 1), keepdims=True)
    s_mean = jnp.mean(s, axis=(0, 1), keepdims=True)
    c_var = jnp.sum((c - c_mean) ** 2, axis=(0, 1), keepdims=True) / (n - 1)
    s_var = jnp.sum((s - s_mean) ** 2, axis=(0, 1), keepdims=True) / (n - 1)
    inv_c_std = jax.lax.rsqrt(c_var + 1e-5)
    s_std = jnp.sqrt(s_var + 1e-5)
    o_ref[...] = ((c - c_mean) * inv_c_std * s_std + s_mean).astype(o_ref.dtype)


# ----------------------------------------------------------------------------
# conv dispatch (pallas_call wrappers)
# ----------------------------------------------------------------------------

def _tap_conv(x, w, b, extras, *, k, dil, act, mode, pad, Ho, Wo, flops, trans):
    N, H, W, C = x.shape
    Cout = w.shape[1]
    xp = jnp.pad(x, ((0, 0), (pad, pad), (pad, pad), (0, 0))) if pad else x
    Hp, Wp = H + 2 * pad, W + 2 * pad
    th = _pick_th(Ho, Wo)
    rb = Ho // th
    tm = th * Wo
    K = k * k * C

    ext_flat = tuple(e.astype(jnp.bfloat16).reshape(N, Ho * Wo, Cout)
                     for e in extras)

    kernel = functools.partial(_tap_conv_kernel, k=k, dil=dil, th=th, wo=Wo,
                               cin=C, act=act, mode=mode, nextra=len(ext_flat))

    x_spec = pl.BlockSpec((None, Hp, Wp, C), lambda n, r: (n, 0, 0, 0))
    w_spec = pl.BlockSpec((K, Cout), lambda n, r: (0, 0))
    b_spec = pl.BlockSpec((1, Cout), lambda n, r: (0, 0))
    e_spec = pl.BlockSpec((None, tm, Cout), lambda n, r: (n, r, 0))
    o_spec = pl.BlockSpec((None, tm, Cout), lambda n, r: (n, r, 0))

    bytes_acc = (xp.size * 2 + w.size * 2 + b.size * 4
                 + (N * Ho * Wo * Cout) * 2 * (1 + len(ext_flat)))

    out = pl.pallas_call(
        kernel,
        out_shape=jax.ShapeDtypeStruct((N, Ho * Wo, Cout), jnp.bfloat16),
        grid=(N, rb),
        in_specs=[x_spec, w_spec, b_spec] + [e_spec] * len(ext_flat),
        out_specs=o_spec,
        scratch_shapes=[pltpu.VMEM((tm, C), jnp.bfloat16)],
        compiler_params=pltpu.CompilerParams(
            dimension_semantics=("parallel", "arbitrary")),
        cost_estimate=pl.CostEstimate(flops=flops, transcendentals=trans,
                                      bytes_accessed=bytes_acc),
    )(xp, w, b, *ext_flat)
    return out.reshape(N, Ho, Wo, Cout)


def _gemm_conv(x, w, b, *, k, stride, dil, act, pad, Ho, Wo, flops, trans):
    N, H, W, C = x.shape
    Cout = w.shape[1]
    if k == 1 and stride == 1:
        patches = x
    else:
        xp = jnp.pad(x, ((0, 0), (pad, pad), (pad, pad), (0, 0))) if pad else x
        taps = []
        for kh in range(k):
            h0 = kh * dil
            for kw in range(k):
                w0 = kw * dil
                taps.append(xp[:, h0:h0 + stride * (Ho - 1) + 1:stride,
                               w0:w0 + stride * (Wo - 1) + 1:stride, :])
        patches = jnp.concatenate(taps, axis=-1)

    K = k * k * C
    M = N * Ho * Wo
    TILE_M = 128
    Mp = _round_up(M, TILE_M)                 # fixed tile; padded rows are free
    lhs = patches.reshape(M, K)
    if Mp != M:
        lhs = jnp.pad(lhs, ((0, Mp - M), (0, 0)))

    bytes_acc = Mp * K * 2 + K * Cout * 2 + Cout * 4 + Mp * Cout * 2
    out = pl.pallas_call(
        functools.partial(_gemm_kernel, act=act),
        out_shape=jax.ShapeDtypeStruct((Mp, Cout), jnp.bfloat16),
        grid=(Mp // TILE_M,),
        in_specs=[pl.BlockSpec((TILE_M, K), lambda i: (i, 0)),
                  pl.BlockSpec((K, Cout), lambda i: (0, 0)),
                  pl.BlockSpec((1, Cout), lambda i: (0, 0))],
        out_specs=pl.BlockSpec((TILE_M, Cout), lambda i: (i, 0)),
        compiler_params=pltpu.CompilerParams(
            dimension_semantics=("parallel",)),
        cost_estimate=pl.CostEstimate(flops=flops, transcendentals=trans,
                                      bytes_accessed=bytes_acc),
    )(lhs, w, b)
    return out[:M].reshape(N, Ho, Wo, Cout)


@functools.partial(jax.jit, static_argnames=('k', 'stride', 'dil', 'act', 'mode'))
def _conv_impl(x, w, b, extras, *, k, stride, dil, act, mode):
    N, H, W, Cin = x.shape
    Cout = w.shape[1]
    cinp = w.shape[0] // (k * k)
    x = x.astype(jnp.bfloat16)
    if cinp != Cin:                            # pad tiny channel counts (1, 3)
        x = jnp.pad(x, ((0, 0), (0, 0), (0, 0), (0, cinp - Cin)))
    pad = (k - 1) // 2 * dil
    Ho = (H + 2 * pad - dil * (k - 1) - 1) // stride + 1
    Wo = (W + 2 * pad - dil * (k - 1) - 1) // stride + 1
    M = N * Ho * Wo
    flops = 2 * M * (k * k * cinp) * Cout
    trans = M * Cout if act in ('sigmoid', 'tanh') else 0

    if stride == 1 and k > 1:
        return _tap_conv(x, w, b, extras, k=k, dil=dil, act=act, mode=mode,
                         pad=pad, Ho=Ho, Wo=Wo, flops=flops, trans=trans)
    assert mode == 'plain' and not extras
    return _gemm_conv(x, w, b, k=k, stride=stride, dil=dil, act=act,
                      pad=pad, Ho=Ho, Wo=Wo, flops=flops, trans=trans)


def conv2d(x, p, *, stride=1, dil=1, act='none', skips=(), sff=None):
    """Conv2d (padding=(k-1)//2*dil) with fused bias/act/residual/SFF epilogue."""
    if sff is not None:
        mode, extras = 'sff', tuple(sff)
    elif skips:
        mode, extras = 'skip', tuple(skips)
    else:
        mode, extras = 'plain', ()
    return _conv_impl(x, p['w'], p['b'], extras,
                      k=p['k'], stride=stride, dil=dil, act=act, mode=mode)


# ----------------------------------------------------------------------------
# AdaIN (per-sample grid, parallel across TensorCores)
# ----------------------------------------------------------------------------

@jax.jit
def adain(content, style):
    N, H, W, C = content.shape
    spec = pl.BlockSpec((None, H, W, C), lambda n: (n, 0, 0, 0))
    return pl.pallas_call(
        _adain_kernel,
        out_shape=jax.ShapeDtypeStruct(content.shape, content.dtype),
        grid=(N,),
        in_specs=[spec, spec],
        out_specs=spec,
        compiler_params=pltpu.CompilerParams(
            dimension_semantics=("parallel",)),
    )(content, style)


# ----------------------------------------------------------------------------
# bilinear upsample (align_corners=True); small glue op kept in XLA
# ----------------------------------------------------------------------------

def _interp_matrix(n_in, n_out):
    if n_in == 1:
        return jnp.ones((n_out, 1), jnp.float32)
    src = jnp.arange(n_out, dtype=jnp.float32) * (n_in - 1) / (n_out - 1)
    i0 = jnp.floor(src).astype(jnp.int32)
    i1 = jnp.minimum(i0 + 1, n_in - 1)
    f = src - i0.astype(jnp.float32)
    m = jnp.zeros((n_out, n_in), jnp.float32)
    rows = jnp.arange(n_out)
    m = m.at[rows, i0].add(1.0 - f)
    m = m.at[rows, i1].add(f)
    return m


@jax.jit
def upsample2x_align_corners(x):
    N, H, W, C = x.shape
    Ah = _interp_matrix(H, 2 * H)
    Aw = _interp_matrix(W, 2 * W)
    y = jnp.einsum('oh,nhwc->nowc', Ah, x.astype(jnp.float32))
    y = jnp.einsum('pw,nowc->nopc', Aw, y)
    return y.astype(jnp.bfloat16)


# ----------------------------------------------------------------------------
# parameters (deterministic synthetic init) and module apply functions
# ----------------------------------------------------------------------------

class KeyGen:
    def __init__(self, seed):
        self._key = jax.random.PRNGKey(seed)

    def __call__(self):
        self._key, sub = jax.random.split(self._key)
        return sub


def make_conv(kg, cin, cout, k, bias=True):
    cinp = max(_round_up(cin, 8), 8)           # lane-friendly input channels
    fan_in = cin * k * k
    w = jax.random.normal(kg(), (k * k * cinp, cout), jnp.float32) / np.sqrt(fan_in)
    w = w.astype(jnp.bfloat16)
    if bias:
        b = jax.random.normal(kg(), (1, cout), jnp.float32) * 0.01
    else:
        b = jnp.zeros((1, cout), jnp.float32)
    return {'w': w, 'b': b, 'k': k}


# --- ResnetBlock ---
def init_resblock(kg, c):
    return {'c0': make_conv(kg, c, c, 3), 'c1': make_conv(kg, c, c, 3)}


def apply_resblock(p, x, dils):
    h = conv2d(x, p['c0'], act='leaky', dil=dils[0])
    return conv2d(h, p['c1'], act='none', dil=dils[1], skips=(x,))


# --- FeatureExDilatedResNet ---
def init_feat_ex(kg, ngf=64):
    return {
        'conv1': make_conv(kg, 3, ngf, 3),
        's1_1': init_resblock(kg, ngf), 's1_2': init_resblock(kg, ngf),
        'conv2': make_conv(kg, ngf, ngf * 2, 3),
        's2_1': init_resblock(kg, ngf * 2), 's2_2': init_resblock(kg, ngf * 2),
        'conv3': make_conv(kg, ngf * 2, ngf * 4, 3),
        's3_1': init_resblock(kg, ngf * 4), 's3_2': init_resblock(kg, ngf * 4),
        'conv4': make_conv(kg, ngf * 4, ngf * 2, 3),
    }


def apply_feat_ex(p, img):
    f = conv2d(img, p['conv1'], act='leaky')
    f = apply_resblock(p['s1_1'], f, [7, 5])
    f = apply_resblock(p['s1_2'], f, [7, 5])
    f = conv2d(f, p['conv2'], act='leaky', stride=2)
    f = apply_resblock(p['s2_1'], f, [5, 3])
    f = apply_resblock(p['s2_2'], f, [5, 3])
    f = conv2d(f, p['conv3'], act='leaky', stride=2)
    f = apply_resblock(p['s3_1'], f, [3, 1])
    f = apply_resblock(p['s3_2'], f, [3, 1])
    f = conv2d(f, p['conv4'], act='leaky')
    return f


# --- MaskConditionModel ---
def init_mask_cmodel(kg, out_c=128):
    return {
        'c0': make_conv(kg, 1, 16, 9, bias=False),
        'c1': make_conv(kg, 16, 32, 7, bias=False),
        'c2': make_conv(kg, 32, 64, 5, bias=False),
        'c3': make_conv(kg, 64, out_c, 3, bias=False),
        'c4': make_conv(kg, out_c, out_c, 3, bias=False),
    }


def apply_mask_cmodel(p, x):
    x = conv2d(x, p['c0'], act='leaky', stride=2)
    x = conv2d(x, p['c1'], act='leaky')
    x = conv2d(x, p['c2'], act='leaky', stride=2)
    x = conv2d(x, p['c3'], act='leaky')
    x = conv2d(x, p['c4'], act='sigmoid')
    return x


# --- UpResBlock / ComponentConditionModel ---
def init_upres(kg, d):
    return {'c0': make_conv(kg, d, d, 3), 'c1': make_conv(kg, d, d, 3)}


def apply_upres(p, x):
    h = conv2d(x, p['c0'], act='leaky')
    return conv2d(h, p['c1'], act='leaky', skips=(x,))


def init_comp_cmodel(kg, c=128):
    return {'c0': make_conv(kg, c, c, 1), 'r0': init_upres(kg, c),
            'c1': make_conv(kg, c, c, 1), 'r1': init_upres(kg, c),
            'c2': make_conv(kg, c, c, 1)}


def apply_comp_cmodel(p, x):
    x = conv2d(x, p['c0'], act='leaky')
    x = apply_upres(p['r0'], x)
    x = conv2d(x, p['c1'], act='leaky')
    x = apply_upres(p['r1'], x)
    x = conv2d(x, p['c2'], act='leaky')
    return x


# --- SFFLayer (SFFLayer_last: same forward compute) ---
def init_sff(kg, c=128):
    # three 1x1 "*Concat" convs fused into one block-diagonal GEMM
    mask_cat = make_conv(kg, c, c // 2, 1)
    deg_cat = make_conv(kg, c, c // 2, 1)
    ref_cat = make_conv(kg, c, c // 2, 1)
    h = c // 2
    wcat = jnp.zeros((3 * c, 3 * h), jnp.bfloat16)
    wcat = wcat.at[0:c, 0:h].set(mask_cat['w'])
    wcat = wcat.at[c:2 * c, h:2 * h].set(deg_cat['w'])
    wcat = wcat.at[2 * c:3 * c, 2 * h:3 * h].set(ref_cat['w'])
    bcat = jnp.concatenate([mask_cat['b'], deg_cat['b'], ref_cat['b']], axis=1)
    return {
        'mask_m0': make_conv(kg, c // 2 * 3, c, 3, bias=False),
        'mask_m1': make_conv(kg, c, c, 3, bias=False),
        'cat': {'w': wcat, 'b': bcat, 'k': 1},
        'deg_m0': make_conv(kg, c, c, 3), 'deg_m1': make_conv(kg, c, c, 3),
        'ref_m0': make_conv(kg, c, c, 3), 'ref_m1': make_conv(kg, c, c, 3),
    }


def apply_sff(p, X):
    deg_in, ref_in, mask_c = X
    deg = conv2d(conv2d(deg_in, p['deg_m0'], act='leaky'), p['deg_m1'], act='none')
    ref = conv2d(conv2d(ref_in, p['ref_m0'], act='leaky'), p['ref_m1'], act='none')
    # fused (MaskConcat | DegradedConcat | RefConcat) block-diagonal 1x1 GEMM
    cat_in = jnp.concatenate([mask_c, deg, ref], axis=-1)
    down = conv2d(cat_in, p['cat'], act='none')
    h = conv2d(down, p['mask_m0'], act='leaky')
    # final conv fused with the SFF combine: deg + (ref - deg) * mask
    return conv2d(h, p['mask_m1'], act='none', sff=(deg, ref))


# --- ASFFBlock ---
def init_asff_block(kg, c=128):
    return {'sff0': init_sff(kg, c),
            'conv0a': make_conv(kg, c, c, 5), 'conv0b': make_conv(kg, c, c, 3),
            'sff1': init_sff(kg, c),
            'conv1a': make_conv(kg, c, c, 5), 'conv1b': make_conv(kg, c, c, 3)}


def apply_asff_block(p, X):
    x0, x1, x2 = X
    f11 = apply_sff(p['sff0'], X)
    f12 = conv2d(conv2d(f11, p['conv0a'], act='leaky'), p['conv0b'], act='leaky')
    f21 = apply_sff(p['sff1'], (f12, x1, x2))
    f22a = conv2d(f21, p['conv1a'], act='leaky')
    out0 = conv2d(f22a, p['conv1b'], act='leaky', skips=(x0,))
    return (out0, x1, x2)


# --- MSDilateBlock ---
def init_msdilate(kg, c=128):
    return {'c1': make_conv(kg, c, c // 2, 3), 'c2': make_conv(kg, c, c // 2, 3),
            'c3': make_conv(kg, c, c // 2, 3), 'c4': make_conv(kg, c, c // 2, 3),
            'ci0': make_conv(kg, c * 2, c, 3), 'ci1': make_conv(kg, c, c, 3)}


def apply_msdilate(p, x, extra_skip, dilation=(4, 3, 2, 1)):
    c1 = conv2d(x, p['c1'], act='leaky', dil=dilation[0])
    c2 = conv2d(x, p['c2'], act='leaky', dil=dilation[1])
    c3 = conv2d(x, p['c3'], act='leaky', dil=dilation[2])
    c4 = conv2d(x, p['c4'], act='leaky', dil=dilation[3])
    cat = jnp.concatenate([c1, c2, c3, c4], axis=-1)
    h = conv2d(cat, p['ci0'], act='leaky')
    # fuses both the MSDilate residual and the top-level "+ LQ_Feature"
    return conv2d(h, p['ci1'], act='none', skips=(x, extra_skip))


# --- UpDilateResBlock / UpModel ---
def init_udrb(kg, d):
    return {'m0a': make_conv(kg, d, d, 3), 'm0b': make_conv(kg, d, d, 3),
            'm1a': make_conv(kg, d, d, 3), 'm1b': make_conv(kg, d, d, 3)}


def apply_udrb(p, x, dilation):
    h = conv2d(x, p['m0a'], act='leaky', dil=dilation[0])
    out = conv2d(h, p['m0b'], act='leaky', dil=dilation[0], skips=(x,))
    h2 = conv2d(out, p['m1a'], act='leaky', dil=dilation[1])
    return conv2d(h2, p['m1b'], act='leaky', dil=dilation[1], skips=(out,))


def init_upmodel(kg):
    return {'c0': make_conv(kg, 128, 128, 3), 'udrb0': init_udrb(kg, 128),
            'c1': make_conv(kg, 128, 64, 3), 'udrb1': init_udrb(kg, 64),
            'udrb2': init_udrb(kg, 64), 'c2': make_conv(kg, 64, 3, 3)}


def apply_upmodel(p, x):
    x = upsample2x_align_corners(x)
    x = conv2d(x, p['c0'], act='leaky')
    x = apply_udrb(p['udrb0'], x, [1, 2])
    x = conv2d(x, p['c1'], act='leaky')
    x = apply_udrb(p['udrb1'], x, [1, 2])
    x = upsample2x_align_corners(x)
    x = apply_udrb(p['udrb2'], x, [1, 1])
    x = conv2d(x, p['c2'], act='tanh')
    return x


# --- ASFFNet ---
def init_asffnet(seed=42):
    kg = KeyGen(seed)
    return {
        'sff_blocks': [init_asff_block(kg, 128) for _ in range(4)],
        'sff_last': init_sff(kg, 128),
        'msdilate': init_msdilate(kg, 128),
        'upmodel': init_upmodel(kg),
        'lq_model': init_feat_ex(kg, 64),
        'ref_model': init_feat_ex(kg, 64),
        'mask_cmodel': init_mask_cmodel(kg, 128),
        'comp_cmodel': init_comp_cmodel(kg, 128),
    }


def asffnet_forward(params, LQ, Ref, Mask, lq_landmark, ref_landmark):
    # inputs are NCHW (PyTorch convention) -> internal NHWC bf16
    LQ_h = jnp.transpose(LQ, (0, 2, 3, 1)).astype(jnp.bfloat16)
    Ref_h = jnp.transpose(Ref, (0, 2, 3, 1)).astype(jnp.bfloat16)
    Mask_h = jnp.transpose(Mask, (0, 2, 3, 1)).astype(jnp.bfloat16)

    LQ_Feature = apply_feat_ex(params['lq_model'], LQ_h)
    Ref_Feature = apply_feat_ex(params['ref_model'], Ref_h)

    down_scale = LQ_h.shape[1] / LQ_Feature.shape[1]
    _ = lq_landmark / down_scale     # kept for semantic parity with reference
    _ = ref_landmark / down_scale

    Ref_AdaIn = adain(Ref_Feature, LQ_Feature)          # Pallas kernel

    # TODO(synk): roi_mls_whole_final (moving-least-squares landmark warp) is not
    # defined in the provided source; the warp grid is therefore the identity, so
    # F.grid_sample with the identity grid is an exact identity and is skipped.
    MLS_Ref_Feature = Ref_AdaIn

    MaskC = apply_mask_cmodel(params['mask_cmodel'], Mask_h)
    ComponentC = apply_comp_cmodel(params['comp_cmodel'], MLS_Ref_Feature)

    X = (LQ_Feature, ComponentC, MaskC)
    for bp in params['sff_blocks']:
        X = apply_asff_block(bp, X)
    Fea = apply_sff(params['sff_last'], X)

    ms_plus = apply_msdilate(params['msdilate'], Fea, LQ_Feature,
                             dilation=(4, 3, 2, 1))     # = MSFea + LQ_Feature
    out = apply_upmodel(params['upmodel'], ms_plus)
    return jnp.transpose(out.astype(jnp.float32), (0, 3, 1, 2))   # back to NCHW


# ----------------------------------------------------------------------------
# Main
# ----------------------------------------------------------------------------
if __name__ == "__main__":
    key = jax.random.PRNGKey(0)
    k1, k2, k3, k4, k5 = jax.random.split(key, 5)
    N, H, W = 2, 16, 16
    LQ = jax.random.normal(k1, (N, 3, H, W), jnp.float32)
    Ref = jax.random.normal(k2, (N, 3, H, W), jnp.float32)
    Mask = jax.random.uniform(k3, (N, 1, H, W), jnp.float32)
    lq_landmark = jax.random.uniform(k4, (N, 68, 2), jnp.float32) * (H - 1)
    ref_landmark = jax.random.uniform(k5, (N, 68, 2), jnp.float32) * (H - 1)

    params = init_asffnet(seed=42)
    out = asffnet_forward(params, LQ, Ref, Mask, lq_landmark, ref_landmark)
    out = jax.block_until_ready(out)
    assert out.shape == (N, 3, H, W), out.shape
    assert bool(jnp.all(jnp.isfinite(out)))
    print("KERNEL_OK")
</pallas_src>

<mosaic_0001>
module attributes {stable_mosaic.version = 11 : i64} {
  func.func @_tap_conv_kernel(%arg0: i32, %arg1: i32, %arg2: memref<1x18x18x8xbf16, #tpu.memory_space<vmem>>, %arg3: memref<72x64xbf16, #tpu.memory_space<vmem>>, %arg4: memref<1x64xf32, #tpu.memory_space<vmem>>, %arg5: memref<1x256x64xbf16, #tpu.memory_space<vmem>>, %arg6: memref<256x8xbf16, #tpu.memory_space<vmem>>) attributes {dimension_semantics = [#tpu.dimension_semantics<parallel>, #tpu.dimension_semantics<arbitrary>], iteration_bounds = array<i64: 2, 1>, scalar_prefetch = 0 : i64, scratch_operands = 1 : i64, tpu.core_type = #tpu.core_type<tc>, window_params = [{transform_indices = @transform_0, window_bounds = array<i64: 1, 18, 18, 8>}, {pipeline_mode = #tpu.pipeline_mode<synchronous>, transform_indices = @transform_1, window_bounds = array<i64: 72, 64>}, {pipeline_mode = #tpu.pipeline_mode<synchronous>, transform_indices = @transform_2, window_bounds = array<i64: 1, 64>}, {transform_indices = @transform_3, window_bounds = array<i64: 1, 256, 64>}]} {
    %c16_i32 = arith.constant 16 : i32
    %0 = arith.muli %arg1, %c16_i32 : i32
    %cst = arith.constant 0.000000e+00 : f32
    %1 = vector.broadcast %cst : f32 to vector<256x64xf32>
    %c0_i32 = arith.constant 0 : i32
    %2 = arith.addi %0, %c0_i32 : i32
    %c0_i32_0 = arith.constant 0 : i32
    %3 = arith.addi %2, %c0_i32_0 : i32
    %c0 = arith.constant 0 : index
    %4 = arith.index_cast %3 : i32 to index
    %c0_1 = arith.constant 0 : index
    %c0_2 = arith.constant 0 : index
    %5 = vector.load %arg2[%c0, %4, %c0_1, %c0_2] : memref<1x18x18x8xbf16, #tpu.memory_space<vmem>>, vector<1x1x16x8xbf16>
    %6 = vector.shape_cast %5 : vector<1x1x16x8xbf16> to vector<16x8xbf16>
    %c0_3 = arith.constant 0 : index
    %c0_4 = arith.constant 0 : index
    %7 = vector.load %arg6[%c0_3, %c0_4] : memref<256x8xbf16, #tpu.memory_space<vmem>>, vector<16x8xbf16>
    tpu.vector_store %arg6[%c0_3, %c0_4], %6 {strides = array<i32>} : memref<256x8xbf16, #tpu.memory_space<vmem>>, vector<16x8xbf16>,
    %c1_i32 = arith.constant 1 : i32
    %8 = arith.addi %2, %c1_i32 : i32
    %c0_5 = arith.constant 0 : index
    %9 = arith.index_cast %8 : i32 to index
    %c0_6 = arith.constant 0 : index
    %c0_7 = arith.constant 0 : index
    %10 = vector.load %arg2[%c0_5, %9, %c0_6, %c0_7] : memref<1x18x18x8xbf16, #tpu.memory_space<vmem>>, vector<1x1x16x8xbf16>
    %11 = vector.shape_cast %10 : vector<1x1x16x8xbf16> to vector<16x8xbf16>
    %c16 = arith.constant 16 : index
    %c0_8 = arith.constant 0 : index
    %12 = vector.load %arg6[%c16, %c0_8] : memref<256x8xbf16, #tpu.memory_space<vmem>>, vector<16x8xbf16>
    tpu.vector_store %arg6[%c16, %c0_8], %11 {strides = array<i32>} : memref<256x8xbf16, #tpu.memory_space<vmem>>, vector<16x8xbf16>,
    %c2_i32 = arith.constant 2 : i32
    %13 = arith.addi %2, %c2_i32 : i32
    %c0_9 = arith.constant 0 : index
    %14 = arith.index_cast %13 : i32 to index
    %c0_10 = arith.constant 0 : index
    %c0_11 = arith.constant 0 : index
    %15 = vector.load %arg2[%c0_9, %14, %c0_10, %c0_11] : memref<1x18x18x8xbf16, #tpu.memory_space<vmem>>, vector<1x1x16x8xbf16>
    %16 = vector.shape_cast %15 : vector<1x1x16x8xbf16> to vector<16x8xbf16>
    %c32 = arith.constant 32 : index
    %c0_12 = arith.constant 0 : index
    %17 = vector.load %arg6[%c32, %c0_12] : memref<256x8xbf16, #tpu.memory_space<vmem>>, vector<16x8xbf16>
    tpu.vector_store %arg6[%c32, %c0_12], %16 {strides = array<i32>} : memref<256x8xbf16, #tpu.memory_space<vmem>>, vector<16x8xbf16>,
    %c3_i32 = arith.constant 3 : i32
    %18 = arith.addi %2, %c3_i32 : i32
    %c0_13 = arith.constant 0 : index
    %19 = arith.index_cast %18 : i32 to index
    %c0_14 = arith.constant 0 : index
    %c0_15 = arith.constant 0 : index
    %20 = vector.load %arg2[%c0_13, %19, %c0_14, %c0_15] : memref<1x18x18x8xbf16, #tpu.memory_space<vmem>>, vector<1x1x16x8xbf16>
    %21 = vector.shape_cast %20 : vector<1x1x16x8xbf16> to vector<16x8xbf16>
    %c48 = arith.constant 48 : index
    %c0_16 = arith.constant 0 : index
    %22 = vector.load %arg6[%c48, %c0_16] : memref<256x8xbf16, #tpu.memory_space<vmem>>, vector<16x8xbf16>
    tpu.vector_store %arg6[%c48, %c0_16], %21 {strides = array<i32>} : memref<256x8xbf16, #tpu.memory_space<vmem>>, vector<16x8xbf16>,
    %c4_i32 = arith.constant 4 : i32
    %23 = arith.addi %2, %c4_i32 : i32
    %c0_17 = arith.constant 0 : index
    %24 = arith.index_cast %23 : i32 to index
    %c0_18 = arith.constant 0 : index
    %c0_19 = arith.constant 0 : index
    %25 = vector.load %arg2[%c0_17, %24, %c0_18, %c0_19] : memref<1x18x18x8xbf16, #tpu.memory_space<vmem>>, vector<1x1x16x8xbf16>
    %26 = vector.shape_cast %25 : vector<1x1x16x8xbf16> to vector<16x8xbf16>
    %c64 = arith.constant 64 : index
    %c0_20 = arith.constant 0 : index
    %27 = vector.load %arg6[%c64, %c0_20] : memref<256x8xbf16, #tpu.memory_space<vmem>>, vector<16x8xbf16>
    tpu.vector_store %arg6[%c64, %c0_20], %26 {strides = array<i32>} : memref<256x8xbf16, #tpu.memory_space<vmem>>, vector<16x8xbf16>,
    %c5_i32 = arith.constant 5 : i32
    %28 = arith.addi %2, %c5_i32 : i32
    %c0_21 = arith.constant 0 : index
    %29 = arith.index_cast %28 : i32 to index
    %c0_22 = arith.constant 0 : index
    %c0_23 = arith.constant 0 : index
    %30 = vector.load %arg2[%c0_21, %29, %c0_22, %c0_23] : memref<1x18x18x8xbf16, #tpu.memory_space<vmem>>, vector<1x1x16x8xbf16>
    %31 = vector.shape_cast %30 : vector<1x1x16x8xbf16> to vector<16x8xbf16>
    %c80 = arith.constant 80 : index
    %c0_24 = arith.constant 0 : index
    %32 = vector.load %arg6[%c80, %c0_24] : memref<256x8xbf16, #tpu.memory_space<vmem>>, vector<16x8xbf16>
    tpu.vector_store %arg6[%c80, %c0_24], %31 {strides = array<i32>} : memref<256x8xbf16, #tpu.memory_space<vmem>>, vector<16x8xbf16>,
    %c6_i32 = arith.constant 6 : i32
    %33 = arith.addi %2, %c6_i32 : i32
    %c0_25 = arith.constant 0 : index
    %34 = arith.index_cast %33 : i32 to index
    %c0_26 = arith.constant 0 : index
    %c0_27 = arith.constant 0 : index
    %35 = vector.load %arg2[%c0_25, %34, %c0_26, %c0_27] : memref<1x18x18x8xbf16, #tpu.memory_space<vmem>>, vector<1x1x16x8xbf16>
    %36 = vector.shape_cast %35 : vector<1x1x16x8xbf16> to vector<16x8xbf16>
    %c96 = arith.constant 96 : index
    %c0_28 = arith.constant 0 : index
    %37 = vector.load %arg6[%c96, %c0_28] : memref<256x8xbf16, #tpu.memory_space<vmem>>, vector<16x8xbf16>
    tpu.vector_store %arg6[%c96, %c0_28], %36 {strides = array<i32>} : memref<256x8xbf16, #tpu.memory_space<vmem>>, vector<16x8xbf16>,
    %c7_i32 = arith.constant 7 : i32
    %38 = arith.addi %2, %c7_i32 : i32
    %c0_29 = arith.constant 0 : index
    %39 = arith.index_cast %38 : i32 to index
    %c0_30 = arith.constant 0 : index
    %c0_31 = arith.constant 0 : index
    %40 = vector.load %arg2[%c0_29, %39, %c0_30, %c0_31] : memref<1x18x18x8xbf16, #tpu.memory_space<vmem>>, vector<1x1x16x8xbf16>
    %41 = vector.shape_cast %40 : vector<1x1x16x8xbf16> to vector<16x8xbf16>
    %c112 = arith.constant 112 : index
    %c0_32 = arith.constant 0 : index
    %42 = vector.load %arg6[%c112, %c0_32] : memref<256x8xbf16, #tpu.memory_space<vmem>>, vector<16x8xbf16>
    tpu.vector_store %arg6[%c112, %c0_32], %41 {strides = array<i32>} : memref<256x8xbf16, #tpu.memory_space<vmem>>, vector<16x8xbf16>,
    %c8_i32 = arith.constant 8 : i32
    %43 = arith.addi %2, %c8_i32 : i32
    %c0_33 = arith.constant 0 : index
    %44 = arith.index_cast %43 : i32 to index
    %c0_34 = arith.constant 0 : index
    %c0_35 = arith.constant 0 : index
    %45 = vector.load %arg2[%c0_33, %44, %c0_34, %c0_35] : memref<1x18x18x8xbf16, #tpu.memory_space<vmem>>, vector<1x1x16x8xbf16>
    %46 = vector.shape_cast %45 : vector<1x1x16x8xbf16> to vector<16x8xbf16>
    %c128 = arith.constant 128 : index
    %c0_36 = arith.constant 0 : index
    %47 = vector.load %arg6[%c128, %c0_36] : memref<256x8xbf16, #tpu.memory_space<vmem>>, vector<16x8xbf16>
    tpu.vector_store %arg6[%c128, %c0_36], %46 {strides = array<i32>} : memref<256x8xbf16, #tpu.memory_space<vmem>>, vector<16x8xbf16>,
    %c9_i32 = arith.constant 9 : i32
    %48 = arith.addi %2, %c9_i32 : i32
    %c0_37 = arith.constant 0 : index
    %49 = arith.index_cast %48 : i32 to index
    %c0_38 = arith.constant 0 : index
    %c0_39 = arith.constant 0 : index
    %50 = vector.load %arg2[%c0_37, %49, %c0_38, %c0_39] : memref<1x18x18x8xbf16, #tpu.memory_space<vmem>>, vector<1x1x16x8xbf16>
    %51 = vector.shape_cast %50 : vector<1x1x16x8xbf16> to vector<16x8xbf16>
    %c144 = arith.constant 144 : index
    %c0_40 = arith.constant 0 : index
    %52 = vector.load %arg6[%c144, %c0_40] : memref<256x8xbf16, #tpu.memory_space<vmem>>, vector<16x8xbf16>
    tpu.vector_store %arg6[%c144, %c0_40], %51 {strides = array<i32>} : memref<256x8xbf16, #tpu.memory_space<vmem>>, vector<16x8xbf16>,
    %c10_i32 = arith.constant 10 : i32
    %53 = arith.addi %2, %c10_i32 : i32
    %c0_41 = arith.constant 0 : index
    %54 = arith.index_cast %53 : i32 to index
    %c0_42 = arith.constant 0 : index
    %c0_43 = arith.constant 0 : index
    %55 = vector.load %arg2[%c0_41, %54, %c0_42, %c0_43] : memref<1x18x18x8xbf16, #tpu.memory_space<vmem>>, vector<1x1x16x8xbf16>
    %56 = vector.shape_cast %55 : vector<1x1x16x8xbf16> to vector<16x8xbf16>
    %c160 = arith.constant 160 : index
    %c0_44 = arith.constant 0 : index
    %57 = vector.load %arg6[%c160, %c0_44] : memref<256x8xbf16, #tpu.memory_space<vmem>>, vector<16x8xbf16>
    tpu.vector_store %arg6[%c160, %c0_44], %56 {strides = array<i32>} : memref<256x8xbf16, #tpu.memory_space<vmem>>, vector<16x8xbf16>,
    %c11_i32 = arith.constant 11 : i32
    %58 = arith.addi %2, %c11_i32 : i32
    %c0_45 = arith.constant 0 : index
    %59 = arith.index_cast %58 : i32 to index
    %c0_46 = arith.constant 0 : index
    %c0_47 = arith.constant 0 : index
    %60 = vector.load %arg2[%c0_45, %59, %c0_46, %c0_47] : memref<1x18x18x8xbf16, #tpu.memory_space<vmem>>, vector<1x1x16x8xbf16>
    %61 = vector.shape_cast %60 : vector<1x1x16x8xbf16> to vector<16x8xbf16>
    %c176 = arith.constant 176 : index
    %c0_48 = arith.constant 0 : index
    %62 = vector.load %arg6[%c176, %c0_48] : memref<256x8xbf16, #tpu.memory_space<vmem>>, vector<16x8xbf16>
    tpu.vector_store %arg6[%c176, %c0_48], %61 {strides = array<i32>} : memref<256x8xbf16, #tpu.memory_space<vmem>>, vector<16x8xbf16>,
    %c12_i32 = arith.constant 12 : i32
    %63 = arith.addi %2, %c12_i32 : i32
    %c0_49 = arith.constant 0 : index
    %64 = arith.index_cast %63 : i32 to index
    %c0_50 = arith.constant 0 : index
    %c0_51 = arith.constant 0 : index
    %65 = vector.load %arg2[%c0_49, %64, %c0_50, %c0_51] : memref<1x18x18x8xbf16, #tpu.memory_space<vmem>>, vector<1x1x16x8xbf16>
    %66 = vector.shape_cast %65 : vector<1x1x16x8xbf16> to vector<16x8xbf16>
    %c192 = arith.constant 192 : index
    %c0_52 = arith.constant 0 : index
    %67 = vector.load %arg6[%c192, %c0_52] : memref<256x8xbf16, #tpu.memory_space<vmem>>, vector<16x8xbf16>
    tpu.vector_store %arg6[%c192, %c0_52], %66 {strides = array<i32>} : memref<256x8xbf16, #tpu.memory_space<vmem>>, vector<16x8xbf16>,
    %c13_i32 = arith.constant 13 : i32
    %68 = arith.addi %2, %c13_i32 : i32
    %c0_53 = arith.constant 0 : index
    %69 = arith.index_cast %68 : i32 to index
    %c0_54 = arith.constant 0 : index
    %c0_55 = arith.constant 0 : index
    %70 = vector.load %arg2[%c0_53, %69, %c0_54, %c0_55] : memref<1x18x18x8xbf16, #tpu.memory_space<vmem>>, vector<1x1x16x8xbf16>
    %71 = vector.shape_cast %70 : vector<1x1x16x8xbf16> to vector<16x8xbf16>
    %c208 = arith.constant 208 : index
    %c0_56 = arith.constant 0 : index
    %72 = vector.load %arg6[%c208, %c0_56] : memref<256x8xbf16, #tpu.memory_space<vmem>>, vector<16x8xbf16>
    tpu.vector_store %arg6[%c208, %c0_56], %71 {strides = array<i32>} : memref<256x8xbf16, #tpu.memory_space<vmem>>, vector<16x8xbf16>,
    %c14_i32 = arith.constant 14 : i32
    %73 = arith.addi %2, %c14_i32 : i32
    %c0_57 = arith.constant 0 : index
    %74 = arith.index_cast %73 : i32 to index
    %c0_58 = arith.constant 0 : index
    %c0_59 = arith.constant 0 : index
    %75 = vector.load %arg2[%c0_57, %74, %c0_58, %c0_59] : memref<1x18x18x8xbf16, #tpu.memory_space<vmem>>, vector<1x1x16x8xbf16>
    %76 = vector.shape_cast %75 : vector<1x1x16x8xbf16> to vector<16x8xbf16>
    %c224 = arith.constant 224 : index
    %c0_60 = arith.constant 0 : index
    %77 = vector.load %arg6[%c224, %c0_60] : memref<256x8xbf16, #tpu.memory_space<vmem>>, vector<16x8xbf16>
    tpu.vector_store %arg6[%c224, %c0_60], %76 {strides = array<i32>} : memref<256x8xbf16, #tpu.memory_space<vmem>>, vector<16x8xbf16>,
    %c15_i32 = arith.constant 15 : i32
    %78 = arith.addi %2, %c15_i32 : i32
    %c0_61 = arith.constant 0 : index
    %79 = arith.index_cast %78 : i32 to index
    %c0_62 = arith.constant 0 : index
    %c0_63 = arith.constant 0 : index
    %80 = vector.load %arg2[%c0_61, %79, %c0_62, %c0_63] : memref<1x18x18x8xbf16, #tpu.memory_space<vmem>>, vector<1x1x16x8xbf16>
    %81 = vector.shape_cast %80 : vector<1x1x16x8xbf16> to vector<16x8xbf16>
    %c240 = arith.constant 240 : index
    %c0_64 = arith.constant 0 : index
    %82 = vector.load %arg6[%c240, %c0_64] : memref<256x8xbf16, #tpu.memory_space<vmem>>, vector<16x8xbf16>
    tpu.vector_store %arg6[%c240, %c0_64], %81 {strides = array<i32>} : memref<256x8xbf16, #tpu.memory_space<vmem>>, vector<16x8xbf16>,
    %c0_65 = arith.constant 0 : index
    %c0_66 = arith.constant 0 : index
    %83 = vector.load %arg6[%c0_65, %c0_66] : memref<256x8xbf16, #tpu.memory_space<vmem>>, vector<256x8xbf16>
    %c0_67 = arith.constant 0 : index
    %c0_68 = arith.constant 0 : index
    %84 = vector.load %arg3[%c0_67, %c0_68] : memref<72x64xbf16, #tpu.memory_space<vmem>>, vector<8x64xbf16>
    %cst_69 = arith.constant dense<0.000000e+00> : vector<256x64xf32>
    %85 = tpu.matmul %83, %84, %cst_69 {dimension_numbers = #tpu.dot_dimension_numbers<[1], [0], [0], [1], [0, 0, 1, 1], [], []>} : vector<256x8xbf16>, vector<8x64xbf16>, vector<256x64xf32> -> vector<256x64xf32>
    %86 = arith.addf %1, %85 : vector<256x64xf32>
    %c0_i32_70 = arith.constant 0 : i32
    %87 = arith.addi %2, %c0_i32_70 : i32
    %c0_71 = arith.constant 0 : index
    %88 = arith.index_cast %87 : i32 to index
    %c1 = arith.constant 1 : index
    %c0_72 = arith.constant 0 : index
    %89 = vector.load %arg2[%c0_71, %88, %c1, %c0_72] : memref<1x18x18x8xbf16, #tpu.memory_space<vmem>>, vector<1x1x16x8xbf16>
    %90 = vector.shape_cast %89 : vector<1x1x16x8xbf16> to vector<16x8xbf16>
    %c0_73 = arith.constant 0 : index
    %c0_74 = arith.constant 0 : index
    %91 = vector.load %arg6[%c0_73, %c0_74] : memref<256x8xbf16, #tpu.memory_space<vmem>>, vector<16x8xbf16>
    tpu.vector_store %arg6[%c0_73, %c0_74], %90 {strides = array<i32>} : memref<256x8xbf16, #tpu.memory_space<vmem>>, vector<16x8xbf16>,
    %c1_i32_75 = arith.constant 1 : i32
    %92 = arith.addi %2, %c1_i32_75 : i32
    %c0_76 = arith.constant 0 : index
    %93 = arith.index_cast %92 : i32 to index
    %c1_77 = arith.constant 1 : index
    %c0_78 = arith.constant 0 : index
    %94 = vector.load %arg2[%c0_76, %93, %c1_77, %c0_78] : memref<1x18x18x8xbf16, #tpu.memory_space<vmem>>, vector<1x1x16x8xbf16>
    %95 = vector.shape_cast %94 : vector<1x1x16x8xbf16> to vector<16x8xbf16>
    %c16_79 = arith.constant 16 : index
    %c0_80 = arith.constant 0 : index
    %96 = vector.load %arg6[%c16_79, %c0_80] : memref<256x8xbf16, #tpu.memory_space<vmem>>, vector<16x8xbf16>
    tpu.vector_store %arg6[%c16_79, %c0_80], %95 {strides = array<i32>} : memref<256x8xbf16, #tpu.memory_space<vmem>>, vector<16x8xbf16>,
    %c2_i32_81 = arith.constant 2 : i32
    %97 = arith.addi %2, %c2_i32_81 : i32
    %c0_82 = arith.constant 0 : index
    %98 = arith.index_cast %97 : i32 to index
    %c1_83 = arith.constant 1 : index
    %c0_84 = arith.constant 0 : index
    %99 = vector.load %arg2[%c0_82, %98, %c1_83, %c0_84] : memref<1x18x18x8xbf16, #tpu.memory_space<vmem>>, vector<1x1x16x8xbf16>
    %100 = vector.shape_cast %99 : vector<1x1x16x8xbf16> to vector<16x8xbf16>
    %c32_85 = arith.constant 32 : index
    %c0_86 = arith.constant 0 : index
    %101 = vector.load %arg6[%c32_85, %c0_86] : memref<256x8xbf16, #tpu.memory_space<vmem>>, vector<16x8xbf16>
    tpu.vector_store %arg6[%c32_85, %c0_86], %100 {strides = array<i32>} : memref<256x8xbf16, #tpu.memory_space<vmem>>, vector<16x8xbf16>,
    %c3_i32_87 = arith.constant 3 : i32
    %102 = arith.addi %2, %c3_i32_87 : i32
    %c0_88 = arith.constant 0 : index
    %103 = arith.index_cast %102 : i32 to index
    %c1_89 = arith.constant 1 : index
    %c0_90 = arith.constant 0 : index
    %104 = vector.load %arg2[%c0_88, %103, %c1_89, %c0_90] : memref<1x18x18x8xbf16, #tpu.memory_space<vmem>>, vector<1x1x16x8xbf16>
    %105 = vector.shape_cast %104 : vector<1x1x16x8xbf16> to vector<16x8xbf16>
    %c48_91 = arith.constant 48 : index
    %c0_92 = arith.constant 0 : index
    %106 = vector.load %arg6[%c48_91, %c0_92] : memref<256x8xbf16, #tpu.memory_space<vmem>>, vector<16x8xbf16>
    tpu.vector_store %arg6[%c48_91, %c0_92], %105 {strides = array<i32>} : memref<256x8xbf16, #tpu.memory_space<vmem>>, vector<16x8xbf16>,
    %c4_i32_93 = arith.constant 4 : i32
    %107 = arith.addi %2, %c4_i32_93 : i32
    %c0_94 = arith.constant 0 : index
    %108 = arith.index_cast %107 : i32 to index
    %c1_95 = arith.constant 1 : index
    %c0_96 = arith.constant 0 : index
    %109 = vector.load %arg2[%c0_94, %108, %c1_95, %c0_96] : memref<1x18x18x8xbf16, #tpu.memory_space<vmem>>, vector<1x1x16x8xbf16>
    %110 = vector.shape_cast %109 : vector<1x1x16x8xbf16> to vector<16x8xbf16>
    %c64_97 = arith.constant 64 : index
    %c0_98 = arith.constant 0 : index
    %111 = vector.load %arg6[%c64_97, %c0_98] : memref<256x8xbf16, #tpu.memory_space<vmem>>, vector<16x8xbf16>
    tpu.vector_store %arg6[%c64_97, %c0_98], %110 {strides = array<i32>} : memref<256x8xbf16, #tpu.memory_space<vmem>>, vector<16x8xbf16>,
    %c5_i32_99 = arith.constant 5 : i32
    %112 = arith.addi %2, %c5_i32_99 : i32
    %c0_100 = arith.constant 0 : index
    %113 = arith.index_cast %112 : i32 to index
    %c1_101 = arith.constant 1 : index
    %c0_102 = arith.constant 0 : index
    %114 = vector.load %arg2[%c0_100, %113, %c1_101, %c0_102] : memref<1x18x18x8xbf16, #tpu.memory_space<vmem>>, vector<1x1x16x8xbf16>
    %115 = vector.shape_cast %114 : vector<1x1x16x8xbf16> to vector<16x8xbf16>
    %c80_103 = arith.constant 80 : index
    %c0_104 = arith.constant 0 : index
    %116 = vector.load %arg6[%c80_103, %c0_104] : memref<256x8xbf16, #tpu.memory_space<vmem>>, vector<16x8xbf16>
    tpu.vector_store %arg6[%c80_103, %c0_104], %115 {strides = array<i32>} : memref<256x8xbf16, #tpu.memory_space<vmem>>, vector<16x8xbf16>,
    %c6_i32_105 = arith.constant 6 : i32
    %117 = arith.addi %2, %c6_i32_105 : i32
    %c0_106 = arith.constant 0 : index
    %118 = arith.index_cast %117 : i32 to index
    %c1_107 = arith.constant 1 : index
    %c0_108 = arith.constant 0 : index
    %119 = vector.load %arg2[%c0_106, %118, %c1_107, %c0_108] : memref<1x18x18x8xbf16, #tpu.memory_space<vmem>>, vector<1x1x16x8xbf16>
    %120 = vector.shape_cast %119 : vector<1x1x16x8xbf16> to vector<16x8xbf16>
    %c96_109 = arith.constant 96 : index
    %c0_110 = arith.constant 0 : index
    %121 = vector.load %arg6[%c96_109, %c0_110] : memref<256x8xbf16, #tpu.memory_space<vmem>>, vector<16x8xbf16>
    tpu.vector_store %arg6[%c96_109, %c0_110], %120 {strides = array<i32>} : memref<256x8xbf16, #tpu.memory_space<vmem>>, vector<16x8xbf16>,
    %c7_i32_111 = arith.constant 7 : i32
    %122 = arith.addi %2, %c7_i32_111 : i32
    %c0_112 = arith.constant 0 : index
    %123 = arith.index_cast %122 : i32 to index
    %c1_113 = arith.constant 1 : index
    %c0_114 = arith.constant 0 : index
    %124 = vector.load %arg2[%c0_112, %123, %c1_113, %c0_114] : memref<1x18x18x8xbf16, #tpu.memory_space<vmem>>, vector<1x1x16x8xbf16>
    %125 = vector.shape_cast %124 : vector<1x1x16x8xbf16> to vector<16x8xbf16>
    %c112_115 = arith.constant 112 : index
    %c0_116 = arith.constant 0 : index
    %126 = vector.load %arg6[%c112_115, %c0_116] : memref<256x8xbf16, #tpu.memory_space<vmem>>, vector<16x8xbf16>
    tpu.vector_store %arg6[%c112_115, %c0_116], %125 {strides = array<i32>} : memref<256x8xbf16, #tpu.memory_space<vmem>>, vector<16x8xbf16>,
    %c8_i32_117 = arith.constant 8 : i32
    %127 = arith.addi %2, %c8_i32_117 : i32
    %c0_118 = arith.constant 0 : index
    %128 = arith.index_cast %127 : i32 to index
    %c1_119 = arith.constant 1 : index
    %c0_120 = arith.constant 0 : index
    %129 = vector.load %arg2[%c0_118, %128, %c1_119, %c0_120] : memref<1x18x18x8xbf16, #tpu.memory_space<vmem>>, vector<1x1x16x8xbf16>
    %130 = vector.shape_cast %129 : vector<1x1x16x8xbf16> to vector<16x8xbf16>
    %c128_121 = arith.constant 128 : index
    %c0_122 = arith.constant 0 : index
    %131 = vector.load %arg6[%c128_121, %c0_122] : memref<256x8xbf16, #tpu.memory_space<vmem>>, vector<16x8xbf16>
    tpu.vector_store %arg6[%c128_121, %c0_122], %130 {strides = array<i32>} : memref<256x8xbf16, #tpu.memory_space<vmem>>, vector<16x8xbf16>,
    %c9_i32_123 = arith.constant 9 : i32
    %132 = arith.addi %2, %c9_i32_123 : i32
    %c0_124 = arith.constant 0 : index
    %133 = arith.index_cast %132 : i32 to index
    %c1_125 = arith.constant 1 : index
    %c0_126 = arith.constant 0 : index
    %134 = vector.load %arg2[%c0_124, %133, %c1_125, %c0_126] : memref<1x18x18x8xbf16, #tpu.memory_space<vmem>>, vector<1x1x16x8xbf16>
    %135 = vector.shape_cast %134 : vector<1x1x16x8xbf16> to vector<16x8xbf16>
    %c144_127 = arith.constant 144 : index
    %c0_128 = arith.constant 0 : index
    %136 = vector.load %arg6[%c144_127, %c0_128] : memref<256x8xbf16, #tpu.memory_space<vmem>>, vector<16x8xbf16>
    tpu.vector_store %arg6[%c144_127, %c0_128], %135 {strides = array<i32>} : memref<256x8xbf16, #tpu.memory_space<vmem>>, vector<16x8xbf16>,
    %c10_i32_129 = arith.constant 10 : i32
    %137 = arith.addi %2, %c10_i32_129 : i32
    %c0_130 = arith.constant 0 : index
    %138 = arith.index_cast %137 : i32 to index
    %c1_131 = arith.constant 1 : index
    %c0_132 = arith.constant 0 : index
    %139 = vector.load %arg2[%c0_130, %138, %c1_131, %c0_132] : memref<1x18x18x8xbf16, #tpu.memory_space<vmem>>, vector<1x1x16x8xbf16>
    %140 = vector.shape_cast %139 : vector<1x1x16x8xbf16> to vector<16x8xbf16>
    %c160_133 = arith.constant 160 : index
    %c0_134 = arith.constant 0 : index
    %141 = vector.load %arg6[%c160_133, %c0_134] : memref<256x8xbf16, #tpu.memory_space<vmem>>, vector<16x8xbf16>
    tpu.vector_store %arg6[%c160_133, %c0_134], %140 {strides = array<i32>} : memref<256x8xbf16, #tpu.memory_space<vmem>>, vector<16x8xbf16>,
    %c11_i32_135 = arith.constant 11 : i32
    %142 = arith.addi %2, %c11_i32_135 : i32
    %c0_136 = arith.constant 0 : index
    %143 = arith.index_cast %142 : i32 to index
    %c1_137 = arith.constant 1 : index
    %c0_138 = arith.constant 0 : index
    %144 = vector.load %arg2[%c0_136, %143, %c1_137, %c0_138] : memref<1x18x18x8xbf16, #tpu.memory_space<vmem>>, vector<1x1x16x8xbf16>
    %145 = vector.shape_cast %144 : vector<1x1x16x8xbf16> to vector<16x8xbf16>
    %c176_139 = arith.constant 176 : index
    %c0_140 = arith.constant 0 : index
    %146 = vector.load %arg6[%c176_139, %c0_140] : memref<256x8xbf16, #tpu.memory_space<vmem>>, vector<16x8xbf16>
    tpu.vector_store %arg6[%c176_139, %c0_140], %145 {strides = array<i32>} : memref<256x8xbf16, #tpu.memory_space<vmem>>, vector<16x8xbf16>,
    %c12_i32_141 = arith.constant 12 : i32
    %147 = arith.addi %2, %c12_i32_141 : i32
    %c0_142 = arith.constant 0 : index
    %148 = arith.index_cast %147 : i32 to index
    %c1_143 = arith.constant 1 : index
    %c0_144 = arith.constant 0 : index
    %149 = vector.load %arg2[%c0_142, %148, %c1_143, %c0_144] : memref<1x18x18x8xbf16, #tpu.memory_space<vmem>>, vector<1x1x16x8xbf16>
    %150 = vector.shape_cast %149 : vector<1x1x16x8xbf16> to vector<16x8xbf16>
    %c192_145 = arith.constant 192 : index
    %c0_146 = arith.constant 0 : index
    %151 = vector.load %arg6[%c192_145, %c0_146] : memref<256x8xbf16, #tpu.memory_space<vmem>>, vector<16x8xbf16>
    tpu.vector_store %arg6[%c192_145, %c0_146], %150 {strides = array<i32>} : memref<256x8xbf16, #tpu.memory_space<vmem>>, vector<16x8xbf16>,
    %c13_i32_147 = arith.constant 13 : i32
    %152 = arith.addi %2, %c13_i32_147 : i32
    %c0_148 = arith.constant 0 : index
    %153 = arith.index_cast %152 : i32 to index
    %c1_149 = arith.constant 1 : index
    %c0_150 = arith.constant 0 : index
    %154 = vector.load %arg2[%c0_148, %153, %c1_149, %c0_150] : memref<1x18x18x8xbf16, #tpu.memory_space<vmem>>, vector<1x1x16x8xbf16>
    %155 = vector.shape_cast %154 : vector<1x1x16x8xbf16> to vector<16x8xbf16>
    %c208_151 = arith.constant 208 : index
    %c0_152 = arith.constant 0 : index
    %156 = vector.load %arg6[%c208_151, %c0_152] : memref<256x8xbf16, #tpu.memory_space<vmem>>, vector<16x8xbf16>
    tpu.vector_store %arg6[%c208_151, %c0_152], %155 {strides = array<i32>} : memref<256x8xbf16, #tpu.memory_space<vmem>>, vector<16x8xbf16>,
    %c14_i32_153 = arith.constant 14 : i32
    %157 = arith.addi %2, %c14_i32_153 : i32
    %c0_154 = arith.constant 0 : index
    %158 = arith.index_cast %157 : i32 to index
    %c1_155 = arith.constant 1 : index
    %c0_156 = arith.constant 0 : index
    %159 = vector.load %arg2[%c0_154, %158, %c1_155, %c0_156] : memref<1x18x18x8xbf16, #tpu.memory_space<vmem>>, vector<1x1x16x8xbf16>
    %160 = vector.shape_cast %159 : vector<1x1x16x8xbf16> to vector<16x8xbf16>
    %c224_157 = arith.constant 224 : index
    %c0_158 = arith.constant 0 : index
    %161 = vector.load %arg6[%c224_157, %c0_158] : memref<256x8xbf16, #tpu.memory_space<vmem>>, vector<16x8xbf16>
    tpu.vector_store %arg6[%c224_157, %c0_158], %160 {strides = array<i32>} : memref<256x8xbf16, #tpu.memory_space<vmem>>, vector<16x8xbf16>,
    %c15_i32_159 = arith.constant 15 : i32
    %162 = arith.addi %2, %c15_i32_159 : i32
    %c0_160 = arith.constant 0 : index
    %163 = arith.index_cast %162 : i32 to index
    %c1_161 = arith.constant 1 : index
    %c0_162 = arith.constant 0 : index
    %164 = vector.load %arg2[%c0_160, %163, %c1_161, %c0_162] : memref<1x18x18x8xbf16, #tpu.memory_space<vmem>>, vector<1x1x16x8xbf16>
    %165 = vector.shape_cast %164 : vector<1x1x16x8xbf16> to vector<16x8xbf16>
    %c240_163 = arith.constant 240 : index
    %c0_164 = arith.constant 0 : index
    %166 = vector.load %arg6[%c240_163, %c0_164] : memref<256x8xbf16, #tpu.memory_space<vmem>>, vector<16x8xbf16>
    tpu.vector_store %arg6[%c240_163, %c0_164], %165 {strides = array<i32>} : memref<256x8xbf16, #tpu.memory_space<vmem>>, vector<16x8xbf16>,
    %c0_165 = arith.constant 0 : index
    %c0_166 = arith.constant 0 : index
    %167 = vector.load %arg6[%c0_165, %c0_166] : memref<256x8xbf16, #tpu.memory_space<vmem>>, vector<256x8xbf16>
    %c8 = arith.constant 8 : index
    %c0_167 = arith.constant 0 : index
    %168 = vector.load %arg3[%c8, %c0_167] : memref<72x64xbf16, #tpu.memory_space<vmem>>, vector<8x64xbf16>
    %cst_168 = arith.constant dense<0.000000e+00> : vector<256x64xf32>
    %169 = tpu.matmul %167, %168, %cst_168 {dimension_numbers = #tpu.dot_dimension_numbers<[1], [0], [0], [1], [0, 0, 1, 1], [], []>} : vector<256x8xbf16>, vector<8x64xbf16>, vector<256x64xf32> -> vector<256x64xf32>
    %170 = arith.addf %86, %169 : vector<256x64xf32>
    %c0_i32_169 = arith.constant 0 : i32
    %171 = arith.addi %2, %c0_i32_169 : i32
    %c0_170 = arith.constant 0 : index
    %172 = arith.index_cast %171 : i32 to index
    %c2 = arith.constant 2 : index
    %c0_171 = arith.constant 0 : index
    %173 = vector.load %arg2[%c0_170, %172, %c2, %c0_171] : memref<1x18x18x8xbf16, #tpu.memory_space<vmem>>, vector<1x1x16x8xbf16>
    %174 = vector.shape_cast %173 : vector<1x1x16x8xbf16> to vector<16x8xbf16>
    %c0_172 = arith.constant 0 : index
    %c0_173 = arith.constant 0 : index
    %175 = vector.load %arg6[%c0_172, %c0_173] : memref<256x8xbf16, #tpu.memory_space<vmem>>, vector<16x8xbf16>
    tpu.vector_store %arg6[%c0_172, %c0_173], %174 {strides = array<i32>} : memref<256x8xbf16, #tpu.memory_space<vmem>>, vector<16x8xbf16>,
    %c1_i32_174 = arith.constant 1 : i32
    %176 = arith.addi %2, %c1_i32_174 : i32
    %c0_175 = arith.constant 0 : index
    %177 = arith.index_cast %176 : i32 to index
    %c2_176 = arith.constant 2 : index
    %c0_177 = arith.constant 0 : index
    %178 = vector.load %arg2[%c0_175, %177, %c2_176, %c0_177] : memref<1x18x18x8xbf16, #tpu.memory_space<vmem>>, vector<1x1x16x8xbf16>
    %179 = vector.shape_cast %178 : vector<1x1x16x8xbf16> to vector<16x8xbf16>
    %c16_178 = arith.constant 16 : index
    %c0_179 = arith.constant 0 : index
    %180 = vector.load %arg6[%c16_178, %c0_179] : memref<256x8xbf16, #tpu.memory_space<vmem>>, vector<16x8xbf16>
    tpu.vector_store %arg6[%c16_178, %c0_179], %179 {strides = array<i32>} : memref<256x8xbf16, #tpu.memory_space<vmem>>, vector<16x8xbf16>,
    %c2_i32_180 = arith.constant 2 : i32
    %181 = arith.addi %2, %c2_i32_180 : i32
    %c0_181 = arith.constant 0 : index
    %182 = arith.index_cast %181 : i32 to index
    %c2_182 = arith.constant 2 : index
    %c0_183 = arith.constant 0 : index
    %183 = vector.load %arg2[%c0_181, %182, %c2_182, %c0_183] : memref<1x18x18x8xbf16, #tpu.memory_space<vmem>>, vector<1x1x16x8xbf16>
    %184 = vector.shape_cast %183 : vector<1x1x16x8xbf16> to vector<16x8xbf16>
    %c32_184 = arith.constant 32 : index
    %c0_185 = arith.constant 0 : index
    %185 = vector.load %arg6[%c32_184, %c0_185] : memref<256x8xbf16, #tpu.memory_space<vmem>>, vector<16x8xbf16>
    tpu.vector_store %arg6[%c32_184, %c0_185], %184 {strides = array<i32>} : memref<256x8xbf16, #tpu.memory_space<vmem>>, vector<16x8xbf16>,
    %c3_i32_186 = arith.constant 3 : i32
    %186 = arith.addi %2, %c3_i32_186 : i32
    %c0_187 = arith.constant 0 : index
    %187 = arith.index_cast %186 : i32 to index
    %c2_188 = arith.constant 2 : index
    %c0_189 = arith.constant 0 : index
    %188 = vector.load %arg2[%c0_187, %187, %c2_188, %c0_189] : memref<1x18x18x8xbf16, #tpu.memory_space<vmem>>, vector<1x1x16x8xbf16>
    %189 = vector.shape_cast %188 : vector<1x1x16x8xbf16> to vector<16x8xbf16>
    %c48_190 = arith.constant 48 : index
    %c0_191 = arith.constant 0 : index
    %190 = vector.load %arg6[%c48_190, %c0_191] : memref<256x8xbf16, #tpu.memory_space<vmem>>, vector<16x8xbf16>
    tpu.vector_store %arg6[%c48_190, %c0_191], %189 {strides = array<i32>} : memref<256x8xbf16, #tpu.memory_space<vmem>>, vector<16x8xbf16>,
    %c4_i32_192 = arith.constant 4 : i32
    %191 = arith.addi %2, %c4_i32_192 : i32
    %c0_193 = arith.constant 0 : index
    %192 = arith.index_cast %191 : i32 to index
    %c2_194 = arith.constant 2 : index
    %c0_195 = arith.constant 0 : index
    %193 = vector.load %arg2[%c0_193, %192, %c2_194, %c0_195] : memref<1x18x18x8xbf16, #tpu.memory_space<vmem>>, vector<1x1x16x8xbf16>
    %194 = vector.shape_cast %193 : vector<1x1x16x8xbf16> to vector<16x8xbf16>
    %c64_196 = arith.constant 64 : index
    %c0_197 = arith.constant 0 : index
    %195 = vector.load %arg6[%c64_196, %c0_197] : memref<256x8xbf16, #tpu.memory_space<vmem>>, vector<16x8xbf16>
    tpu.vector_store %arg6[%c64_196, %c0_197], %194 {strides = array<i32>} : memref<256x8xbf16, #tpu.memory_space<vmem>>, vector<16x8xbf16>,
    %c5_i32_198 = arith.constant 5 : i32
    %196 = arith.addi %2, %c5_i32_198 : i32
    %c0_199 = arith.constant 0 : index
    %197 = arith.index_cast %196 : i32 to index
    %c2_200 = arith.constant 2 : index
    %c0_201 = arith.constant 0 : index
    %198 = vector.load %arg2[%c0_199, %197, %c2_200, %c0_201] : memref<1x18x18x8xbf16, #tpu.memory_space<vmem>>, vector<1x1x16x8xbf16>
    %199 = vector.shape_cast %198 : vector<1x1x16x8xbf16> to vector<16x8xbf16>
    %c80_202 = arith.constant 80 : index
    %c0_203 = arith.constant 0 : index
    %200 = vector.load %arg6[%c80_202, %c0_203] : memref<256x8xbf16, #tpu.memory_space<vmem>>, vector<16x8xbf16>
    tpu.vector_store %arg6[%c80_202, %c0_203], %199 {strides = array<i32>} : memref<256x8xbf16, #tpu.memory_space<vmem>>, vector<16x8xbf16>,
    %c6_i32_204 = arith.constant 6 : i32
    %201 = arith.addi %2, %c6_i32_204 : i32
    %c0_205 = arith.constant 0 : index
    %202 = arith.index_cast %201 : i32 to index
    %c2_206 = arith.constant 2 : index
    %c0_207 = arith.constant 0 : index
    %203 = vector.load %arg2[%c0_205, %202, %c2_206, %c0_207] : memref<1x18x18x8xbf16, #tpu.memory_space<vmem>>, vector<1x1x16x8xbf16>
    %204 = vector.shape_cast %203 : vector<1x1x16x8xbf16> to vector<16x8xbf16>
    %c96_208 = arith.constant 96 : index
    %c0_209 = arith.constant 0 : index
    %205 = vector.load %arg6[%c96_208, %c0_209] : memref<256x8xbf16, #tpu.memory_space<vmem>>, vector<16x8xbf16>
    tpu.vector_store %arg6[%c96_208, %c0_209], %204 {strides = array<i32>} : memref<256x8xbf16, #tpu.memory_space<vmem>>, vector<16x8xbf16>,
    %c7_i32_210 = arith.constant 7 : i32
    %206 = arith.addi %2, %c7_i32_210 : i32
    %c0_211 = arith.constant 0 : index
    %207 = arith.index_cast %206 : i32 to index
    %c2_212 = arith.constant 2 : index
    %c0_213 = arith.constant 0 : index
    %208 = vector.load %arg2[%c0_211, %207, %c2_212, %c0_213] : memref<1x18x18x8xbf16, #tpu.memory_space<vmem>>, vector<1x1x16x8xbf16>
    %209 = vector.shape_cast %208 : vector<1x1x16x8xbf16> to vector<16x8xbf16>
    %c112_214 = arith.constant 112 : index
    %c0_215 = arith.constant 0 : index
    %210 = vector.load %arg6[%c112_214, %c0_215] : memref<256x8xbf16, #tpu.memory_space<vmem>>, vector<16x8xbf16>
    tpu.vector_store %arg6[%c112_214, %c0_215], %209 {strides = array<i32>} : memref<256x8xbf16, #tpu.memory_space<vmem>>, vector<16x8xbf16>,
    %c8_i32_216 = arith.constant 8 : i32
    %211 = arith.addi %2, %c8_i32_216 : i32
    %c0_217 = arith.constant 0 : index
    %212 = arith.index_cast %211 : i32 to index
    %c2_218 = arith.constant 2 : index
    %c0_219 = arith.constant 0 : index
    %213 = vector.load %arg2[%c0_217, %212, %c2_218, %c0_219] : memref<1x18x18x8xbf16, #tpu.memory_space<vmem>>, vector<1x1x16x8xbf16>
    %214 = vector.shape_cast %213 : vector<1x1x16x8xbf16> to vector<16x8xbf16>
    %c128_220 = arith.constant 128 : index
    %c0_221 = arith.constant 0 : index
    %215 = vector.load %arg6[%c128_220, %c0_221] : memref<256x8xbf16, #tpu.memory_space<vmem>>, vector<16x8xbf16>
    tpu.vector_store %arg6[%c128_220, %c0_221], %214 {strides = array<i32>} : memref<256x8xbf16, #tpu.memory_space<vmem>>, vector<16x8xbf16>,
    %c9_i32_222 = arith.constant 9 : i32
    %216 = arith.addi %2, %c9_i32_222 : i32
    %c0_223 = arith.constant 0 : index
    %217 = arith.index_cast %216 : i32 to index
    %c2_224 = arith.constant 2 : index
    %c0_225 = arith.constant 0 : index
    %218 = vector.load %arg2[%c0_223, %217, %c2_224, %c0_225] : memref<1x18x18x8xbf16, #tpu.memory_space<vmem>>, vector<1x1x16x8xbf16>
    %219 = vector.shape_cast %218 : vector<1x1x16x8xbf16> to vector<16x8xbf16>
    %c144_226 = arith.constant 144 : index
    %c0_227 = arith.constant 0 : index
    %220 = vector.load %arg6[%c144_226, %c0_227] : memref<256x8xbf16, #tpu.memory_space<vmem>>, vector<16x8xbf16>
    tpu.vector_store %arg6[%c144_226, %c0_227], %219 {strides = array<i32>} : memref<256x8xbf16, #tpu.memory_space<vmem>>, vector<16x8xbf16>,
    %c10_i32_228 = arith.constant 10 : i32
    %221 = arith.addi %2, %c10_i32_228 : i32
    %c0_229 = arith.constant 0 : index
    %222 = arith.index_cast %221 : i32 to index
    %c2_230 = arith.constant 2 : index
    %c0_231 = arith.constant 0 : index
    %223 = vector.load %arg2[%c0_229, %222, %c2_230, %c0_231] : memref<1x18x18x8xbf16, #tpu.memory_space<vmem>>, vector<1x1x16x8xbf16>
    %224 = vector.shape_cast %223 : vector<1x1x16x8xbf16> to vector<16x8xbf16>
    %c160_232 = arith.constant 160 : index
    %c0_233 = arith.constant 0 : index
    %225 = vector.load %arg6[%c160_232, %c0_233] : memref<256x8xbf16, #tpu.memory_space<vmem>>, vector<16x8xbf16>
    tpu.vector_store %arg6[%c160_232, %c0_233], %224 {strides = array<i32>} : memref<256x8xbf16, #tpu.memory_space<vmem>>, vector<16x8xbf16>,
    %c11_i32_234 = arith.constant 11 : i32
    %226 = arith.addi %2, %c11_i32_234 : i32
    %c0_235 = arith.constant 0 : index
    %227 = arith.index_cast %226 : i32 to index
    %c2_236 = arith.constant 2 : index
    %c0_237 = arith.constant 0 : index
    %228 = vector.load %arg2[%c0_235, %227, %c2_236, %c0_237] : memref<1x18x18x8xbf16, #tpu.memory_space<vmem>>, vector<1x1x16x8xbf16>
    %229 = vector.shape_cast %228 : vector<1x1x16x8xbf16> to vector<16x8xbf16>
    %c176_238 = arith.constant 176 : index
    %c0_239 = arith.constant 0 : index
    %230 = vector.load %arg6[%c176_238, %c0_239] : memref<256x8xbf16, #tpu.memory_space<vmem>>, vector<16x8xbf16>
    tpu.vector_store %arg6[%c176_238, %c0_239], %229 {strides = array<i32>} : memref<256x8xbf16, #tpu.memory_space<vmem>>, vector<16x8xbf16>,
    %c12_i32_240 = arith.constant 12 : i32
    %231 = arith.addi %2, %c12_i32_240 : i32
    %c0_241 = arith.constant 0 : index
    %232 = arith.index_cast %231 : i32 to index
    %c2_242 = arith.constant 2 : index
    %c0_243 = arith.constant 0 : index
    %233 = vector.load %arg2[%c0_241, %232, %c2_242, %c0_243] : memref<1x18x18x8xbf16, #tpu.memory_space<vmem>>, vector<1x1x16x8xbf16>
    %234 = vector.shape_cast %233 : vector<1x1x16x8xbf16> to vector<16x8xbf16>
    %c192_244 = arith.constant 192 : index
    %c0_245 = arith.constant 0 : index
    %235 = vector.load %arg6[%c192_244, %c0_245] : memref<256x8xbf16, #tpu.memory_space<vmem>>, vector<16x8xbf16>
    tpu.vector_store %arg6[%c192_244, %c0_245], %234 {strides = array<i32>} : memref<256x8xbf16, #tpu.memory_space<vmem>>, vector<16x8xbf16>,
    %c13_i32_246 = arith.constant 13 : i32
    %236 = arith.addi %2, %c13_i32_246 : i32
    %c0_247 = arith.constant 0 : index
    %237 = arith.index_cast %236 : i32 to index
    %c2_248 = arith.constant 2 : index
    %c0_249 = arith.constant 0 : index
    %238 = vector.load %arg2[%c0_247, %237, %c2_248, %c0_249] : memref<1x18x18x8xbf16, #tpu.memory_space<vmem>>, vector<1x1x16x8xbf16>
    %239 = vector.shape_cast %238 : vector<1x1x16x8xbf16> to vector<16x8xbf16>
    %c208_250 = arith.constant 208 : index
    %c0_251 = arith.constant 0 : index
    %240 = vector.load %arg6[%c208_250, %c0_251] : memref<256x8xbf16, #tpu.memory_space<vmem>>, vector<16x8xbf16>
    tpu.vector_store %arg6[%c208_250, %c0_251], %239 {strides = array<i32>} : memref<256x8xbf16, #tpu.memory_space<vmem>>, vector<16x8xbf16>,
    %c14_i32_252 = arith.constant 14 : i32
    %241 = arith.addi %2, %c14_i32_252 : i32
    %c0_253 = arith.constant 0 : index
    %242 = arith.index_cast %241 : i32 to index
    %c2_254 = arith.constant 2 : index
    %c0_255 = arith.constant 0 : index
    %243 = vector.load %arg2[%c0_253, %242, %c2_254, %c0_255] : memref<1x18x18x8xbf16, #tpu.memory_space<vmem>>, vector<1x1x16x8xbf16>
    %244 = vector.shape_cast %243 : vector<1x1x16x8xbf16> to vector<16x8xbf16>
    %c224_256 = arith.constant 224 : index
    %c0_257 = arith.constant 0 : index
    %245 = vector.load %arg6[%c224_256, %c0_257] : memref<256x8xbf16, #tpu.memory_space<vmem>>, vector<16x8xbf16>
    tpu.vector_store %arg6[%c224_256, %c0_257], %244 {strides = array<i32>} : memref<256x8xbf16, #tpu.memory_space<vmem>>, vector<16x8xbf16>,
    %c15_i32_258 = arith.constant 15 : i32
    %246 = arith.addi %2, %c15_i32_258 : i32
    %c0_259 = arith.constant 0 : index
    %247 = arith.index_cast %246 : i32 to index
    %c2_260 = arith.constant 2 : index
    %c0_261 = arith.constant 0 : index
    %248 = vector.load %arg2[%c0_259, %247, %c2_260, %c0_261] : memref<1x18x18x8xbf16, #tpu.memory_space<vmem>>, vector<1x1x16x8xbf16>
    %249 = vector.shape_cast %248 : vector<1x1x16x8xbf16> to vector<16x8xbf16>
    %c240_262 = arith.constant 240 : index
    %c0_263 = arith.constant 0 : index
    %250 = vector.load %arg6[%c240_262, %c0_263] : memref<256x8xbf16, #tpu.memory_space<vmem>>, vector<16x8xbf16>
    tpu.vector_store %arg6[%c240_262, %c0_263], %249 {strides = array<i32>} : memref<256x8xbf16, #tpu.memory_space<vmem>>, vector<16x8xbf16>,
    %c0_264 = arith.constant 0 : index
    %c0_265 = arith.constant 0 : index
    %251 = vector.load %arg6[%c0_264, %c0_265] : memref<256x8xbf16, #tpu.memory_space<vmem>>, vector<256x8xbf16>
    %c16_266 = arith.constant 16 : index
    %c0_267 = arith.constant 0 : index
    %252 = vector.load %arg3[%c16_266, %c0_267] : memref<72x64xbf16, #tpu.memory_space<vmem>>, vector<8x64xbf16>
    %cst_268 = arith.constant dense<0.000000e+00> : vector<256x64xf32>
    %253 = tpu.matmul %251, %252, %cst_268 {dimension_numbers = #tpu.dot_dimension_numbers<[1], [0], [0], [1], [0, 0, 1, 1], [], []>} : vector<256x8xbf16>, vector<8x64xbf16>, vector<256x64xf32> -> vector<256x64xf32>
    %254 = arith.addf %170, %253 : vector<256x64xf32>
    %c1_i32_269 = arith.constant 1 : i32
    %255 = arith.addi %0, %c1_i32_269 : i32
    %c0_i32_270 = arith.constant 0 : i32
    %256 = arith.addi %255, %c0_i32_270 : i32
    %c0_271 = arith.constant 0 : index
    %257 = arith.index_cast %256 : i32 to index
    %c0_272 = arith.constant 0 : index
    %c0_273 = arith.constant 0 : index
    %258 = vector.load %arg2[%c0_271, %257, %c0_272, %c0_273] : memref<1x18x18x8xbf16, #tpu.memory_space<vmem>>, vector<1x1x16x8xbf16>
    %259 = vector.shape_cast %258 : vector<1x1x16x8xbf16> to vector<16x8xbf16>
    %c0_274 = arith.constant 0 : index
    %c0_275 = arith.constant 0 : index
    %260 = vector.load %arg6[%c0_274, %c0_275] : memref<256x8xbf16, #tpu.memory_space<vmem>>, vector<16x8xbf16>
    tpu.vector_store %arg6[%c0_274, %c0_275], %259 {strides = array<i32>} : memref<256x8xbf16, #tpu.memory_space<vmem>>, vector<16x8xbf16>,
    %c1_i32_276 = arith.constant 1 : i32
    %261 = arith.addi %255, %c1_i32_276 : i32
    %c0_277 = arith.constant 0 : index
    %262 = arith.index_cast %261 : i32 to index
    %c0_278 = arith.constant 0 : index
    %c0_279 = arith.constant 0 : index
    %263 = vector.load %arg2[%c0_277, %262, %c0_278, %c0_279] : memref<1x18x18x8xbf16, #tpu.memory_space<vmem>>, vector<1x1x16x8xbf16>
    %264 = vector.shape_cast %263 : vector<1x1x16x8xbf16> to vector<16x8xbf16>
    %c16_280 = arith.constant 16 : index
    %c0_281 = arith.constant 0 : index
    %265 = vector.load %arg6[%c16_280, %c0_281] : memref<256x8xbf16, #tpu.memory_space<vmem>>, vector<16x8xbf16>
    tpu.vector_store %arg6[%c16_280, %c0_281], %264 {strides = array<i32>} : memref<256x8xbf16, #tpu.memory_space<vmem>>, vector<16x8xbf16>,
    %c2_i32_282 = arith.constant 2 : i32
    %266 = arith.addi %255, %c2_i32_282 : i32
    %c0_283 = arith.constant 0 : index
    %267 = arith.index_cast %266 : i32 to index
    %c0_284 = arith.constant 0 : index
    %c0_285 = arith.constant 0 : index
    %268 = vector.load %arg2[%c0_283, %267, %c0_284, %c0_285] : memref<1x18x18x8xbf16, #tpu.memory_space<vmem>>, vector<1x1x16x8xbf16>
    %269 = vector.shape_cast %268 : vector<1x1x16x8xbf16> to vector<16x8xbf16>
    %c32_286 = arith.constant 32 : index
    %c0_287 = arith.constant 0 : index
    %270 = vector.load %arg6[%c32_286, %c0_287] : memref<256x8xbf16, #tpu.memory_space<vmem>>, vector<16x8xbf16>
    tpu.vector_store %arg6[%c32_286, %c0_287], %269 {strides = array<i32>} : memref<256x8xbf16, #tpu.memory_space<vmem>>, vector<16x8xbf16>,
    %c3_i32_288 = arith.constant 3 : i32
    %271 = arith.addi %255, %c3_i32_288 : i32
    %c0_289 = arith.constant 0 : index
    %272 = arith.index_cast %271 : i32 to index
    %c0_290 = arith.constant 0 : index
    %c0_291 = arith.constant 0 : index
    %273 = vector.load %arg2[%c0_289, %272, %c0_290, %c0_291] : memref<1x18x18x8xbf16, #tpu.memory_space<vmem>>, vector<1x1x16x8xbf16>
    %274 = vector.shape_cast %273 : vector<1x1x16x8xbf16> to vector<16x8xbf16>
    %c48_292 = arith.constant 48 : index
    %c0_293 = arith.constant 0 : index
    %275 = vector.load %arg6[%c48_292, %c0_293] : memref<256x8xbf16, #tpu.memory_space<vmem>>, vector<16x8xbf16>
    tpu.vector_store %arg6[%c48_292, %c0_293], %274 {strides = array<i32>} : memref<256x8xbf16, #tpu.memory_space<vmem>>, vector<16x8xbf16>,
    %c4_i32_294 = arith.constant 4 : i32
    %276 = arith.addi %255, %c4_i32_294 : i32
    %c0_295 = arith.constant 0 : index
    %277 = arith.index_cast %276 : i32 to index
    %c0_296 = arith.constant 0 : index
    %c0_297 = arith.constant 0 : index
    %278 = vector.load %arg2[%c0_295, %277, %c0_296, %c0_297] : memref<1x18x18x8xbf16, #tpu.memory_space<vmem>>, vector<1x1x16x8xbf16>
    %279 = vector.shape_cast %278 : vector<1x1x16x8xbf16> to vector<16x8xbf16>
    %c64_298 = arith.constant 64 : index
    %c0_299 = arith.constant 0 : index
    %280 = vector.load %arg6[%c64_298, %c0_299] : memref<256x8xbf16, #tpu.memory_space<vmem>>, vector<16x8xbf16>
    tpu.vector_store %arg6[%c64_298, %c0_299], %279 {strides = array<i32>} : memref<256x8xbf16, #tpu.memory_space<vmem>>, vector<16x8xbf16>,
    %c5_i32_300 = arith.constant 5 : i32
    %281 = arith.addi %255, %c5_i32_300 : i32
    %c0_301 = arith.constant 0 : index
    %282 = arith.index_cast %281 : i32 to index
    %c0_302 = arith.constant 0 : index
    %c0_303 = arith.constant 0 : index
    %283 = vector.load %arg2[%c0_301, %282, %c0_302, %c0_303] : memref<1x18x18x8xbf16, #tpu.memory_space<vmem>>, vector<1x1x16x8xbf16>
    %284 = vector.shape_cast %283 : vector<1x1x16x8xbf16> to vector<16x8xbf16>
    %c80_304 = arith.constant 80 : index
    %c0_305 = arith.constant 0 : index
    %285 = vector.load %arg6[%c80_304, %c0_305] : memref<256x8xbf16, #tpu.memory_space<vmem>>, vector<16x8xbf16>
    tpu.vector_store %arg6[%c80_304, %c0_305], %284 {strides = array<i32>} : memref<256x8xbf16, #tpu.memory_space<vmem>>, vector<16x8xbf16>,
    %c6_i32_306 = arith.constant 6 : i32
    %286 = arith.addi %255, %c6_i32_306 : i32
    %c0_307 = arith.constant 0 : index
    %287 = arith.index_cast %286 : i32 to index
    %c0_308 = arith.constant 0 : index
    %c0_309 = arith.constant 0 : index
    %288 = vector.load %arg2[%c0_307, %287, %c0_308, %c0_309] : memref<1x18x18x8xbf16, #tpu.memory_space<vmem>>, vector<1x1x16x8xbf16>
    %289 = vector.shape_cast %288 : vector<1x1x16x8xbf16> to vector<16x8xbf16>
    %c96_310 = arith.constant 96 : index
    %c0_311 = arith.constant 0 : index
    %290 = vector.load %arg6[%c96_310, %c0_311] : memref<256x8xbf16, #tpu.memory_space<vmem>>, vector<16x8xbf16>
    tpu.vector_store %arg6[%c96_310, %c0_311], %289 {strides = array<i32>} : memref<256x8xbf16, #tpu.memory_space<vmem>>, vector<16x8xbf16>,
    %c7_i32_312 = arith.constant 7 : i32
    %291 = arith.addi %255, %c7_i32_312 : i32
    %c0_313 = arith.constant 0 : index
    %292 = arith.index_cast %291 : i32 to index
    %c0_314 = arith.constant 0 : index
    %c0_315 = arith.constant 0 : index
    %293 = vector.load %arg2[%c0_313, %292, %c0_314, %c0_315] : memref<1x18x18x8xbf16, #tpu.memory_space<vmem>>, vector<1x1x16x8xbf16>
    %294 = vector.shape_cast %293 : vector<1x1x16x8xbf16> to vector<16x8xbf16>
    %c112_316 = arith.constant 112 : index
    %c0_317 = arith.constant 0 : index
    %295 = vector.load %arg6[%c112_316, %c0_317] : memref<256x8xbf16, #tpu.memory_space<vmem>>, vector<16x8xbf16>
    tpu.vector_store %arg6[%c112_316, %c0_317], %294 {strides = array<i32>} : memref<256x8xbf16, #tpu.memory_space<vmem>>, vector<16x8xbf16>,
    %c8_i32_318 = arith.constant 8 : i32
    %296 = arith.addi %255, %c8_i32_318 : i32
    %c0_319 = arith.constant 0 : index
    %297 = arith.index_cast %296 : i32 to index
    %c0_320 = arith.constant 0 : index
    %c0_321 = arith.constant 0 : index
    %298 = vector.load %arg2[%c0_319, %297, %c0_320, %c0_321] : memref<1x18x18x8xbf16, #tpu.memory_space<vmem>>, vector<1x1x16x8xbf16>
    %299 = vector.shape_cast %298 : vector<1x1x16x8xbf16> to vector<16x8xbf16>
    %c128_322 = arith.constant 128 : index
    %c0_323 = arith.constant 0 : index
    %300 = vector.load %arg6[%c128_322, %c0_323] : memref<256x8xbf16, #tpu.memory_space<vmem>>, vector<16x8xbf16>
    tpu.vector_store %arg6[%c128_322, %c0_323], %299 {strides = array<i32>} : memref<256x8xbf16, #tpu.memory_space<vmem>>, vector<16x8xbf16>,
    %c9_i32_324 = arith.constant 9 : i32
    %301 = arith.addi %255, %c9_i32_324 : i32
    %c0_325 = arith.constant 0 : index
    %302 = arith.index_cast %301 : i32 to index
    %c0_326 = arith.constant 0 : index
    %c0_327 = arith.constant 0 : index
    %303 = vector.load %arg2[%c0_325, %302, %c0_326, %c0_327] : memref<1x18x18x8xbf16, #tpu.memory_space<vmem>>, vector<1x1x16x8xbf16>
    %304 = vector.shape_cast %303 : vector<1x1x16x8xbf16> to vector<16x8xbf16>
    %c144_328 = arith.constant 144 : index
    %c0_329 = arith.constant 0 : index
    %305 = vector.load %arg6[%c144_328, %c0_329] : memref<256x8xbf16, #tpu.memory_space<vmem>>, vector<16x8xbf16>
    tpu.vector_store %arg6[%c144_328, %c0_329], %304 {strides = array<i32>} : memref<256x8xbf16, #tpu.memory_space<vmem>>, vector<16x8xbf16>,
    %c10_i32_330 = arith.constant 10 : i32
    %306 = arith.addi %255, %c10_i32_330 : i32
    %c0_331 = arith.constant 0 : index
    %307 = arith.index_cast %306 : i32 to index
    %c0_332 = arith.constant 0 : index
    %c0_333 = arith.constant 0 : index
    %308 = vector.load %arg2[%c0_331, %307, %c0_332, %c0_333] : memref<1x18x18x8xbf16, #tpu.memory_space<vmem>>, vector<1x1x16x8xbf16>
    %309 = vector.shape_cast %308 : vector<1x1x16x8xbf16> to vector<16x8xbf16>
    %c160_334 = arith.constant 160 : index
    %c0_335 = arith.constant 0 : index
    %310 = vector.load %arg6[%c160_334, %c0_335] : memref<256x8xbf16, #tpu.memory_space<vmem>>, vector<16x8xbf16>
    tpu.vector_store %arg6[%c160_334, %c0_335], %309 {strides = array<i32>} : memref<256x8xbf16, #tpu.memory_space<vmem>>, vector<16x8xbf16>,
    %c11_i32_336 = arith.constant 11 : i32
    %311 = arith.addi %255, %c11_i32_336 : i32
    %c0_337 = arith.constant 0 : index
    %312 = arith.index_cast %311 : i32 to index
    %c0_338 = arith.constant 0 : index
    %c0_339 = arith.constant 0 : index
    %313 = vector.load %arg2[%c0_337, %312, %c0_338, %c0_339] : memref<1x18x18x8xbf16, #tpu.memory_space<vmem>>, vector<1x1x16x8xbf16>
    %314 = vector.shape_cast %313 : vector<1x1x16x8xbf16> to vector<16x8xbf16>
    %c176_340 = arith.constant 176 : index
    %c0_341 = arith.constant 0 : index
    %315 = vector.load %arg6[%c176_340, %c0_341] : memref<256x8xbf16, #tpu.memory_space<vmem>>, vector<16x8xbf16>
    tpu.vector_store %arg6[%c176_340, %c0_341], %314 {strides = array<i32>} : memref<256x8xbf16, #tpu.memory_space<vmem>>, vector<16x8xbf16>,
    %c12_i32_342 = arith.constant 12 : i32
    %316 = arith.addi %255, %c12_i32_342 : i32
    %c0_343 = arith.constant 0 : index
    %317 = arith.index_cast %316 : i32 to index
    %c0_344 = arith.constant 0 : index
    %c0_345 = arith.constant 0 : index
    %318 = vector.load %arg2[%c0_343, %317, %c0_344, %c0_345] : memref<1x18x18x8xbf16, #tpu.memory_space<vmem>>, vector<1x1x16x8xbf16>
    %319 = vector.shape_cast %318 : vector<1x1x16x8xbf16> to vector<16x8xbf16>
    %c192_346 = arith.constant 192 : index
    %c0_347 = arith.constant 0 : index
    %320 = vector.load %arg6[%c192_346, %c0_347] : memref<256x8xbf16, #tpu.memory_space<vmem>>, vector<16x8xbf16>
    tpu.vector_store %arg6[%c192_346, %c0_347], %319 {strides = array<i32>} : memref<256x8xbf16, #tpu.memory_space<vmem>>, vector<16x8xbf16>,
    %c13_i32_348 = arith.constant 13 : i32
    %321 = arith.addi %255, %c13_i32_348 : i32
    %c0_349 = arith.constant 0 : index
    %322 = arith.index_cast %321 : i32 to index
    %c0_350 = arith.constant 0 : index
    %c0_351 = arith.constant 0 : index
    %323 = vector.load %arg2[%c0_349, %322, %c0_350, %c0_351] : memref<1x18x18x8xbf16, #tpu.memory_space<vmem>>, vector<1x1x16x8xbf16>
    %324 = vector.shape_cast %323 : vector<1x1x16x8xbf16> to vector<16x8xbf16>
    %c208_352 = arith.constant 208 : index
    %c0_353 = arith.constant 0 : index
    %325 = vector.load %arg6[%c208_352, %c0_353] : memref<256x8xbf16, #tpu.memory_space<vmem>>, vector<16x8xbf16>
    tpu.vector_store %arg6[%c208_352, %c0_353], %324 {strides = array<i32>} : memref<256x8xbf16, #tpu.memory_space<vmem>>, vector<16x8xbf16>,
    %c14_i32_354 = arith.constant 14 : i32
    %326 = arith.addi %255, %c14_i32_354 : i32
    %c0_355 = arith.constant 0 : index
    %327 = arith.index_cast %326 : i32 to index
    %c0_356 = arith.constant 0 : index
    %c0_357 = arith.constant 0 : index
    %328 = vector.load %arg2[%c0_355, %327, %c0_356, %c0_357] : memref<1x18x18x8xbf16, #tpu.memory_space<vmem>>, vector<1x1x16x8xbf16>
    %329 = vector.shape_cast %328 : vector<1x1x16x8xbf16> to vector<16x8xbf16>
    %c224_358 = arith.constant 224 : index
    %c0_359 = arith.constant 0 : index
    %330 = vector.load %arg6[%c224_358, %c0_359] : memref<256x8xbf16, #tpu.memory_space<vmem>>, vector<16x8xbf16>
    tpu.vector_store %arg6[%c224_358, %c0_359], %329 {strides = array<i32>} : memref<256x8xbf16, #tpu.memory_space<vmem>>, vector<16x8xbf16>,
    %c15_i32_360 = arith.constant 15 : i32
    %331 = arith.addi %255, %c15_i32_360 : i32
    %c0_361 = arith.constant 0 : index
    %332 = arith.index_cast %331 : i32 to index
    %c0_362 = arith.constant 0 : index
    %c0_363 = arith.constant 0 : index
    %333 = vector.load %arg2[%c0_361, %332, %c0_362, %c0_363] : memref<1x18x18x8xbf16, #tpu.memory_space<vmem>>, vector<1x1x16x8xbf16>
    %334 = vector.shape_cast %333 : vector<1x1x16x8xbf16> to vector<16x8xbf16>
    %c240_364 = arith.constant 240 : index
    %c0_365 = arith.constant 0 : index
    %335 = vector.load %arg6[%c240_364, %c0_365] : memref<256x8xbf16, #tpu.memory_space<vmem>>, vector<16x8xbf16>
    tpu.vector_store %arg6[%c240_364, %c0_365], %334 {strides = array<i32>} : memref<256x8xbf16, #tpu.memory_space<vmem>>, vector<16x8xbf16>,
    %c0_366 = arith.constant 0 : index
    %c0_367 = arith.constant 0 : index
    %336 = vector.load %arg6[%c0_366, %c0_367] : memref<256x8xbf16, #tpu.memory_space<vmem>>, vector<256x8xbf16>
    %c24 = arith.constant 24 : index
    %c0_368 = arith.constant 0 : index
    %337 = vector.load %arg3[%c24, %c0_368] : memref<72x64xbf16, #tpu.memory_space<vmem>>, vector<8x64xbf16>
    %cst_369 = arith.constant dense<0.000000e+00> : vector<256x64xf32>
    %338 = tpu.matmul %336, %337, %cst_369 {dimension_numbers = #tpu.dot_dimension_numbers<[1], [0], [0], [1], [0, 0, 1, 1], [], []>} : vector<256x8xbf16>, vector<8x64xbf16>, vector<256x64xf32> -> vector<256x64xf32>
    %339 = arith.addf %254, %338 : vector<256x64xf32>
    %c0_i32_370 = arith.constant 0 : i32
    %340 = arith.addi %255, %c0_i32_370 : i32
    %c0_371 = arith.constant 0 : index
    %341 = arith.index_cast %340 : i32 to index
    %c1_372 = arith.constant 1 : index
    %c0_373 = arith.constant 0 : index
    %342 = vector.load %arg2[%c0_371, %341, %c1_372, %c0_373] : memref<1x18x18x8xbf16, #tpu.memory_space<vmem>>, vector<1x1x16x8xbf16>
    %343 = vector.shape_cast %342 : vector<1x1x16x8xbf16> to vector<16x8xbf16>
    %c0_374 = arith.constant 0 : index
    %c0_375 = arith.constant 0 : index
    %344 = vector.load %arg6[%c0_374, %c0_375] : memref<256x8xbf16, #tpu.memory_space<vmem>>, vector<16x8xbf16>
    tpu.vector_store %arg6[%c0_374, %c0_375], %343 {strides = array<i32>} : memref<256x8xbf16, #tpu.memory_space<vmem>>, vector<16x8xbf16>,
    %c1_i32_376 = arith.constant 1 : i32
    %345 = arith.addi %255, %c1_i32_376 : i32
    %c0_377 = arith.constant 0 : index
    %346 = arith.index_cast %345 : i32 to index
    %c1_378 = arith.constant 1 : index
    %c0_379 = arith.constant 0 : index
    %347 = vector.load %arg2[%c0_377, %346, %c1_378, %c0_379] : memref<1x18x18x8xbf16, #tpu.memory_space<vmem>>, vector<1x1x16x8xbf16>
    %348 = vector.shape_cast %347 : vector<1x1x16x8xbf16> to vector<16x8xbf16>
    %c16_380 = arith.constant 16 : index
    %c0_381 = arith.constant 0 : index
    %349 = vector.load %arg6[%c16_380, %c0_381] : memref<256x8xbf16, #tpu.memory_space<vmem>>, vector<16x8xbf16>
    tpu.vector_store %arg6[%c16_380, %c0_381], %348 {strides = array<i32>} : memref<256x8xbf16, #tpu.memory_space<vmem>>, vector<16x8xbf16>,
    %c2_i32_382 = arith.constant 2 : i32
    %350 = arith.addi %255, %c2_i32_382 : i32
    %c0_383 = arith.constant 0 : index
    %351 = arith.index_cast %350 : i32 to index
    %c1_384 = arith.constant 1 : index
    %c0_385 = arith.constant 0 : index
    %352 = vector.load %arg2[%c0_383, %351, %c1_384, %c0_385] : memref<1x18x18x8xbf16, #tpu.memory_space<vmem>>, vector<1x1x16x8xbf16>
    %353 = vector.shape_cast %352 : vector<1x1x16x8xbf16> to vector<16x8xbf16>
    %c32_386 = arith.constant 32 : index
    %c0_387 = arith.constant 0 : index
    %354 = vector.load %arg6[%c32_386, %c0_387] : memref<256x8xbf16, #tpu.memory_space<vmem>>, vector<16x8xbf16>
    tpu.vector_store %arg6[%c32_386, %c0_387], %353 {strides = array<i32>} : memref<256x8xbf16, #tpu.memory_space<vmem>>, vector<16x8xbf16>,
    %c3_i32_388 = arith.constant 3 : i32
    %355 = arith.addi %255, %c3_i32_388 : i32
    %c0_389 = arith.constant 0 : index
    %356 = arith.index_cast %355 : i32 to index
    %c1_390 = arith.constant 1 : index
    %c0_391 = arith.constant 0 : index
    %357 = vector.load %arg2[%c0_389, %356, %c1_390, %c0_391] : memref<1x18x18x8xbf16, #tpu.memory_space<vmem>>, vector<1x1x16x8xbf16>
    %358 = vector.shape_cast %357 : vector<1x1x16x8xbf16> to vector<16x8xbf16>
    %c48_392 = arith.constant 48 : index
    %c0_393 = arith.constant 0 : index
    %359 = vector.load %arg6[%c48_392, %c0_393] : memref<256x8xbf16, #tpu.memory_space<vmem>>, vector<16x8xbf16>
    tpu.vector_store %arg6[%c48_392, %c0_393], %358 {strides = array<i32>} : memref<256x8xbf16, #tpu.memory_space<vmem>>, vector<16x8xbf16>,
    %c4_i32_394 = arith.constant 4 : i32
    %360 = arith.addi %255, %c4_i32_394 : i32
    %c0_395 = arith.constant 0 : index
    %361 = arith.index_cast %360 : i32 to index
    %c1_396 = arith.constant 1 : index
    %c0_397 = arith.constant 0 : index
    %362 = vector.load %arg2[%c0_395, %361, %c1_396, %c0_397] : memref<1x18x18x8xbf16, #tpu.memory_space<vmem>>, vector<1x1x16x8xbf16>
    %363 = vector.shape_cast %362 : vector<1x1x16x8xbf16> to vector<16x8xbf16>
    %c64_398 = arith.constant 64 : index
    %c0_399 = arith.constant 0 : index
    %364 = vector.load %arg6[%c64_398, %c0_399] : memref<256x8xbf16, #tpu.memory_space<vmem>>, vector<16x8xbf16>
    tpu.vector_store %arg6[%c64_398, %c0_399], %363 {strides = array<i32>} : memref<256x8xbf16, #tpu.memory_space<vmem>>, vector<16x8xbf16>,
    %c5_i32_400 = arith.constant 5 : i32
    %365 = arith.addi %255, %c5_i32_400 : i32
    %c0_401 = arith.constant 0 : index
    %366 = arith.index_cast %365 : i32 to index
    %c1_402 = arith.constant 1 : index
    %c0_403 = arith.constant 0 : index
    %367 = vector.load %arg2[%c0_401, %366, %c1_402, %c0_403] : memref<1x18x18x8xbf16, #tpu.memory_space<vmem>>, vector<1x1x16x8xbf16>
    %368 = vector.shape_cast %367 : vector<1x1x16x8xbf16> to vector<16x8xbf16>
    %c80_404 = arith.constant 80 : index
    %c0_405 = arith.constant 0 : index
    %369 = vector.load %arg6[%c80_404, %c0_405] : memref<256x8xbf16, #tpu.memory_space<vmem>>, vector<16x8xbf16>
    tpu.vector_store %arg6[%c80_404, %c0_405], %368 {strides = array<i32>} : memref<256x8xbf16, #tpu.memory_space<vmem>>, vector<16x8xbf16>,
    %c6_i32_406 = arith.constant 6 : i32
    %370 = arith.addi %255, %c6_i32_406 : i32
    %c0_407 = arith.constant 0 : index
    %371 = arith.index_cast %370 : i32 to index
    %c1_408 = arith.constant 1 : index
    %c0_409 = arith.constant 0 : index
    %372 = vector.load %arg2[%c0_407, %371, %c1_408, %c0_409] : memref<1x18x18x8xbf16, #tpu.memory_space<vmem>>, vector<1x1x16x8xbf16>
    %373 = vector.shape_cast %372 : vector<1x1x16x8xbf16> to vector<16x8xbf16>
    %c96_410 = arith.constant 96 : index
    %c0_411 = arith.constant 0 : index
    %374 = vector.load %arg6[%c96_410, %c0_411] : memref<256x8xbf16, #tpu.memory_space<vmem>>, vector<16x8xbf16>
    tpu.vector_store %arg6[%c96_410, %c0_411], %373 {strides = array<i32>} : memref<256x8xbf16, #tpu.memory_space<vmem>>, vector<16x8xbf16>,
    %c7_i32_412 = arith.constant 7 : i32
    %375 = arith.addi %255, %c7_i32_412 : i32
    %c0_413 = arith.constant 0 : index
    %376 = arith.index_cast %375 : i32 to index
    %c1_414 = arith.constant 1 : index
    %c0_415 = arith.constant 0 : index
    %377 = vector.load %arg2[%c0_413, %376, %c1_414, %c0_415] : memref<1x18x18x8xbf16, #tpu.memory_space<vmem>>, vector<1x1x16x8xbf16>
    %378 = vector.shape_cast %377 : vector<1x1x16x8xbf16> to vector<16x8xbf16>
    %c112_416 = arith.constant 112 : index
    %c0_417 = arith.constant 0 : index
    %379 = vector.load %arg6[%c112_416, %c0_417] : memref<256x8xbf16, #tpu.memory_space<vmem>>, vector<16x8xbf16>
    tpu.vector_store %arg6[%c112_416, %c0_417], %378 {strides = array<i32>} : memref<256x8xbf16, #tpu.memory_space<vmem>>, vector<16x8xbf16>,
    %c8_i32_418 = arith.constant 8 : i32
    %380 = arith.addi %255, %c8_i32_418 : i32
    %c0_419 = arith.constant 0 : index
    %381 = arith.index_cast %380 : i32 to index
    %c1_420 = arith.constant 1 : index
    %c0_421 = arith.constant 0 : index
    %382 = vector.load %arg2[%c0_419, %381, %c1_420, %c0_421] : memref<1x18x18x8xbf16, #tpu.memory_space<vmem>>, vector<1x1x16x8xbf16>
    %383 = vector.shape_cast %382 : vector<1x1x16x8xbf16> to vector<16x8xbf16>
    %c128_422 = arith.constant 128 : index
    %c0_423 = arith.constant 0 : index
    %384 = vector.load %arg6[%c128_422, %c0_423] : memref<256x8xbf16, #tpu.memory_space<vmem>>, vector<16x8xbf16>
    tpu.vector_store %arg6[%c128_422, %c0_423], %383 {strides = array<i32>} : memref<256x8xbf16, #tpu.memory_space<vmem>>, vector<16x8xbf16>,
    %c9_i32_424 = arith.constant 9 : i32
    %385 = arith.addi %255, %c9_i32_424 : i32
    %c0_425 = arith.constant 0 : index
    %386 = arith.index_cast %385 : i32 to index
    %c1_426 = arith.constant 1 : index
    %c0_427 = arith.constant 0 : index
    %387 = vector.load %arg2[%c0_425, %386, %c1_426, %c0_427] : memref<1x18x18x8xbf16, #tpu.memory_space<vmem>>, vector<1x1x16x8xbf16>
    %388 = vector.shape_cast %387 : vector<1x1x16x8xbf16> to vector<16x8xbf16>
    %c144_428 = arith.constant 144 : index
    %c0_429 = arith.constant 0 : index
    %389 = vector.load %arg6[%c144_428, %c0_429] : memref<256x8xbf16, #tpu.memory_space<vmem>>, vector<16x8xbf16>
    tpu.vector_store %arg6[%c144_428, %c0_429], %388 {strides = array<i32>} : memref<256x8xbf16, #tpu.memory_space<vmem>>, vector<16x8xbf16>,
    %c10_i32_430 = arith.constant 10 : i32
    %390 = arith.addi %255, %c10_i32_430 : i32
    %c0_431 = arith.constant 0 : index
    %391 = arith.index_cast %390 : i32 to index
    %c1_432 = arith.constant 1 : index
    %c0_433 = arith.constant 0 : index
    %392 = vector.load %arg2[%c0_431, %391, %c1_432, %c0_433] : memref<1x18x18x8xbf16, #tpu.memory_space<vmem>>, vector<1x1x16x8xbf16>
    %393 = vector.shape_cast %392 : vector<1x1x16x8xbf16> to vector<16x8xbf16>
    %c160_434 = arith.constant 160 : index
    %c0_435 = arith.constant 0 : index
    %394 = vector.load %arg6[%c160_434, %c0_435] : memref<256x8xbf16, #tpu.memory_space<vmem>>, vector<16x8xbf16>
    tpu.vector_store %arg6[%c160_434, %c0_435], %393 {strides = array<i32>} : memref<256x8xbf16, #tpu.memory_space<vmem>>, vector<16x8xbf16>,
    %c11_i32_436 = arith.constant 11 : i32
    %395 = arith.addi %255, %c11_i32_436 : i32
    %c0_437 = arith.constant 0 : index
    %396 = arith.index_cast %395 : i32 to index
    %c1_438 = arith.constant 1 : index
    %c0_439 = arith.constant 0 : index
    %397 = vector.load %arg2[%c0_437, %396, %c1_438, %c0_439] : memref<1x18x18x8xbf16, #tpu.memory_space<vmem>>, vector<1x1x16x8xbf16>
    %398 = vector.shape_cast %397 : vector<1x1x16x8xbf16> to vector<16x8xbf16>
    %c176_440 = arith.constant 176 : index
    %c0_441 = arith.constant 0 : index
    %399 = vector.load %arg6[%c176_440, %c0_441] : memref<256x8xbf16, #tpu.memory_space<vmem>>, vector<16x8xbf16>
    tpu.vector_store %arg6[%c176_440, %c0_441], %398 {strides = array<i32>} : memref<256x8xbf16, #tpu.memory_space<vmem>>, vector<16x8xbf16>,
    %c12_i32_442 = arith.constant 12 : i32
    %400 = arith.addi %255, %c12_i32_442 : i32
    %c0_443 = arith.constant 0 : index
    %401 = arith.index_cast %400 : i32 to index
    %c1_444 = arith.constant 1 : index
    %c0_445 = arith.constant 0 : index
    %402 = vector.load %arg2[%c0_443, %401, %c1_444, %c0_445] : memref<1x18x18x8xbf16, #tpu.memory_space<vmem>>, vector<1x1x16x8xbf16>
    %403 = vector.shape_cast %402 : vector<1x1x16x8xbf16> to vector<16x8xbf16>
    %c192_446 = arith.constant 192 : index
    %c0_447 = arith.constant 0 : index
    %404 = vector.load %arg6[%c192_446, %c0_447] : memref<256x8xbf16, #tpu.memory_space<vmem>>, vector<16x8xbf16>
    tpu.vector_store %arg6[%c192_446, %c0_447], %403 {strides = array<i32>} : memref<256x8xbf16, #tpu.memory_space<vmem>>, vector<16x8xbf16>,
    %c13_i32_448 = arith.constant 13 : i32
    %405 = arith.addi %255, %c13_i32_448 : i32
    %c0_449 = arith.constant 0 : index
    %406 = arith.index_cast %405 : i32 to index
    %c1_450 = arith.constant 1 : index
    %c0_451 = arith.constant 0 : index
    %407 = vector.load %arg2[%c0_449, %406, %c1_450, %c0_451] : memref<1x18x18x8xbf16, #tpu.memory_space<vmem>>, vector<1x1x16x8xbf16>
    %408 = vector.shape_cast %407 : vector<1x1x16x8xbf16> to vector<16x8xbf16>
    %c208_452 = arith.constant 208 : index
    %c0_453 = arith.constant 0 : index
    %409 = vector.load %arg6[%c208_452, %c0_453] : memref<256x8xbf16, #tpu.memory_space<vmem>>, vector<16x8xbf16>
    tpu.vector_store %arg6[%c208_452, %c0_453], %408 {strides = array<i32>} : memref<256x8xbf16, #tpu.memory_space<vmem>>, vector<16x8xbf16>,
    %c14_i32_454 = arith.constant 14 : i32
    %410 = arith.addi %255, %c14_i32_454 : i32
    %c0_455 = arith.constant 0 : index
    %411 = arith.index_cast %410 : i32 to index
    %c1_456 = arith.constant 1 : index
    %c0_457 = arith.constant 0 : index
    %412 = vector.load %arg2[%c0_455, %411, %c1_456, %c0_457] : memref<1x18x18x8xbf16, #tpu.memory_space<vmem>>, vector<1x1x16x8xbf16>
    %413 = vector.shape_cast %412 : vector<1x1x16x8xbf16> to vector<16x8xbf16>
    %c224_458 = arith.constant 224 : index
    %c0_459 = arith.constant 0 : index
    %414 = vector.load %arg6[%c224_458, %c0_459] : memref<256x8xbf16, #tpu.memory_space<vmem>>, vector<16x8xbf16>
    tpu.vector_store %arg6[%c224_458, %c0_459], %413 {strides = array<i32>} : memref<256x8xbf16, #tpu.memory_space<vmem>>, vector<16x8xbf16>,
    %c15_i32_460 = arith.constant 15 : i32
    %415 = arith.addi %255, %c15_i32_460 : i32
    %c0_461 = arith.constant 0 : index
    %416 = arith.index_cast %415 : i32 to index
    %c1_462 = arith.constant 1 : index
    %c0_463 = arith.constant 0 : index
    %417 = vector.load %arg2[%c0_461, %416, %c1_462, %c0_463] : memref<1x18x18x8xbf16, #tpu.memory_space<vmem>>, vector<1x1x16x8xbf16>
    %418 = vector.shape_cast %417 : vector<1x1x16x8xbf16> to vector<16x8xbf16>
    %c240_464 = arith.constant 240 : index
    %c0_465 = arith.constant 0 : index
    %419 = vector.load %arg6[%c240_464, %c0_465] : memref<256x8xbf16, #tpu.memory_space<vmem>>, vector<16x8xbf16>
    tpu.vector_store %arg6[%c240_464, %c0_465], %418 {strides = array<i32>} : memref<256x8xbf16, #tpu.memory_space<vmem>>, vector<16x8xbf16>,
    %c0_466 = arith.constant 0 : index
    %c0_467 = arith.constant 0 : index
    %420 = vector.load %arg6[%c0_466, %c0_467] : memref<256x8xbf16, #tpu.memory_space<vmem>>, vector<256x8xbf16>
    %c32_468 = arith.constant 32 : index
    %c0_469 = arith.constant 0 : index
    %421 = vector.load %arg3[%c32_468, %c0_469] : memref<72x64xbf16, #tpu.memory_space<vmem>>, vector<8x64xbf16>
    %cst_470 = arith.constant dense<0.000000e+00> : vector<256x64xf32>
    %422 = tpu.matmul %420, %421, %cst_470 {dimension_numbers = #tpu.dot_dimension_numbers<[1], [0], [0], [1], [0, 0, 1, 1], [], []>} : vector<256x8xbf16>, vector<8x64xbf16>, vector<256x64xf32> -> vector<256x64xf32>
    %423 = arith.addf %339, %422 : vector<256x64xf32>
    %c0_i32_471 = arith.constant 0 : i32
    %424 = arith.addi %255, %c0_i32_471 : i32
    %c0_472 = arith.constant 0 : index
    %425 = arith.index_cast %424 : i32 to index
    %c2_473 = arith.constant 2 : index
    %c0_474 = arith.constant 0 : index
    %426 = vector.load %arg2[%c0_472, %425, %c2_473, %c0_474] : memref<1x18x18x8xbf16, #tpu.memory_space<vmem>>, vector<1x1x16x8xbf16>
    %427 = vector.shape_cast %426 : vector<1x1x16x8xbf16> to vector<16x8xbf16>
    %c0_475 = arith.constant 0 : index
    %c0_476 = arith.constant 0 : index
    %428 = vector.load %arg6[%c0_475, %c0_476] : memref<256x8xbf16, #tpu.memory_space<vmem>>, vector<16x8xbf16>
    tpu.vector_store %arg6[%c0_475, %c0_476], %427 {strides = array<i32>} : memref<256x8xbf16, #tpu.memory_space<vmem>>, vector<16x8xbf16>,
    %c1_i32_477 = arith.constant 1 : i32
    %429 = arith.addi %255, %c1_i32_477 : i32
    %c0_478 = arith.constant 0 : index
    %430 = arith.index_cast %429 : i32 to index
    %c2_479 = arith.constant 2 : index
    %c0_480 = arith.constant 0 : index
    %431 = vector.load %arg2[%c0_478, %430, %c2_479, %c0_480] : memref<1x18x18x8xbf16, #tpu.memory_space<vmem>>, vector<1x1x16x8xbf16>
    %432 = vector.shape_cast %431 : vector<1x1x16x8xbf16> to vector<16x8xbf16>
    %c16_481 = arith.constant 16 : index
    %c0_482 = arith.constant 0 : index
    %433 = vector.load %arg6[%c16_481, %c0_482] : memref<256x8xbf16, #tpu.memory_space<vmem>>, vector<16x8xbf16>
    tpu.vector_store %arg6[%c16_481, %c0_482], %432 {strides = array<i32>} : memref<256x8xbf16, #tpu.memory_space<vmem>>, vector<16x8xbf16>,
    %c2_i32_483 = arith.constant 2 : i32
    %434 = arith.addi %255, %c2_i32_483 : i32
    %c0_484 = arith.constant 0 : index
    %435 = arith.index_cast %434 : i32 to index
    %c2_485 = arith.constant 2 : index
    %c0_486 = arith.constant 0 : index
    %436 = vector.load %arg2[%c0_484, %435, %c2_485, %c0_486] : memref<1x18x18x8xbf16, #tpu.memory_space<vmem>>, vector<1x1x16x8xbf16>
    %437 = vector.shape_cast %436 : vector<1x1x16x8xbf16> to vector<16x8xbf16>
    %c32_487 = arith.constant 32 : index
    %c0_488 = arith.constant 0 : index
    %438 = vector.load %arg6[%c32_487, %c0_488] : memref<256x8xbf16, #tpu.memory_space<vmem>>, vector<16x8xbf16>
    tpu.vector_store %arg6[%c32_487, %c0_488], %437 {strides = array<i32>} : memref<256x8xbf16, #tpu.memory_space<vmem>>, vector<16x8xbf16>,
    %c3_i32_489 = arith.constant 3 : i32
    %439 = arith.addi %255, %c3_i32_489 : i32
    %c0_490 = arith.constant 0 : index
    %440 = arith.index_cast %439 : i32 to index
    %c2_491 = arith.constant 2 : index
    %c0_492 = arith.constant 0 : index
    %441 = vector.load %arg2[%c0_490, %440, %c2_491, %c0_492] : memref<1x18x18x8xbf16, #tpu.memory_space<vmem>>, vector<1x1x16x8xbf16>
    %442 = vector.shape_cast %441 : vector<1x1x16x8xbf16> to vector<16x8xbf16>
    %c48_493 = arith.constant 48 : index
    %c0_494 = arith.constant 0 : index
    %443 = vector.load %arg6[%c48_493, %c0_494] : memref<256x8xbf16, #tpu.memory_space<vmem>>, vector<16x8xbf16>
    tpu.vector_store %arg6[%c48_493, %c0_494], %442 {strides = array<i32>} : memref<256x8xbf16, #tpu.memory_space<vmem>>, vector<16x8xbf16>,
    %c4_i32_495 = arith.constant 4 : i32
    %444 = arith.addi %255, %c4_i32_495 : i32
    %c0_496 = arith.constant 0 : index
    %445 = arith.index_cast %444 : i32 to index
    %c2_497 = arith.constant 2 : index
    %c0_498 = arith.constant 0 : index
    %446 = vector.load %arg2[%c0_496, %445, %c2_497, %c0_498] : memref<1x18x18x8xbf16, #tpu.memory_space<vmem>>, vector<1x1x16x8xbf16>
    %447 = vector.shape_cast %446 : vector<1x1x16x8xbf16> to vector<16x8xbf16>
    %c64_499 = arith.constant 64 : index
    %c0_500 = arith.constant 0 : index
    %448 = vector.load %arg6[%c64_499, %c0_500] : memref<256x8xbf16, #tpu.memory_space<vmem>>, vector<16x8xbf16>
    tpu.vector_store %arg6[%c64_499, %c0_500], %447 {strides = array<i32>} : memref<256x8xbf16, #tpu.memory_space<vmem>>, vector<16x8xbf16>,
    %c5_i32_501 = arith.constant 5 : i32
    %449 = arith.addi %255, %c5_i32_501 : i32
    %c0_502 = arith.constant 0 : index
    %450 = arith.index_cast %449 : i32 to index
    %c2_503 = arith.constant 2 : index
    %c0_504 = arith.constant 0 : index
    %451 = vector.load %arg2[%c0_502, %450, %c2_503, %c0_504] : memref<1x18x18x8xbf16, #tpu.memory_space<vmem>>, vector<1x1x16x8xbf16>
    %452 = vector.shape_cast %451 : vector<1x1x16x8xbf16> to vector<16x8xbf16>
    %c80_505 = arith.constant 80 : index
    %c0_506 = arith.constant 0 : index
    %453 = vector.load %arg6[%c80_505, %c0_506] : memref<256x8xbf16, #tpu.memory_space<vmem>>, vector<16x8xbf16>
    tpu.vector_store %arg6[%c80_505, %c0_506], %452 {strides = array<i32>} : memref<256x8xbf16, #tpu.memory_space<vmem>>, vector<16x8xbf16>,
    %c6_i32_507 = arith.constant 6 : i32
    %454 = arith.addi %255, %c6_i32_507 : i32
    %c0_508 = arith.constant 0 : index
    %455 = arith.index_cast %454 : i32 to index
    %c2_509 = arith.constant 2 : index
    %c0_510 = arith.constant 0 : index
    %456 = vector.load %arg2[%c0_508, %455, %c2_509, %c0_510] : memref<1x18x18x8xbf16, #tpu.memory_space<vmem>>, vector<1x1x16x8xbf16>
    %457 = vector.shape_cast %456 : vector<1x1x16x8xbf16> to vector<16x8xbf16>
    %c96_511 = arith.constant 96 : index
    %c0_512 = arith.constant 0 : index
    %458 = vector.load %arg6[%c96_511, %c0_512] : memref<256x8xbf16, #tpu.memory_space<vmem>>, vector<16x8xbf16>
    tpu.vector_store %arg6[%c96_511, %c0_512], %457 {strides = array<i32>} : memref<256x8xbf16, #tpu.memory_space<vmem>>, vector<16x8xbf16>,
    %c7_i32_513 = arith.constant 7 : i32
    %459 = arith.addi %255, %c7_i32_513 : i32
    %c0_514 = arith.constant 0 : index
    %460 = arith.index_cast %459 : i32 to index
    %c2_515 = arith.constant 2 : index
    %c0_516 = arith.constant 0 : index
    %461 = vector.load %arg2[%c0_514, %460, %c2_515, %c0_516] : memref<1x18x18x8xbf16, #tpu.memory_space<vmem>>, vector<1x1x16x8xbf16>
    %462 = vector.shape_cast %461 : vector<1x1x16x8xbf16> to vector<16x8xbf16>
    %c112_517 = arith.constant 112 : index
    %c0_518 = arith.constant 0 : index
    %463 = vector.load %arg6[%c112_517, %c0_518] : memref<256x8xbf16, #tpu.memory_space<vmem>>, vector<16x8xbf16>
    tpu.vector_store %arg6[%c112_517, %c0_518], %462 {strides = array<i32>} : memref<256x8xbf16, #tpu.memory_space<vmem>>, vector<16x8xbf16>,
    %c8_i32_519 = arith.constant 8 : i32
    %464 = arith.addi %255, %c8_i32_519 : i32
    %c0_520 = arith.constant 0 : index
    %465 = arith.index_cast %464 : i32 to index
    %c2_521 = arith.constant 2 : index
    %c0_522 = arith.constant 0 : index
    %466 = vector.load %arg2[%c0_520, %465, %c2_521, %c0_522] : memref<1x18x18x8xbf16, #tpu.memory_space<vmem>>, vector<1x1x16x8xbf16>
    %467 = vector.shape_cast %466 : vector<1x1x16x8xbf16> to vector<16x8xbf16>
    %c128_523 = arith.constant 128 : index
    %c0_524 = arith.constant 0 : index
    %468 = vector.load %arg6[%c128_523, %c0_524] : memref<256x8xbf16, #tpu.memory_space<vmem>>, vector<16x8xbf16>
    tpu.vector_store %arg6[%c128_523, %c0_524], %467 {strides = array<i32>} : memref<256x8xbf16, #tpu.memory_space<vmem>>, vector<16x8xbf16>,
    %c9_i32_525 = arith.constant 9 : i32
    %469 = arith.addi %255, %c9_i32_525 : i32
    %c0_526 = arith.constant 0 : index
    %470 = arith.index_cast %469 : i32 to index
    %c2_527 = arith.constant 2 : index
    %c0_528 = arith.constant 0 : index
    %471 = vector.load %arg2[%c0_526, %470, %c2_527, %c0_528] : memref<1x18x18x8xbf16, #tpu.memory_space<vmem>>, vector<1x1x16x8xbf16>
    %472 = vector.shape_cast %471 : vector<1x1x16x8xbf16> to vector<16x8xbf16>
    %c144_529 = arith.constant 144 : index
    %c0_530 = arith.constant 0 : index
    %473 = vector.load %arg6[%c144_529, %c0_530] : memref<256x8xbf16, #tpu.memory_space<vmem>>, vector<16x8xbf16>
    tpu.vector_store %arg6[%c144_529, %c0_530], %472 {strides = array<i32>} : memref<256x8xbf16, #tpu.memory_space<vmem>>, vector<16x8xbf16>,
    %c10_i32_531 = arith.constant 10 : i32
    %474 = arith.addi %255, %c10_i32_531 : i32
    %c0_532 = arith.constant 0 : index
    %475 = arith.index_cast %474 : i32 to index
    %c2_533 = arith.constant 2 : index
    %c0_534 = arith.constant 0 : index
    %476 = vector.load %arg2[%c0_532, %475, %c2_533, %c0_534] : memref<1x18x18x8xbf16, #tpu.memory_space<vmem>>, vector<1x1x16x8xbf16>
    %477 = vector.shape_cast %476 : vector<1x1x16x8xbf16> to vector<16x8xbf16>
    %c160_535 = arith.constant 160 : index
    %c0_536 = arith.constant 0 : index
    %478 = vector.load %arg6[%c160_535, %c0_536] : memref<256x8xbf16, #tpu.memory_space<vmem>>, vector<16x8xbf16>
    tpu.vector_store %arg6[%c160_535, %c0_536], %477 {strides = array<i32>} : memref<256x8xbf16, #tpu.memory_space<vmem>>, vector<16x8xbf16>,
    %c11_i32_537 = arith.constant 11 : i32
    %479 = arith.addi %255, %c11_i32_537 : i32
    %c0_538 = arith.constant 0 : index
    %480 = arith.index_cast %479 : i32 to index
    %c2_539 = arith.constant 2 : index
    %c0_540 = arith.constant 0 : index
    %481 = vector.load %arg2[%c0_538, %480, %c2_539, %c0_540] : memref<1x18x18x8xbf16, #tpu.memory_space<vmem>>, vector<1x1x16x8xbf16>
    %482 = vector.shape_cast %481 : vector<1x1x16x8xbf16> to vector<16x8xbf16>
    %c176_541 = arith.constant 176 : index
    %c0_542 = arith.constant 0 : index
    %483 = vector.load %arg6[%c176_541, %c0_542] : memref<256x8xbf16, #tpu.memory_space<vmem>>, vector<16x8xbf16>
    tpu.vector_store %arg6[%c176_541, %c0_542], %482 {strides = array<i32>} : memref<256x8xbf16, #tpu.memory_space<vmem>>, vector<16x8xbf16>,
    %c12_i32_543 = arith.constant 12 : i32
    %484 = arith.addi %255, %c12_i32_543 : i32
    %c0_544 = arith.constant 0 : index
    %485 = arith.index_cast %484 : i32 to index
    %c2_545 = arith.constant 2 : index
    %c0_546 = arith.constant 0 : index
    %486 = vector.load %arg2[%c0_544, %485, %c2_545, %c0_546] : memref<1x18x18x8xbf16, #tpu.memory_space<vmem>>, vector<1x1x16x8xbf16>
    %487 = vector.shape_cast %486 : vector<1x1x16x8xbf16> to vector<16x8xbf16>
    %c192_547 = arith.constant 192 : index
    %c0_548 = arith.constant 0 : index
    %488 = vector.load %arg6[%c192_547, %c0_548] : memref<256x8xbf16, #tpu.memory_space<vmem>>, vector<16x8xbf16>
    tpu.vector_store %arg6[%c192_547, %c0_548], %487 {strides = array<i32>} : memref<256x8xbf16, #tpu.memory_space<vmem>>, vector<16x8xbf16>,
    %c13_i32_549 = arith.constant 13 : i32
    %489 = arith.addi %255, %c13_i32_549 : i32
    %c0_550 = arith.constant 0 : index
    %490 = arith.index_cast %489 : i32 to index
    %c2_551 = arith.constant 2 : index
    %c0_552 = arith.constant 0 : index
    %491 = vector.load %arg2[%c0_550, %490, %c2_551, %c0_552] : memref<1x18x18x8xbf16, #tpu.memory_space<vmem>>, vector<1x1x16x8xbf16>
    %492 = vector.shape_cast %491 : vector<1x1x16x8xbf16> to vector<16x8xbf16>
    %c208_553 = arith.constant 208 : index
    %c0_554 = arith.constant 0 : index
    %493 = vector.load %arg6[%c208_553, %c0_554] : memref<256x8xbf16, #tpu.memory_space<vmem>>, vector<16x8xbf16>
    tpu.vector_store %arg6[%c208_553, %c0_554], %492 {strides = array<i32>} : memref<256x8xbf16, #tpu.memory_space<vmem>>, vector<16x8xbf16>,
    %c14_i32_555 = arith.constant 14 : i32
    %494 = arith.addi %255, %c14_i32_555 : i32
    %c0_556 = arith.constant 0 : index
    %495 = arith.index_cast %494 : i32 to index
    %c2_557 = arith.constant 2 : index
    %c0_558 = arith.constant 0 : index
    %496 = vector.load %arg2[%c0_556, %495, %c2_557, %c0_558] : memref<1x18x18x8xbf16, #tpu.memory_space<vmem>>, vector<1x1x16x8xbf16>
    %497 = vector.shape_cast %496 : vector<1x1x16x8xbf16> to vector<16x8xbf16>
    %c224_559 = arith.constant 224 : index
    %c0_560 = arith.constant 0 : index
    %498 = vector.load %arg6[%c224_559, %c0_560] : memref<256x8xbf16, #tpu.memory_space<vmem>>, vector<16x8xbf16>
    tpu.vector_store %arg6[%c224_559, %c0_560], %497 {strides = array<i32>} : memref<256x8xbf16, #tpu.memory_space<vmem>>, vector<16x8xbf16>,
    %c15_i32_561 = arith.constant 15 : i32
    %499 = arith.addi %255, %c15_i32_561 : i32
    %c0_562 = arith.constant 0 : index
    %500 = arith.index_cast %499 : i32 to index
    %c2_563 = arith.constant 2 : index
    %c0_564 = arith.constant 0 : index
    %501 = vector.load %arg2[%c0_562, %500, %c2_563, %c0_564] : memref<1x18x18x8xbf16, #tpu.memory_space<vmem>>, vector<1x1x16x8xbf16>
    %502 = vector.shape_cast %501 : vector<1x1x16x8xbf16> to vector<16x8xbf16>
    %c240_565 = arith.constant 240 : index
    %c0_566 = arith.constant 0 : index
    %503 = vector.load %arg6[%c240_565, %c0_566] : memref<256x8xbf16, #tpu.memory_space<vmem>>, vector<16x8xbf16>
    tpu.vector_store %arg6[%c240_565, %c0_566], %502 {strides = array<i32>} : memref<256x8xbf16, #tpu.memory_space<vmem>>, vector<16x8xbf16>,
    %c0_567 = arith.constant 0 : index
    %c0_568 = arith.constant 0 : index
    %504 = vector.load %arg6[%c0_567, %c0_568] : memref<256x8xbf16, #tpu.memory_space<vmem>>, vector<256x8xbf16>
    %c40 = arith.constant 40 : index
    %c0_569 = arith.constant 0 : index
    %505 = vector.load %arg3[%c40, %c0_569] : memref<72x64xbf16, #tpu.memory_space<vmem>>, vector<8x64xbf16>
    %cst_570 = arith.constant dense<0.000000e+00> : vector<256x64xf32>
    %506 = tpu.matmul %504, %505, %cst_570 {dimension_numbers = #tpu.dot_dimension_numbers<[1], [0], [0], [1], [0, 0, 1, 1], [], []>} : vector<256x8xbf16>, vector<8x64xbf16>, vector<256x64xf32> -> vector<256x64xf32>
    %507 = arith.addf %423, %506 : vector<256x64xf32>
    %c2_i32_571 = arith.constant 2 : i32
    %508 = arith.addi %0, %c2_i32_571 : i32
    %c0_i32_572 = arith.constant 0 : i32
    %509 = arith.addi %508, %c0_i32_572 : i32
    %c0_573 = arith.constant 0 : index
    %510 = arith.index_cast %509 : i32 to index
    %c0_574 = arith.constant 0 : index
    %c0_575 = arith.constant 0 : index
    %511 = vector.load %arg2[%c0_573, %510, %c0_574, %c0_575] : memref<1x18x18x8xbf16, #tpu.memory_space<vmem>>, vector<1x1x16x8xbf16>
    %512 = vector.shape_cast %511 : vector<1x1x16x8xbf16> to vector<16x8xbf16>
    %c0_576 = arith.constant 0 : index
    %c0_577 = arith.constant 0 : index
    %513 = vector.load %arg6[%c0_576, %c0_577] : memref<256x8xbf16, #tpu.memory_space<vmem>>, vector<16x8xbf16>
    tpu.vector_store %arg6[%c0_576, %c0_577], %512 {strides = array<i32>} : memref<256x8xbf16, #tpu.memory_space<vmem>>, vector<16x8xbf16>,
    %c1_i32_578 = arith.constant 1 : i32
    %514 = arith.addi %508, %c1_i32_578 : i32
    %c0_579 = arith.constant 0 : index
    %515 = arith.index_cast %514 : i32 to index
    %c0_580 = arith.constant 0 : index
    %c0_581 = arith.constant 0 : index
    %516 = vector.load %arg2[%c0_579, %515, %c0_580, %c0_581] : memref<1x18x18x8xbf16, #tpu.memory_space<vmem>>, vector<1x1x16x8xbf16>
    %517 = vector.shape_cast %516 : vector<1x1x16x8xbf16> to vector<16x8xbf16>
    %c16_582 = arith.constant 16 : index
    %c0_583 = arith.constant 0 : index
    %518 = vector.load %arg6[%c16_582, %c0_583] : memref<256x8xbf16, #tpu.memory_space<vmem>>, vector<16x8xbf16>
    tpu.vector_store %arg6[%c16_582, %c0_583], %517 {strides = array<i32>} : memref<256x8xbf16, #tpu.memory_space<vmem>>, vector<16x8xbf16>,
    %c2_i32_584 = arith.constant 2 : i32
    %519 = arith.addi %508, %c2_i32_584 : i32
    %c0_585 = arith.constant 0 : index
    %520 = arith.index_cast %519 : i32 to index
    %c0_586 = arith.constant 0 : index
    %c0_587 = arith.constant 0 : index
    %521 = vector.load %arg2[%c0_585, %520, %c0_586, %c0_587] : memref<1x18x18x8xbf16, #tpu.memory_space<vmem>>, vector<1x1x16x8xbf16>
    %522 = vector.shape_cast %521 : vector<1x1x16x8xbf16> to vector<16x8xbf16>
    %c32_588 = arith.constant 32 : index
    %c0_589 = arith.constant 0 : index
    %523 = vector.load %arg6[%c32_588, %c0_589] : memref<256x8xbf16, #tpu.memory_space<vmem>>, vector<16x8xbf16>
    tpu.vector_store %arg6[%c32_588, %c0_589], %522 {strides = array<i32>} : memref<256x8xbf16, #tpu.memory_space<vmem>>, vector<16x8xbf16>,
    %c3_i32_590 = arith.constant 3 : i32
    %524 = arith.addi %508, %c3_i32_590 : i32
    %c0_591 = arith.constant 0 : index
    %525 = arith.index_cast %524 : i32 to index
    %c0_592 = arith.constant 0 : index
    %c0_593 = arith.constant 0 : index
    %526 = vector.load %arg2[%c0_591, %525, %c0_592, %c0_593] : memref<1x18x18x8xbf16, #tpu.memory_space<vmem>>, vector<1x1x16x8xbf16>
    %527 = vector.shape_cast %526 : vector<1x1x16x8xbf16> to vector<16x8xbf16>
    %c48_594 = arith.constant 48 : index
    %c0_595 = arith.constant 0 : index
    %528 = vector.load %arg6[%c48_594, %c0_595] : memref<256x8xbf16, #tpu.memory_space<vmem>>, vector<16x8xbf16>
    tpu.vector_store %arg6[%c48_594, %c0_595], %527 {strides = array<i32>} : memref<256x8xbf16, #tpu.memory_space<vmem>>, vector<16x8xbf16>,
    %c4_i32_596 = arith.constant 4 : i32
    %529 = arith.addi %508, %c4_i32_596 : i32
    %c0_597 = arith.constant 0 : index
    %530 = arith.index_cast %529 : i32 to index
    %c0_598 = arith.constant 0 : index
    %c0_599 = arith.constant 0 : index
    %531 = vector.load %arg2[%c0_597, %530, %c0_598, %c0_599] : memref<1x18x18x8xbf16, #tpu.memory_space<vmem>>, vector<1x1x16x8xbf16>
    %532 = vector.shape_cast %531 : vector<1x1x16x8xbf16> to vector<16x8xbf16>
    %c64_600 = arith.constant 64 : index
    %c0_601 = arith.constant 0 : index
    %533 = vector.load %arg6[%c64_600, %c0_601] : memref<256x8xbf16, #tpu.memory_space<vmem>>, vector<16x8xbf16>
    tpu.vector_store %arg6[%c64_600, %c0_601], %532 {strides = array<i32>} : memref<256x8xbf16, #tpu.memory_space<vmem>>, vector<16x8xbf16>,
    %c5_i32_602 = arith.constant 5 : i32
    %534 = arith.addi %508, %c5_i32_602 : i32
    %c0_603 = arith.constant 0 : index
    %535 = arith.index_cast %534 : i32 to index
    %c0_604 = arith.constant 0 : index
    %c0_605 = arith.constant 0 : index
    %536 = vector.load %arg2[%c0_603, %535, %c0_604, %c0_605] : memref<1x18x18x8xbf16, #tpu.memory_space<vmem>>, vector<1x1x16x8xbf16>
    %537 = vector.shape_cast %536 : vector<1x1x16x8xbf16> to vector<16x8xbf16>
    %c80_606 = arith.constant 80 : index
    %c0_607 = arith.constant 0 : index
    %538 = vector.load %arg6[%c80_606, %c0_607] : memref<256x8xbf16, #tpu.memory_space<vmem>>, vector<16x8xbf16>
    tpu.vector_store %arg6[%c80_606, %c0_607], %537 {strides = array<i32>} : memref<256x8xbf16, #tpu.memory_space<vmem>>, vector<16x8xbf16>,
    %c6_i32_608 = arith.constant 6 : i32
    %539 = arith.addi %508, %c6_i32_608 : i32
    %c0_609 = arith.constant 0 : index
    %540 = arith.index_cast %539 : i32 to index
    %c0_610 = arith.constant 0 : index
    %c0_611 = arith.constant 0 : index
    %541 = vector.load %arg2[%c0_609, %540, %c0_610, %c0_611] : memref<1x18x18x8xbf16, #tpu.memory_space<vmem>>, vector<1x1x16x8xbf16>
    %542 = vector.shape_cast %541 : vector<1x1x16x8xbf16> to vector<16x8xbf16>
    %c96_612 = arith.constant 96 : index
    %c0_613 = arith.constant 0 : index
    %543 = vector.load %arg6[%c96_612, %c0_613] : memref<256x8xbf16, #tpu.memory_space<vmem>>, vector<16x8xbf16>
    tpu.vector_store %arg6[%c96_612, %c0_613], %542 {strides = array<i32>} : memref<256x8xbf16, #tpu.memory_space<vmem>>, vector<16x8xbf16>,
    %c7_i32_614 = arith.constant 7 : i32
    %544 = arith.addi %508, %c7_i32_614 : i32
    %c0_615 = arith.constant 0 : index
    %545 = arith.index_cast %544 : i32 to index
    %c0_616 = arith.constant 0 : index
    %c0_617 = arith.constant 0 : index
    %546 = vector.load %arg2[%c0_615, %545, %c0_616, %c0_617] : memref<1x18x18x8xbf16, #tpu.memory_space<vmem>>, vector<1x1x16x8xbf16>
    %547 = vector.shape_cast %546 : vector<1x1x16x8xbf16> to vector<16x8xbf16>
    %c112_618 = arith.constant 112 : index
    %c0_619 = arith.constant 0 : index
    %548 = vector.load %arg6[%c112_618, %c0_619] : memref<256x8xbf16, #tpu.memory_space<vmem>>, vector<16x8xbf16>
    tpu.vector_store %arg6[%c112_618, %c0_619], %547 {strides = array<i32>} : memref<256x8xbf16, #tpu.memory_space<vmem>>, vector<16x8xbf16>,
    %c8_i32_620 = arith.constant 8 : i32
    %549 = arith.addi %508, %c8_i32_620 : i32
    %c0_621 = arith.constant 0 : index
    %550 = arith.index_cast %549 : i32 to index
    %c0_622 = arith.constant 0 : index
    %c0_623 = arith.constant 0 : index
    %551 = vector.load %arg2[%c0_621, %550, %c0_622, %c0_623] : memref<1x18x18x8xbf16, #tpu.memory_space<vmem>>, vector<1x1x16x8xbf16>
    %552 = vector.shape_cast %551 : vector<1x1x16x8xbf16> to vector<16x8xbf16>
    %c128_624 = arith.constant 128 : index
    %c0_625 = arith.constant 0 : index
    %553 = vector.load %arg6[%c128_624, %c0_625] : memref<256x8xbf16, #tpu.memory_space<vmem>>, vector<16x8xbf16>
    tpu.vector_store %arg6[%c128_624, %c0_625], %552 {strides = array<i32>} : memref<256x8xbf16, #tpu.memory_space<vmem>>, vector<16x8xbf16>,
    %c9_i32_626 = arith.constant 9 : i32
    %554 = arith.addi %508, %c9_i32_626 : i32
    %c0_627 = arith.constant 0 : index
    %555 = arith.index_cast %554 : i32 to index
    %c0_628 = arith.constant 0 : index
    %c0_629 = arith.constant 0 : index
    %556 = vector.load %arg2[%c0_627, %555, %c0_628, %c0_629] : memref<1x18x18x8xbf16, #tpu.memory_space<vmem>>, vector<1x1x16x8xbf16>
    %557 = vector.shape_cast %556 : vector<1x1x16x8xbf16> to vector<16x8xbf16>
    %c144_630 = arith.constant 144 : index
    %c0_631 = arith.constant 0 : index
    %558 = vector.load %arg6[%c144_630, %c0_631] : memref<256x8xbf16, #tpu.memory_space<vmem>>, vector<16x8xbf16>
    tpu.vector_store %arg6[%c144_630, %c0_631], %557 {strides = array<i32>} : memref<256x8xbf16, #tpu.memory_space<vmem>>, vector<16x8xbf16>,
    %c10_i32_632 = arith.constant 10 : i32
    %559 = arith.addi %508, %c10_i32_632 : i32
    %c0_633 = arith.constant 0 : index
    %560 = arith.index_cast %559 : i32 to index
    %c0_634 = arith.constant 0 : index
    %c0_635 = arith.constant 0 : index
    %561 = vector.load %arg2[%c0_633, %560, %c0_634, %c0_635] : memref<1x18x18x8xbf16, #tpu.memory_space<vmem>>, vector<1x1x16x8xbf16>
    %562 = vector.shape_cast %561 : vector<1x1x16x8xbf16> to vector<16x8xbf16>
    %c160_636 = arith.constant 160 : index
    %c0_637 = arith.constant 0 : index
    %563 = vector.load %arg6[%c160_636, %c0_637] : memref<256x8xbf16, #tpu.memory_space<vmem>>, vector<16x8xbf16>
    tpu.vector_store %arg6[%c160_636, %c0_637], %562 {strides = array<i32>} : memref<256x8xbf16, #tpu.memory_space<vmem>>, vector<16x8xbf16>,
    %c11_i32_638 = arith.constant 11 : i32
    %564 = arith.addi %508, %c11_i32_638 : i32
    %c0_639 = arith.constant 0 : index
    %565 = arith.index_cast %564 : i32 to index
    %c0_640 = arith.constant 0 : index
    %c0_641 = arith.constant 0 : index
    %566 = vector.load %arg2[%c0_639, %565, %c0_640, %c0_641] : memref<1x18x18x8xbf16, #tpu.memory_space<vmem>>, vector<1x1x16x8xbf16>
    %567 = vector.shape_cast %566 : vector<1x1x16x8xbf16> to vector<16x8xbf16>
    %c176_642 = arith.constant 176 : index
    %c0_643 = arith.constant 0 : index
    %568 = vector.load %arg6[%c176_642, %c0_643] : memref<256x8xbf16, #tpu.memory_space<vmem>>, vector<16x8xbf16>
    tpu.vector_store %arg6[%c176_642, %c0_643], %567 {strides = array<i32>} : memref<256x8xbf16, #tpu.memory_space<vmem>>, vector<16x8xbf16>,
    %c12_i32_644 = arith.constant 12 : i32
    %569 = arith.addi %508, %c12_i32_644 : i32
    %c0_645 = arith.constant 0 : index
    %570 = arith.index_cast %569 : i32 to index
    %c0_646 = arith.constant 0 : index
    %c0_647 = arith.constant 0 : index
    %571 = vector.load %arg2[%c0_645, %570, %c0_646, %c0_647] : memref<1x18x18x8xbf16, #tpu.memory_space<vmem>>, vector<1x1x16x8xbf16>
    %572 = vector.shape_cast %571 : vector<1x1x16x8xbf16> to vector<16x8xbf16>
    %c192_648 = arith.constant 192 : index
    %c0_649 = arith.constant 0 : index
    %573 = vector.load %arg6[%c192_648, %c0_649] : memref<256x8xbf16, #tpu.memory_space<vmem>>, vector<16x8xbf16>
    tpu.vector_store %arg6[%c192_648, %c0_649], %572 {strides = array<i32>} : memref<256x8xbf16, #tpu.memory_space<vmem>>, vector<16x8xbf16>,
    %c13_i32_650 = arith.constant 13 : i32
    %574 = arith.addi %508, %c13_i32_650 : i32
    %c0_651 = arith.constant 0 : index
    %575 = arith.index_cast %574 : i32 to index
    %c0_652 = arith.constant 0 : index
    %c0_653 = arith.constant 0 : index
    %576 = vector.load %arg2[%c0_651, %575, %c0_652, %c0_653] : memref<1x18x18x8xbf16, #tpu.memory_space<vmem>>, vector<1x1x16x8xbf16>
    %577 = vector.shape_cast %576 : vector<1x1x16x8xbf16> to vector<16x8xbf16>
    %c208_654 = arith.constant 208 : index
    %c0_655 = arith.constant 0 : index
    %578 = vector.load %arg6[%c208_654, %c0_655] : memref<256x8xbf16, #tpu.memory_space<vmem>>, vector<16x8xbf16>
    tpu.vector_store %arg6[%c208_654, %c0_655], %577 {strides = array<i32>} : memref<256x8xbf16, #tpu.memory_space<vmem>>, vector<16x8xbf16>,
    %c14_i32_656 = arith.constant 14 : i32
    %579 = arith.addi %508, %c14_i32_656 : i32
    %c0_657 = arith.constant 0 : index
    %580 = arith.index_cast %579 : i32 to index
    %c0_658 = arith.constant 0 : index
    %c0_659 = arith.constant 0 : index
    %581 = vector.load %arg2[%c0_657, %580, %c0_658, %c0_659] : memref<1x18x18x8xbf16, #tpu.memory_space<vmem>>, vector<1x1x16x8xbf16>
    %582 = vector.shape_cast %581 : vector<1x1x16x8xbf16> to vector<16x8xbf16>
    %c224_660 = arith.constant 224 : index
    %c0_661 = arith.constant 0 : index
    %583 = vector.load %arg6[%c224_660, %c0_661] : memref<256x8xbf16, #tpu.memory_space<vmem>>, vector<16x8xbf16>
    tpu.vector_store %arg6[%c224_660, %c0_661], %582 {strides = array<i32>} : memref<256x8xbf16, #tpu.memory_space<vmem>>, vector<16x8xbf16>,
    %c15_i32_662 = arith.constant 15 : i32
    %584 = arith.addi %508, %c15_i32_662 : i32
    %c0_663 = arith.constant 0 : index
    %585 = arith.index_cast %584 : i32 to index
    %c0_664 = arith.constant 0 : index
    %c0_665 = arith.constant 0 : index
    %586 = vector.load %arg2[%c0_663, %585, %c0_664, %c0_665] : memref<1x18x18x8xbf16, #tpu.memory_space<vmem>>, vector<1x1x16x8xbf16>
    %587 = vector.shape_cast %586 : vector<1x1x16x8xbf16> to vector<16x8xbf16>
    %c240_666 = arith.constant 240 : index
    %c0_667 = arith.constant 0 : index
    %588 = vector.load %arg6[%c240_666, %c0_667] : memref<256x8xbf16, #tpu.memory_space<vmem>>, vector<16x8xbf16>
    tpu.vector_store %arg6[%c240_666, %c0_667], %587 {strides = array<i32>} : memref<256x8xbf16, #tpu.memory_space<vmem>>, vector<16x8xbf16>,
    %c0_668 = arith.constant 0 : index
    %c0_669 = arith.constant 0 : index
    %589 = vector.load %arg6[%c0_668, %c0_669] : memref<256x8xbf16, #tpu.memory_space<vmem>>, vector<256x8xbf16>
    %c48_670 = arith.constant 48 : index
    %c0_671 = arith.constant 0 : index
    %590 = vector.load %arg3[%c48_670, %c0_671] : memref<72x64xbf16, #tpu.memory_space<vmem>>, vector<8x64xbf16>
    %cst_672 = arith.constant dense<0.000000e+00> : vector<256x64xf32>
    %591 = tpu.matmul %589, %590, %cst_672 {dimension_numbers = #tpu.dot_dimension_numbers<[1], [0], [0], [1], [0, 0, 1, 1], [], []>} : vector<256x8xbf16>, vector<8x64xbf16>, vector<256x64xf32> -> vector<256x64xf32>
    %592 = arith.addf %507, %591 : vector<256x64xf32>
    %c0_i32_673 = arith.constant 0 : i32
    %593 = arith.addi %508, %c0_i32_673 : i32
    %c0_674 = arith.constant 0 : index
    %594 = arith.index_cast %593 : i32 to index
    %c1_675 = arith.constant 1 : index
    %c0_676 = arith.constant 0 : index
    %595 = vector.load %arg2[%c0_674, %594, %c1_675, %c0_676] : memref<1x18x18x8xbf16, #tpu.memory_space<vmem>>, vector<1x1x16x8xbf16>
    %596 = vector.shape_cast %595 : vector<1x1x16x8xbf16> to vector<16x8xbf16>
    %c0_677 = arith.constant 0 : index
    %c0_678 = arith.constant 0 : index
    %597 = vector.load %arg6[%c0_677, %c0_678] : memref<256x8xbf16, #tpu.memory_space<vmem>>, vector<16x8xbf16>
    tpu.vector_store %arg6[%c0_677, %c0_678], %596 {strides = array<i32>} : memref<256x8xbf16, #tpu.memory_space<vmem>>, vector<16x8xbf16>,
    %c1_i32_679 = arith.constant 1 : i32
    %598 = arith.addi %508, %c1_i32_679 : i32
    %c0_680 = arith.constant 0 : index
    %599 = arith.index_cast %598 : i32 to index
    %c1_681 = arith.constant 1 : index
    %c0_682 = arith.constant 0 : index
    %600 = vector.load %arg2[%c0_680, %599, %c1_681, %c0_682] : memref<1x18x18x8xbf16, #tpu.memory_space<vmem>>, vector<1x1x16x8xbf16>
    %601 = vector.shape_cast %600 : vector<1x1x16x8xbf16> to vector<16x8xbf16>
    %c16_683 = arith.constant 16 : index
    %c0_684 = arith.constant 0 : index
    %602 = vector.load %arg6[%c16_683, %c0_684] : memref<256x8xbf16, #tpu.memory_space<vmem>>, vector<16x8xbf16>
    tpu.vector_store %arg6[%c16_683, %c0_684], %601 {strides = array<i32>} : memref<256x8xbf16, #tpu.memory_space<vmem>>, vector<16x8xbf16>,
    %c2_i32_685 = arith.constant 2 : i32
    %603 = arith.addi %508, %c2_i32_685 : i32
    %c0_686 = arith.constant 0 : index
    %604 = arith.index_cast %603 : i32 to index
    %c1_687 = arith.constant 1 : index
    %c0_688 = arith.constant 0 : index
    %605 = vector.load %arg2[%c0_686, %604, %c1_687, %c0_688] : memref<1x18x18x8xbf16, #tpu.memory_space<vmem>>, vector<1x1x16x8xbf16>
    %606 = vector.shape_cast %605 : vector<1x1x16x8xbf16> to vector<16x8xbf16>
    %c32_689 = arith.constant 32 : index
    %c0_690 = arith.constant 0 : index
    %607 = vector.load %arg6[%c32_689, %c0_690] : memref<256x8xbf16, #tpu.memory_space<vmem>>, vector<16x8xbf16>
    tpu.vector_store %arg6[%c32_689, %c0_690], %606 {strides = array<i32>} : memref<256x8xbf16, #tpu.memory_space<vmem>>, vector<16x8xbf16>,
    %c3_i32_691 = arith.constant 3 : i32
    %608 = arith.addi %508, %c3_i32_691 : i32
    %c0_692 = arith.constant 0 : index
    %609 = arith.index_cast %608 : i32 to index
    %c1_693 = arith.constant 1 : index
    %c0_694 = arith.constant 0 : index
    %610 = vector.load %arg2[%c0_692, %609, %c1_693, %c0_694] : memref<1x18x18x8xbf16, #tpu.memory_space<vmem>>, vector<1x1x16x8xbf16>
    %611 = vector.shape_cast %610 : vector<1x1x16x8xbf16> to vector<16x8xbf16>
    %c48_695 = arith.constant 48 : index
    %c0_696 = arith.constant 0 : index
    %612 = vector.load %arg6[%c48_695, %c0_696] : memref<256x8xbf16, #tpu.memory_space<vmem>>, vector<16x8xbf16>
    tpu.vector_store %arg6[%c48_695, %c0_696], %611 {strides = array<i32>} : memref<256x8xbf16, #tpu.memory_space<vmem>>, vector<16x8xbf16>,
    %c4_i32_697 = arith.constant 4 : i32
    %613 = arith.addi %508, %c4_i32_697 : i32
    %c0_698 = arith.constant 0 : index
    %614 = arith.index_cast %613 : i32 to index
    %c1_699 = arith.constant 1 : index
    %c0_700 = arith.constant 0 : index
    %615 = vector.load %arg2[%c0_698, %614, %c1_699, %c0_700] : memref<1x18x18x8xbf16, #tpu.memory_space<vmem>>, vector<1x1x16x8xbf16>
    %616 = vector.shape_cast %615 : vector<1x1x16x8xbf16> to vector<16x8xbf16>
    %c64_701 = arith.constant 64 : index
    %c0_702 = arith.constant 0 : index
    %617 = vector.load %arg6[%c64_701, %c0_702] : memref<256x8xbf16, #tpu.memory_space<vmem>>, vector<16x8xbf16>
    tpu.vector_store %arg6[%c64_701, %c0_702], %616 {strides = array<i32>} : memref<256x8xbf16, #tpu.memory_space<vmem>>, vector<16x8xbf16>,
    %c5_i32_703 = arith.constant 5 : i32
    %618 = arith.addi %508, %c5_i32_703 : i32
    %c0_704 = arith.constant 0 : index
    %619 = arith.index_cast %618 : i32 to index
    %c1_705 = arith.constant 1 : index
    %c0_706 = arith.constant 0 : index
    %620 = vector.load %arg2[%c0_704, %619, %c1_705, %c0_706] : memref<1x18x18x8xbf16, #tpu.memory_space<vmem>>, vector<1x1x16x8xbf16>
    %621 = vector.shape_cast %620 : vector<1x1x16x8xbf16> to vector<16x8xbf16>
    %c80_707 = arith.constant 80 : index
    %c0_708 = arith.constant 0 : index
    %622 = vector.load %arg6[%c80_707, %c0_708] : memref<256x8xbf16, #tpu.memory_space<vmem>>, vector<16x8xbf16>
    tpu.vector_store %arg6[%c80_707, %c0_708], %621 {strides = array<i32>} : memref<256x8xbf16, #tpu.memory_space<vmem>>, vector<16x8xbf16>,
    %c6_i32_709 = arith.constant 6 : i32
    %623 = arith.addi %508, %c6_i32_709 : i32
    %c0_710 = arith.constant 0 : index
    %624 = arith.index_cast %623 : i32 to index
    %c1_711 = arith.constant 1 : index
    %c0_712 = arith.constant 0 : index
    %625 = vector.load %arg2[%c0_710, %624, %c1_711, %c0_712] : memref<1x18x18x8xbf16, #tpu.memory_space<vmem>>, vector<1x1x16x8xbf16>
    %626 = vector.shape_cast %625 : vector<1x1x16x8xbf16> to vector<16x8xbf16>
    %c96_713 = arith.constant 96 : index
    %c0_714 = arith.constant 0 : index
    %627 = vector.load %arg6[%c96_713, %c0_714] : memref<256x8xbf16, #tpu.memory_space<vmem>>, vector<16x8xbf16>
    tpu.vector_store %arg6[%c96_713, %c0_714], %626 {strides = array<i32>} : memref<256x8xbf16, #tpu.memory_space<vmem>>, vector<16x8xbf16>,
    %c7_i32_715 = arith.constant 7 : i32
    %628 = arith.addi %508, %c7_i32_715 : i32
    %c0_716 = arith.constant 0 : index
    %629 = arith.index_cast %628 : i32 to index
    %c1_717 = arith.constant 1 : index
    %c0_718 = arith.constant 0 : index
    %630 = vector.load %arg2[%c0_716, %629, %c1_717, %c0_718] : memref<1x18x18x8xbf16, #tpu.memory_space<vmem>>, vector<1x1x16x8xbf16>
    %631 = vector.shape_cast %630 : vector<1x1x16x8xbf16> to vector<16x8xbf16>
    %c112_719 = arith.constant 112 : index
    %c0_720 = arith.constant 0 : index
    %632 = vector.load %arg6[%c112_719, %c0_720] : memref<256x8xbf16, #tpu.memory_space<vmem>>, vector<16x8xbf16>
    tpu.vector_store %arg6[%c112_719, %c0_720], %631 {strides = array<i32>} : memref<256x8xbf16, #tpu.memory_space<vmem>>, vector<16x8xbf16>,
    %c8_i32_721 = arith.constant 8 : i32
    %633 = arith.addi %508, %c8_i32_721 : i32
    %c0_722 = arith.constant 0 : index
    %634 = arith.index_cast %633 : i32 to index
    %c1_723 = arith.constant 1 : index
    %c0_724 = arith.constant 0 : index
    %635 = vector.load %arg2[%c0_722, %634, %c1_723, %c0_724] : memref<1x18x18x8xbf16, #tpu.memory_space<vmem>>, vector<1x1x16x8xbf16>
    %636 = vector.shape_cast %635 : vector<1x1x16x8xbf16> to vector<16x8xbf16>
    %c128_725 = arith.constant 128 : index
    %c0_726 = arith.constant 0 : index
    %637 = vector.load %arg6[%c128_725, %c0_726] : memref<256x8xbf16, #tpu.memory_space<vmem>>, vector<16x8xbf16>
    tpu.vector_store %arg6[%c128_725, %c0_726], %636 {strides = array<i32>} : memref<256x8xbf16, #tpu.memory_space<vmem>>, vector<16x8xbf16>,
    %c9_i32_727 = arith.constant 9 : i32
    %638 = arith.addi %508, %c9_i32_727 : i32
    %c0_728 = arith.constant 0 : index
    %639 = arith.index_cast %638 : i32 to index
    %c1_729 = arith.constant 1 : index
    %c0_730 = arith.constant 0 : index
    %640 = vector.load %arg2[%c0_728, %639, %c1_729, %c0_730] : memref<1x18x18x8xbf16, #tpu.memory_space<vmem>>, vector<1x1x16x8xbf16>
    %641 = vector.shape_cast %640 : vector<1x1x16x8xbf16> to vector<16x8xbf16>
    %c144_731 = arith.constant 144 : index
    %c0_732 = arith.constant 0 : index
    %642 = vector.load %arg6[%c144_731, %c0_732] : memref<256x8xbf16, #tpu.memory_space<vmem>>, vector<16x8xbf16>
    tpu.vector_store %arg6[%c144_731, %c0_732], %641 {strides = array<i32>} : memref<256x8xbf16, #tpu.memory_space<vmem>>, vector<16x8xbf16>,
    %c10_i32_733 = arith.constant 10 : i32
    %643 = arith.addi %508, %c10_i32_733 : i32
    %c0_734 = arith.constant 0 : index
    %644 = arith.index_cast %643 : i32 to index
    %c1_735 = arith.constant 1 : index
    %c0_736 = arith.constant 0 : index
    %645 = vector.load %arg2[%c0_734, %644, %c1_735, %c0_736] : memref<1x18x18x8xbf16, #tpu.memory_space<vmem>>, vector<1x1x16x8xbf16>
    %646 = vector.shape_cast %645 : vector<1x1x16x8xbf16> to vector<16x8xbf16>
    %c160_737 = arith.constant 160 : index
    %c0_738 = arith.constant 0 : index
    %647 = vector.load %arg6[%c160_737, %c0_738] : memref<256x8xbf16, #tpu.memory_space<vmem>>, vector<16x8xbf16>
    tpu.vector_store %arg6[%c160_737, %c0_738], %646 {strides = array<i32>} : memref<256x8xbf16, #tpu.memory_space<vmem>>, vector<16x8xbf16>,
    %c11_i32_739 = arith.constant 11 : i32
    %648 = arith.addi %508, %c11_i32_739 : i32
    %c0_740 = arith.constant 0 : index
    %649 = arith.index_cast %648 : i32 to index
    %c1_741 = arith.constant 1 : index
    %c0_742 = arith.constant 0 : index
    %650 = vector.load %arg2[%c0_740, %649, %c1_741, %c0_742] : memref<1x18x18x8xbf16, #tpu.memory_space<vmem>>, vector<1x1x16x8xbf16>
    %651 = vector.shape_cast %650 : vector<1x1x16x8xbf16> to vector<16x8xbf16>
    %c176_743 = arith.constant 176 : index
    %c0_744 = arith.constant 0 : index
    %652 = vector.load %arg6[%c176_743, %c0_744] : memref<256x8xbf16, #tpu.memory_space<vmem>>, vector<16x8xbf16>
    tpu.vector_store %arg6[%c176_743, %c0_744], %651 {strides = array<i32>} : memref<256x8xbf16, #tpu.memory_space<vmem>>, vector<16x8xbf16>,
    %c12_i32_745 = arith.constant 12 : i32
    %653 = arith.addi %508, %c12_i32_745 : i32
    %c0_746 = arith.constant 0 : index
    %654 = arith.index_cast %653 : i32 to index
    %c1_747 = arith.constant 1 : index
    %c0_748 = arith.constant 0 : index
    %655 = vector.load %arg2[%c0_746, %654, %c1_747, %c0_748] : memref<1x18x18x8xbf16, #tpu.memory_space<vmem>>, vector<1x1x16x8xbf16>
    %656 = vector.shape_cast %655 : vector<1x1x16x8xbf16> to vector<16x8xbf16>
    %c192_749 = arith.constant 192 : index
    %c0_750 = arith.constant 0 : index
    %657 = vector.load %arg6[%c192_749, %c0_750] : memref<256x8xbf16, #tpu.memory_space<vmem>>, vector<16x8xbf16>
    tpu.vector_store %arg6[%c192_749, %c0_750], %656 {strides = array<i32>} : memref<256x8xbf16, #tpu.memory_space<vmem>>, vector<16x8xbf16>,
    %c13_i32_751 = arith.constant 13 : i32
    %658 = arith.addi %508, %c13_i32_751 : i32
    %c0_752 = arith.constant 0 : index
    %659 = arith.index_cast %658 : i32 to index
    %c1_753 = arith.constant 1 : index
    %c0_754 = arith.constant 0 : index
    %660 = vector.load %arg2[%c0_752, %659, %c1_753, %c0_754] : memref<1x18x18x8xbf16, #tpu.memory_space<vmem>>, vector<1x1x16x8xbf16>
    %661 = vector.shape_cast %660 : vector<1x1x16x8xbf16> to vector<16x8xbf16>
    %c208_755 = arith.constant 208 : index
    %c0_756 = arith.constant 0 : index
    %662 = vector.load %arg6[%c208_755, %c0_756] : memref<256x8xbf16, #tpu.memory_space<vmem>>, vector<16x8xbf16>
    tpu.vector_store %arg6[%c208_755, %c0_756], %661 {strides = array<i32>} : memref<256x8xbf16, #tpu.memory_space<vmem>>, vector<16x8xbf16>,
    %c14_i32_757 = arith.constant 14 : i32
    %663 = arith.addi %508, %c14_i32_757 : i32
    %c0_758 = arith.constant 0 : index
    %664 = arith.index_cast %663 : i32 to index
    %c1_759 = arith.constant 1 : index
    %c0_760 = arith.constant 0 : index
    %665 = vector.load %arg2[%c0_758, %664, %c1_759, %c0_760] : memref<1x18x18x8xbf16, #tpu.memory_space<vmem>>, vector<1x1x16x8xbf16>
    %666 = vector.shape_cast %665 : vector<1x1x16x8xbf16> to vector<16x8xbf16>
    %c224_761 = arith.constant 224 : index
    %c0_762 = arith.constant 0 : index
    %667 = vector.load %arg6[%c224_761, %c0_762] : memref<256x8xbf16, #tpu.memory_space<vmem>>, vector<16x8xbf16>
    tpu.vector_store %arg6[%c224_761, %c0_762], %666 {strides = array<i32>} : memref<256x8xbf16, #tpu.memory_space<vmem>>, vector<16x8xbf16>,
    %c15_i32_763 = arith.constant 15 : i32
    %668 = arith.addi %508, %c15_i32_763 : i32
    %c0_764 = arith.constant 0 : index
    %669 = arith.index_cast %668 : i32 to index
    %c1_765 = arith.constant 1 : index
    %c0_766 = arith.constant 0 : index
    %670 = vector.load %arg2[%c0_764, %669, %c1_765, %c0_766] : memref<1x18x18x8xbf16, #tpu.memory_space<vmem>>, vector<1x1x16x8xbf16>
    %671 = vector.shape_cast %670 : vector<1x1x16x8xbf16> to vector<16x8xbf16>
    %c240_767 = arith.constant 240 : index
    %c0_768 = arith.constant 0 : index
    %672 = vector.load %arg6[%c240_767, %c0_768] : memref<256x8xbf16, #tpu.memory_space<vmem>>, vector<16x8xbf16>
    tpu.vector_store %arg6[%c240_767, %c0_768], %671 {strides = array<i32>} : memref<256x8xbf16, #tpu.memory_space<vmem>>, vector<16x8xbf16>,
    %c0_769 = arith.constant 0 : index
    %c0_770 = arith.constant 0 : index
    %673 = vector.load %arg6[%c0_769, %c0_770] : memref<256x8xbf16, #tpu.memory_space<vmem>>, vector<256x8xbf16>
    %c56 = arith.constant 56 : index
    %c0_771 = arith.constant 0 : index
    %674 = vector.load %arg3[%c56, %c0_771] : memref<72x64xbf16, #tpu.memory_space<vmem>>, vector<8x64xbf16>
    %cst_772 = arith.constant dense<0.000000e+00> : vector<256x64xf32>
    %675 = tpu.matmul %673, %674, %cst_772 {dimension_numbers = #tpu.dot_dimension_numbers<[1], [0], [0], [1], [0, 0, 1, 1], [], []>} : vector<256x8xbf16>, vector<8x64xbf16>, vector<256x64xf32> -> vector<256x64xf32>
    %676 = arith.addf %592, %675 : vector<256x64xf32>
    %c0_i32_773 = arith.constant 0 : i32
    %677 = arith.addi %508, %c0_i32_773 : i32
    %c0_774 = arith.constant 0 : index
    %678 = arith.index_cast %677 : i32 to index
    %c2_775 = arith.constant 2 : index
    %c0_776 = arith.constant 0 : index
    %679 = vector.load %arg2[%c0_774, %678, %c2_775, %c0_776] : memref<1x18x18x8xbf16, #tpu.memory_space<vmem>>, vector<1x1x16x8xbf16>
    %680 = vector.shape_cast %679 : vector<1x1x16x8xbf16> to vector<16x8xbf16>
    %c0_777 = arith.constant 0 : index
    %c0_778 = arith.constant 0 : index
    %681 = vector.load %arg6[%c0_777, %c0_778] : memref<256x8xbf16, #tpu.memory_space<vmem>>, vector<16x8xbf16>
    tpu.vector_store %arg6[%c0_777, %c0_778], %680 {strides = array<i32>} : memref<256x8xbf16, #tpu.memory_space<vmem>>, vector<16x8xbf16>,
    %c1_i32_779 = arith.constant 1 : i32
    %682 = arith.addi %508, %c1_i32_779 : i32
    %c0_780 = arith.constant 0 : index
    %683 = arith.index_cast %682 : i32 to index
    %c2_781 = arith.constant 2 : index
    %c0_782 = arith.constant 0 : index
    %684 = vector.load %arg2[%c0_780, %683, %c2_781, %c0_782] : memref<1x18x18x8xbf16, #tpu.memory_space<vmem>>, vector<1x1x16x8xbf16>
    %685 = vector.shape_cast %684 : vector<1x1x16x8xbf16> to vector<16x8xbf16>
    %c16_783 = arith.constant 16 : index
    %c0_784 = arith.constant 0 : index
    %686 = vector.load %arg6[%c16_783, %c0_784] : memref<256x8xbf16, #tpu.memory_space<vmem>>, vector<16x8xbf16>
    tpu.vector_store %arg6[%c16_783, %c0_784], %685 {strides = array<i32>} : memref<256x8xbf16, #tpu.memory_space<vmem>>, vector<16x8xbf16>,
    %c2_i32_785 = arith.constant 2 : i32
    %687 = arith.addi %508, %c2_i32_785 : i32
    %c0_786 = arith.constant 0 : index
    %688 = arith.index_cast %687 : i32 to index
    %c2_787 = arith.constant 2 : index
    %c0_788 = arith.constant 0 : index
    %689 = vector.load %arg2[%c0_786, %688, %c2_787, %c0_788] : memref<1x18x18x8xbf16, #tpu.memory_space<vmem>>, vector<1x1x16x8xbf16>
    %690 = vector.shape_cast %689 : vector<1x1x16x8xbf16> to vector<16x8xbf16>
    %c32_789 = arith.constant 32 : index
    %c0_790 = arith.constant 0 : index
    %691 = vector.load %arg6[%c32_789, %c0_790] : memref<256x8xbf16, #tpu.memory_space<vmem>>, vector<16x8xbf16>
    tpu.vector_store %arg6[%c32_789, %c0_790], %690 {strides = array<i32>} : memref<256x8xbf16, #tpu.memory_space<vmem>>, vector<16x8xbf16>,
    %c3_i32_791 = arith.constant 3 : i32
    %692 = arith.addi %508, %c3_i32_791 : i32
    %c0_792 = arith.constant 0 : index
    %693 = arith.index_cast %692 : i32 to index
    %c2_793 = arith.constant 2 : index
    %c0_794 = arith.constant 0 : index
    %694 = vector.load %arg2[%c0_792, %693, %c2_793, %c0_794] : memref<1x18x18x8xbf16, #tpu.memory_space<vmem>>, vector<1x1x16x8xbf16>
    %695 = vector.shape_cast %694 : vector<1x1x16x8xbf16> to vector<16x8xbf16>
    %c48_795 = arith.constant 48 : index
    %c0_796 = arith.constant 0 : index
    %696 = vector.load %arg6[%c48_795, %c0_796] : memref<256x8xbf16, #tpu.memory_space<vmem>>, vector<16x8xbf16>
    tpu.vector_store %arg6[%c48_795, %c0_796], %695 {strides = array<i32>} : memref<256x8xbf16, #tpu.memory_space<vmem>>, vector<16x8xbf16>,
    %c4_i32_797 = arith.constant 4 : i32
    %697 = arith.addi %508, %c4_i32_797 : i32
    %c0_798 = arith.constant 0 : index
    %698 = arith.index_cast %697 : i32 to index
    %c2_799 = arith.constant 2 : index
    %c0_800 = arith.constant 0 : index
    %699 = vector.load %arg2[%c0_798, %698, %c2_799, %c0_800] : memref<1x18x18x8xbf16, #tpu.memory_space<vmem>>, vector<1x1x16x8xbf16>
    %700 = vector.shape_cast %699 : vector<1x1x16x8xbf16> to vector<16x8xbf16>
    %c64_801 = arith.constant 64 : index
    %c0_802 = arith.constant 0 : index
    %701 = vector.load %arg6[%c64_801, %c0_802] : memref<256x8xbf16, #tpu.memory_space<vmem>>, vector<16x8xbf16>
    tpu.vector_store %arg6[%c64_801, %c0_802], %700 {strides = array<i32>} : memref<256x8xbf16, #tpu.memory_space<vmem>>, vector<16x8xbf16>,
    %c5_i32_803 = arith.constant 5 : i32
    %702 = arith.addi %508, %c5_i32_803 : i32
    %c0_804 = arith.constant 0 : index
    %703 = arith.index_cast %702 : i32 to index
    %c2_805 = arith.constant 2 : index
    %c0_806 = arith.constant 0 : index
    %704 = vector.load %arg2[%c0_804, %703, %c2_805, %c0_806] : memref<1x18x18x8xbf16, #tpu.memory_space<vmem>>, vector<1x1x16x8xbf16>
    %705 = vector.shape_cast %704 : vector<1x1x16x8xbf16> to vector<16x8xbf16>
    %c80_807 = arith.constant 80 : index
    %c0_808 = arith.constant 0 : index
    %706 = vector.load %arg6[%c80_807, %c0_808] : memref<256x8xbf16, #tpu.memory_space<vmem>>, vector<16x8xbf16>
    tpu.vector_store %arg6[%c80_807, %c0_808], %705 {strides = array<i32>} : memref<256x8xbf16, #tpu.memory_space<vmem>>, vector<16x8xbf16>,
    %c6_i32_809 = arith.constant 6 : i32
    %707 = arith.addi %508, %c6_i32_809 : i32
    %c0_810 = arith.constant 0 : index
    %708 = arith.index_cast %707 : i32 to index
    %c2_811 = arith.constant 2 : index
    %c0_812 = arith.constant 0 : index
    %709 = vector.load %arg2[%c0_810, %708, %c2_811, %c0_812] : memref<1x18x18x8xbf16, #tpu.memory_space<vmem>>, vector<1x1x16x8xbf16>
    %710 = vector.shape_cast %709 : vector<1x1x16x8xbf16> to vector<16x8xbf16>
    %c96_813 = arith.constant 96 : index
    %c0_814 = arith.constant 0 : index
    %711 = vector.load %arg6[%c96_813, %c0_814] : memref<256x8xbf16, #tpu.memory_space<vmem>>, vector<16x8xbf16>
    tpu.vector_store %arg6[%c96_813, %c0_814], %710 {strides = array<i32>} : memref<256x8xbf16, #tpu.memory_space<vmem>>, vector<16x8xbf16>,
    %c7_i32_815 = arith.constant 7 : i32
    %712 = arith.addi %508, %c7_i32_815 : i32
    %c0_816 = arith.constant 0 : index
    %713 = arith.index_cast %712 : i32 to index
    %c2_817 = arith.constant 2 : index
    %c0_818 = arith.constant 0 : index
    %714 = vector.load %arg2[%c0_816, %713, %c2_817, %c0_818] : memref<1x18x18x8xbf16, #tpu.memory_space<vmem>>, vector<1x1x16x8xbf16>
    %715 = vector.shape_cast %714 : vector<1x1x16x8xbf16> to vector<16x8xbf16>
    %c112_819 = arith.constant 112 : index
    %c0_820 = arith.constant 0 : index
    %716 = vector.load %arg6[%c112_819, %c0_820] : memref<256x8xbf16, #tpu.memory_space<vmem>>, vector<16x8xbf16>
    tpu.vector_store %arg6[%c112_819, %c0_820], %715 {strides = array<i32>} : memref<256x8xbf16, #tpu.memory_space<vmem>>, vector<16x8xbf16>,
    %c8_i32_821 = arith.constant 8 : i32
    %717 = arith.addi %508, %c8_i32_821 : i32
    %c0_822 = arith.constant 0 : index
    %718 = arith.index_cast %717 : i32 to index
    %c2_823 = arith.constant 2 : index
    %c0_824 = arith.constant 0 : index
    %719 = vector.load %arg2[%c0_822, %718, %c2_823, %c0_824] : memref<1x18x18x8xbf16, #tpu.memory_space<vmem>>, vector<1x1x16x8xbf16>
    %720 = vector.shape_cast %719 : vector<1x1x16x8xbf16> to vector<16x8xbf16>
    %c128_825 = arith.constant 128 : index
    %c0_826 = arith.constant 0 : index
    %721 = vector.load %arg6[%c128_825, %c0_826] : memref<256x8xbf16, #tpu.memory_space<vmem>>, vector<16x8xbf16>
    tpu.vector_store %arg6[%c128_825, %c0_826], %720 {strides = array<i32>} : memref<256x8xbf16, #tpu.memory_space<vmem>>, vector<16x8xbf16>,
    %c9_i32_827 = arith.constant 9 : i32
    %722 = arith.addi %508, %c9_i32_827 : i32
    %c0_828 = arith.constant 0 : index
    %723 = arith.index_cast %722 : i32 to index
    %c2_829 = arith.constant 2 : index
    %c0_830 = arith.constant 0 : index
    %724 = vector.load %arg2[%c0_828, %723, %c2_829, %c0_830] : memref<1x18x18x8xbf16, #tpu.memory_space<vmem>>, vector<1x1x16x8xbf16>
    %725 = vector.shape_cast %724 : vector<1x1x16x8xbf16> to vector<16x8xbf16>
    %c144_831 = arith.constant 144 : index
    %c0_832 = arith.constant 0 : index
    %726 = vector.load %arg6[%c144_831, %c0_832] : memref<256x8xbf16, #tpu.memory_space<vmem>>, vector<16x8xbf16>
    tpu.vector_store %arg6[%c144_831, %c0_832], %725 {strides = array<i32>} : memref<256x8xbf16, #tpu.memory_space<vmem>>, vector<16x8xbf16>,
    %c10_i32_833 = arith.constant 10 : i32
    %727 = arith.addi %508, %c10_i32_833 : i32
    %c0_834 = arith.constant 0 : index
    %728 = arith.index_cast %727 : i32 to index
    %c2_835 = arith.constant 2 : index
    %c0_836 = arith.constant 0 : index
    %729 = vector.load %arg2[%c0_834, %728, %c2_835, %c0_836] : memref<1x18x18x8xbf16, #tpu.memory_space<vmem>>, vector<1x1x16x8xbf16>
    %730 = vector.shape_cast %729 : vector<1x1x16x8xbf16> to vector<16x8xbf16>
    %c160_837 = arith.constant 160 : index
    %c0_838 = arith.constant 0 : index
    %731 = vector.load %arg6[%c160_837, %c0_838] : memref<256x8xbf16, #tpu.memory_space<vmem>>, vector<16x8xbf16>
    tpu.vector_store %arg6[%c160_837, %c0_838], %730 {strides = array<i32>} : memref<256x8xbf16, #tpu.memory_space<vmem>>, vector<16x8xbf16>,
    %c11_i32_839 = arith.constant 11 : i32
    %732 = arith.addi %508, %c11_i32_839 : i32
    %c0_840 = arith.constant 0 : index
    %733 = arith.index_cast %732 : i32 to index
    %c2_841 = arith.constant 2 : index
    %c0_842 = arith.constant 0 : index
    %734 = vector.load %arg2[%c0_840, %733, %c2_841, %c0_842] : memref<1x18x18x8xbf16, #tpu.memory_space<vmem>>, vector<1x1x16x8xbf16>
    %735 = vector.shape_cast %734 : vector<1x1x16x8xbf16> to vector<16x8xbf16>
    %c176_843 = arith.constant 176 : index
    %c0_844 = arith.constant 0 : index
    %736 = vector.load %arg6[%c176_843, %c0_844] : memref<256x8xbf16, #tpu.memory_space<vmem>>, vector<16x8xbf16>
    tpu.vector_store %arg6[%c176_843, %c0_844], %735 {strides = array<i32>} : memref<256x8xbf16, #tpu.memory_space<vmem>>, vector<16x8xbf16>,
    %c12_i32_845 = arith.constant 12 : i32
    %737 = arith.addi %508, %c12_i32_845 : i32
    %c0_846 = arith.constant 0 : index
    %738 = arith.index_cast %737 : i32 to index
    %c2_847 = arith.constant 2 : index
    %c0_848 = arith.constant 0 : index
    %739 = vector.load %arg2[%c0_846, %738, %c2_847, %c0_848] : memref<1x18x18x8xbf16, #tpu.memory_space<vmem>>, vector<1x1x16x8xbf16>
    %740 = vector.shape_cast %739 : vector<1x1x16x8xbf16> to vector<16x8xbf16>
    %c192_849 = arith.constant 192 : index
    %c0_850 = arith.constant 0 : index
    %741 = vector.load %arg6[%c192_849, %c0_850] : memref<256x8xbf16, #tpu.memory_space<vmem>>, vector<16x8xbf16>
    tpu.vector_store %arg6[%c192_849, %c0_850], %740 {strides = array<i32>} : memref<256x8xbf16, #tpu.memory_space<vmem>>, vector<16x8xbf16>,
    %c13_i32_851 = arith.constant 13 : i32
    %742 = arith.addi %508, %c13_i32_851 : i32
    %c0_852 = arith.constant 0 : index
    %743 = arith.index_cast %742 : i32 to index
    %c2_853 = arith.constant 2 : index
    %c0_854 = arith.constant 0 : index
    %744 = vector.load %arg2[%c0_852, %743, %c2_853, %c0_854] : memref<1x18x18x8xbf16, #tpu.memory_space<vmem>>, vector<1x1x16x8xbf16>
    %745 = vector.shape_cast %744 : vector<1x1x16x8xbf16> to vector<16x8xbf16>
    %c208_855 = arith.constant 208 : index
    %c0_856 = arith.constant 0 : index
    %746 = vector.load %arg6[%c208_855, %c0_856] : memref<256x8xbf16, #tpu.memory_space<vmem>>, vector<16x8xbf16>
    tpu.vector_store %arg6[%c208_855, %c0_856], %745 {strides = array<i32>} : memref<256x8xbf16, #tpu.memory_space<vmem>>, vector<16x8xbf16>,
    %c14_i32_857 = arith.constant 14 : i32
    %747 = arith.addi %508, %c14_i32_857 : i32
    %c0_858 = arith.constant 0 : index
    %748 = arith.index_cast %747 : i32 to index
    %c2_859 = arith.constant 2 : index
    %c0_860 = arith.constant 0 : index
    %749 = vector.load %arg2[%c0_858, %748, %c2_859, %c0_860] : memref<1x18x18x8xbf16, #tpu.memory_space<vmem>>, vector<1x1x16x8xbf16>
    %750 = vector.shape_cast %749 : vector<1x1x16x8xbf16> to vector<16x8xbf16>
    %c224_861 = arith.constant 224 : index
    %c0_862 = arith.constant 0 : index
    %751 = vector.load %arg6[%c224_861, %c0_862] : memref<256x8xbf16, #tpu.memory_space<vmem>>, vector<16x8xbf16>
    tpu.vector_store %arg6[%c224_861, %c0_862], %750 {strides = array<i32>} : memref<256x8xbf16, #tpu.memory_space<vmem>>, vector<16x8xbf16>,
    %c15_i32_863 = arith.constant 15 : i32
    %752 = arith.addi %508, %c15_i32_863 : i32
    %c0_864 = arith.constant 0 : index
    %753 = arith.index_cast %752 : i32 to index
    %c2_865 = arith.constant 2 : index
    %c0_866 = arith.constant 0 : index
    %754 = vector.load %arg2[%c0_864, %753, %c2_865, %c0_866] : memref<1x18x18x8xbf16, #tpu.memory_space<vmem>>, vector<1x1x16x8xbf16>
    %755 = vector.shape_cast %754 : vector<1x1x16x8xbf16> to vector<16x8xbf16>
    %c240_867 = arith.constant 240 : index
    %c0_868 = arith.constant 0 : index
    %756 = vector.load %arg6[%c240_867, %c0_868] : memref<256x8xbf16, #tpu.memory_space<vmem>>, vector<16x8xbf16>
    tpu.vector_store %arg6[%c240_867, %c0_868], %755 {strides = array<i32>} : memref<256x8xbf16, #tpu.memory_space<vmem>>, vector<16x8xbf16>,
    %c0_869 = arith.constant 0 : index
    %c0_870 = arith.constant 0 : index
    %757 = vector.load %arg6[%c0_869, %c0_870] : memref<256x8xbf16, #tpu.memory_space<vmem>>, vector<256x8xbf16>
    %c64_871 = arith.constant 64 : index
    %c0_872 = arith.constant 0 : index
    %758 = vector.load %arg3[%c64_871, %c0_872] : memref<72x64xbf16, #tpu.memory_space<vmem>>, vector<8x64xbf16>
    %cst_873 = arith.constant dense<0.000000e+00> : vector<256x64xf32>
    %759 = tpu.matmul %757, %758, %cst_873 {dimension_numbers = #tpu.dot_dimension_numbers<[1], [0], [0], [1], [0, 0, 1, 1], [], []>} : vector<256x8xbf16>, vector<8x64xbf16>, vector<256x64xf32> -> vector<256x64xf32>
    %760 = arith.addf %676, %759 : vector<256x64xf32>
    %c0_874 = arith.constant 0 : index
    %c0_875 = arith.constant 0 : index
    %761 = vector.load %arg4[%c0_874, %c0_875] : memref<1x64xf32, #tpu.memory_space<vmem>>, vector<1x64xf32>
    %762 = vector.broadcast %761 : vector<1x64xf32> to vector<256x64xf32>
    %763 = arith.addf %760, %762 : vector<256x64xf32>
    %cst_876 = arith.constant 0.000000e+00 : f32
    %764 = vector.broadcast %cst_876 : f32 to vector<256x64xf32>
    %765 = arith.cmpf oge, %763, %764 : vector<256x64xf32>
    %cst_877 = arith.constant 2.000000e-01 : f32
    %766 = vector.broadcast %cst_877 : f32 to vector<256x64xf32>
    %767 = arith.mulf %766, %763 : vector<256x64xf32>
    %768 = arith.select %765, %763, %767 : vector<256x64xi1>, vector<256x64xf32>
    %769 = arith.truncf %768 : vector<256x64xf32> to vector<256x64xbf16>
    %c0_878 = arith.constant 0 : index
    %c0_879 = arith.constant 0 : index
    %c0_880 = arith.constant 0 : index
    %770 = vector.load %arg5[%c0_878, %c0_879, %c0_880] : memref<1x256x64xbf16, #tpu.memory_space<vmem>>, vector<1x256x64xbf16>
    %771 = vector.shape_cast %770 : vector<1x256x64xbf16> to vector<256x64xbf16>
    %772 = vector.shape_cast %769 : vector<256x64xbf16> to vector<1x256x64xbf16>
    tpu.vector_store %arg5[%c0_878, %c0_879, %c0_880], %772 {strides = array<i32>} : memref<1x256x64xbf16, #tpu.memory_space<vmem>>, vector<1x256x64xbf16>,
    return
  }
  func.func @transform_0(%arg0: i32, %arg1: i32) -> (i32, i32, i32, i32) {
    %c0_i32 = arith.constant 0 : i32
    %c0_i32_0 = arith.constant 0 : i32
    %c0_i32_1 = arith.constant 0 : i32
    %c0_i32_2 = arith.constant 0 : i32
    return %arg0, %c0_i32, %c0_i32_0, %c0_i32_1 : i32, i32, i32, i32
  }
  func.func @transform_1(%arg0: i32, %arg1: i32) -> (i32, i32) {
    %c0_i32 = arith.constant 0 : i32
    %c0_i32_0 = arith.constant 0 : i32
    %c0_i32_1 = arith.constant 0 : i32
    return %c0_i32, %c0_i32_0 : i32, i32
  }
  func.func @transform_2(%arg0: i32, %arg1: i32) -> (i32, i32) {
    %c0_i32 = arith.constant 0 : i32
    %c0_i32_0 = arith.constant 0 : i32
    %c0_i32_1 = arith.constant 0 : i32
    return %c0_i32, %c0_i32_0 : i32, i32
  }
  func.func @transform_3(%arg0: i32, %arg1: i32) -> (i32, i32, i32) {
    %c0_i32 = arith.constant 0 : i32
    %c0_i32_0 = arith.constant 0 : i32
    return %arg0, %arg1, %c0_i32 : i32, i32, i32
  }
}

</mosaic_0001>

<bundles_post_ra>
// kernel: _conv_impl.1
= control target key start
LH: loop header
LB: loop body
LE: loop exit
PB: predicated region body
PF: predicated region fallthrough
CT: control target
= control target key end

     0   :  { %8 = vsyncpa [#allocation4], 0  ;;  %s9147_s0 = inlined_call_operand.vmem [shape: bf16[2,18,18,8], index: 0, kind: input, shape index: {}]   ;;  %s9148_s1 = inlined_call_operand.vmem [shape: bf16[72,64], index: 1, kind: input, shape index: {}]   ;;  %s9149_s2 = inlined_call_operand.vmem [shape: f32[1,64], index: 2, kind: input, shape index: {}]   ;;  %s9150_s3 = inlined_call_operand.hbm [shape: bf16[2,256,64], index: 3, kind: output, shape index: {}]  }
   0x1   :  { %10 = vsyncpa [#allocation4 + $0x1], 0  ;;  %s7087_s12 = smov 0   ;;  %s7089_s13 = smov 0  }
   0x2   :  { %s7091_s14 = smov 0   ;;  %s7093_s15 = smov 0  }
   0x3   :  { %s7095_s16 = smov 0   ;;  %s7097_s17 = smov 0  }
   0x4 LB: > { %s5621_s18 = sadd.s32 4294967295, %s7063_s17   ;;  %s5622_s19 = sadd.s32 4294967294, %s7063_s17   ;;  %s7063_s17 = sphi %s7097_s17, %s16_s17   ;;  %s7059_s16 = sphi %s7095_s16, %s9189_s16   ;;  %s7055_s15 = sphi %s7093_s15, %s9188_s15   ;;  %s7051_s14 = sphi %s7091_s14, %s9187_s14   ;;  %s7047_s13 = sphi %s7089_s13, %s9186_s13   ;;  %s7043_s12 = sphi %s7087_s12, %s9185_s12  }
   0x5   : > { %s28_s20 = sadd.s32 1, %s7059_s16  ;;  %s105_s21 = sadd.s32 1, %s7051_s14 }
   0x6   : > { %p30_p0 = scmp.ge.s32.totalorder %s28_s20, 2  ;;  %p115_p1 = scmp.ne.s32.totalorder %s7051_s14, %s7047_s13 }
   0x7   : > { %p116_p2 = scmp.eq.s32.totalorder %s5621_s18, 1  ;;  %p121_p3 = scmp.ne.s32.totalorder %s7047_s13, %s7043_s12 }
   0x8   : > { %s9191_s20 = smov (%p30_p0, %s28_s20), 0  ;;  %p122_p5 = scmp.eq.s32.totalorder %s5622_s19, 1 }
   0x9   : > { %p7127_p4 = por %p116_p2, %p115_p1  ;;  %s100_s23 = ssub.s32 %s7059_s16, %s9191_s20 }
   0xa   : > { %p5625_p6 = scmp.ge.s32.totalorder %s7063_s17, 1  ;;  %p103_p7 = scmp.eq.s32.totalorder %s100_s23, 0 }
   0xb   : > { %p7134_p8 = por %p122_p5, %p121_p3  ;;  %p154_p9 = scmp.lt.s32.totalorder %s7063_s17, 3 }
   0xc   : > { %s7140_s25 = scalar_select %p103_p7, %s7051_s14, %s105_s21  }
   0xd   : > { %p155_p10 = pnand %p5625_p6, %p154_p9 }
   0xf   : > { %158 = sbr.rel (%p155_p10) target bundleno = 834 (0x342), region = 32 }
  0x14   : > { %v878_v0 = vld [vmem:[%s9148_s1 + $0x4] sm:$0xf]  ;;  %vm1008_vm0 = vcmask 1043456   ;;  %p178_p11 = scmp.lt.s32.totalorder %s7055_s15, 1  ;;  %vm191_vm1 = vcmask 60416   ;;  %vm1327_vm4 = vcmask 1042432  }
  0x15   : > { %v1010_v1 = vsel %vm1008_vm0, %v878_v0, 0  ;;  %vm350_vm2 = vsmask.f32 3328  ;;  %vm351_vm3 = vsmask.f32 7440  ;;  %vm1328_vm5 = vcmask 1046532  }
  0x16   : > { %6922 = vmatpush.bf16.msra.mxu1 %v1010_v1  ;;  %6923 = vmatpush.bf16.msra.mxu2 %v1010_v1  ;;  %s179_s28 = scalar_select %p178_p11, %s7055_s15, 1  ;;  %vm7169_vm6 = vmor %vm350_vm2, %vm351_vm3  ;;  %vm959_vm8 = vcmask 64512   ;;  %vm5427_vm10 = vcmask 519168  }
  0x17   : > { %6924 = vmatpush.bf16.msra.mxu3 %v1010_v1  ;;  %1019 = vmatpush.bf16.msra.mxu0 %v1010_v1  ;;  %vm7179_vm7 = vmor %vm1327_vm4, %vm1328_vm5  ;;  %s175_s8 = sand.u32 1, %s7047_s13   ;;  %s6921_s18 = sshll.u32 %s7055_s15, 7 }
  0x18   : > { %s6925_s29 = smul.u32 216, %s179_s28  ;;  %s5626_s9 = sshll.u32 %s175_s8, 7 }
  0x19   : > { %s8796_s10 = scalar_lea.vmem [#allocation3], %s5626_s9  ;;  %s5474_s23 = scalar_lea.hbm %s9150_s3, %s6921_s18 }
  0x1a   : > { %s7151_s5 = scalar_lea.vmem %s9147_s0, %s6925_s29  ;;  %s5475_s26 = sshll.u32 %s8796_s10, 4  ;;  %s5476_s26 = int_to_ptr.vmem [resolvable:$true] %s5475_s26 }
  0x1b   : > { %v5634_v2 = vld [vmem:[%s7151_s5 + $0x30] sm:$0xf]  ;;  %v5635_v3 = vld [vmem:[%s7151_s5 + $0x34] sm:$0xf]  ;;  %v5669_v6 = vld [vmem:[%s7151_s5 + $0x38] sm:$0x1] }
  0x1c   : > { %v5667_v4 = vld [vmem:[%s7151_s5 + $0x30] sm:$0xf]  ;;  %224 = vst.msk [vmem:[#allocation2 + $0x20] sm:$0xf] %vm191_vm1, %v5634_v2  ;;  %v5668_v5 = vld [vmem:[%s7151_s5 + $0x34] sm:$0xf] }
  0x1d   : > { %225 = vst.msk [vmem:[#allocation2 + $0x24] sm:$0xf] %vm191_vm1, %v5635_v3  ;;  %v478_v7 = vshrl.u32 %v5667_v4, 16  ;;  %v481_v8 = vshll.u32 %v5667_v4, 16  ;;  %v487_v9 = vshll.u32 %v5668_v5, 16  ;;  %v491_v10 = vshrl.u32 %v5668_v5, 16 }
  0x1e   : > { %v497_v11 = vshll.u32 %v5669_v6, 16  ;;  %v5876_v12 = vld [vmem:[%s7151_s5 + $0x30] sm:$0xe]  ;;  %v5877_v17 = vld [vmem:[%s7151_s5 + $0x34] sm:$0xf]  ;;  %s5477_s27 = sshll.u32 %s5474_s23, 4  ;;  %s5478_s27 = int_to_ptr.hbm [resolvable:$true] %s5477_s27 }
  0x1f   : > { %v480_v13 = vrot.slane %v478_v7, 4  ;;  %v483_v14 = vrot.slane %v481_v8, 5  ;;  %v489_v15 = vrot.slane %v487_v9, 5  ;;  %v493_v16 = vrot.slane %v491_v10, 4  ;;  %v5642_v20 = vld [vmem:[%s7151_s5 + $0x60] sm:$0xf] }
  0x20   : > { %v499_v18 = vrot.slane %v497_v11, 5  ;;  %v5879_v19 = vrot.slane %v5876_v12, 9  ;;  %v5878_v23 = vld [vmem:[%s7151_s5 + $0x38] sm:$0x1]  ;;  %v5643_v24 = vld [vmem:[%s7151_s5 + $0x64] sm:$0xf] }
  0x21   : > { %v484_v21 = vor.u32 %v483_v14, %v480_v13  ;;  %v494_v22 = vor.u32 %v493_v16, %v489_v15  ;;  %256 = vst.msk [vmem:[#allocation2 + $0x40] sm:$0xf] %vm191_vm1, %v5642_v20  ;;  %v5679_v25 = vld [vmem:[%s7151_s5 + $0x60] sm:$0xf]  ;;  %v1400_v27 = vrot.slane %v5877_v17, 5  ;;  %v1403_v45 = vrot.slane %v5878_v23, 5 }
  0x22   : > { %257 = vst.msk [vmem:[#allocation2 + $0x44] sm:$0xf] %vm191_vm1, %v5643_v24  ;;  %v5680_v28 = vld [vmem:[%s7151_s5 + $0x64] sm:$0xf]  ;;  %v602_v29 = vshrl.u32 %v5679_v25, 16  ;;  %v605_v38 = vshll.u32 %v5679_v25, 16 }
  0x23   : > { %v7175_v30 = vld [vmem:[#allocation2 + $0x20] sm:$0xf]  ;;  %v485_v31 = vrot.slane %v484_v21, 4  ;;  %v495_v32 = vrot.slane %v494_v22, 4  ;;  %v5681_v34 = vld [vmem:[%s7151_s5 + $0x68] sm:$0x1]  ;;  %v1401_v36 = vsel %vm7179_vm7, %v5879_v19, %v1400_v27 }
  0x24   : > { %v7184_v35 = vld [vmem:[#allocation2 + $0x20] sm:$0xf0]  ;;  %v604_v37 = vrot.slane %v602_v29, 4  ;;  %v611_v39 = vshll.u32 %v5680_v28, 16  ;;  %v615_v42 = vshrl.u32 %v5680_v28, 16  ;;  %v621_v43 = vshll.u32 %v5681_v34, 16 }
  0x25   : > { %v490_v40 = vsel %vm7169_vm6, %v485_v31, %v489_v15  ;;  %v500_v41 = vsel %vm7169_vm6, %v495_v32, %v499_v18  ;;  %v5892_v44 = vld [vmem:[%s7151_s5 + $0x60] sm:$0xe]  ;;  %v607_v46 = vrot.slane %v605_v38, 5  ;;  %v1402_v48 = vrot.slane %v1400_v27, 4  ;;  %v5893_v50 = vld [vmem:[%s7151_s5 + $0x64] sm:$0xf] }
  0x26   : > { %503 = vst.msk [vmem:[#allocation2 + $0x20] sm:$0xf] %vm191_vm1, %v490_v40  ;;  %v613_v47 = vrot.slane %v611_v39, 5  ;;  %v617_v49 = vrot.slane %v615_v42, 4  ;;  %v623_v52 = vrot.slane %v621_v43, 5  ;;  %v5895_v54 = vrot.slane %v5892_v44, 9 }
  0x27   : > { %504 = vst.msk [vmem:[#allocation2 + $0x24] sm:$0xf] %vm191_vm1, %v500_v41  ;;  %v608_v51 = vor.u32 %v607_v46, %v604_v37  ;;  %v5894_v53 = vld [vmem:[%s7151_s5 + $0x68] sm:$0x1]  ;;  %v5650_v58 = vld [vmem:[%s7151_s5 + $0x90] sm:$0xf]  ;;  %v1404_v62 = vsel %vm7179_vm7, %v1402_v48, %v1403_v45 }
  0x28   : > { %1407 = vst.msk [vmem:[#allocation2 + $0x20] sm:$0xf] %vm191_vm1, %v1401_v36  ;;  %v7198_v55 = vld [vmem:[#allocation2 + $0x40] sm:$0xf]  ;;  %v618_v57 = vor.u32 %v617_v49, %v613_v47  ;;  %v1468_v60 = vrot.slane %v5893_v50, 5  ;;  %v1471_v0 = vrot.slane %v5894_v53, 5 }
  0x29   : > { %v7200_v56 = vld [vmem:[#allocation2 + $0x40] sm:$0xf0]  ;;  %v609_v59 = vrot.slane %v608_v51, 4  ;;  %v5651_v61 = vld [vmem:[%s7151_s5 + $0x94] sm:$0xf]  ;;  %s5461_s15 = scalar_lea.sflag [#allocation4], %s175_s8 }
  0x2a   : > { %288 = vst.msk [vmem:[#allocation2 + $0x60] sm:$0xf] %vm191_vm1, %v5650_v58  ;;  %v619_v63 = vrot.slane %v618_v57, 4  ;;  %v5691_v1 = vld [vmem:[%s7151_s5 + $0x90] sm:$0xf]  ;;  %v1469_v3 = vsel %vm7179_vm7, %v5895_v54, %v1468_v60  ;;  %v1470_v13 = vrot.slane %v1468_v60, 4 }
  0x2b   : > { %289 = vst.msk [vmem:[#allocation2 + $0x64] sm:$0xf] %vm191_vm1, %v5651_v61  ;;  %v614_v2 = vsel %vm7169_vm6, %v609_v59, %v613_v47  ;;  %v5692_v4 = vld [vmem:[%s7151_s5 + $0x94] sm:$0xf]  ;;  %v5693_v5 = vld [vmem:[%s7151_s5 + $0x98] sm:$0x1] }
  0x2c   : > { %v726_v6 = vshrl.u32 %v5691_v1, 16  ;;  %v729_v7 = vshll.u32 %v5691_v1, 16  ;;  %v624_v8 = vsel %vm7169_vm6, %v619_v63, %v623_v52  ;;  %627 = vst.msk [vmem:[#allocation2 + $0x40] sm:$0xf] %vm191_vm1, %v614_v2  ;;  %v735_v9 = vshll.u32 %v5692_v4, 16  ;;  %s6999_s28 = sshra.s32 %s5478_s27, 4  ;;  %s7000_s28 = int_to_ptr.hbm [resolvable:$true] %s6999_s28 }
  0x2d   : > { %v739_v10 = vshrl.u32 %v5692_v4, 16  ;;  %v745_v11 = vshll.u32 %v5693_v5, 16  ;;  %628 = vst.msk [vmem:[#allocation2 + $0x44] sm:$0xf] %vm191_vm1, %v624_v8  ;;  %v5908_v19 = vld [vmem:[%s7151_s5 + $0x90] sm:$0xe]  ;;  %v1472_v27 = vsel %vm7179_vm7, %v1470_v13, %v1471_v0  ;;  %p7006_p1 = scmp.lt.s32.totalorder %s7000_s28, %s9150_s3 }
  0x2e   : > { %v728_v14 = vrot.slane %v726_v6, 4  ;;  %v731_v15 = vrot.slane %v729_v7, 5  ;;  %v737_v16 = vrot.slane %v735_v9, 5  ;;  %1475 = vst.msk [vmem:[#allocation2 + $0x40] sm:$0xf] %vm191_vm1, %v1469_v3  ;;  %v5911_v25 = vrot.slane %v5908_v19, 9 }
  0x2f   : > { %v6797_v12 = vld [vmem:[#allocation2 + $0x20] sm:$0xff]  ;;  %v741_v17 = vrot.slane %v739_v10, 4  ;;  %v5909_v20 = vld [vmem:[%s7151_s5 + $0x94] sm:$0xf]  ;;  %v747_v23 = vrot.slane %v745_v11, 5  ;;  %s7001_s29 = scalar_lea.hbm %s7000_s28, 128 }
  0x30   : > { %1408 = vst.msk [vmem:[#allocation2 + $0x24] sm:$0xf] %vm191_vm1, %v1404_v62  ;;  %5771 = vmatmul.msk.bf16.vlgmr.msra.gmra.mxu1 %vm959_vm8, %v6797_v12  ;;  %v732_v18 = vor.u32 %v731_v15, %v728_v14  ;;  %v5910_v24 = vld [vmem:[%s7151_s5 + $0x98] sm:$0x1]  ;;  %v1628_v31 = vld [vmem:[%s9148_s1 + $0x8] sm:$0xf]  ;;  %p7002_p12 = scmp.ne.s32.totalorder %s7000_s28, %s7001_s29 }
  0x31   : > { %v7224_v21 = vld [vmem:[#allocation2 + $0x60] sm:$0xf]  ;;  %v742_v22 = vor.u32 %v741_v17, %v737_v16  ;;  %v1536_v34 = vrot.slane %v5909_v20, 5  ;;  %v1539_v36 = vrot.slane %v5910_v24, 5  ;;  %v1758_v37 = vsel %vm1008_vm0, %v1628_v31, 0  ;;  %s7005_s6 = scalar_lea.hbm %s9150_s3, 256 }
  0x32   : > { %v7229_v28 = vld [vmem:[#allocation2 + $0x60] sm:$0xf0]  ;;  %v733_v29 = vrot.slane %v732_v18, 4  ;;  %v189_v38 = vld [vmem:[%s7151_s5] sm:$0xf]  ;;  %1767 = vmatpush.bf16.msrb.mxu2 %v1758_v37  ;;  %p7003_p13 = pnand %p7002_p12, %p7127_p4  ;;  %p7007_p2 = scmp.lt.s32.totalorder %s7005_s6, %s7001_s29 }
  0x33   : > { %v743_v32 = vrot.slane %v742_v22, 4  ;;  %v190_v40 = vld [vmem:[%s7151_s5 + $0x4] sm:$0xf]  ;;  %192 = vst.msk [vmem:[#allocation2] sm:$0xf] %vm191_vm1, %v189_v38  ;;  %v1537_v44 = vsel %vm7179_vm7, %v5911_v25, %v1536_v34  ;;  %v1538_v50 = vrot.slane %v1536_v34, 4 }
  0x34   : > { %v738_v39 = vsel %vm7169_vm6, %v733_v29, %v737_v16  ;;  %v347_v41 = vld [vmem:[%s7151_s5] sm:$0xf]  ;;  %v348_v45 = vld [vmem:[%s7151_s5 + $0x4] sm:$0xf]  ;;  %v349_v47 = vld [vmem:[%s7151_s5 + $0x8] sm:$0x1]  ;;  %p7004_p0 = pneg %p7003_p13  ;;  %p7008_p3 = por %p7007_p2, %p7006_p1 }
  0x35   : > { %v6801_v42 = vld [vmem:[#allocation2 + $0x40] sm:$0xff]  ;;  %v748_v43 = vsel %vm7169_vm6, %v743_v32, %v747_v23  ;;  %751 = vst.msk [vmem:[#allocation2 + $0x60] sm:$0xf] %vm191_vm1, %v738_v39  ;;  %v354_v46 = vshrl.u32 %v347_v41, 16  ;;  %v357_v48 = vshll.u32 %v347_v41, 16  ;;  %v363_v49 = vshll.u32 %v348_v45, 16 }
  0x36   : > { %1476 = vst.msk [vmem:[#allocation2 + $0x44] sm:$0xf] %vm191_vm1, %v1472_v27  ;;  %5775 = vmatmul.msk.bf16.vlgmr.msra.gmra.mxu2 %vm959_vm8, %v6801_v42  ;;  %v367_v52 = vshrl.u32 %v348_v45, 16  ;;  %v373_v53 = vshll.u32 %v349_v47, 16  ;;  %v1321_v58 = vld [vmem:[%s7151_s5] sm:$0xe]  ;;  %v1540_v5 = vsel %vm7179_vm7, %v1538_v50, %v1539_v36  ;;  %p7009_p5 = pnand %p7008_p3, %p7004_p0 }
  0x37   : > { %752 = vst.msk [vmem:[#allocation2 + $0x64] sm:$0xf] %vm191_vm1, %v748_v43  ;;  %v356_v51 = vrot.slane %v354_v46, 4  ;;  %v359_v54 = vrot.slane %v357_v48, 5  ;;  %v365_v57 = vrot.slane %v363_v49, 5  ;;  %v5863_v2 = vrot.slane %v1321_v58, 9 }
  0x38   : > { %1543 = vst.msk [vmem:[#allocation2 + $0x60] sm:$0xf] %vm191_vm1, %v1537_v44  ;;  %v369_v59 = vrot.slane %v367_v52, 4  ;;  %v1322_v60 = vld [vmem:[%s7151_s5 + $0x4] sm:$0xf]  ;;  %v375_v62 = vrot.slane %v373_v53, 5 }
  0x39   : > { %193 = vst.msk [vmem:[#allocation2 + $0x4] sm:$0xf] %vm191_vm1, %v190_v40  ;;  %v360_v61 = vor.u32 %v359_v54, %v356_v51  ;;  %v1981_v63 = vld [vmem:[%s9148_s1 + $0xc] sm:$0xf]  ;;  %v1323_v1 = vld [vmem:[%s7151_s5 + $0x8] sm:$0x1] }
  0x3a   : > { %v370_v0 = vor.u32 %v369_v59, %v365_v57  ;;  %v2111_v3 = vsel %vm1008_vm0, %v1981_v63, 0  ;;  %v346_v4 = vld [vmem:[%s9148_s1] sm:$0xf]  ;;  %v1332_v7 = vrot.slane %v1322_v60, 5  ;;  %v2762_v9 = vld [vmem:[%s9148_s1 + $0x10] sm:$0xf] }
  0x3b   : > { %v361_v6 = vrot.slane %v360_v61, 4  ;;  %2120 = vmatpush.bf16.msrb.mxu3 %v2111_v3  ;;  %v1230_v8 = vsel %vm1008_vm0, %v346_v4, 0  ;;  %v7269_v10 = vld [vmem:[#allocation2] sm:$0xf]  ;;  %v2892_v12 = vsel %vm1008_vm0, %v2762_v9, 0  ;;  %v1335_v16 = vrot.slane %v1323_v1, 5 }
  0x3c   : > { %v371_v11 = vrot.slane %v370_v0, 4  ;;  %1239 = vmatpush.bf16.msrb.mxu1 %v1230_v8  ;;  %v5636_v13 = vld [vmem:[%s7151_s5 + $0x3c] sm:$0xf]  ;;  %2901 = vmatpush.bf16.msrb.mxu0 %v2892_v12  ;;  %v5637_v17 = vld [vmem:[%s7151_s5 + $0x40] sm:$0xf]  ;;  %v1333_v20 = vsel %vm7179_vm7, %v5863_v2, %v1332_v7  ;;  %v1334_v29 = vrot.slane %v1332_v7, 4 }
  0x3d   : > { %v366_v15 = vsel %vm7169_vm6, %v361_v6, %v365_v57  ;;  %232 = vst.msk [vmem:[#allocation2 + $0x28] sm:$0xf] %vm191_vm1, %v5636_v13  ;;  %v5670_v18 = vld [vmem:[%s7151_s5 + $0x3c] sm:$0xf]  ;;  %v5671_v22 = vld [vmem:[%s7151_s5 + $0x40] sm:$0xf] }
  0x3e   : > { %v376_v19 = vsel %vm7169_vm6, %v371_v11, %v375_v62  ;;  %v5672_v23 = vld [vmem:[%s7151_s5 + $0x44] sm:$0x1]  ;;  %379 = vst.msk [vmem:[#allocation2] sm:$0xf] %vm191_vm1, %v366_v15  ;;  %v509_v25 = vshrl.u32 %v5670_v18, 16  ;;  %v512_v27 = vshll.u32 %v5670_v18, 16  ;;  %v1336_v49 = vsel %vm7179_vm7, %v1334_v29, %v1335_v16 }
  0x3f   : > { %v6805_v14 = vld [vmem:[#allocation2 + $0x60] sm:$0xff]  ;;  %v518_v31 = vshll.u32 %v5671_v22, 16  ;;  %v522_v32 = vshrl.u32 %v5671_v22, 16  ;;  %v528_v34 = vshll.u32 %v5672_v23, 16  ;;  %1339 = vst.msk [vmem:[#allocation2] sm:$0xf] %vm191_vm1, %v1333_v20 }
  0x40   : > { %1544 = vst.msk [vmem:[#allocation2 + $0x64] sm:$0xf] %vm191_vm1, %v1540_v5  ;;  %5779 = vmatmul.msk.bf16.vlgmr.msra.gmra.mxu3 %vm959_vm8, %v6805_v14  ;;  %v7286_v24 = vld [vmem:[#allocation2] sm:$0xf0]  ;;  %v511_v36 = vrot.slane %v509_v25, 4  ;;  %v514_v37 = vrot.slane %v512_v27, 5 }
  0x41   : > { %380 = vst.msk [vmem:[#allocation2 + $0x4] sm:$0xf] %vm191_vm1, %v376_v19  ;;  %v5880_v38 = vld [vmem:[%s7151_s5 + $0x3c] sm:$0xe]  ;;  %v520_v39 = vrot.slane %v518_v31, 5  ;;  %v524_v40 = vrot.slane %v522_v32, 4 }
  0x42   : > { %233 = vst.msk [vmem:[#allocation2 + $0x2c] sm:$0xf] %vm191_vm1, %v5637_v17  ;;  %v515_v41 = vor.u32 %v514_v37, %v511_v36  ;;  %v5881_v42 = vld [vmem:[%s7151_s5 + $0x40] sm:$0xf]  ;;  %v5644_v43 = vld [vmem:[%s7151_s5 + $0x6c] sm:$0xf] }
  0x43   : > { %v525_v45 = vor.u32 %v524_v40, %v520_v39  ;;  %v530_v46 = vrot.slane %v528_v34, 5  ;;  %v5883_v47 = vrot.slane %v5880_v38, 9  ;;  %v5645_v48 = vld [vmem:[%s7151_s5 + $0x70] sm:$0xf]  ;;  %264 = vst.msk [vmem:[#allocation2 + $0x48] sm:$0xf] %vm191_vm1, %v5644_v43 }
  0x44   : > { %v7295_v44 = vld [vmem:[#allocation2 + $0x28] sm:$0xf]  ;;  %v516_v50 = vrot.slane %v515_v41, 4  ;;  %v5682_v51 = vld [vmem:[%s7151_s5 + $0x6c] sm:$0xf]  ;;  %v1417_v54 = vrot.slane %v5881_v42, 5 }
  0x45   : > { %v526_v52 = vrot.slane %v525_v45, 4  ;;  %v5882_v53 = vld [vmem:[%s7151_s5 + $0x44] sm:$0x1]  ;;  %265 = vst.msk [vmem:[#allocation2 + $0x4c] sm:$0xf] %vm191_vm1, %v5645_v48  ;;  %v633_v61 = vshrl.u32 %v5682_v51, 16 }
  0x46   : > { %v5683_v57 = vld [vmem:[%s7151_s5 + $0x70] sm:$0xf]  ;;  %v521_v59 = vsel %vm7169_vm6, %v516_v50, %v520_v39  ;;  %v5684_v60 = vld [vmem:[%s7151_s5 + $0x74] sm:$0x1]  ;;  %v636_v62 = vshll.u32 %v5682_v51, 16  ;;  %v1418_v1 = vsel %vm7179_vm7, %v5883_v47, %v1417_v54  ;;  %v1419_v11 = vrot.slane %v1417_v54, 4 }
  0x47   : > { %v642_v63 = vshll.u32 %v5683_v57, 16  ;;  %v531_v0 = vsel %vm7169_vm6, %v526_v52, %v530_v46  ;;  %v646_v2 = vshrl.u32 %v5683_v57, 16  ;;  %v652_v3 = vshll.u32 %v5684_v60, 16  ;;  %v5896_v4 = vld [vmem:[%s7151_s5 + $0x6c] sm:$0xe] }
  0x48   : > { %v6793_v58 = vld [vmem:[#allocation2] sm:$0xff]  ;;  %534 = vst.msk [vmem:[#allocation2 + $0x28] sm:$0xf] %vm191_vm1, %v521_v59  ;;  %v635_v6 = vrot.slane %v633_v61, 4  ;;  %v638_v7 = vrot.slane %v636_v62, 5  ;;  %v1420_v12 = vrot.slane %v5882_v53, 5 }
  0x49   : > { %1340 = vst.msk [vmem:[#allocation2 + $0x4] sm:$0xf] %vm191_vm1, %v1336_v49  ;;  %5767 = vmatmul.msk.bf16.vlgmr.msra.gmra.mxu0 %vm959_vm8, %v6793_v58  ;;  %v7315_v5 = vld [vmem:[#allocation2 + $0x28] sm:$0xf0]  ;;  %v644_v8 = vrot.slane %v642_v63, 5  ;;  %v648_v9 = vrot.slane %v646_v2, 4 }
  0x4a   : > { %535 = vst.msk [vmem:[#allocation2 + $0x2c] sm:$0xf] %vm191_vm1, %v531_v0  ;;  %v639_v13 = vor.u32 %v638_v7, %v635_v6  ;;  %v5897_v14 = vld [vmem:[%s7151_s5 + $0x70] sm:$0xf]  ;;  %v7321_v15 = vld [vmem:[#allocation2 + $0x48] sm:$0xf]  ;;  %v1421_v32 = vsel %vm7179_vm7, %v1419_v11, %v1420_v12 }
  0x4b   : > { %1424 = vst.msk [vmem:[#allocation2 + $0x28] sm:$0xf] %vm191_vm1, %v1418_v1  ;;  %v649_v16 = vor.u32 %v648_v9, %v644_v8  ;;  %v654_v17 = vrot.slane %v652_v3, 5  ;;  %v5899_v18 = vrot.slane %v5896_v4, 9  ;;  %v5652_v19 = vld [vmem:[%s7151_s5 + $0x9c] sm:$0xf] }
  0x4c   : > { %v7324_v20 = vld [vmem:[#allocation2 + $0x48] sm:$0xf0]  ;;  %v640_v22 = vrot.slane %v639_v13, 4  ;;  %v5898_v23 = vld [vmem:[%s7151_s5 + $0x74] sm:$0x1]  ;;  %v1485_v29 = vrot.slane %v5897_v14, 5 }
  0x4d   : > { %v5653_v25 = vld [vmem:[%s7151_s5 + $0xa0] sm:$0xf]  ;;  %v650_v27 = vrot.slane %v649_v16, 4  ;;  %296 = vst.msk [vmem:[#allocation2 + $0x68] sm:$0xf] %vm191_vm1, %v5652_v19  ;;  %v1488_v49 = vrot.slane %v5898_v23, 5 }
  0x4e   : > { %v5694_v31 = vld [vmem:[%s7151_s5 + $0x9c] sm:$0xf]  ;;  %v645_v34 = vsel %vm7169_vm6, %v640_v22, %v644_v8  ;;  %297 = vst.msk [vmem:[#allocation2 + $0x6c] sm:$0xf] %vm191_vm1, %v5653_v25  ;;  %v5695_v36 = vld [vmem:[%s7151_s5 + $0xa0] sm:$0xf]  ;;  %v1486_v39 = vsel %vm7179_vm7, %v5899_v18, %v1485_v29 }
  0x4f   : > { %v5696_v37 = vld [vmem:[%s7151_s5 + $0xa4] sm:$0x1]  ;;  %v655_v38 = vsel %vm7169_vm6, %v650_v27, %v654_v17  ;;  %658 = vst.msk [vmem:[#allocation2 + $0x48] sm:$0xf] %vm191_vm1, %v645_v34  ;;  %v757_v40 = vshrl.u32 %v5694_v31, 16  ;;  %v760_v41 = vshll.u32 %v5694_v31, 16 }
  0x50   : > { %v5912_v42 = vld [vmem:[%s7151_s5 + $0x9c] sm:$0xe]  ;;  %659 = vst.msk [vmem:[#allocation2 + $0x4c] sm:$0xf] %vm191_vm1, %v655_v38  ;;  %v766_v45 = vshll.u32 %v5695_v36, 16  ;;  %v770_v46 = vshrl.u32 %v5695_v36, 16 }
  0x51   : > { %v776_v47 = vshll.u32 %v5696_v37, 16  ;;  %v1487_v48 = vrot.slane %v1485_v29, 4  ;;  %v759_v50 = vrot.slane %v757_v40, 4  ;;  %v762_v51 = vrot.slane %v760_v41, 5  ;;  %1492 = vst.msk [vmem:[#allocation2 + $0x48] sm:$0xf] %vm191_vm1, %v1486_v39 }
  0x52   : > { %v6798_v43 = vld [vmem:[#allocation2 + $0x28] sm:$0xff]  ;;  %v768_v52 = vrot.slane %v766_v45, 5  ;;  %v772_v53 = vrot.slane %v770_v46, 4  ;;  %v5913_v54 = vld [vmem:[%s7151_s5 + $0xa0] sm:$0xf]  ;;  %v5915_v58 = vrot.slane %v5912_v42, 9 }
  0x53   : > { %1425 = vst.msk [vmem:[#allocation2 + $0x2c] sm:$0xf] %vm191_vm1, %v1421_v32  ;;  %5772 = vmatmul.msk.bf16.gmra.mxu1 %vm959_vm8, %v6798_v43  ;;  %v763_v57 = vor.u32 %v762_v51, %v759_v50  ;;  %v5628_v59 = vld [vmem:[%s7151_s5 + $0xc] sm:$0xf]  ;;  %v778_v62 = vrot.slane %v776_v47, 5  ;;  %v1489_v0 = vsel %vm7179_vm7, %v1487_v48, %v1488_v49  ;;  %v1553_v3 = vrot.slane %v5913_v54, 5 }
  0x54   : > { %v7349_v60 = vld [vmem:[#allocation2 + $0x68] sm:$0xf]  ;;  %v773_v61 = vor.u32 %v772_v53, %v768_v52  ;;  %v5629_v63 = vld [vmem:[%s7151_s5 + $0x10] sm:$0xf]  ;;  %200 = vst.msk [vmem:[#allocation2 + $0x8] sm:$0xf] %vm191_vm1, %v5628_v59 }
  0x55   : > { %v7354_v1 = vld [vmem:[#allocation2 + $0x68] sm:$0xf0]  ;;  %v764_v2 = vrot.slane %v763_v57, 4  ;;  %v5914_v6 = vld [vmem:[%s7151_s5 + $0xa4] sm:$0x1]  ;;  %v1554_v11 = vsel %vm7179_vm7, %v5915_v58, %v1553_v3  ;;  %v1555_v32 = vrot.slane %v1553_v3, 4 }
  0x56   : > { %v774_v4 = vrot.slane %v773_v61, 4  ;;  %201 = vst.msk [vmem:[#allocation2 + $0xc] sm:$0xf] %vm191_vm1, %v5629_v63  ;;  %v5658_v7 = vld [vmem:[%s7151_s5 + $0xc] sm:$0xf]  ;;  %v1556_v34 = vrot.slane %v5914_v6, 5 }
  0x57   : > { %v769_v9 = vsel %vm7169_vm6, %v764_v2, %v768_v52  ;;  %v5659_v12 = vld [vmem:[%s7151_s5 + $0x10] sm:$0xf]  ;;  %v5660_v13 = vld [vmem:[%s7151_s5 + $0x14] sm:$0x1]  ;;  %v385_v14 = vshrl.u32 %v5658_v7, 16  ;;  %v388_v17 = vshll.u32 %v5658_v7, 16 }
  0x58   : > { %v6802_v8 = vld [vmem:[#allocation2 + $0x48] sm:$0xff]  ;;  %v779_v16 = vsel %vm7169_vm6, %v774_v4, %v778_v62  ;;  %v394_v18 = vshll.u32 %v5659_v12, 16  ;;  %v398_v19 = vshrl.u32 %v5659_v12, 16  ;;  %782 = vst.msk [vmem:[#allocation2 + $0x68] sm:$0xf] %vm191_vm1, %v769_v9  ;;  %v404_v23 = vshll.u32 %v5660_v13, 16 }
  0x59   : > { %1493 = vst.msk [vmem:[#allocation2 + $0x4c] sm:$0xf] %vm191_vm1, %v1489_v0  ;;  %5776 = vmatmul.msk.bf16.gmra.mxu2 %vm959_vm8, %v6802_v8  ;;  %v387_v22 = vrot.slane %v385_v14, 4  ;;  %v5864_v25 = vld [vmem:[%s7151_s5 + $0xc] sm:$0xe]  ;;  %v390_v27 = vrot.slane %v388_v17, 5  ;;  %v1557_v49 = vsel %vm7179_vm7, %v1555_v32, %v1556_v34 }
  0x5a   : > { %783 = vst.msk [vmem:[#allocation2 + $0x6c] sm:$0xf] %vm191_vm1, %v779_v16  ;;  %v396_v29 = vrot.slane %v394_v18, 5  ;;  %v400_v31 = vrot.slane %v398_v19, 4  ;;  %v5865_v36 = vld [vmem:[%s7151_s5 + $0x10] sm:$0xf] }
  0x5b   : > { %1560 = vst.msk [vmem:[#allocation2 + $0x68] sm:$0xf] %vm191_vm1, %v1554_v11  ;;  %v391_v37 = vor.u32 %v390_v27, %v387_v22  ;;  %v406_v39 = vrot.slane %v404_v23, 5  ;;  %v7375_v40 = vld [vmem:[#allocation2 + $0x8] sm:$0xf]  ;;  %v5867_v41 = vrot.slane %v5864_v25, 9 }
  0x5c   : > { %v401_v38 = vor.u32 %v400_v31, %v396_v29  ;;  %v1349_v42 = vrot.slane %v5865_v36, 5  ;;  %v5638_v43 = vld [vmem:[%s7151_s5 + $0x48] sm:$0xf]  ;;  %v5639_v48 = vld [vmem:[%s7151_s5 + $0x4c] sm:$0xf] }
  0x5d   : > { %v7378_v45 = vld [vmem:[#allocation2 + $0x8] sm:$0xf0]  ;;  %v392_v46 = vrot.slane %v391_v37, 4  ;;  %v5866_v50 = vld [vmem:[%s7151_s5 + $0x14] sm:$0x1] }
  0x5e   : > { %v402_v47 = vrot.slane %v401_v38, 4  ;;  %240 = vst.msk [vmem:[#allocation2 + $0x30] sm:$0xf] %vm191_vm1, %v5638_v43  ;;  %v5673_v51 = vld [vmem:[%s7151_s5 + $0x48] sm:$0xf]  ;;  %v1350_v61 = vsel %vm7179_vm7, %v5867_v41, %v1349_v42  ;;  %v1351_v9 = vrot.slane %v1349_v42, 4 }
  0x5f   : > { %v5674_v52 = vld [vmem:[%s7151_s5 + $0x4c] sm:$0xf]  ;;  %v397_v53 = vsel %vm7169_vm6, %v392_v46, %v396_v29  ;;  %241 = vst.msk [vmem:[#allocation2 + $0x34] sm:$0xf] %vm191_vm1, %v5639_v48  ;;  %v5675_v57 = vld [vmem:[%s7151_s5 + $0x50] sm:$0x1] }
  0x60   : > { %v407_v54 = vsel %vm7169_vm6, %v402_v47, %v406_v39  ;;  %v540_v58 = vshrl.u32 %v5673_v51, 16  ;;  %410 = vst.msk [vmem:[#allocation2 + $0x8] sm:$0xf] %vm191_vm1, %v397_v53  ;;  %v543_v62 = vshll.u32 %v5673_v51, 16  ;;  %v549_v63 = vshll.u32 %v5674_v52, 16 }
  0x61   : > { %v553_v0 = vshrl.u32 %v5674_v52, 16  ;;  %v559_v3 = vshll.u32 %v5675_v57, 16  ;;  %v5884_v4 = vld [vmem:[%s7151_s5 + $0x48] sm:$0xe]  ;;  %411 = vst.msk [vmem:[#allocation2 + $0xc] sm:$0xf] %vm191_vm1, %v407_v54 }
  0x62   : > { %v6806_v59 = vld [vmem:[#allocation2 + $0x68] sm:$0xff]  ;;  %v542_v2 = vrot.slane %v540_v58, 4  ;;  %v545_v6 = vrot.slane %v543_v62, 5  ;;  %v551_v7 = vrot.slane %v549_v63, 5  ;;  %v1352_v11 = vrot.slane %v5866_v50, 5 }
  0x63   : > { %1561 = vst.msk [vmem:[#allocation2 + $0x6c] sm:$0xf] %vm191_vm1, %v1557_v49  ;;  %5780 = vmatmul.msk.bf16.gmra.mxu3 %vm959_vm8, %v6806_v59  ;;  %v555_v8 = vrot.slane %v553_v0, 4  ;;  %v5885_v12 = vld [vmem:[%s7151_s5 + $0x4c] sm:$0xf]  ;;  %v561_v16 = vrot.slane %v559_v3, 5 }
  0x64   : > { %1356 = vst.msk [vmem:[#allocation2 + $0x8] sm:$0xf] %vm191_vm1, %v1350_v61  ;;  %v546_v13 = vor.u32 %v545_v6, %v542_v2  ;;  %v5646_v17 = vld [vmem:[%s7151_s5 + $0x78] sm:$0xf]  ;;  %v5887_v18 = vrot.slane %v5884_v4, 9  ;;  %v1434_v19 = vrot.slane %v5885_v12, 5  ;;  %v1353_v31 = vsel %vm7179_vm7, %v1351_v9, %v1352_v11 }
  0x65   : > { %v556_v14 = vor.u32 %v555_v8, %v551_v7  ;;  %v5647_v22 = vld [vmem:[%s7151_s5 + $0x7c] sm:$0xf]  ;;  %v7404_v23 = vld [vmem:[#allocation2 + $0x30] sm:$0xf]  ;;  %272 = vst.msk [vmem:[#allocation2 + $0x50] sm:$0xf] %vm191_vm1, %v5646_v17 }
  0x66   : > { %v7406_v25 = vld [vmem:[#allocation2 + $0x30] sm:$0xf0]  ;;  %v547_v27 = vrot.slane %v546_v13, 4  ;;  %v5886_v32 = vld [vmem:[%s7151_s5 + $0x50] sm:$0x1]  ;;  %v1435_v43 = vsel %vm7179_vm7, %v5887_v18, %v1434_v19  ;;  %v1436_v57 = vrot.slane %v1434_v19, 4 }
  0x67   : > { %v557_v29 = vrot.slane %v556_v14, 4  ;;  %v5685_v34 = vld [vmem:[%s7151_s5 + $0x78] sm:$0xf]  ;;  %v5686_v36 = vld [vmem:[%s7151_s5 + $0x7c] sm:$0xf]  ;;  %v1437_v58 = vrot.slane %v5886_v32, 5 }
  0x68   : > { %v552_v37 = vsel %vm7169_vm6, %v547_v27, %v551_v7  ;;  %273 = vst.msk [vmem:[#allocation2 + $0x54] sm:$0xf] %vm191_vm1, %v5647_v22  ;;  %v5687_v39 = vld [vmem:[%s7151_s5 + $0x80] sm:$0x1]  ;;  %v664_v41 = vshrl.u32 %v5685_v34, 16  ;;  %v667_v46 = vshll.u32 %v5685_v34, 16 }
  0x69   : > { %v562_v38 = vsel %vm7169_vm6, %v557_v29, %v561_v16  ;;  %565 = vst.msk [vmem:[#allocation2 + $0x30] sm:$0xf] %vm191_vm1, %v552_v37  ;;  %v673_v47 = vshll.u32 %v5686_v36, 16  ;;  %v677_v48 = vshrl.u32 %v5686_v36, 16  ;;  %v683_v50 = vshll.u32 %v5687_v39, 16 }
  0x6a   : > { %v666_v49 = vrot.slane %v664_v41, 4  ;;  %v5900_v51 = vld [vmem:[%s7151_s5 + $0x78] sm:$0xe]  ;;  %566 = vst.msk [vmem:[#allocation2 + $0x34] sm:$0xf] %vm191_vm1, %v562_v38  ;;  %v669_v52 = vrot.slane %v667_v46, 5  ;;  %v1438_v11 = vsel %vm7179_vm7, %v1436_v57, %v1437_v58 }
  0x6b   : > { %v6794_v42 = vld [vmem:[#allocation2 + $0x8] sm:$0xff]  ;;  %v675_v53 = vrot.slane %v673_v47, 5  ;;  %v679_v54 = vrot.slane %v677_v48, 4  ;;  %1441 = vst.msk [vmem:[#allocation2 + $0x30] sm:$0xf] %vm191_vm1, %v1435_v43  ;;  %v685_v63 = vrot.slane %v683_v50, 5 }
  0x6c   : > { %1357 = vst.msk [vmem:[#allocation2 + $0xc] sm:$0xf] %vm191_vm1, %v1353_v31  ;;  %5768 = vmatmul.msk.bf16.gmra.mxu0 %vm959_vm8, %v6794_v42  ;;  %v5901_v59 = vld [vmem:[%s7151_s5 + $0x7c] sm:$0xf]  ;;  %v670_v61 = vor.u32 %v669_v52, %v666_v49  ;;  %v5654_v0 = vld [vmem:[%s7151_s5 + $0xa8] sm:$0xf] }
  0x6d   : > { %v680_v62 = vor.u32 %v679_v54, %v675_v53  ;;  %v5903_v2 = vrot.slane %v5900_v51, 9  ;;  %v1502_v3 = vrot.slane %v5901_v59, 5  ;;  %v5655_v4 = vld [vmem:[%s7151_s5 + $0xac] sm:$0xf]  ;;  %v7431_v6 = vld [vmem:[#allocation2 + $0x50] sm:$0xf] }
  0x6e   : > { %v671_v8 = vrot.slane %v670_v61, 4  ;;  %v5902_v12 = vld [vmem:[%s7151_s5 + $0x80] sm:$0x1]  ;;  %304 = vst.msk [vmem:[#allocation2 + $0x70] sm:$0xf] %vm191_vm1, %v5654_v0 }
  0x6f   : > { %v7433_v7 = vld [vmem:[#allocation2 + $0x50] sm:$0xf0]  ;;  %v681_v9 = vrot.slane %v680_v62, 4  ;;  %v5697_v13 = vld [vmem:[%s7151_s5 + $0xa8] sm:$0xf]  ;;  %v1503_v27 = vsel %vm7179_vm7, %v5903_v2, %v1502_v3  ;;  %v1504_v42 = vrot.slane %v1502_v3, 4 }
  0x70   : > { %v5698_v14 = vld [vmem:[%s7151_s5 + $0xac] sm:$0xf]  ;;  %v676_v16 = vsel %vm7169_vm6, %v671_v8, %v675_v53  ;;  %305 = vst.msk [vmem:[#allocation2 + $0x74] sm:$0xf] %vm191_vm1, %v5655_v4  ;;  %v5699_v18 = vld [vmem:[%s7151_s5 + $0xb0] sm:$0x1] }
  0x71   : > { %v686_v17 = vsel %vm7169_vm6, %v681_v9, %v685_v63  ;;  %v788_v19 = vshrl.u32 %v5697_v13, 16  ;;  %689 = vst.msk [vmem:[#allocation2 + $0x50] sm:$0xf] %vm191_vm1, %v676_v16  ;;  %v791_v29 = vshll.u32 %v5697_v13, 16  ;;  %v797_v31 = vshll.u32 %v5698_v14, 16 }
  0x72   : > { %v6799_v22 = vld [vmem:[#allocation2 + $0x30] sm:$0xff]  ;;  %v801_v32 = vshrl.u32 %v5698_v14, 16  ;;  %v807_v36 = vshll.u32 %v5699_v18, 16  ;;  %v5916_v37 = vld [vmem:[%s7151_s5 + $0xa8] sm:$0xe]  ;;  %v1505_v43 = vrot.slane %v5902_v12, 5 }
  0x73   : > { %1442 = vst.msk [vmem:[#allocation2 + $0x34] sm:$0xf] %vm191_vm1, %v1438_v11  ;;  %v790_v34 = vrot.slane %v788_v19, 4  ;;  %5773 = vmatmul.msk.bf16.gmra.mxu1 %vm959_vm8, %v6799_v22  ;;  %v793_v38 = vrot.slane %v791_v29, 5  ;;  %v799_v39 = vrot.slane %v797_v31, 5  ;;  %v5919_v51 = vrot.slane %v5916_v37, 9 }
  0x74   : > { %690 = vst.msk [vmem:[#allocation2 + $0x54] sm:$0xf] %vm191_vm1, %v686_v17  ;;  %v803_v41 = vrot.slane %v801_v32, 4  ;;  %v5917_v46 = vld [vmem:[%s7151_s5 + $0xac] sm:$0xf]  ;;  %v809_v49 = vrot.slane %v807_v36, 5  ;;  %v1506_v61 = vsel %vm7179_vm7, %v1504_v42, %v1505_v43 }
  0x75   : > { %1509 = vst.msk [vmem:[#allocation2 + $0x50] sm:$0xf] %vm191_vm1, %v1503_v27  ;;  %v794_v47 = vor.u32 %v793_v38, %v790_v34  ;;  %v5630_v50 = vld [vmem:[%s7151_s5 + $0x18] sm:$0xf]  ;;  %v1570_v52 = vrot.slane %v5917_v46, 5 }
  0x76   : > { %v804_v48 = vor.u32 %v803_v41, %v799_v39  ;;  %v5631_v53 = vld [vmem:[%s7151_s5 + $0x1c] sm:$0xf]  ;;  %v7458_v54 = vld [vmem:[#allocation2 + $0x70] sm:$0xf]  ;;  %208 = vst.msk [vmem:[#allocation2 + $0x10] sm:$0xf] %vm191_vm1, %v5630_v50 }
  0x77   : > { %v7460_v57 = vld [vmem:[#allocation2 + $0x70] sm:$0xf0]  ;;  %v795_v58 = vrot.slane %v794_v47, 4  ;;  %v5918_v62 = vld [vmem:[%s7151_s5 + $0xb0] sm:$0x1]  ;;  %v1571_v11 = vsel %vm7179_vm7, %v5919_v51, %v1570_v52  ;;  %v1572_v29 = vrot.slane %v1570_v52, 4 }
  0x78   : > { %v805_v59 = vrot.slane %v804_v48, 4  ;;  %v5661_v63 = vld [vmem:[%s7151_s5 + $0x18] sm:$0xf]  ;;  %v5662_v0 = vld [vmem:[%s7151_s5 + $0x1c] sm:$0xf]  ;;  %v1573_v31 = vrot.slane %v5918_v62, 5 }
  0x79   : > { %v800_v2 = vsel %vm7169_vm6, %v795_v58, %v799_v39  ;;  %209 = vst.msk [vmem:[#allocation2 + $0x14] sm:$0xf] %vm191_vm1, %v5631_v53  ;;  %v5663_v4 = vld [vmem:[%s7151_s5 + $0x20] sm:$0x1]  ;;  %v416_v8 = vshrl.u32 %v5661_v63, 16  ;;  %v419_v12 = vshll.u32 %v5661_v63, 16 }
  0x7a   : > { %v810_v3 = vsel %vm7169_vm6, %v805_v59, %v809_v49  ;;  %813 = vst.msk [vmem:[#allocation2 + $0x70] sm:$0xf] %vm191_vm1, %v800_v2  ;;  %v425_v13 = vshll.u32 %v5662_v0, 16  ;;  %v429_v14 = vshrl.u32 %v5662_v0, 16  ;;  %v435_v17 = vshll.u32 %v5663_v4, 16 }
  0x7b   : > { %v418_v16 = vrot.slane %v416_v8, 4  ;;  %v5868_v18 = vld [vmem:[%s7151_s5 + $0x18] sm:$0xe]  ;;  %814 = vst.msk [vmem:[#allocation2 + $0x74] sm:$0xf] %vm191_vm1, %v810_v3  ;;  %v421_v19 = vrot.slane %v419_v12, 5  ;;  %v1574_v49 = vsel %vm7179_vm7, %v1572_v29, %v1573_v31 }
  0x7c   : > { %v6803_v9 = vld [vmem:[#allocation2 + $0x50] sm:$0xff]  ;;  %v427_v22 = vrot.slane %v425_v13, 5  ;;  %v431_v27 = vrot.slane %v429_v14, 4  ;;  %1577 = vst.msk [vmem:[#allocation2 + $0x70] sm:$0xf] %vm191_vm1, %v1571_v11  ;;  %v437_v37 = vrot.slane %v435_v17, 5 }
  0x7d   : > { %1510 = vst.msk [vmem:[#allocation2 + $0x54] sm:$0xf] %vm191_vm1, %v1506_v61  ;;  %5777 = vmatmul.msk.bf16.gmra.mxu2 %vm959_vm8, %v6803_v9  ;;  %v5869_v32 = vld [vmem:[%s7151_s5 + $0x1c] sm:$0xf]  ;;  %v422_v34 = vor.u32 %v421_v19, %v418_v16  ;;  %v5640_v38 = vld [vmem:[%s7151_s5 + $0x54] sm:$0xf] }
  0x7e   : > { %v432_v36 = vor.u32 %v431_v27, %v427_v22  ;;  %v5871_v39 = vrot.slane %v5868_v18, 9  ;;  %v1366_v41 = vrot.slane %v5869_v32, 5  ;;  %v5641_v42 = vld [vmem:[%s7151_s5 + $0x58] sm:$0xf]  ;;  %v7485_v43 = vld [vmem:[#allocation2 + $0x10] sm:$0xf] }
  0x7f   : > { %v423_v47 = vrot.slane %v422_v34, 4  ;;  %v5870_v50 = vld [vmem:[%s7151_s5 + $0x20] sm:$0x1]  ;;  %248 = vst.msk [vmem:[#allocation2 + $0x38] sm:$0xf] %vm191_vm1, %v5640_v38 }
  0x80   : > { %v7487_v46 = vld [vmem:[#allocation2 + $0x10] sm:$0xf0]  ;;  %v433_v48 = vrot.slane %v432_v36, 4  ;;  %v5677_v52 = vld [vmem:[%s7151_s5 + $0x58] sm:$0xf]  ;;  %v1367_v63 = vsel %vm7179_vm7, %v5871_v39, %v1366_v41  ;;  %v1368_v14 = vrot.slane %v1366_v41, 4 }
  0x81   : > { %v5676_v51 = vld [vmem:[%s7151_s5 + $0x54] sm:$0xf]  ;;  %v428_v53 = vsel %vm7169_vm6, %v423_v47, %v427_v22  ;;  %249 = vst.msk [vmem:[#allocation2 + $0x3c] sm:$0xf] %vm191_vm1, %v5641_v42  ;;  %v5678_v59 = vld [vmem:[%s7151_s5 + $0x5c] sm:$0x1] }
  0x82   : > { %v438_v58 = vsel %vm7169_vm6, %v433_v48, %v437_v37  ;;  %v571_v61 = vshrl.u32 %v5676_v51, 16  ;;  %441 = vst.msk [vmem:[#allocation2 + $0x10] sm:$0xf] %vm191_vm1, %v428_v53  ;;  %v574_v0 = vshll.u32 %v5676_v51, 16  ;;  %v580_v2 = vshll.u32 %v5677_v52, 16 }
  0x83   : > { %v6807_v62 = vld [vmem:[#allocation2 + $0x70] sm:$0xff]  ;;  %v584_v3 = vshrl.u32 %v5677_v52, 16  ;;  %v590_v8 = vshll.u32 %v5678_v59, 16  ;;  %442 = vst.msk [vmem:[#allocation2 + $0x14] sm:$0xf] %vm191_vm1, %v438_v58  ;;  %v1369_v16 = vrot.slane %v5870_v50, 5 }
  0x84   : > { %1578 = vst.msk [vmem:[#allocation2 + $0x74] sm:$0xf] %vm191_vm1, %v1574_v49  ;;  %v573_v4 = vrot.slane %v571_v61, 4  ;;  %v5888_v9 = vld [vmem:[%s7151_s5 + $0x54] sm:$0xe]  ;;  %5781 = vmatmul.msk.bf16.gmra.mxu3 %vm959_vm8, %v6807_v62  ;;  %v576_v11 = vrot.slane %v574_v0, 5 }
  0x85   : > { %v582_v12 = vrot.slane %v580_v2, 5  ;;  %v586_v13 = vrot.slane %v584_v3, 4  ;;  %1373 = vst.msk [vmem:[#allocation2 + $0x10] sm:$0xf] %vm191_vm1, %v1367_v63  ;;  %v5889_v17 = vld [vmem:[%s7151_s5 + $0x58] sm:$0xf]  ;;  %v1370_v39 = vsel %vm7179_vm7, %v1368_v14, %v1369_v16 }
  0x86   : > { %v577_v18 = vor.u32 %v576_v11, %v573_v4  ;;  %v592_v22 = vrot.slane %v590_v8, 5  ;;  %v5648_v27 = vld [vmem:[%s7151_s5 + $0x84] sm:$0xf]  ;;  %v5891_v29 = vrot.slane %v5888_v9, 9  ;;  %v1451_v31 = vrot.slane %v5889_v17, 5 }
  0x87   : > { %v587_v19 = vor.u32 %v586_v13, %v582_v12  ;;  %v5649_v32 = vld [vmem:[%s7151_s5 + $0x88] sm:$0xf]  ;;  %v7512_v34 = vld [vmem:[#allocation2 + $0x38] sm:$0xf]  ;;  %v5890_v41 = vld [vmem:[%s7151_s5 + $0x5c] sm:$0x1] }
  0x88   : > { %v7514_v36 = vld [vmem:[#allocation2 + $0x38] sm:$0xf0]  ;;  %v578_v37 = vrot.slane %v577_v18, 4  ;;  %280 = vst.msk [vmem:[#allocation2 + $0x58] sm:$0xf] %vm191_vm1, %v5648_v27  ;;  %v1452_v53 = vsel %vm7179_vm7, %v5891_v29, %v1451_v31  ;;  %v1453_v8 = vrot.slane %v1451_v31, 4 }
  0x89   : > { %v588_v38 = vrot.slane %v587_v19, 4  ;;  %v5688_v42 = vld [vmem:[%s7151_s5 + $0x84] sm:$0xf]  ;;  %v5689_v47 = vld [vmem:[%s7151_s5 + $0x88] sm:$0xf]  ;;  %v1454_v9 = vrot.slane %v5890_v41, 5 }
  0x8a   : > { %v583_v48 = vsel %vm7169_vm6, %v578_v37, %v582_v12  ;;  %281 = vst.msk [vmem:[#allocation2 + $0x5c] sm:$0xf] %vm191_vm1, %v5649_v32  ;;  %v5690_v50 = vld [vmem:[%s7151_s5 + $0x8c] sm:$0x1]  ;;  %v695_v51 = vshrl.u32 %v5688_v42, 16  ;;  %v698_v58 = vshll.u32 %v5688_v42, 16 }
  0x8b   : > { %v593_v49 = vsel %vm7169_vm6, %v588_v38, %v592_v22  ;;  %596 = vst.msk [vmem:[#allocation2 + $0x38] sm:$0xf] %vm191_vm1, %v583_v48  ;;  %v704_v59 = vshll.u32 %v5689_v47, 16  ;;  %v708_v61 = vshrl.u32 %v5689_v47, 16  ;;  %v714_v63 = vshll.u32 %v5690_v50, 16 }
  0x8c   : > { %v6795_v52 = vld [vmem:[#allocation2 + $0x10] sm:$0xff]  ;;  %v697_v62 = vrot.slane %v695_v51, 4  ;;  %v5904_v0 = vld [vmem:[%s7151_s5 + $0x84] sm:$0xe]  ;;  %597 = vst.msk [vmem:[#allocation2 + $0x3c] sm:$0xf] %vm191_vm1, %v593_v49  ;;  %v1455_v32 = vsel %vm7179_vm7, %v1453_v8, %v1454_v9 }
  0x8d   : > { %1374 = vst.msk [vmem:[#allocation2 + $0x14] sm:$0xf] %vm191_vm1, %v1370_v39  ;;  %5769 = vmatmul.msk.bf16.gmra.mxu0 %vm959_vm8, %v6795_v52  ;;  %v700_v2 = vrot.slane %v698_v58, 5  ;;  %v706_v3 = vrot.slane %v704_v59, 5  ;;  %v710_v4 = vrot.slane %v708_v61, 4  ;;  %v716_v14 = vrot.slane %v714_v63, 5 }
  0x8e   : > { %1458 = vst.msk [vmem:[#allocation2 + $0x38] sm:$0xf] %vm191_vm1, %v1452_v53  ;;  %v5905_v11 = vld [vmem:[%s7151_s5 + $0x88] sm:$0xf]  ;;  %v5656_v16 = vld [vmem:[%s7151_s5 + $0xb4] sm:$0xf] }
  0x8f   : > { %v701_v12 = vor.u32 %v700_v2, %v697_v62  ;;  %v711_v13 = vor.u32 %v710_v4, %v706_v3  ;;  %v5907_v17 = vrot.slane %v5904_v0, 9  ;;  %v1519_v18 = vrot.slane %v5905_v11, 5  ;;  %v5657_v19 = vld [vmem:[%s7151_s5 + $0xb8] sm:$0xf]  ;;  %v5906_v37 = vld [vmem:[%s7151_s5 + $0x8c] sm:$0x1] }
  0x90   : > { %v7539_v22 = vld [vmem:[#allocation2 + $0x58] sm:$0xf]  ;;  %312 = vst.msk [vmem:[#allocation2 + $0x78] sm:$0xf] %vm191_vm1, %v5656_v16  ;;  %v5700_v38 = vld [vmem:[%s7151_s5 + $0xb4] sm:$0xf] }
  0x91   : > { %v7541_v27 = vld [vmem:[#allocation2 + $0x58] sm:$0xf0]  ;;  %v702_v29 = vrot.slane %v701_v12, 4  ;;  %v712_v31 = vrot.slane %v711_v13, 4  ;;  %v5701_v39 = vld [vmem:[%s7151_s5 + $0xb8] sm:$0xf]  ;;  %v1520_v50 = vsel %vm7179_vm7, %v5907_v17, %v1519_v18 }
  0x92   : > { %313 = vst.msk [vmem:[#allocation2 + $0x7c] sm:$0xf] %vm191_vm1, %v5657_v19  ;;  %v5702_v47 = vld [vmem:[%s7151_s5 + $0xbc] sm:$0x1]  ;;  %v819_v48 = vshrl.u32 %v5700_v38, 16  ;;  %v822_v51 = vshll.u32 %v5700_v38, 16 }
  0x93   : > { %v707_v41 = vsel %vm7169_vm6, %v702_v29, %v706_v3  ;;  %v717_v42 = vsel %vm7169_vm6, %v712_v31, %v716_v14  ;;  %v828_v52 = vshll.u32 %v5701_v39, 16  ;;  %v832_v53 = vshrl.u32 %v5701_v39, 16  ;;  %v5920_v61 = vld [vmem:[%s7151_s5 + $0xb4] sm:$0xe]  ;;  %v5921_v4 = vld [vmem:[%s7151_s5 + $0xb8] sm:$0xf] }
  0x94   : > { %720 = vst.msk [vmem:[#allocation2 + $0x58] sm:$0xf] %vm191_vm1, %v707_v41  ;;  %v821_v58 = vrot.slane %v819_v48, 4  ;;  %v838_v59 = vshll.u32 %v5702_v47, 16  ;;  %v824_v62 = vrot.slane %v822_v51, 5  ;;  %v1521_v2 = vrot.slane %v1519_v18, 4 }
  0x95   : > { %v6800_v49 = vld [vmem:[#allocation2 + $0x38] sm:$0xff]  ;;  %721 = vst.msk [vmem:[#allocation2 + $0x5c] sm:$0xf] %vm191_vm1, %v717_v42  ;;  %v830_v63 = vrot.slane %v828_v52, 5  ;;  %v834_v0 = vrot.slane %v832_v53, 4  ;;  %v1522_v3 = vrot.slane %v5906_v37, 5 }
  0x96   : > { %1459 = vst.msk [vmem:[#allocation2 + $0x3c] sm:$0xf] %vm191_vm1, %v1455_v32  ;;  %5774 = vmatmul.msk.bf16.gmra.mxu1 %vm959_vm8, %v6800_v49  ;;  %v825_v8 = vor.u32 %v824_v62, %v821_v58  ;;  %v840_v11 = vrot.slane %v838_v59, 5  ;;  %v5632_v12 = vld [vmem:[%s7151_s5 + $0x24] sm:$0xf]  ;;  %v5923_v13 = vrot.slane %v5920_v61, 9 }
  0x97   : > { %1526 = vst.msk [vmem:[#allocation2 + $0x58] sm:$0xf] %vm191_vm1, %v1520_v50  ;;  %v835_v9 = vor.u32 %v834_v0, %v830_v63  ;;  %v1587_v14 = vrot.slane %v5921_v4, 5  ;;  %v5633_v16 = vld [vmem:[%s7151_s5 + $0x28] sm:$0xf]  ;;  %v1523_v31 = vsel %vm7179_vm7, %v1521_v2, %v1522_v3 }
  0x98   : > { %v7566_v17 = vld [vmem:[#allocation2 + $0x78] sm:$0xf]  ;;  %v826_v18 = vrot.slane %v825_v8, 4  ;;  %v5922_v32 = vld [vmem:[%s7151_s5 + $0xbc] sm:$0x1] }
  0x99   : > { %v7568_v19 = vld [vmem:[#allocation2 + $0x78] sm:$0xf0]  ;;  %v836_v29 = vrot.slane %v835_v9, 4  ;;  %216 = vst.msk [vmem:[#allocation2 + $0x18] sm:$0xf] %vm191_vm1, %v5632_v12  ;;  %v1588_v49 = vsel %vm7179_vm7, %v5923_v13, %v1587_v14  ;;  %v1589_v0 = vrot.slane %v1587_v14, 4 }
  0x9a   : > { %v5664_v37 = vld [vmem:[%s7151_s5 + $0x24] sm:$0xf]  ;;  %v5665_v38 = vld [vmem:[%s7151_s5 + $0x28] sm:$0xf]  ;;  %v831_v39 = vsel %vm7169_vm6, %v826_v18, %v830_v63  ;;  %217 = vst.msk [vmem:[#allocation2 + $0x1c] sm:$0xf] %vm191_vm1, %v5633_v16  ;;  %v5786_v16 = vor.u32 %v7286_v24, %v7269_v10 }
  0x9b   : > { %v841_v41 = vsel %vm7169_vm6, %v836_v29, %v840_v11  ;;  %v5666_v42 = vld [vmem:[%s7151_s5 + $0x2c] sm:$0x1]  ;;  %v447_v47 = vshrl.u32 %v5664_v37, 16  ;;  %844 = vst.msk [vmem:[#allocation2 + $0x78] sm:$0xf] %vm191_vm1, %v831_v39  ;;  %v450_v50 = vshll.u32 %v5664_v37, 16 }
  0x9c   : > { %v456_v51 = vshll.u32 %v5665_v38, 16  ;;  %v460_v52 = vshrl.u32 %v5665_v38, 16  ;;  %v466_v58 = vshll.u32 %v5666_v42, 16  ;;  %v5872_v59 = vld [vmem:[%s7151_s5 + $0x24] sm:$0xe]  ;;  %v1590_v2 = vrot.slane %v5922_v32, 5 }
  0x9d   : > { %v449_v53 = vrot.slane %v447_v47, 4  ;;  %845 = vst.msk [vmem:[#allocation2 + $0x7c] sm:$0xf] %vm191_vm1, %v841_v41  ;;  %v452_v61 = vrot.slane %v450_v50, 5  ;;  %v5873_v3 = vld [vmem:[%s7151_s5 + $0x28] sm:$0xf] }
  0x9e   : > { %v6804_v48 = vld [vmem:[#allocation2 + $0x58] sm:$0xff]  ;;  %v458_v62 = vrot.slane %v456_v51, 5  ;;  %v462_v63 = vrot.slane %v460_v52, 4  ;;  %1594 = vst.msk [vmem:[#allocation2 + $0x78] sm:$0xf] %vm191_vm1, %v1588_v49  ;;  %v468_v9 = vrot.slane %v466_v58, 5  ;;  %v1591_v38 = vsel %vm7179_vm7, %v1589_v0, %v1590_v2 }
  0x9f   : > { %1527 = vst.msk [vmem:[#allocation2 + $0x5c] sm:$0xf] %vm191_vm1, %v1523_v31  ;;  %5778 = vmatmul.msk.bf16.gmra.mxu2 %vm959_vm8, %v6804_v48  ;;  %v453_v4 = vor.u32 %v452_v61, %v449_v53  ;;  %v6004_v11 = vld [vmem:[%s7151_s5 + $0xc] sm:$0xf]  ;;  %v5875_v12 = vrot.slane %v5872_v59, 9  ;;  %v1383_v13 = vrot.slane %v5873_v3, 5 }
  0xa0   : > { %v463_v8 = vor.u32 %v462_v63, %v458_v62  ;;  %v7594_v18 = vld [vmem:[#allocation2] sm:$0xff]  ;;  %v6005_v14 = vld [vmem:[%s7151_s5 + $0x10] sm:$0xf]  ;;  %v7597_v29 = vld [vmem:[#allocation2 + $0x18] sm:$0xf] }
  0xa1   : > { %v7599_v31 = vld [vmem:[#allocation2 + $0x18] sm:$0xf0]  ;;  %v454_v32 = vrot.slane %v453_v4, 4  ;;  %v5874_v39 = vld [vmem:[%s7151_s5 + $0x2c] sm:$0x1]  ;;  %v1384_v50 = vsel %vm7179_vm7, %v5875_v12, %v1383_v13  ;;  %v1385_v3 = vrot.slane %v1383_v13, 4 }
  0xa2   : > { %v464_v37 = vrot.slane %v463_v8, 4  ;;  %1883 = vst.msk [vmem:[#allocation2] sm:$0xf] %vm191_vm1, %v6004_v11  ;;  %v6116_v41 = vld [vmem:[%s7151_s5 + $0xc] sm:$0xf]  ;;  %v1386_v4 = vrot.slane %v5874_v39, 5 }
  0xa3   : > { %v6117_v42 = vld [vmem:[%s7151_s5 + $0x10] sm:$0xf]  ;;  %v459_v10 = vsel %vm7169_vm6, %v454_v32, %v458_v62  ;;  %1884 = vst.msk [vmem:[#allocation2 + $0x4] sm:$0xf] %vm191_vm1, %v6005_v14  ;;  %v6118_v47 = vld [vmem:[%s7151_s5 + $0x14] sm:$0x1] }
  0xa4   : > { %v469_v24 = vsel %vm7169_vm6, %v464_v37, %v468_v9  ;;  %v2238_v48 = vshrl.u32 %v6116_v41, 16  ;;  %472 = vst.msk [vmem:[#allocation2 + $0x18] sm:$0xf] %vm191_vm1, %v459_v10  ;;  %v2241_v51 = vshll.u32 %v6116_v41, 16  ;;  %v2247_v52 = vshll.u32 %v6117_v42, 16 }
  0xa5   : > { %v6808_v49 = vld [vmem:[#allocation2 + $0x78] sm:$0xff]  ;;  %v2251_v53 = vshrl.u32 %v6117_v42, 16  ;;  %v2257_v59 = vshll.u32 %v6118_v47, 16  ;;  %473 = vst.msk [vmem:[#allocation2 + $0x1c] sm:$0xf] %vm191_vm1, %v469_v24  ;;  %v1387_v10 = vsel %vm7179_vm7, %v1385_v3, %v1386_v4 }
  0xa6   : > { %5847 = vmatmul.msk.bf16.vlgmr.msrb.gmra.mxu1 %vm959_vm8, %v5786_v16  ;;  %1595 = vst.msk [vmem:[#allocation2 + $0x7c] sm:$0xf] %vm191_vm1, %v1591_v38  ;;  %v2240_v58 = vrot.slane %v2238_v48, 4  ;;  %v3672_v61 = vld [vmem:[%s9148_s1 + $0x18] sm:$0xf]  ;;  %5782 = vmatmul.msk.bf16.gmra.mxu3 %vm959_vm8, %v6808_v49  ;;  %v2243_v62 = vrot.slane %v2241_v51, 5 }
  0xa7   : > { %v2249_v63 = vrot.slane %v2247_v52, 5  ;;  %v2253_v0 = vrot.slane %v2251_v53, 4  ;;  %v3802_v2 = vsel %vm1008_vm0, %v3672_v61, 0  ;;  %1390 = vst.msk [vmem:[#allocation2 + $0x18] sm:$0xf] %vm191_vm1, %v1384_v50  ;;  %v2259_v12 = vrot.slane %v2257_v59, 5 }
  0xa8   : > { %3811 = vmatpush.bf16.msra.mxu2 %v3802_v2  ;;  %v6244_v8 = vld [vmem:[%s7151_s5 + $0xc] sm:$0xe]  ;;  %v2244_v9 = vor.u32 %v2243_v62, %v2240_v58  ;;  %v6245_v16 = vld [vmem:[%s7151_s5 + $0x10] sm:$0xf]  ;;  %v4453_v32 = vld [vmem:[%s9148_s1 + $0x1c] sm:$0xf] }
  0xa9   : > { %v2254_v11 = vor.u32 %v2253_v0, %v2249_v63  ;;  %v6247_v14 = vrot.slane %v6244_v8, 9  ;;  %v3319_v37 = vld [vmem:[%s9148_s1 + $0x14] sm:$0xf]  ;;  %v4583_v41 = vsel %vm1008_vm0, %v4453_v32, 0  ;;  %v3023_v24 = vrot.slane %v6245_v16, 5  ;;  %v7647_v53 = vld [vmem:[#allocation2 + $0x8] sm:$0xff] }
  0xaa   : > { %v2245_v13 = vrot.slane %v2244_v9, 4  ;;  %v6246_v39 = vld [vmem:[%s7151_s5 + $0x14] sm:$0x1]  ;;  %v3449_v42 = vsel %vm1008_vm0, %v3319_v37, 0  ;;  %4592 = vmatpush.bf16.msra.mxu3 %v4583_v41  ;;  %v5010_v47 = vld [vmem:[%s9148_s1 + $0x20] sm:$0xf] }
  0xab   : > { %v2255_v38 = vrot.slane %v2254_v11, 4  ;;  %3458 = vmatpush.bf16.msra.mxu1 %v3449_v42  ;;  %v6006_v48 = vld [vmem:[%s7151_s5 + $0x18] sm:$0xf]  ;;  %v6825_v49 = vld [vmem:[#allocation2] sm:$0xff]  ;;  %v5140_v52 = vsel %vm1008_vm0, %v5010_v47, 0  ;;  %v3024_v61 = vsel %vm7179_vm7, %v6247_v14, %v3023_v24  ;;  %v3026_v62 = vrot.slane %v6246_v39, 5 }
  0xac   : > { %v2250_v50 = vsel %vm7169_vm6, %v2245_v13, %v2249_v63  ;;  %v6007_v58 = vld [vmem:[%s7151_s5 + $0x1c] sm:$0xf]  ;;  %1887 = vst.msk [vmem:[#allocation2 + $0x8] sm:$0xf] %vm191_vm1, %v6006_v48  ;;  %5149 = vmatpush.bf16.msra.mxu0 %v5140_v52  ;;  %v6119_v63 = vld [vmem:[%s7151_s5 + $0x18] sm:$0xf]  ;;  %v5790_v11 = vor.u32 %v7378_v45, %v7375_v40 }
  0xad   : > { %v2260_v51 = vsel %vm7169_vm6, %v2255_v38, %v2259_v12  ;;  %2263 = vst.msk [vmem:[#allocation2] sm:$0xf] %vm191_vm1, %v2250_v50  ;;  %v6120_v0 = vld [vmem:[%s7151_s5 + $0x1c] sm:$0xf]  ;;  %v6121_v2 = vld [vmem:[%s7151_s5 + $0x20] sm:$0x1] }
  0xae   : > { %v6796_v59 = vld [vmem:[#allocation2 + $0x18] sm:$0xff]  ;;  %2264 = vst.msk [vmem:[#allocation2 + $0x4] sm:$0xf] %vm191_vm1, %v2260_v51  ;;  %v2269_v3 = vshrl.u32 %v6119_v63, 16  ;;  %v2278_v4 = vshll.u32 %v6120_v0, 16  ;;  %v2282_v8 = vshrl.u32 %v6120_v0, 16 }
  0xaf   : > { %5988 = vmatmul.msk.bf16.vlgmr.msrb.gmra.mxu2 %vm959_vm8, %v7594_v18  ;;  %1391 = vst.msk [vmem:[#allocation2 + $0x1c] sm:$0xf] %vm191_vm1, %v1387_v10  ;;  %5770 = vmatmul.msk.bf16.gmra.mxu0 %vm959_vm8, %v6796_v59  ;;  %v2272_v18 = vshll.u32 %v6119_v63, 16  ;;  %v3025_v9 = vrot.slane %v3023_v24, 4  ;;  %v2288_v12 = vshll.u32 %v6121_v2, 16  ;;  %v7668_v39 = vld [vmem:[#allocation2 + $0x10] sm:$0xff] }
  0xb0   : > { %3030 = vst.msk [vmem:[#allocation2] sm:$0xf] %vm191_vm1, %v3024_v61  ;;  %v6248_v16 = vld [vmem:[%s7151_s5 + $0x18] sm:$0xe]  ;;  %v2271_v14 = vrot.slane %v2269_v3, 4  ;;  %v2280_v37 = vrot.slane %v2278_v4, 5 }
  0xb1   : > { %1888 = vst.msk [vmem:[#allocation2 + $0xc] sm:$0xf] %vm191_vm1, %v6007_v58  ;;  %v2274_v32 = vrot.slane %v2272_v18, 5  ;;  %v2284_v13 = vrot.slane %v2282_v8, 4  ;;  %v6249_v38 = vld [vmem:[%s7151_s5 + $0x1c] sm:$0xf]  ;;  %v3027_v47 = vsel %vm7179_vm7, %v3025_v9, %v3026_v62 }
  0xb2   : > { %v2290_v10 = vrot.slane %v2288_v12, 5  ;;  %v6251_v24 = vrot.slane %v6248_v16, 9  ;;  %v6008_v40 = vld [vmem:[%s7151_s5 + $0x24] sm:$0xf]  ;;  %v6009_v45 = vld [vmem:[%s7151_s5 + $0x28] sm:$0xf] }
  0xb3   : > { %v2275_v41 = vor.u32 %v2274_v32, %v2271_v14  ;;  %v2285_v42 = vor.u32 %v2284_v13, %v2280_v37  ;;  %v6250_v48 = vld [vmem:[%s7151_s5 + $0x20] sm:$0x1]  ;;  %1891 = vst.msk [vmem:[#allocation2 + $0x10] sm:$0xf] %vm191_vm1, %v6008_v40  ;;  %v6122_v50 = vld [vmem:[%s7151_s5 + $0x24] sm:$0xf] }
  0xb4   : > { %v6123_v51 = vld [vmem:[%s7151_s5 + $0x28] sm:$0xf]  ;;  %v3040_v59 = vrot.slane %v6249_v38, 5  ;;  %1892 = vst.msk [vmem:[#allocation2 + $0x14] sm:$0xf] %vm191_vm1, %v6009_v45  ;;  %v2300_v0 = vshrl.u32 %v6122_v50, 16 }
  0xb5   : > { %v2276_v52 = vrot.slane %v2275_v41, 4  ;;  %v2286_v58 = vrot.slane %v2285_v42, 4  ;;  %v6124_v63 = vld [vmem:[%s7151_s5 + $0x2c] sm:$0x1]  ;;  %v2303_v2 = vshll.u32 %v6122_v50, 16  ;;  %v2309_v3 = vshll.u32 %v6123_v51, 16 }
  0xb6   : > { %5848 = vmatmul.msk.bf16.gmra.mxu1 %vm959_vm8, %v5790_v11  ;;  %6100 = vmatmul.msk.bf16.vlgmr.msrb.gmra.mxu3 %vm959_vm8, %v6825_v49  ;;  %v3041_v4 = vsel %vm7179_vm7, %v6251_v24, %v3040_v59  ;;  %v2313_v8 = vshrl.u32 %v6123_v51, 16  ;;  %v2302_v49 = vrot.slane %v2300_v0, 4  ;;  %v3042_v16 = vrot.slane %v3040_v59, 4  ;;  %v6126_v24 = vld [vmem:[%s7151_s5 + $0x34] sm:$0xf] }
  0xb7   : > { %v6841_v61 = vld [vmem:[#allocation2] sm:$0xff]  ;;  %v2281_v62 = vsel %vm7169_vm6, %v2276_v52, %v2280_v37  ;;  %v2291_v18 = vsel %vm7169_vm6, %v2286_v58, %v2290_v10  ;;  %v2305_v11 = vrot.slane %v2303_v2, 5  ;;  %v2311_v12 = vrot.slane %v2309_v3, 5  ;;  %v6125_v10 = vld [vmem:[%s7151_s5 + $0x30] sm:$0xf]  ;;  %v7704_v52 = vld [vmem:[#allocation2 + $0x18] sm:$0xff] }
  0xb8   : > { %3031 = vst.msk [vmem:[#allocation2 + $0x4] sm:$0xf] %vm191_vm1, %v3027_v47  ;;  %v6826_v9 = vld [vmem:[#allocation2 + $0x8] sm:$0xff]  ;;  %v3043_v14 = vrot.slane %v6250_v48, 5  ;;  %v2315_v32 = vrot.slane %v2313_v8, 4  ;;  %v2319_v37 = vshll.u32 %v6124_v63, 16 }
  0xb9   : > { %2294 = vst.msk [vmem:[#allocation2 + $0x8] sm:$0xf] %vm191_vm1, %v2281_v62  ;;  %v2306_v13 = vor.u32 %v2305_v11, %v2302_v49  ;;  %v6010_v48 = vld [vmem:[%s7151_s5 + $0x30] sm:$0xf]  ;;  %v6011_v50 = vld [vmem:[%s7151_s5 + $0x34] sm:$0xf]  ;;  %v5794_v62 = vor.u32 %v7487_v46, %v7485_v43 }
  0xba   : > { %2295 = vst.msk [vmem:[#allocation2 + $0xc] sm:$0xf] %vm191_vm1, %v2291_v18  ;;  %v2316_v38 = vor.u32 %v2315_v32, %v2311_v12  ;;  %v2321_v41 = vrot.slane %v2319_v37, 5  ;;  %v3044_v40 = vsel %vm7179_vm7, %v3042_v16, %v3043_v14  ;;  %v2331_v58 = vshrl.u32 %v6125_v10, 16  ;;  %v6252_v0 = vld [vmem:[%s7151_s5 + $0x24] sm:$0xe] }
  0xbb   : > { %3047 = vst.msk [vmem:[#allocation2 + $0x8] sm:$0xf] %vm191_vm1, %v3041_v4  ;;  %v2307_v42 = vrot.slane %v2306_v13, 4  ;;  %v7698_v45 = vld [vmem:[#allocation2 + $0x10] sm:$0xff]  ;;  %v2340_v59 = vshll.u32 %v6126_v24, 16  ;;  %v6255_v4 = vrot.slane %v6252_v0, 9 }
  0xbc   : > { %v2317_v47 = vrot.slane %v2316_v38, 4  ;;  %1895 = vst.msk [vmem:[#allocation2 + $0x18] sm:$0xf] %vm191_vm1, %v6010_v48  ;;  %v6253_v2 = vld [vmem:[%s7151_s5 + $0x28] sm:$0xf]  ;;  %v2333_v11 = vrot.slane %v2331_v58, 4 }
  0xbd   : > { %v2312_v51 = vsel %vm7169_vm6, %v2307_v42, %v2311_v12  ;;  %v6254_v18 = vld [vmem:[%s7151_s5 + $0x2c] sm:$0x1]  ;;  %v3057_v8 = vrot.slane %v6253_v2, 5  ;;  %1896 = vst.msk [vmem:[#allocation2 + $0x1c] sm:$0xf] %vm191_vm1, %v6011_v50  ;;  %v2342_v16 = vrot.slane %v2340_v59, 5 }
  0xbe   : > { %v2322_v63 = vsel %vm7169_vm6, %v2317_v47, %v2321_v41  ;;  %2325 = vst.msk [vmem:[#allocation2 + $0x10] sm:$0xf] %vm191_vm1, %v2312_v51  ;;  %v3060_v49 = vrot.slane %v6254_v18, 5  ;;  %v2344_v14 = vshrl.u32 %v6126_v24, 16  ;;  %v6128_v50 = vld [vmem:[%s7151_s5 + $0x3c] sm:$0xf]  ;;  %v5798_v18 = vor.u32 %v7599_v31, %v7597_v29 }
  0xbf   : > { %5989 = vmatmul.msk.bf16.gmra.mxu2 %vm959_vm8, %v7647_v53  ;;  %v2334_v53 = vshll.u32 %v6125_v10, 16  ;;  %6228 = vmatmul.msk.bf16.vlgmr.msrb.gmra.mxu0 %vm959_vm8, %v6841_v61  ;;  %2326 = vst.msk [vmem:[#allocation2 + $0x14] sm:$0xf] %vm191_vm1, %v2322_v63  ;;  %v6127_v61 = vld [vmem:[%s7151_s5 + $0x38] sm:$0x1]  ;;  %v3058_v32 = vsel %vm7179_vm7, %v6255_v4, %v3057_v8  ;;  %v3059_v37 = vrot.slane %v3057_v8, 4 }
  0xc0   : > { %v2350_v43 = vshll.u32 %v6127_v61, 16  ;;  %3064 = vst.msk [vmem:[#allocation2 + $0x10] sm:$0xf] %vm191_vm1, %v3058_v32  ;;  %v2346_v13 = vrot.slane %v2344_v14, 4  ;;  %v6129_v51 = vld [vmem:[%s7151_s5 + $0x40] sm:$0xf] }
  0xc1   : > { %v2336_v12 = vrot.slane %v2334_v53, 5  ;;  %v3061_v38 = vsel %vm7179_vm7, %v3059_v37, %v3060_v49  ;;  %v7742_v58 = vld [vmem:[#allocation2 + $0x20] sm:$0xff]  ;;  %v6012_v53 = vld [vmem:[%s7151_s5 + $0x3c] sm:$0xf]  ;;  %v2362_v63 = vshrl.u32 %v6128_v50, 16  ;;  %v2365_v0 = vshll.u32 %v6128_v50, 16 }
  0xc2   : > { %v6842_v3 = vld [vmem:[#allocation2 + $0x8] sm:$0xff]  ;;  %v2347_v42 = vor.u32 %v2346_v13, %v2342_v16  ;;  %v2352_v10 = vrot.slane %v2350_v43, 5  ;;  %v6013_v59 = vld [vmem:[%s7151_s5 + $0x40] sm:$0xf]  ;;  %1899 = vst.msk [vmem:[#allocation2 + $0x20] sm:$0xf] %vm191_vm1, %v6012_v53 }
  0xc3   : > { %3048 = vst.msk [vmem:[#allocation2 + $0xc] sm:$0xf] %vm191_vm1, %v3044_v40  ;;  %v2337_v46 = vor.u32 %v2336_v12, %v2333_v11  ;;  %v2371_v2 = vshll.u32 %v6129_v51, 16  ;;  %v6256_v4 = vld [vmem:[%s7151_s5 + $0x30] sm:$0xe]  ;;  %v2364_v12 = vrot.slane %v2362_v63, 4 }
  0xc4   : > { %v2348_v47 = vrot.slane %v2347_v42, 4  ;;  %v7732_v48 = vld [vmem:[#allocation2 + $0x18] sm:$0xff]  ;;  %v6257_v8 = vld [vmem:[%s7151_s5 + $0x34] sm:$0xf]  ;;  %1900 = vst.msk [vmem:[#allocation2 + $0x24] sm:$0xf] %vm191_vm1, %v6013_v59 }
  0xc5   : > { %v2338_v41 = vrot.slane %v2337_v46, 4  ;;  %v6258_v49 = vld [vmem:[%s7151_s5 + $0x38] sm:$0x1]  ;;  %v3074_v61 = vrot.slane %v6257_v8, 5  ;;  %v2367_v14 = vrot.slane %v2365_v0, 5  ;;  %v2373_v32 = vrot.slane %v2371_v2, 5 }
  0xc6   : > { %5849 = vmatmul.msk.bf16.gmra.mxu1 %vm959_vm8, %v5794_v62  ;;  %6101 = vmatmul.msk.bf16.gmra.mxu3 %vm959_vm8, %v6826_v9  ;;  %v2353_v9 = vsel %vm7169_vm6, %v2348_v47, %v2352_v10  ;;  %v2375_v62 = vshrl.u32 %v6129_v51, 16  ;;  %v3077_v11 = vrot.slane %v6258_v49, 5  ;;  %v6131_v51 = vld [vmem:[%s7151_s5 + $0x48] sm:$0xf]  ;;  %v6132_v53 = vld [vmem:[%s7151_s5 + $0x4c] sm:$0xf] }
  0xc7   : > { %v7727_v24 = vld [vmem:[#allocation2 + $0x10] sm:$0xff]  ;;  %v2343_v40 = vsel %vm7169_vm6, %v2338_v41, %v2342_v16  ;;  %2357 = vst.msk [vmem:[#allocation2 + $0x1c] sm:$0xf] %vm191_vm1, %v2353_v9  ;;  %v6130_v16 = vld [vmem:[%s7151_s5 + $0x44] sm:$0x1]  ;;  %v2368_v29 = vor.u32 %v2367_v14, %v2364_v12  ;;  %v2393_v0 = vshrl.u32 %v6131_v51, 16 }
  0xc8   : > { %3065 = vst.msk [vmem:[#allocation2 + $0x14] sm:$0xf] %vm191_vm1, %v3061_v38  ;;  %v2377_v37 = vrot.slane %v2375_v62, 4  ;;  %v2381_v46 = vshll.u32 %v6130_v16, 16  ;;  %v6014_v59 = vld [vmem:[%s7151_s5 + $0x48] sm:$0xf] }
  0xc9   : > { %2356 = vst.msk [vmem:[#allocation2 + $0x18] sm:$0xf] %vm191_vm1, %v2343_v40  ;;  %v2369_v42 = vrot.slane %v2368_v29, 4  ;;  %v7766_v40 = vpop.f32.mrf.mxu1  ;;  %v6015_v63 = vld [vmem:[%s7151_s5 + $0x4c] sm:$0xf]  ;;  %v2396_v2 = vshll.u32 %v6131_v51, 16 }
  0xca   : > { %v2378_v31 = vor.u32 %v2377_v37, %v2373_v32  ;;  %v2383_v41 = vrot.slane %v2381_v46, 5  ;;  %v2402_v62 = vshll.u32 %v6132_v53, 16  ;;  %v6261_v8 = vld [vmem:[%s7151_s5 + $0x40] sm:$0xf]  ;;  %v6262_v49 = vld [vmem:[%s7151_s5 + $0x44] sm:$0x1] }
  0xcb   : > { %v7768_v47 = vld [vmem:[#allocation2 + $0x20] sm:$0xff]  ;;  %v2374_v9 = vsel %vm7169_vm6, %v2369_v42, %v2373_v32  ;;  %v6133_v16 = vld [vmem:[%s7151_s5 + $0x50] sm:$0x1]  ;;  %v2395_v14 = vrot.slane %v2393_v0, 4  ;;  %v2398_v32 = vrot.slane %v2396_v2, 5 }
  0xcc   : > { %v2379_v10 = vrot.slane %v2378_v31, 4  ;;  %2387 = vst.msk [vmem:[#allocation2 + $0x20] sm:$0xf] %vm191_vm1, %v2374_v9  ;;  %v2404_v37 = vrot.slane %v2402_v62, 5  ;;  %v2412_v46 = vshll.u32 %v6133_v16, 16  ;;  %v7825_v0 = vld [vmem:[#allocation2 + $0x30] sm:$0xff]  ;;  %v5806_v16 = vor.u32 %v7315_v5, %v7295_v44 }
  0xcd   : > { %v6016_v2 = vld [vmem:[%s7151_s5 + $0x54] sm:$0xf]  ;;  %v6017_v62 = vld [vmem:[%s7151_s5 + $0x58] sm:$0xf] }
  0xce   : > { %v2384_v50 = vsel %vm7169_vm6, %v2379_v10, %v2383_v41  ;;  %v2414_v41 = vrot.slane %v2412_v46, 5  ;;  %1907 = vst.msk [vmem:[#allocation2 + $0x30] sm:$0xf] %vm191_vm1, %v6016_v2 }
  0xcf   : > { %5990 = vmatmul.msk.bf16.gmra.mxu2 %vm959_vm8, %v7668_v39  ;;  %6229 = vmatmul.msk.bf16.gmra.mxu0 %vm959_vm8, %v6842_v3  ;;  %v6259_v39 = vrot.slane %v6256_v4, 9  ;;  %v3076_v3 = vrot.slane %v3074_v61, 4  ;;  %2388 = vst.msk [vmem:[#allocation2 + $0x24] sm:$0xf] %vm191_vm1, %v2384_v50  ;;  %v6260_v4 = vld [vmem:[%s7151_s5 + $0x3c] sm:$0xe] }
  0xd0   : > { %1908 = vst.msk [vmem:[#allocation2 + $0x34] sm:$0xf] %vm191_vm1, %v6017_v62 }
  0xd1   : > { %v3075_v43 = vsel %vm7179_vm7, %v6259_v39, %v3074_v61  ;;  %v3078_v38 = vsel %vm7179_vm7, %v3076_v3, %v3077_v11  ;;  %v6263_v39 = vrot.slane %v6260_v4, 9  ;;  %v3091_v61 = vrot.slane %v6261_v8, 5  ;;  %v7792_v12 = vpop.f32.mrf.mxu1 }
  0xd2   : > { %3081 = vst.msk [vmem:[#allocation2 + $0x18] sm:$0xf] %vm191_vm1, %v3075_v43  ;;  %v3094_v11 = vrot.slane %v6262_v49, 5 }
  0xd3   : > { %v3093_v3 = vrot.slane %v3091_v61, 4 }
  0xd5   : > { %v3095_v31 = vsel %vm7179_vm7, %v3093_v3, %v3094_v11  ;;  %v7837_v11 = vpop.f32.mrf.mxu0 }
  0xd6   : > { %5850 = vmatmul.msk.bf16.gmra.mxu1 %vm959_vm8, %v5798_v18  ;;  %6102 = vmatmul.msk.bf16.gmra.mxu3 %vm959_vm8, %v7698_v45  ;;  %v7780_v45 = vld [vmem:[#allocation2 + $0x28] sm:$0xff]  ;;  %v2406_v18 = vshrl.u32 %v6132_v53, 16 }
  0xd7   : > { %1903 = vst.msk [vmem:[#allocation2 + $0x28] sm:$0xf] %vm191_vm1, %v6014_v59  ;;  %v6134_v59 = vld [vmem:[%s7151_s5 + $0x54] sm:$0xf] }
  0xd8   : > { %1904 = vst.msk [vmem:[#allocation2 + $0x2c] sm:$0xf] %vm191_vm1, %v6015_v63  ;;  %v2408_v43 = vrot.slane %v2406_v18, 4  ;;  %v6135_v63 = vld [vmem:[%s7151_s5 + $0x58] sm:$0xf]  ;;  %v2424_v18 = vshrl.u32 %v6134_v59, 16 }
  0xd9   : > { %v7759_v13 = vld [vmem:[#allocation2 + $0x18] sm:$0xff]  ;;  %v7816_v53 = vpop.f32.mrf.mxu1  ;;  %v2427_v8 = vshll.u32 %v6134_v59, 16  ;;  %v2433_v49 = vshll.u32 %v6135_v63, 16  ;;  %v7858_v2 = vld [vmem:[#allocation2 + $0x30] sm:$0xff] }
  0xda   : > { %3082 = vst.msk [vmem:[#allocation2 + $0x1c] sm:$0xf] %vm191_vm1, %v3078_v38  ;;  %v7804_v38 = vpop.f32.mrf.mxu2 }
  0xdb   : > { %v2429_v3 = vrot.slane %v2427_v8, 5  ;;  %v2435_v46 = vrot.slane %v2433_v49, 5 }
  0xdd   : > { %v7868_v49 = vpop.f32.mrf.mxu0 }
  0xdf   : > { %5991 = vmatmul.msk.bf16.gmra.mxu2 %vm959_vm8, %v7704_v52  ;;  %6230 = vmatmul.msk.bf16.gmra.mxu0 %vm959_vm8, %v7727_v24  ;;  %v5802_v52 = vor.u32 %v7184_v35, %v7175_v30  ;;  %v3092_v24 = vsel %vm7179_vm7, %v6263_v39, %v3091_v61  ;;  %v2399_v30 = vor.u32 %v2398_v32, %v2395_v14  ;;  %v7809_v9 = vld [vmem:[#allocation2 + $0x28] sm:$0xff]  ;;  %v6266_v61 = vld [vmem:[%s7151_s5 + $0x50] sm:$0x1] }
  0xe0   : > { %3098 = vst.msk [vmem:[#allocation2 + $0x20] sm:$0xf] %vm191_vm1, %v3092_v24  ;;  %v2409_v35 = vor.u32 %v2408_v43, %v2404_v37  ;;  %v6264_v39 = vld [vmem:[%s7151_s5 + $0x48] sm:$0xe]  ;;  %v6136_v43 = vld [vmem:[%s7151_s5 + $0x5c] sm:$0x1] }
  0xe1   : > { %v2400_v42 = vrot.slane %v2399_v30, 4  ;;  %v6267_v14 = vrot.slane %v6264_v39, 9  ;;  %v2426_v24 = vrot.slane %v2424_v18, 4 }
  0xe2   : > { %v2410_v10 = vrot.slane %v2409_v35, 4  ;;  %v7829_v4 = vpop.f32.mrf.mxu2 }
  0xe3   : > { %v2405_v50 = vsel %vm7169_vm6, %v2400_v42, %v2404_v37  ;;  %v3111_v37 = vrot.slane %v6266_v61, 5  ;;  %v2430_v44 = vor.u32 %v2429_v3, %v2426_v24  ;;  %v6018_v61 = vld [vmem:[%s7151_s5 + $0x60] sm:$0xf]  ;;  %v6268_v24 = vld [vmem:[%s7151_s5 + $0x54] sm:$0xe] }
  0xe4   : > { %v2415_v51 = vsel %vm7169_vm6, %v2410_v10, %v2414_v41  ;;  %2418 = vst.msk [vmem:[#allocation2 + $0x28] sm:$0xf] %vm191_vm1, %v2405_v50  ;;  %v7846_v41 = vpop.f32.mrf.mxu1  ;;  %v6269_v3 = vld [vmem:[%s7151_s5 + $0x58] sm:$0xf] }
  0xe5   : > { %2419 = vst.msk [vmem:[#allocation2 + $0x2c] sm:$0xf] %vm191_vm1, %v2415_v51  ;;  %v2431_v51 = vrot.slane %v2430_v44, 4  ;;  %v6139_v44 = vld [vmem:[%s7151_s5 + $0x68] sm:$0x1] }
  0xe6   : > { %5851 = vmatmul.msk.bf16.gmra.mxu1 %vm959_vm8, %v5802_v52  ;;  %6103 = vmatmul.msk.bf16.gmra.mxu3 %vm959_vm8, %v7732_v48  ;;  %v7823_v48 = vpop.f32.mrf.mxu3  ;;  %v2437_v52 = vshrl.u32 %v6135_v63, 16 }
  0xe7   : > { %v7800_v29 = vld [vmem:[#allocation2 + $0x20] sm:$0xff]  ;;  %9157 = vst [vmem:[#allocation6_spill] sm:$0xff] %v7823_v48  ;;  %v2436_v62 = vsel %vm7169_vm6, %v2431_v51, %v2435_v46 }
  0xe8   : > { %3099 = vst.msk [vmem:[#allocation2 + $0x24] sm:$0xf] %vm191_vm1, %v3095_v31  ;;  %v2439_v30 = vrot.slane %v2437_v52, 4  ;;  %v2443_v31 = vshll.u32 %v6136_v43, 16  ;;  %v6138_v52 = vld [vmem:[%s7151_s5 + $0x64] sm:$0xf] }
  0xe9   : > { %2449 = vst.msk [vmem:[#allocation2 + $0x30] sm:$0xf] %vm191_vm1, %v2436_v62  ;;  %v2468_v43 = vshrl.u32 %v6138_v52, 16 }
  0xea   : > { %v2440_v5 = vor.u32 %v2439_v30, %v2435_v46  ;;  %v2445_v50 = vrot.slane %v2443_v31, 5  ;;  %v7864_v8 = vpop.f32.mrf.mxu2  ;;  %v6270_v46 = vld [vmem:[%s7151_s5 + $0x5c] sm:$0x1]  ;;  %v6271_v30 = vrot.slane %v6268_v24, 9 }
  0xeb   : > { %v2470_v51 = vrot.slane %v2468_v43, 4 }
  0xec   : > { %v2441_v59 = vrot.slane %v2440_v5, 4 }
  0xee   : > { %v7856_v63 = vpop.f32.mrf.mxu3  ;;  %v2446_v18 = vsel %vm7169_vm6, %v2441_v59, %v2445_v50 }
  0xef   : > { %5992 = vmatmul.msk.bf16.gmra.mxu2 %vm959_vm8, %v7742_v58  ;;  %6231 = vmatmul.msk.bf16.gmra.mxu0 %vm959_vm8, %v7759_v13  ;;  %v6265_v58 = vld [vmem:[%s7151_s5 + $0x4c] sm:$0xf]  ;;  %9158 = vst [vmem:[#allocation7_spill] sm:$0xff] %v7856_v63 }
  0xf0   : > { %v3108_v32 = vrot.slane %v6265_v58, 5  ;;  %2450 = vst.msk [vmem:[#allocation2 + $0x34] sm:$0xf] %vm191_vm1, %v2446_v18  ;;  %v7874_v39 = vpop.f32.mrf.mxu1  ;;  %v7876_v58 = vld [vmem:[#allocation2 + $0x38] sm:$0xff]  ;;  %v2474_v18 = vshll.u32 %v6139_v44, 16 }
  0xf1   : > { %1911 = vst.msk [vmem:[#allocation2 + $0x38] sm:$0xf] %vm191_vm1, %v6018_v61  ;;  %v6021_v44 = vld [vmem:[%s7151_s5 + $0x70] sm:$0xf] }
  0xf2   : > { %v3109_v13 = vsel %vm7179_vm7, %v6267_v14, %v3108_v32  ;;  %v3110_v35 = vrot.slane %v3108_v32, 4  ;;  %v7892_v59 = vpop.f32.mrf.mxu2 }
  0xf3   : > { %3115 = vst.msk [vmem:[#allocation2 + $0x28] sm:$0xf] %vm191_vm1, %v3109_v13  ;;  %v3125_v13 = vrot.slane %v6269_v3, 5 }
  0xf4   : > { %v3112_v10 = vsel %vm7179_vm7, %v3110_v35, %v3111_v37  ;;  %v2464_v37 = vshll.u32 %v6138_v52, 16  ;;  %v3128_v35 = vrot.slane %v6270_v46, 5 }
  0xf5   : > { %v3127_v62 = vrot.slane %v3125_v13, 4 }
  0xf6   : > { %5852 = vmatmul.msk.bf16.gmra.mxu1 %vm959_vm8, %v5806_v16  ;;  %6104 = vmatmul.msk.bf16.gmra.mxu3 %vm959_vm8, %v7768_v47  ;;  %v6137_v47 = vld [vmem:[%s7151_s5 + $0x60] sm:$0xf]  ;;  %v6019_v16 = vld [vmem:[%s7151_s5 + $0x64] sm:$0xf]  ;;  %v7889_v31 = vpop.f32.mrf.mxu3  ;;  %v2466_v50 = vrot.slane %v2464_v37, 5 }
  0xf7   : > { %v2455_v14 = vshrl.u32 %v6137_v47, 16  ;;  %v2458_v32 = vshll.u32 %v6137_v47, 16  ;;  %1912 = vst.msk [vmem:[#allocation2 + $0x3c] sm:$0xf] %vm191_vm1, %v6019_v16  ;;  %v7897_v47 = vpop.f32.mrf.mxu0  ;;  %v3129_v61 = vsel %vm7179_vm7, %v3127_v62, %v3128_v35  ;;  %v2476_v16 = vrot.slane %v2474_v18, 5 }
  0xf8   : > { %9159 = vst [vmem:[#allocation8_spill] sm:$0xff] %v7889_v31  ;;  %v7907_v37 = vpop.f32.mrf.mxu1  ;;  %v6020_v35 = vld [vmem:[%s7151_s5 + $0x6c] sm:$0xf]  ;;  %v6272_v62 = vld [vmem:[%s7151_s5 + $0x60] sm:$0xe] }
  0xf9   : > { %v2457_v5 = vrot.slane %v2455_v14, 4  ;;  %v6273_v18 = vld [vmem:[%s7151_s5 + $0x64] sm:$0xf] }
  0xfa   : > { %v7849_v42 = vld [vmem:[#allocation2 + $0x28] sm:$0xff] }
  0xfb   : > { %3116 = vst.msk [vmem:[#allocation2 + $0x2c] sm:$0xf] %vm191_vm1, %v3112_v10  ;;  %v2460_v10 = vrot.slane %v2458_v32, 5 }
  0xfe   : > { %v7909_v43 = vld [vmem:[#allocation2 + $0x38] sm:$0xff]  ;;  %v7917_v46 = vpop.f32.mrf.mxu3 }
  0xff   : > { %5993 = vmatmul.msk.bf16.gmra.mxu2 %vm959_vm8, %v7780_v45  ;;  %6232 = vmatmul.msk.bf16.gmra.mxu0 %vm959_vm8, %v7800_v29  ;;  %v5810_v45 = vor.u32 %v7406_v25, %v7404_v23  ;;  %v3126_v29 = vsel %vm7179_vm7, %v6271_v30, %v3125_v13  ;;  %v2461_v23 = vor.u32 %v2460_v10, %v2457_v5  ;;  %v6141_v30 = vld [vmem:[%s7151_s5 + $0x70] sm:$0xf]  ;;  %v7925_v13 = vld [vmem:[#allocation2 + $0x40] sm:$0xff]  ;;  %v7929_v10 = vpop.f32.mrf.mxu0 }
 0x100   : > { %3132 = vst.msk [vmem:[#allocation2 + $0x30] sm:$0xf] %vm191_vm1, %v3126_v29  ;;  %v2471_v25 = vor.u32 %v2470_v51, %v2466_v50  ;;  %v2495_v51 = vshll.u32 %v6141_v30, 16  ;;  %v2499_v29 = vshrl.u32 %v6141_v30, 16 }
 0x101   : > { %v2462_v14 = vrot.slane %v2461_v23, 4  ;;  %9160 = vst [vmem:[#allocation9_spill] sm:$0xff] %v7917_v46  ;;  %v6274_v23 = vld [vmem:[%s7151_s5 + $0x68] sm:$0x1] }
 0x102   : > { %v2472_v32 = vrot.slane %v2471_v25, 4  ;;  %1915 = vst.msk [vmem:[#allocation2 + $0x40] sm:$0xf] %vm191_vm1, %v6020_v35  ;;  %v6275_v25 = vrot.slane %v6272_v62, 9  ;;  %v2501_v30 = vrot.slane %v2499_v29, 4 }
 0x103   : > { %v2467_v24 = vsel %vm7169_vm6, %v2462_v14, %v2466_v50  ;;  %1916 = vst.msk [vmem:[#allocation2 + $0x44] sm:$0xf] %vm191_vm1, %v6021_v44 }
 0x104   : > { %v2477_v3 = vsel %vm7169_vm6, %v2472_v32, %v2476_v16  ;;  %2480 = vst.msk [vmem:[#allocation2 + $0x38] sm:$0xf] %vm191_vm1, %v2467_v24  ;;  %v3145_v16 = vrot.slane %v6274_v23, 5  ;;  %v6142_v32 = vld [vmem:[%s7151_s5 + $0x74] sm:$0x1] }
 0x105   : > { %2481 = vst.msk [vmem:[#allocation2 + $0x3c] sm:$0xf] %vm191_vm1, %v2477_v3  ;;  %v2505_v46 = vshll.u32 %v6142_v32, 16  ;;  %v7974_v32 = vld [vmem:[#allocation2 + $0x48] sm:$0xff] }
 0x106   : > { %5853 = vmatmul.msk.bf16.gmra.mxu1 %vm959_vm8, %v5810_v45  ;;  %6105 = vmatmul.msk.bf16.gmra.mxu3 %vm959_vm8, %v7809_v9  ;;  %v7919_v45 = vpop.f32.mrf.mxu2  ;;  %v6140_v9 = vld [vmem:[%s7151_s5 + $0x6c] sm:$0xf] }
 0x107   : > { %v7900_v52 = vld [vmem:[#allocation2 + $0x30] sm:$0xff]  ;;  %9161 = vst [vmem:[#allocation10_spill] sm:$0xff] %v7919_v45  ;;  %v2486_v5 = vshrl.u32 %v6140_v9, 16  ;;  %v2489_v50 = vshll.u32 %v6140_v9, 16  ;;  %v2497_v9 = vrot.slane %v2495_v51, 5 }
 0x108   : > { %3133 = vst.msk [vmem:[#allocation2 + $0x34] sm:$0xf] %vm191_vm1, %v3129_v61  ;;  %v3142_v61 = vrot.slane %v6273_v18, 5 }
 0x109   : > { %v2488_v24 = vrot.slane %v2486_v5, 4  ;;  %v2491_v3 = vrot.slane %v2489_v50, 5  ;;  %v2507_v5 = vrot.slane %v2505_v46, 5  ;;  %v7951_v50 = vpop.f32.mrf.mxu3 }
 0x10a   : > { %v3144_v35 = vrot.slane %v3142_v61, 4  ;;  %9162 = vst [vmem:[#allocation11_spill] sm:$0xff] %v7951_v50  ;;  %v7958_v23 = vld [vmem:[#allocation2 + $0x40] sm:$0xff] }
 0x10c   : > { %v3146_v44 = vsel %vm7179_vm7, %v3144_v35, %v3145_v16  ;;  %v6144_v16 = vld [vmem:[%s7151_s5 + $0x7c] sm:$0xf] }
 0x10d   : > { %v2530_v35 = vshrl.u32 %v6144_v16, 16 }
 0x10e   : > { %v7956_v18 = vpop.f32.mrf.mxu2 }
 0x10f   : > { %5994 = vmatmul.msk.bf16.gmra.mxu2 %vm959_vm8, %v7825_v0  ;;  %6233 = vmatmul.msk.bf16.gmra.mxu0 %vm959_vm8, %v7849_v42  ;;  %v5814_v0 = vor.u32 %v7514_v36, %v7512_v34  ;;  %v3143_v42 = vsel %vm7179_vm7, %v6275_v25, %v3142_v61  ;;  %v2492_v34 = vor.u32 %v2491_v3, %v2488_v24  ;;  %v7964_v25 = vpop.f32.mrf.mxu0  ;;  %v6022_v24 = vld [vmem:[%s7151_s5 + $0x78] sm:$0xf]  ;;  %v6023_v3 = vld [vmem:[%s7151_s5 + $0x7c] sm:$0xf]  ;;  %v2532_v31 = vrot.slane %v2530_v35, 4 }
 0x110   : > { %3149 = vst.msk [vmem:[#allocation2 + $0x38] sm:$0xf] %vm191_vm1, %v3143_v42  ;;  %v2502_v36 = vor.u32 %v2501_v30, %v2497_v9  ;;  %v2526_v42 = vshll.u32 %v6144_v16, 16  ;;  %v6145_v16 = vld [vmem:[%s7151_s5 + $0x80] sm:$0x1] }
 0x111   : > { %v2493_v51 = vrot.slane %v2492_v34, 4  ;;  %9163 = vst [vmem:[#allocation12_spill] sm:$0xff] %v7956_v18  ;;  %v7981_v34 = vpop.f32.mrf.mxu3 }
 0x112   : > { %v2503_v29 = vrot.slane %v2502_v36, 4  ;;  %1919 = vst.msk [vmem:[#allocation2 + $0x48] sm:$0xf] %vm191_vm1, %v6022_v24  ;;  %v6276_v36 = vld [vmem:[%s7151_s5 + $0x6c] sm:$0xe] }
 0x113   : > { %v7940_v14 = vpop.f32.mrf.mxu1  ;;  %9164 = vst [vmem:[#allocation13_spill] sm:$0xff] %v7981_v34 }
 0x114   : > { %v2508_v46 = vsel %vm7169_vm6, %v2503_v29, %v2507_v5  ;;  %v6278_v5 = vld [vmem:[%s7151_s5 + $0x74] sm:$0x1]  ;;  %v6279_v29 = vrot.slane %v6276_v36, 9  ;;  %1920 = vst.msk [vmem:[#allocation2 + $0x4c] sm:$0xf] %vm191_vm1, %v6023_v3 }
 0x115   : > { %2512 = vst.msk [vmem:[#allocation2 + $0x44] sm:$0xf] %vm191_vm1, %v2508_v46  ;;  %v3162_v46 = vrot.slane %v6278_v5, 5  ;;  %v6146_v5 = vld [vmem:[%s7151_s5 + $0x84] sm:$0xf] }
 0x116   : > { %5854 = vmatmul.msk.bf16.gmra.mxu1 %vm959_vm8, %v5814_v0  ;;  %6106 = vmatmul.msk.bf16.gmra.mxu3 %vm959_vm8, %v7858_v2  ;;  %v2498_v0 = vsel %vm7169_vm6, %v2493_v51, %v2497_v9  ;;  %v6143_v2 = vld [vmem:[%s7151_s5 + $0x78] sm:$0xf]  ;;  %v5818_v51 = vor.u32 %v7200_v56, %v7198_v55 }
 0x117   : > { %v7947_v62 = vld [vmem:[#allocation2 + $0x38] sm:$0xff]  ;;  %2511 = vst.msk [vmem:[#allocation2 + $0x40] sm:$0xf] %vm191_vm1, %v2498_v0  ;;  %v2517_v9 = vshrl.u32 %v6143_v2, 16  ;;  %v2520_v30 = vshll.u32 %v6143_v2, 16  ;;  %v7992_v34 = vpop.f32.mrf.mxu0 }
 0x118   : > { %3150 = vst.msk [vmem:[#allocation2 + $0x3c] sm:$0xf] %vm191_vm1, %v3146_v44  ;;  %v6277_v44 = vld [vmem:[%s7151_s5 + $0x70] sm:$0xf] }
 0x119   : > { %v3159_v0 = vrot.slane %v6277_v44, 5  ;;  %v2519_v24 = vrot.slane %v2517_v9, 4  ;;  %v2522_v50 = vrot.slane %v2520_v30, 5 }
 0x11b   : > { %v7967_v61 = vpop.f32.mrf.mxu1  ;;  %v3160_v63 = vsel %vm7179_vm7, %v6279_v29, %v3159_v0  ;;  %v3161_v48 = vrot.slane %v3159_v0, 4  ;;  %v2523_v55 = vor.u32 %v2522_v50, %v2519_v24  ;;  %v6024_v29 = vld [vmem:[%s7151_s5 + $0x84] sm:$0xf]  ;;  %v6025_v0 = vld [vmem:[%s7151_s5 + $0x88] sm:$0xf] }
 0x11c   : > { %3166 = vst.msk [vmem:[#allocation2 + $0x40] sm:$0xf] %vm191_vm1, %v3160_v63  ;;  %v8005_v63 = vld [vmem:[#allocation2 + $0x48] sm:$0xff] }
 0x11d   : > { %v3163_v9 = vsel %vm7179_vm7, %v3161_v48, %v3162_v46  ;;  %v2548_v46 = vshrl.u32 %v6146_v5, 16 }
 0x11f   : > { %5995 = vmatmul.msk.bf16.gmra.mxu2 %vm959_vm8, %v7876_v58  ;;  %6234 = vmatmul.msk.bf16.gmra.mxu0 %vm959_vm8, %v7900_v52  ;;  %v2528_v52 = vrot.slane %v2526_v42, 5  ;;  %v2524_v42 = vrot.slane %v2523_v55, 4 }
 0x121   : > { %v2533_v56 = vor.u32 %v2532_v31, %v2528_v52  ;;  %v2529_v31 = vsel %vm7169_vm6, %v2524_v42, %v2528_v52  ;;  %v5822_v42 = vor.u32 %v7324_v20, %v7321_v15 }
 0x122   : > { %v7986_v58 = vpop.f32.mrf.mxu2  ;;  %2542 = vst.msk [vmem:[#allocation2 + $0x48] sm:$0xf] %vm191_vm1, %v2529_v31 }
 0x123   : > { %9165 = vst [vmem:[#allocation14_spill] sm:$0xff] %v7986_v58  ;;  %v1241_v2 = vpop.f32.mrf.mxu1  ;;  %v2536_v58 = vshll.u32 %v6145_v16, 16  ;;  %v7998_v3 = vld [vmem:[#allocation2 + $0x40] sm:$0xff]  ;;  %v2534_v35 = vrot.slane %v2533_v56, 4  ;;  %v2551_v16 = vshll.u32 %v6146_v5, 16 }
 0x124   : > { %3167 = vst.msk [vmem:[#allocation2 + $0x44] sm:$0xf] %vm191_vm1, %v3163_v9  ;;  %v1242_v55 = vadd.f32 %v1241_v2, %v7837_v11  ;;  %v6280_v56 = vld [vmem:[%s7151_s5 + $0x78] sm:$0xe]  ;;  %v6281_v9 = vld [vmem:[%s7151_s5 + $0x7c] sm:$0xf] }
 0x125   : > { %v2538_v30 = vrot.slane %v2536_v58, 5  ;;  %v6147_v58 = vld [vmem:[%s7151_s5 + $0x88] sm:$0xf]  ;;  %v3176_v31 = vrot.slane %v6281_v9, 5 }
 0x126   : > { %5855 = vmatmul.msk.bf16.gmra.mxu1 %vm959_vm8, %v5818_v51  ;;  %6107 = vmatmul.msk.bf16.gmra.mxu3 %vm959_vm8, %v7909_v43  ;;  %v8023_v51 = vld [vmem:[#allocation2 + $0x50] sm:$0xff]  ;;  %v2557_v24 = vshll.u32 %v6147_v58, 16  ;;  %v2561_v52 = vshrl.u32 %v6147_v58, 16 }
 0x127   : > { %v2539_v50 = vsel %vm7169_vm6, %v2534_v35, %v2538_v30  ;;  %1923 = vst.msk [vmem:[#allocation2 + $0x50] sm:$0xf] %vm191_vm1, %v6024_v29  ;;  %v6282_v30 = vld [vmem:[%s7151_s5 + $0x80] sm:$0x1]  ;;  %v6283_v35 = vrot.slane %v6280_v56, 9  ;;  %v3178_v18 = vrot.slane %v3176_v31, 4 }
 0x128   : > { %2543 = vst.msk [vmem:[#allocation2 + $0x4c] sm:$0xf] %vm191_vm1, %v2539_v50  ;;  %v3179_v50 = vrot.slane %v6282_v30, 5  ;;  %v2559_v11 = vrot.slane %v2557_v24, 5  ;;  %v2563_v45 = vrot.slane %v2561_v52, 4 }
 0x129   : > { %v8014_v36 = vpop.f32.mrf.mxu3  ;;  %1924 = vst.msk [vmem:[#allocation2 + $0x54] sm:$0xf] %vm191_vm1, %v6025_v0  ;;  %v3177_v2 = vsel %vm7179_vm7, %v6283_v35, %v3176_v31  ;;  %v6150_v35 = vld [vmem:[%s7151_s5 + $0x94] sm:$0xf]  ;;  %v8066_v31 = vld [vmem:[#allocation2 + $0x58] sm:$0xff] }
 0x12a   : > { %v8011_v48 = vpop.f32.mrf.mxu2  ;;  %9167 = vst [vmem:[#allocation16_spill] sm:$0xff] %v8014_v36  ;;  %v6148_v36 = vld [vmem:[%s7151_s5 + $0x8c] sm:$0x1] }
 0x12b   : > { %9166 = vst [vmem:[#allocation15_spill] sm:$0xff] %v8011_v48  ;;  %v1243_v44 = vpop.f32.mrf.mxu1  ;;  %v2553_v48 = vrot.slane %v2551_v16, 5  ;;  %v2567_v20 = vshll.u32 %v6148_v36, 16  ;;  %v2564_v16 = vor.u32 %v2563_v45, %v2559_v11 }
 0x12c   : > { %v8017_v43 = vpop.f32.mrf.mxu0  ;;  %3183 = vst.msk [vmem:[#allocation2 + $0x48] sm:$0xf] %vm191_vm1, %v3177_v2  ;;  %v1244_v36 = vadd.f32 %v1243_v44, %v7868_v49  ;;  %v6149_v44 = vld [vmem:[%s7151_s5 + $0x90] sm:$0xf] }
 0x12f   : > { %5996 = vmatmul.msk.bf16.gmra.mxu2 %vm959_vm8, %v7925_v13  ;;  %6235 = vmatmul.msk.bf16.gmra.mxu0 %vm959_vm8, %v7947_v62  ;;  %v2550_v62 = vrot.slane %v2548_v46, 4  ;;  %v3180_v46 = vsel %vm7179_vm7, %v3178_v18, %v3179_v50  ;;  %v6026_v50 = vld [vmem:[%s7151_s5 + $0x90] sm:$0xf] }
 0x130   : > { %v8054_v52 = vld [vmem:[#allocation2 + $0x50] sm:$0xff]  ;;  %1927 = vst.msk [vmem:[#allocation2 + $0x58] sm:$0xf] %vm191_vm1, %v6026_v50 }
 0x131   : > { %v8037_v5 = vpop.f32.mrf.mxu3  ;;  %v2554_v15 = vor.u32 %v2553_v48, %v2550_v62  ;;  %v2565_v48 = vrot.slane %v2564_v16, 4  ;;  %v6027_v62 = vld [vmem:[%s7151_s5 + $0x94] sm:$0xf]  ;;  %v6284_v16 = vld [vmem:[%s7151_s5 + $0x84] sm:$0xe] }
 0x132   : > { %v1769_v13 = vpop.f32.mrf.mxu2  ;;  %1928 = vst.msk [vmem:[#allocation2 + $0x5c] sm:$0xf] %vm191_vm1, %v6027_v62 }
 0x133   : > { %v1849_v58 = vadd.f32 %v1769_v13, %v1242_v55  ;;  %v1246_v29 = vpop.f32.mrf.mxu1  ;;  %v8046_v0 = vld [vmem:[#allocation2 + $0x48] sm:$0xff]  ;;  %v2555_v24 = vrot.slane %v2554_v15, 4  ;;  %v2569_v55 = vrot.slane %v2567_v20, 5  ;;  %v2582_v15 = vshll.u32 %v6149_v44, 16 }
 0x134   : > { %v8043_v56 = vpop.f32.mrf.mxu0  ;;  %3184 = vst.msk [vmem:[#allocation2 + $0x4c] sm:$0xf] %vm191_vm1, %v3180_v46  ;;  %v2592_v20 = vshrl.u32 %v6150_v35, 16  ;;  %v1247_v46 = vadd.f32 %v1246_v29, %v7897_v47 }
 0x135   : > { %v2560_v18 = vsel %vm7169_vm6, %v2555_v24, %v2559_v11  ;;  %v2570_v9 = vsel %vm7169_vm6, %v2565_v48, %v2569_v55  ;;  %v2579_v11 = vshrl.u32 %v6149_v44, 16  ;;  %v6286_v24 = vld [vmem:[%s7151_s5 + $0x8c] sm:$0x1]  ;;  %v5826_v48 = vor.u32 %v7433_v7, %v7431_v6 }
 0x136   : > { %5856 = vmatmul.msk.bf16.gmra.mxu1 %vm959_vm8, %v5822_v42  ;;  %6108 = vmatmul.msk.bf16.gmra.mxu3 %vm959_vm8, %v7958_v23  ;;  %2573 = vst.msk [vmem:[#allocation2 + $0x50] sm:$0xf] %vm191_vm1, %v2560_v18  ;;  %v2594_v7 = vrot.slane %v2592_v20, 4 }
 0x137   : > { %2574 = vst.msk [vmem:[#allocation2 + $0x54] sm:$0xf] %vm191_vm1, %v2570_v9  ;;  %v2581_v44 = vrot.slane %v2579_v11, 4 }
 0x139   : > { %v2122_v30 = vpop.f32.mrf.mxu3 }
 0x13a   : > { %v1771_v45 = vpop.f32.mrf.mxu2  ;;  %v2202_v23 = vadd.f32 %v2122_v30, %v1849_v58  ;;  %v2588_v58 = vshll.u32 %v6150_v35, 16 }
 0x13b   : > { %v1850_v13 = vadd.f32 %v1771_v45, %v1244_v36  ;;  %v1248_v42 = vpop.f32.mrf.mxu1  ;;  %v6287_v36 = vrot.slane %v6284_v16, 9  ;;  %v3196_v45 = vrot.slane %v6286_v24, 5 }
 0x13c   : > { %v2903_v49 = vpop.f32.mrf.mxu0  ;;  %v2590_v35 = vrot.slane %v2588_v58, 5  ;;  %v1249_v20 = vadd.f32 %v1248_v42, %v7929_v10 }
 0x13d   : > { %v8070_v2 = vadd.f32 %v2903_v49, %v2202_v23  ;;  %v6151_v49 = vld [vmem:[%s7151_s5 + $0x98] sm:$0x1] }
 0x13e   : > { %v2598_v16 = vshll.u32 %v6151_v49, 16  ;;  %v8111_v49 = vld [vmem:[#allocation2 + $0x60] sm:$0xff] }
 0x13f   : > { %5997 = vmatmul.msk.bf16.gmra.mxu2 %vm959_vm8, %v7974_v32  ;;  %9168 = vst [vmem:[#allocation17_spill] sm:$0xff] %v8070_v2  ;;  %6236 = vmatmul.msk.bf16.gmra.mxu0 %vm959_vm8, %v7998_v3  ;;  %v6285_v32 = vld [vmem:[%s7151_s5 + $0x88] sm:$0xf]  ;;  %v2584_v3 = vrot.slane %v2582_v15, 5 }
 0x140   : > { %v3193_v18 = vrot.slane %v6285_v32, 5  ;;  %v2600_v15 = vrot.slane %v2598_v16, 5  ;;  %v8098_v32 = vld [vmem:[#allocation2 + $0x58] sm:$0xff] }
 0x141   : > { %v2124_v9 = vpop.f32.mrf.mxu3  ;;  %v2585_v6 = vor.u32 %v2584_v3, %v2581_v44  ;;  %v6028_v44 = vld [vmem:[%s7151_s5 + $0x9c] sm:$0xf]  ;;  %v6029_v3 = vld [vmem:[%s7151_s5 + $0xa0] sm:$0xf]  ;;  %v6290_v16 = vld [vmem:[%s7151_s5 + $0x98] sm:$0x1] }
 0x142   : > { %v1774_v55 = vpop.f32.mrf.mxu2  ;;  %v2203_v47 = vadd.f32 %v2124_v9, %v1850_v13  ;;  %v3194_v50 = vsel %vm7179_vm7, %v6287_v36, %v3193_v18  ;;  %v3195_v2 = vrot.slane %v3193_v18, 4  ;;  %v2595_v13 = vor.u32 %v2594_v7, %v2590_v35  ;;  %v6152_v9 = vld [vmem:[%s7151_s5 + $0x9c] sm:$0xf]  ;;  %1931 = vst.msk [vmem:[#allocation2 + $0x60] sm:$0xf] %vm191_vm1, %v6028_v44 }
 0x143   : > { %v1851_v30 = vadd.f32 %v1774_v55, %v1247_v46  ;;  %v1251_v23 = vpop.f32.mrf.mxu1  ;;  %3200 = vst.msk [vmem:[#allocation2 + $0x50] sm:$0xf] %vm191_vm1, %v3194_v50  ;;  %v6289_v7 = vld [vmem:[%s7151_s5 + $0x94] sm:$0xf] }
 0x144   : > { %v1252_v29 = vadd.f32 %v1251_v23, %v7964_v25  ;;  %v2905_v62 = vpop.f32.mrf.mxu0  ;;  %v3197_v11 = vsel %vm7179_vm7, %v3195_v2, %v3196_v45  ;;  %v2586_v25 = vrot.slane %v2585_v6, 4  ;;  %v2596_v2 = vrot.slane %v2595_v13, 4  ;;  %v6153_v23 = vld [vmem:[%s7151_s5 + $0xa0] sm:$0xf]  ;;  %1932 = vst.msk [vmem:[#allocation2 + $0x64] sm:$0xf] %vm191_vm1, %v6029_v3 }
 0x145   : > { %v8093_v58 = vadd.f32 %v2905_v62, %v2203_v47  ;;  %v2623_v50 = vshrl.u32 %v6153_v23, 16  ;;  %v5830_v6 = vor.u32 %v7541_v27, %v7539_v22  ;;  %v3213_v13 = vrot.slane %v6290_v16, 5 }
 0x146   : > { %5857 = vmatmul.msk.bf16.gmra.mxu1 %vm959_vm8, %v5826_v48  ;;  %6109 = vmatmul.msk.bf16.gmra.mxu3 %vm959_vm8, %v8005_v63  ;;  %v2591_v24 = vsel %vm7169_vm6, %v2586_v25, %v2590_v35  ;;  %v2601_v63 = vsel %vm7169_vm6, %v2596_v2, %v2600_v15  ;;  %v2610_v35 = vshrl.u32 %v6152_v9, 16  ;;  %v3210_v25 = vrot.slane %v6289_v7, 5 }
 0x147   : > { %2604 = vst.msk [vmem:[#allocation2 + $0x58] sm:$0xf] %vm191_vm1, %v2591_v24 }
 0x148   : > { %2605 = vst.msk [vmem:[#allocation2 + $0x5c] sm:$0xf] %vm191_vm1, %v2601_v63  ;;  %v2612_v15 = vrot.slane %v2610_v35, 4 }
 0x149   : > { %v2127_v48 = vpop.f32.mrf.mxu3 }
 0x14a   : > { %v8088_v46 = vld [vmem:[#allocation2 + $0x50] sm:$0xff]  ;;  %v1776_v55 = vpop.f32.mrf.mxu2  ;;  %v2204_v45 = vadd.f32 %v2127_v48, %v1851_v30  ;;  %v2619_v30 = vshll.u32 %v6153_v23, 16 }
 0x14b   : > { %3201 = vst.msk [vmem:[#allocation2 + $0x54] sm:$0xf] %vm191_vm1, %v3197_v11  ;;  %v1852_v36 = vadd.f32 %v1776_v55, %v1249_v20  ;;  %v1253_v18 = vpop.f32.mrf.mxu1  ;;  %v6154_v55 = vld [vmem:[%s7151_s5 + $0xa4] sm:$0x1] }
 0x14c   : > { %v1254_v10 = vadd.f32 %v1253_v18, %v7992_v34  ;;  %v2908_v42 = vpop.f32.mrf.mxu0  ;;  %v2613_v34 = vshll.u32 %v6152_v9, 16  ;;  %v2621_v18 = vrot.slane %v2619_v30, 5  ;;  %v2629_v23 = vshll.u32 %v6154_v55, 16  ;;  %v8141_v30 = vld [vmem:[#allocation2 + $0x60] sm:$0xff]  ;;  %v6031_v55 = vld [vmem:[%s7151_s5 + $0xac] sm:$0xf] }
 0x14d   : > { %v8115_v47 = vadd.f32 %v2908_v42, %v2204_v45  ;;  %v3212_v45 = vrot.slane %v3210_v25, 4 }
 0x14e   : > { %v2615_v48 = vrot.slane %v2613_v34, 5  ;;  %v2631_v35 = vrot.slane %v2629_v23, 5 }
 0x14f   : > { %5998 = vmatmul.msk.bf16.gmra.mxu2 %vm959_vm8, %v8023_v51  ;;  %6237 = vmatmul.msk.bf16.gmra.mxu0 %vm959_vm8, %v8046_v0  ;;  %v6288_v51 = vld [vmem:[%s7151_s5 + $0x90] sm:$0xe]  ;;  %v2625_v0 = vrot.slane %v2623_v50, 4  ;;  %v3214_v3 = vsel %vm7179_vm7, %v3212_v45, %v3213_v13  ;;  %v6155_v13 = vld [vmem:[%s7151_s5 + $0xa8] sm:$0xf]  ;;  %v5834_v45 = vor.u32 %v7229_v28, %v7224_v21 }
 0x150   : > { %v6291_v11 = vrot.slane %v6288_v51, 9  ;;  %v2616_v42 = vor.u32 %v2615_v48, %v2612_v15  ;;  %v6156_v15 = vld [vmem:[%s7151_s5 + $0xac] sm:$0xf] }
 0x151   : > { %v2129_v20 = vpop.f32.mrf.mxu3  ;;  %v2626_v9 = vor.u32 %v2625_v0, %v2621_v18  ;;  %v6292_v0 = vld [vmem:[%s7151_s5 + $0x9c] sm:$0xe] }
 0x152   : > { %v1779_v62 = vpop.f32.mrf.mxu2  ;;  %v2205_v63 = vadd.f32 %v2129_v20, %v1852_v36  ;;  %v3211_v27 = vsel %vm7179_vm7, %v6291_v11, %v3210_v25  ;;  %v8154_v20 = vld [vmem:[#allocation2 + $0x68] sm:$0xff] }
 0x153   : > { %v1853_v24 = vadd.f32 %v1779_v62, %v1252_v29  ;;  %v1256_v2 = vpop.f32.mrf.mxu1  ;;  %3217 = vst.msk [vmem:[#allocation2 + $0x58] sm:$0xf] %vm191_vm1, %v3211_v27  ;;  %v2627_v36 = vrot.slane %v2626_v9, 4  ;;  %v6294_v27 = vld [vmem:[%s7151_s5 + $0xa4] sm:$0x1] }
 0x154   : > { %v1257_v22 = vadd.f32 %v1256_v2, %v8017_v43  ;;  %v2910_v44 = vpop.f32.mrf.mxu0  ;;  %v2617_v43 = vrot.slane %v2616_v42, 4  ;;  %v6030_v2 = vld [vmem:[%s7151_s5 + $0xa8] sm:$0xf]  ;;  %v6295_v42 = vrot.slane %v6292_v0, 9  ;;  %v3230_v23 = vrot.slane %v6294_v27, 5 }
 0x155   : > { %v8137_v34 = vadd.f32 %v2910_v44, %v2205_v63  ;;  %1935 = vst.msk [vmem:[#allocation2 + $0x68] sm:$0xf] %vm191_vm1, %v6030_v2  ;;  %v6293_v63 = vld [vmem:[%s7151_s5 + $0xa0] sm:$0xf] }
 0x156   : > { %5858 = vmatmul.msk.bf16.gmra.mxu1 %vm959_vm8, %v5830_v6  ;;  %6110 = vmatmul.msk.bf16.gmra.mxu3 %vm959_vm8, %v8054_v52  ;;  %v2622_v50 = vsel %vm7169_vm6, %v2617_v43, %v2621_v18  ;;  %v2632_v6 = vsel %vm7169_vm6, %v2627_v36, %v2631_v35  ;;  %v2654_v18 = vshrl.u32 %v6156_v15, 16  ;;  %v3227_v9 = vrot.slane %v6293_v63, 5  ;;  %1936 = vst.msk [vmem:[#allocation2 + $0x6c] sm:$0xf] %vm191_vm1, %v6031_v55  ;;  %v6157_v36 = vld [vmem:[%s7151_s5 + $0xb0] sm:$0x1] }
 0x157   : > { %2635 = vst.msk [vmem:[#allocation2 + $0x60] sm:$0xf] %vm191_vm1, %v2622_v50 }
 0x158   : > { %2636 = vst.msk [vmem:[#allocation2 + $0x64] sm:$0xf] %vm191_vm1, %v2632_v6  ;;  %v2656_v28 = vrot.slane %v2654_v18, 4 }
 0x159   : > { %v2132_v7 = vpop.f32.mrf.mxu3 }
 0x15a   : > { %v8132_v29 = vld [vmem:[#allocation2 + $0x58] sm:$0xff]  ;;  %v1781_v51 = vpop.f32.mrf.mxu2  ;;  %v2206_v11 = vadd.f32 %v2132_v7, %v1853_v24  ;;  %v2644_v24 = vshll.u32 %v6155_v13, 16  ;;  %v3229_v7 = vrot.slane %v3227_v9, 4 }
 0x15b   : > { %3218 = vst.msk [vmem:[#allocation2 + $0x5c] sm:$0xf] %vm191_vm1, %v3214_v3  ;;  %v1854_v16 = vadd.f32 %v1781_v51, %v1254_v10  ;;  %v1258_v62 = vpop.f32.mrf.mxu1  ;;  %v2641_v10 = vshrl.u32 %v6155_v13, 16  ;;  %v3228_v51 = vsel %vm7179_vm7, %v6295_v42, %v3227_v9  ;;  %v6159_v42 = vld [vmem:[%s7151_s5 + $0xb8] sm:$0xf]  ;;  %v8195_v9 = vld [vmem:[#allocation2 + $0x70] sm:$0xff] }
 0x15c   : > { %v1259_v52 = vadd.f32 %v1258_v62, %v8043_v56  ;;  %v2913_v25 = vpop.f32.mrf.mxu0  ;;  %v2650_v56 = vshll.u32 %v6156_v15, 16  ;;  %v2646_v50 = vrot.slane %v2644_v24, 5  ;;  %3234 = vst.msk [vmem:[#allocation2 + $0x60] sm:$0xf] %vm191_vm1, %v3228_v51  ;;  %v2660_v62 = vshll.u32 %v6157_v36, 16 }
 0x15d   : > { %v8158_v48 = vadd.f32 %v2913_v25, %v2206_v11  ;;  %v2643_v35 = vrot.slane %v2641_v10, 4  ;;  %v8183_v55 = vld [vmem:[#allocation2 + $0x68] sm:$0xff] }
 0x15e   : > { %v2652_v6 = vrot.slane %v2650_v56, 5  ;;  %v2662_v15 = vrot.slane %v2660_v62, 5  ;;  %v6297_v51 = vld [vmem:[%s7151_s5 + $0xac] sm:$0xf] }
 0x15f   : > { %5999 = vmatmul.msk.bf16.gmra.mxu2 %vm959_vm8, %v8066_v31  ;;  %6238 = vmatmul.msk.bf16.gmra.mxu0 %vm959_vm8, %v8088_v46  ;;  %v2647_v21 = vor.u32 %v2646_v50, %v2643_v35  ;;  %v2681_v35 = vshll.u32 %v6159_v42, 16  ;;  %v2685_v50 = vshrl.u32 %v6159_v42, 16  ;;  %v3244_v62 = vrot.slane %v6297_v51, 5 }
 0x160   : > { %v2657_v13 = vor.u32 %v2656_v28, %v2652_v6 }
 0x161   : > { %v2134_v44 = vpop.f32.mrf.mxu3 }
 0x162   : > { %v1784_v31 = vpop.f32.mrf.mxu2  ;;  %v2207_v46 = vadd.f32 %v2134_v44, %v1854_v16  ;;  %v2648_v16 = vrot.slane %v2647_v21, 4  ;;  %v2658_v24 = vrot.slane %v2657_v13, 4 }
 0x163   : > { %v1855_v3 = vadd.f32 %v1784_v31, %v1257_v22  ;;  %v1261_v43 = vpop.f32.mrf.mxu1  ;;  %v8174_v25 = vld [vmem:[#allocation2 + $0x60] sm:$0xff]  ;;  %v3231_v22 = vsel %vm7179_vm7, %v3229_v7, %v3230_v23  ;;  %v6032_v23 = vld [vmem:[%s7151_s5 + $0xb4] sm:$0xf]  ;;  %v6298_v7 = vld [vmem:[%s7151_s5 + $0xb0] sm:$0x1] }
 0x164   : > { %v2915_v11 = vpop.f32.mrf.mxu0  ;;  %3235 = vst.msk [vmem:[#allocation2 + $0x64] sm:$0xf] %vm191_vm1, %v3231_v22  ;;  %v2653_v10 = vsel %vm7169_vm6, %v2648_v16, %v2652_v6  ;;  %v2663_v27 = vsel %vm7169_vm6, %v2658_v24, %v2662_v15  ;;  %v1262_v6 = vadd.f32 %v1261_v43, %v7766_v40  ;;  %v2683_v24 = vrot.slane %v2681_v35, 5 }
 0x165   : > { %v8179_v2 = vadd.f32 %v2915_v11, %v2207_v46  ;;  %2666 = vst.msk [vmem:[#allocation2 + $0x68] sm:$0xf] %vm191_vm1, %v2653_v10  ;;  %v6296_v46 = vld [vmem:[%s7151_s5 + $0xa8] sm:$0xe]  ;;  %v3247_v11 = vrot.slane %v6298_v7, 5  ;;  %v2687_v40 = vrot.slane %v2685_v50, 4 }
 0x166   : > { %5859 = vmatmul.msk.bf16.gmra.mxu1 %vm959_vm8, %v5834_v45  ;;  %6111 = vmatmul.msk.bf16.gmra.mxu3 %vm959_vm8, %v8098_v32  ;;  %2667 = vst.msk [vmem:[#allocation2 + $0x6c] sm:$0xf] %vm191_vm1, %v2663_v27  ;;  %v6158_v45 = vld [vmem:[%s7151_s5 + $0xb4] sm:$0xf]  ;;  %v6299_v28 = vrot.slane %v6296_v46, 9 }
 0x167   : > { %v2672_v44 = vshrl.u32 %v6158_v45, 16  ;;  %1939 = vst.msk [vmem:[#allocation2 + $0x70] sm:$0xf] %vm191_vm1, %v6032_v23  ;;  %v6160_v10 = vld [vmem:[%s7151_s5 + $0xbc] sm:$0x1] }
 0x168   : > { %v2691_v27 = vshll.u32 %v6160_v10, 16  ;;  %v6162_v7 = vld [vmem:[%s7151_s5 + $0xc4] sm:$0xf] }
 0x169   : > { %v2137_v18 = vpop.f32.mrf.mxu3  ;;  %v2674_v22 = vrot.slane %v2672_v44, 4  ;;  %v2716_v10 = vshrl.u32 %v6162_v7, 16 }
 0x16a   : > { %v1786_v56 = vpop.f32.mrf.mxu2  ;;  %v2208_v31 = vadd.f32 %v2137_v18, %v1855_v3  ;;  %v2675_v3 = vshll.u32 %v6158_v45, 16  ;;  %v2688_v18 = vor.u32 %v2687_v40, %v2683_v24  ;;  %v2693_v23 = vrot.slane %v2691_v27, 5  ;;  %v6302_v40 = vld [vmem:[%s7151_s5 + $0xbc] sm:$0x1] }
 0x16b   : > { %v1856_v0 = vadd.f32 %v1786_v56, %v1259_v52  ;;  %v1263_v63 = vpop.f32.mrf.mxu1  ;;  %v6033_v52 = vld [vmem:[%s7151_s5 + $0xb8] sm:$0xf] }
 0x16c   : > { %v2918_v32 = vpop.f32.mrf.mxu0  ;;  %1940 = vst.msk [vmem:[#allocation2 + $0x74] sm:$0xf] %vm191_vm1, %v6033_v52  ;;  %v2689_v42 = vrot.slane %v2688_v18, 4  ;;  %v1264_v44 = vadd.f32 %v1263_v63, %v7792_v12  ;;  %v6161_v63 = vld [vmem:[%s7151_s5 + $0xc0] sm:$0xf]  ;;  %v3264_v18 = vrot.slane %v6302_v40, 5 }
 0x16d   : > { %v8199_v36 = vadd.f32 %v2918_v32, %v2208_v31 }
 0x16e   : > { %v2694_v50 = vsel %vm7169_vm6, %v2689_v42, %v2693_v23 }
 0x16f   : > { %6000 = vmatmul.msk.bf16.gmra.mxu2 %vm959_vm8, %v8111_v49  ;;  %6239 = vmatmul.msk.bf16.gmra.mxu0 %vm959_vm8, %v8132_v29  ;;  %v5838_v49 = vor.u32 %v7354_v1, %v7349_v60  ;;  %v2677_v29 = vrot.slane %v2675_v3, 5  ;;  %v3245_v60 = vsel %vm7179_vm7, %v6299_v28, %v3244_v62  ;;  %v3246_v1 = vrot.slane %v3244_v62, 4  ;;  %v6034_v28 = vld [vmem:[%s7151_s5 + $0xc0] sm:$0xf]  ;;  %v6035_v62 = vld [vmem:[%s7151_s5 + $0xc4] sm:$0xf] }
 0x170   : > { %3251 = vst.msk [vmem:[#allocation2 + $0x68] sm:$0xf] %vm191_vm1, %v3245_v60  ;;  %v5842_v60 = vor.u32 %v7460_v57, %v7458_v54  ;;  %v2718_v57 = vrot.slane %v2716_v10, 4 }
 0x171   : > { %v2139_v16 = vpop.f32.mrf.mxu3  ;;  %v2678_v56 = vor.u32 %v2677_v29, %v2674_v22  ;;  %v3248_v45 = vsel %vm7179_vm7, %v3246_v1, %v3247_v11  ;;  %v2703_v11 = vshrl.u32 %v6161_v63, 16 }
 0x172   : > { %v1789_v21 = vpop.f32.mrf.mxu2  ;;  %v2209_v43 = vadd.f32 %v2139_v16, %v1856_v0  ;;  %v2706_v16 = vshll.u32 %v6161_v63, 16 }
 0x173   : > { %v1857_v13 = vadd.f32 %v1789_v21, %v1262_v6  ;;  %v1266_v15 = vpop.f32.mrf.mxu1  ;;  %v2679_v0 = vrot.slane %v2678_v56, 4  ;;  %v8226_v3 = vld [vmem:[#allocation2 + $0x70] sm:$0xff]  ;;  %v8238_v21 = vld [vmem:[#allocation2 + $0x78] sm:$0xff] }
 0x174   : > { %v2920_v31 = vpop.f32.mrf.mxu0  ;;  %2698 = vst.msk [vmem:[#allocation2 + $0x74] sm:$0xf] %vm191_vm1, %v2694_v50  ;;  %v1267_v29 = vadd.f32 %v1266_v15, %v7816_v53  ;;  %v2708_v53 = vrot.slane %v2706_v16, 5  ;;  %v6388_v16 = vld [vmem:[%s7151_s5 + $0x18] sm:$0xf] }
 0x175   : > { %v8221_v52 = vadd.f32 %v2920_v31, %v2209_v43  ;;  %v2684_v35 = vsel %vm7169_vm6, %v2679_v0, %v2683_v24  ;;  %1947 = vst.msk [vmem:[#allocation2 + $0x78] sm:$0xf] %vm191_vm1, %v6034_v28  ;;  %v6300_v24 = vld [vmem:[%s7151_s5 + $0xb4] sm:$0xe]  ;;  %v6163_v0 = vld [vmem:[%s7151_s5 + $0xc8] sm:$0x1] }
 0x176   : > { %5860 = vmatmul.msk.bf16.gmra.mxu1 %vm959_vm8, %v5838_v49  ;;  %6112 = vmatmul.msk.bf16.gmra.mxu3 %vm959_vm8, %v8141_v30  ;;  %2697 = vst.msk [vmem:[#allocation2 + $0x70] sm:$0xf] %vm191_vm1, %v2684_v35  ;;  %v6303_v1 = vrot.slane %v6300_v24, 9  ;;  %v2722_v35 = vshll.u32 %v6163_v0, 16  ;;  %v8266_v28 = vld [vmem:[#allocation2] sm:$0xff] }
 0x177   : > { %v8216_v32 = vld [vmem:[#allocation2 + $0x68] sm:$0xff]  ;;  %1948 = vst.msk [vmem:[#allocation2 + $0x7c] sm:$0xf] %vm191_vm1, %v6035_v62 }
 0x178   : > { %3252 = vst.msk [vmem:[#allocation2 + $0x6c] sm:$0xf] %vm191_vm1, %v3248_v45 }
 0x179   : > { %v2142_v49 = vpop.f32.mrf.mxu3  ;;  %3574 = vst.msk [vmem:[#allocation2] sm:$0xf] %vm191_vm1, %v6388_v16 }
 0x17a   : > { %v1791_v6 = vpop.f32.mrf.mxu2  ;;  %v2210_v30 = vadd.f32 %v2142_v49, %v1857_v13  ;;  %v2712_v13 = vshll.u32 %v6162_v7, 16  ;;  %v2724_v7 = vrot.slane %v2722_v35, 5 }
 0x17b   : > { %v1858_v46 = vadd.f32 %v1791_v6, %v1264_v44  ;;  %v1268_v51 = vpop.f32.mrf.mxu1 }
 0x17c   : > { %v2923_v12 = vpop.f32.mrf.mxu0  ;;  %v2714_v15 = vrot.slane %v2712_v13, 5  ;;  %v6389_v13 = vld [vmem:[%s7151_s5 + $0x1c] sm:$0xf] }
 0x17d   : > { %v8242_v22 = vadd.f32 %v2923_v12, %v2210_v30  ;;  %v6501_v30 = vld [vmem:[%s7151_s5 + $0x1c] sm:$0xf]  ;;  %3575 = vst.msk [vmem:[#allocation2 + $0x4] sm:$0xf] %vm191_vm1, %v6389_v13 }
 0x17e   : > { %v2719_v63 = vor.u32 %v2718_v57, %v2714_v15 }
 0x17f   : > { %6001 = vmatmul.msk.bf16.gmra.mxu2 %vm959_vm8, %v8154_v20  ;;  %6240 = vmatmul.msk.bf16.gmra.mxu0 %vm959_vm8, %v8174_v25  ;;  %v6301_v20 = vld [vmem:[%s7151_s5 + $0xb8] sm:$0xf]  ;;  %v2705_v25 = vrot.slane %v2703_v11, 4  ;;  %v1269_v11 = vadd.f32 %v1268_v51, %v7846_v41  ;;  %v6502_v41 = vld [vmem:[%s7151_s5 + $0x20] sm:$0x1] }
 0x180   : > { %v3261_v56 = vrot.slane %v6301_v20, 5  ;;  %v8275_v20 = vld [vmem:[#allocation2 + $0x78] sm:$0xff] }
 0x181   : > { %v2144_v27 = vpop.f32.mrf.mxu3  ;;  %v2709_v54 = vor.u32 %v2708_v53, %v2705_v25 }
 0x182   : > { %v1794_v43 = vpop.f32.mrf.mxu2  ;;  %v2211_v42 = vadd.f32 %v2144_v27, %v1858_v46  ;;  %v3262_v23 = vsel %vm7179_vm7, %v6303_v1, %v3261_v56  ;;  %v3263_v44 = vrot.slane %v3261_v56, 4  ;;  %v6500_v46 = vld [vmem:[%s7151_s5 + $0x18] sm:$0xf]  ;;  %v3942_v1 = vshrl.u32 %v6501_v30, 16 }
 0x183   : > { %v1859_v31 = vadd.f32 %v1794_v43, %v1267_v29  ;;  %v1271_v45 = vpop.f32.mrf.mxu1  ;;  %3268 = vst.msk [vmem:[#allocation2 + $0x70] sm:$0xf] %vm191_vm1, %v3262_v23  ;;  %v2710_v12 = vrot.slane %v2709_v54, 4  ;;  %v3929_v62 = vshrl.u32 %v6500_v46, 16  ;;  %v3932_v10 = vshll.u32 %v6500_v46, 16 }
 0x184   : > { %v2925_v50 = vpop.f32.mrf.mxu0  ;;  %v3265_v49 = vsel %vm7179_vm7, %v3263_v44, %v3264_v18  ;;  %v3938_v29 = vshll.u32 %v6501_v30, 16  ;;  %v2720_v43 = vrot.slane %v2719_v63, 4  ;;  %v3944_v53 = vrot.slane %v3942_v1, 4  ;;  %v6304_v30 = vld [vmem:[%s7151_s5 + $0xc0] sm:$0xe] }
 0x185   : > { %v8273_v24 = vadd.f32 %v2925_v50, %v2211_v42  ;;  %v2715_v40 = vsel %vm7169_vm6, %v2710_v12, %v2714_v15  ;;  %v3948_v15 = vshll.u32 %v6502_v41, 16  ;;  %v6305_v12 = vld [vmem:[%s7151_s5 + $0xc4] sm:$0xf]  ;;  %v6306_v63 = vld [vmem:[%s7151_s5 + $0xc8] sm:$0x1] }
 0x186   : > { %5861 = vmatmul.msk.bf16.gmra.mxu1 %vm959_vm8, %v5842_v60  ;;  %6113 = vmatmul.msk.bf16.gmra.mxu3 %vm959_vm8, %v8183_v55  ;;  %v3931_v60 = vrot.slane %v3929_v62, 4  ;;  %2728 = vst.msk [vmem:[#allocation2 + $0x78] sm:$0xf] %vm191_vm1, %v2715_v40  ;;  %v3934_v55 = vrot.slane %v3932_v10, 5  ;;  %v3940_v51 = vrot.slane %v3938_v29, 5  ;;  %v2725_v25 = vsel %vm7169_vm6, %v2720_v43, %v2724_v7  ;;  %v8302_v10 = vld [vmem:[#allocation2] sm:$0xff] }
 0x187   : > { %2729 = vst.msk [vmem:[#allocation2 + $0x7c] sm:$0xf] %vm191_vm1, %v2725_v25  ;;  %v3950_v54 = vrot.slane %v3948_v15, 5  ;;  %v5846_v62 = vor.u32 %v7568_v19, %v7566_v17  ;;  %v3278_v16 = vrot.slane %v6305_v12, 5  ;;  %v3281_v13 = vrot.slane %v6306_v63, 5 }
 0x188   : > { %v3935_v23 = vor.u32 %v3934_v55, %v3931_v60  ;;  %v3945_v44 = vor.u32 %v3944_v53, %v3940_v51  ;;  %v6629_v29 = vld [vmem:[%s7151_s5 + $0x1c] sm:$0xf]  ;;  %v6628_v19 = vld [vmem:[%s7151_s5 + $0x18] sm:$0xe]  ;;  %v6630_v60 = vld [vmem:[%s7151_s5 + $0x20] sm:$0x1] }
 0x189   : > { %v2147_v18 = vpop.f32.mrf.mxu3  ;;  %v3280_v17 = vrot.slane %v3278_v16, 4  ;;  %v6631_v1 = vrot.slane %v6628_v19, 9  ;;  %v4717_v41 = vrot.slane %v6630_v60, 5  ;;  %v6504_v25 = vld [vmem:[%s7151_s5 + $0x28] sm:$0xf] }
 0x18a   : > { %v8259_v6 = vld [vmem:[#allocation2 + $0x70] sm:$0xff]  ;;  %v1796_v56 = vpop.f32.mrf.mxu2  ;;  %v2212_v42 = vadd.f32 %v2147_v18, %v1859_v31  ;;  %v3936_v35 = vrot.slane %v3935_v23, 4  ;;  %v3946_v50 = vrot.slane %v3945_v44, 4  ;;  %v1272_v31 = vadd.f32 %v1271_v45, %v7874_v39  ;;  %v6390_v23 = vld [vmem:[%s7151_s5 + $0x24] sm:$0xf] }
 0x18b   : > { %3269 = vst.msk [vmem:[#allocation2 + $0x74] sm:$0xf] %vm191_vm1, %v3265_v49  ;;  %v1860_v27 = vadd.f32 %v1796_v56, %v1269_v11  ;;  %v1273_v0 = vpop.f32.mrf.mxu1  ;;  %v6307_v11 = vrot.slane %v6304_v30, 9  ;;  %v4714_v56 = vrot.slane %v6629_v29, 5  ;;  %v3282_v18 = vsel %vm7179_vm7, %v3280_v17, %v3281_v13 }
 0x18c   : > { %v2928_v57 = vpop.f32.mrf.mxu0  ;;  %v3941_v46 = vsel %vm7169_vm6, %v3936_v35, %v3940_v51  ;;  %v3951_v7 = vsel %vm7169_vm6, %v3946_v50, %v3950_v54  ;;  %v6391_v54 = vld [vmem:[%s7151_s5 + $0x28] sm:$0xf]  ;;  %v1274_v50 = vadd.f32 %v1273_v0, %v7907_v37  ;;  %v3973_v30 = vshrl.u32 %v6504_v25, 16 }
 0x18d   : > { %v8288_v49 = vadd.f32 %v2928_v57, %v2212_v42  ;;  %3954 = vst.msk [vmem:[#allocation2] sm:$0xf] %vm191_vm1, %v3941_v46  ;;  %v3279_v43 = vsel %vm7179_vm7, %v6307_v11, %v3278_v16  ;;  %v4715_v53 = vsel %vm7179_vm7, %v6631_v1, %v4714_v56  ;;  %v4716_v15 = vrot.slane %v4714_v56, 4  ;;  %v8322_v42 = vld [vmem:[#allocation2 + $0x8] sm:$0xff] }
 0x18e   : > { %3955 = vst.msk [vmem:[#allocation2 + $0x4] sm:$0xf] %vm191_vm1, %v3951_v7  ;;  %v3975_v16 = vrot.slane %v3973_v30, 4  ;;  %v8364_v30 = vld [vmem:[#allocation2 + $0x10] sm:$0xff] }
 0x18f   : > { %6002 = vmatmul.msk.bf16.gmra.mxu2 %vm959_vm8, %v8195_v9  ;;  %6241 = vmatmul.msk.bf16.gmra.mxu0 %vm959_vm8, %v8216_v32  ;;  %3285 = vst.msk [vmem:[#allocation2 + $0x78] sm:$0xf] %vm191_vm1, %v3279_v43  ;;  %v4718_v46 = vsel %vm7179_vm7, %v4716_v15, %v4717_v41  ;;  %v6634_v15 = vld [vmem:[%s7151_s5 + $0x2c] sm:$0x1] }
 0x190   : > { %4721 = vst.msk [vmem:[#allocation2] sm:$0xf] %vm191_vm1, %v4715_v53  ;;  %v6632_v53 = vld [vmem:[%s7151_s5 + $0x24] sm:$0xe] }
 0x191   : > { %v2149_v39 = vpop.f32.mrf.mxu3  ;;  %3578 = vst.msk [vmem:[#allocation2 + $0x8] sm:$0xf] %vm191_vm1, %v6390_v23  ;;  %v6635_v23 = vrot.slane %v6632_v53, 9 }
 0x192   : > { %v1799_v9 = vpop.f32.mrf.mxu2  ;;  %v2213_v40 = vadd.f32 %v2149_v39, %v1860_v27  ;;  %v6503_v27 = vld [vmem:[%s7151_s5 + $0x24] sm:$0xf]  ;;  %3579 = vst.msk [vmem:[#allocation2 + $0xc] sm:$0xf] %vm191_vm1, %v6391_v54 }
 0x193   : > { %v1861_v32 = vadd.f32 %v1799_v9, %v1272_v31  ;;  %v1276_v45 = vpop.f32.mrf.mxu1  ;;  %v3960_v57 = vshrl.u32 %v6503_v27, 16  ;;  %v3963_v35 = vshll.u32 %v6503_v27, 16  ;;  %v3969_v31 = vshll.u32 %v6504_v25, 16 }
 0x194   : > { %v2930_v55 = vpop.f32.mrf.mxu0 }
 0x195   : > { %v8325_v44 = vadd.f32 %v2930_v55, %v2213_v40  ;;  %v3962_v7 = vrot.slane %v3960_v57, 4  ;;  %v3965_v37 = vrot.slane %v3963_v35, 5  ;;  %v3971_v0 = vrot.slane %v3969_v31, 5 }
 0x196   : > { %5862 = vmatmul.msk.bf16.gmra.mxu1 %vm959_vm8, %v5846_v62  ;;  %v8313_v51 = vld [vmem:[#allocation2 + $0x78] sm:$0xff]  ;;  %6114 = vmatmul.msk.bf16.gmra.mxu3 %vm959_vm8, %v8226_v3  ;;  %v6505_v3 = vld [vmem:[%s7151_s5 + $0x2c] sm:$0x1]  ;;  %v4734_v57 = vrot.slane %v6634_v15, 5 }
 0x197   : > { %3286 = vst.msk [vmem:[#allocation2 + $0x7c] sm:$0xf] %vm191_vm1, %v3282_v18  ;;  %v8335_v63 = vld [vmem:[#allocation2] sm:$0xff]  ;;  %v3979_v39 = vshll.u32 %v6505_v3, 16  ;;  %v3966_v29 = vor.u32 %v3965_v37, %v3962_v7  ;;  %v3976_v40 = vor.u32 %v3975_v16, %v3971_v0  ;;  %v6633_v18 = vld [vmem:[%s7151_s5 + $0x28] sm:$0xf] }
 0x198   : > { %4722 = vst.msk [vmem:[#allocation2 + $0x4] sm:$0xf] %vm191_vm1, %v4718_v46  ;;  %v6507_v46 = vld [vmem:[%s7151_s5 + $0x34] sm:$0xf] }
 0x199   : > { %v2152_v9 = vpop.f32.mrf.mxu3  ;;  %v3981_v17 = vrot.slane %v3979_v39, 5  ;;  %v3967_v19 = vrot.slane %v3966_v29, 4  ;;  %v3977_v60 = vrot.slane %v3976_v40, 4  ;;  %v8347_v56 = vld [vmem:[#allocation2 + $0x8] sm:$0xff]  ;;  %v6393_v3 = vld [vmem:[%s7151_s5 + $0x34] sm:$0xf] }
 0x19a   : > { %v1801_v12 = vpop.f32.mrf.mxu2  ;;  %v2214_v13 = vadd.f32 %v2152_v9, %v1861_v32  ;;  %v1277_v32 = vadd.f32 %v1276_v45, %v7940_v14  ;;  %v4731_v14 = vrot.slane %v6633_v18, 5  ;;  %v4000_v37 = vshll.u32 %v6507_v46, 16  ;;  %3583 = vst.msk [vmem:[#allocation2 + $0x14] sm:$0xf] %vm191_vm1, %v6393_v3  ;;  %v6508_v40 = vld [vmem:[%s7151_s5 + $0x38] sm:$0x1] }
 0x19b   : > { %v1862_v62 = vadd.f32 %v1801_v12, %v1274_v50  ;;  %v1278_v11 = vpop.f32.mrf.mxu1  ;;  %v3972_v41 = vsel %vm7169_vm6, %v3967_v19, %v3971_v0  ;;  %v3982_v55 = vsel %vm7169_vm6, %v3977_v60, %v3981_v17  ;;  %v6506_v50 = vld [vmem:[%s7151_s5 + $0x30] sm:$0xf]  ;;  %v4004_v0 = vshrl.u32 %v6507_v46, 16  ;;  %v6638_v46 = vld [vmem:[%s7151_s5 + $0x38] sm:$0x1] }
 0x19c   : > { %v2933_v43 = vpop.f32.mrf.mxu0  ;;  %3985 = vst.msk [vmem:[#allocation2 + $0x8] sm:$0xf] %vm191_vm1, %v3972_v41  ;;  %v4733_v54 = vrot.slane %v4731_v14, 4  ;;  %v4732_v31 = vsel %vm7179_vm7, %v6635_v23, %v4731_v14  ;;  %v6392_v12 = vld [vmem:[%s7151_s5 + $0x30] sm:$0xf]  ;;  %v3991_v7 = vshrl.u32 %v6506_v50, 16  ;;  %v1279_v16 = vadd.f32 %v1278_v11, %v7967_v61 }
 0x19d   : > { %v8342_v1 = vadd.f32 %v2933_v43, %v2214_v13  ;;  %3986 = vst.msk [vmem:[#allocation2 + $0xc] sm:$0xf] %vm191_vm1, %v3982_v55  ;;  %v4002_v60 = vrot.slane %v4000_v37, 5  ;;  %v4010_v41 = vshll.u32 %v6508_v40, 16  ;;  %v4751_v3 = vrot.slane %v6638_v46, 5 }
 0x19e   : > { %4738 = vst.msk [vmem:[#allocation2 + $0x8] sm:$0xf] %vm191_vm1, %v4732_v31  ;;  %v3993_v13 = vrot.slane %v3991_v7, 4 }
 0x19f   : > { %6003 = vmatmul.msk.bf16.gmra.mxu2 %vm959_vm8, %v8238_v21  ;;  %6242 = vmatmul.msk.bf16.gmra.mxu0 %vm959_vm8, %v8259_v6  ;;  %3582 = vst.msk [vmem:[#allocation2 + $0x10] sm:$0xf] %vm191_vm1, %v6392_v12 }
 0x1a1   : > { %v2154_v27 = vpop.f32.mrf.mxu3 }
 0x1a2   : > { %v1804_v21 = vpop.f32.mrf.mxu2  ;;  %v2215_v45 = vadd.f32 %v2154_v27, %v1862_v62  ;;  %v4735_v62 = vsel %vm7179_vm7, %v4733_v54, %v4734_v57  ;;  %v6637_v54 = vld [vmem:[%s7151_s5 + $0x34] sm:$0xf] }
 0x1a3   : > { %v1863_v25 = vadd.f32 %v1804_v21, %v1277_v32  ;;  %v1281_v6 = vpop.f32.mrf.mxu1  ;;  %v4006_v32 = vrot.slane %v4004_v0, 4  ;;  %v4012_v21 = vrot.slane %v4010_v41, 5 }
 0x1a4   : > { %v2935_v35 = vpop.f32.mrf.mxu0 }
 0x1a5   : > { %v8368_v9 = vadd.f32 %v2935_v35, %v2215_v45  ;;  %v8377_v29 = vld [vmem:[#allocation2 + $0x8] sm:$0xff]  ;;  %v4007_v11 = vor.u32 %v4006_v32, %v4002_v60 }
 0x1a6   : > { %6372 = vmatmul.msk.bf16.vlgmr.msra.gmra.mxu1 %vm959_vm8, %v8266_v28  ;;  %6115 = vmatmul.msk.bf16.gmra.mxu3 %vm959_vm8, %v8275_v20  ;;  %v3994_v28 = vshll.u32 %v6506_v50, 16  ;;  %4739 = vst.msk [vmem:[#allocation2 + $0xc] sm:$0xf] %vm191_vm1, %v4735_v62  ;;  %v8391_v15 = vld [vmem:[#allocation2 + $0x10] sm:$0xff]  ;;  %v4748_v50 = vrot.slane %v6637_v54, 5 }
 0x1a7   : > { %v4008_v14 = vrot.slane %v4007_v11, 4  ;;  %v6509_v62 = vld [vmem:[%s7151_s5 + $0x3c] sm:$0xf] }
 0x1a8   : > { %v3996_v20 = vrot.slane %v3994_v28, 5  ;;  %v4750_v12 = vrot.slane %v4748_v50, 4  ;;  %v6510_v28 = vld [vmem:[%s7151_s5 + $0x40] sm:$0xf] }
 0x1a9   : > { %v2157_v43 = vpop.f32.mrf.mxu3  ;;  %v4013_v23 = vsel %vm7169_vm6, %v4008_v14, %v4012_v21 }
 0x1aa   : > { %v1806_v39 = vpop.f32.mrf.mxu2  ;;  %v2216_v55 = vadd.f32 %v2157_v43, %v1863_v25  ;;  %v3997_v61 = vor.u32 %v3996_v20, %v3993_v13  ;;  %v1282_v25 = vadd.f32 %v1281_v6, %v7804_v38  ;;  %4017 = vst.msk [vmem:[#allocation2 + $0x14] sm:$0xf] %vm191_vm1, %v4013_v23  ;;  %v6636_v6 = vld [vmem:[%s7151_s5 + $0x30] sm:$0xe]  ;;  %v4752_v0 = vsel %vm7179_vm7, %v4750_v12, %v4751_v3  ;;  %v6395_v13 = vld [vmem:[%s7151_s5 + $0x40] sm:$0xf] }
 0x1ab   : > { %v1864_v17 = vadd.f32 %v1806_v39, %v1279_v16  ;;  %v1283_v19 = vpop.f32.mrf.mxu1  ;;  %v6639_v31 = vrot.slane %v6636_v6, 9  ;;  %v6394_v16 = vld [vmem:[%s7151_s5 + $0x3c] sm:$0xf]  ;;  %v4022_v39 = vshrl.u32 %v6509_v62, 16  ;;  %v4025_v20 = vshll.u32 %v6509_v62, 16 }
 0x1ac   : > { %v2938_v18 = vpop.f32.mrf.mxu0  ;;  %v3998_v27 = vrot.slane %v3997_v61, 4  ;;  %v4031_v43 = vshll.u32 %v6510_v28, 16  ;;  %v6511_v61 = vld [vmem:[%s7151_s5 + $0x44] sm:$0x1]  ;;  %v6641_v12 = vld [vmem:[%s7151_s5 + $0x40] sm:$0xf] }
 0x1ad   : > { %v8384_v45 = vadd.f32 %v2938_v18, %v2216_v55  ;;  %v4749_v37 = vsel %vm7179_vm7, %v6639_v31, %v4748_v50  ;;  %v4024_v41 = vrot.slane %v4022_v39, 4  ;;  %v4027_v11 = vrot.slane %v4025_v20, 5  ;;  %v6512_v20 = vld [vmem:[%s7151_s5 + $0x48] sm:$0xf] }
 0x1ae   : > { %v4003_v53 = vsel %vm7169_vm6, %v3998_v27, %v4002_v60  ;;  %v1284_v60 = vadd.f32 %v1283_v19, %v7829_v4  ;;  %v6905_v19 = vld [vmem:[#allocation2] sm:$0xff] }
 0x1af   : > { %6484 = vmatmul.msk.bf16.vlgmr.msra.gmra.mxu2 %vm959_vm8, %v8302_v10  ;;  %6243 = vmatmul.msk.bf16.gmra.mxu0 %vm959_vm8, %v8313_v51  ;;  %4016 = vst.msk [vmem:[#allocation2 + $0x10] sm:$0xf] %vm191_vm1, %v4003_v53  ;;  %v4041_v53 = vshll.u32 %v6511_v61, 16  ;;  %v4028_v4 = vor.u32 %v4027_v11, %v4024_v41  ;;  %v6396_v41 = vld [vmem:[%s7151_s5 + $0x48] sm:$0xf]  ;;  %v4053_v61 = vshrl.u32 %v6512_v20, 16 }
 0x1b0   : > { %4755 = vst.msk [vmem:[#allocation2 + $0x10] sm:$0xf] %vm191_vm1, %v4749_v37  ;;  %v6642_v37 = vld [vmem:[%s7151_s5 + $0x44] sm:$0x1] }
 0x1b1   : > { %v2159_v57 = vpop.f32.mrf.mxu3 }
 0x1b2   : > { %v1809_v10 = vpop.f32.mrf.mxu2  ;;  %v2217_v38 = vadd.f32 %v2159_v57, %v1864_v17  ;;  %v4035_v17 = vshrl.u32 %v6510_v28, 16  ;;  %v4029_v57 = vrot.slane %v4028_v4, 4  ;;  %v4765_v28 = vrot.slane %v6641_v12, 5 }
 0x1b3   : > { %v1865_v35 = vadd.f32 %v1809_v10, %v1282_v25  ;;  %v1286_v51 = vpop.f32.mrf.mxu1  ;;  %v4043_v10 = vrot.slane %v4041_v53, 5  ;;  %v4055_v53 = vrot.slane %v4053_v61, 4 }
 0x1b4   : > { %v2940_v7 = vpop.f32.mrf.mxu0  ;;  %v4037_v14 = vrot.slane %v4035_v17, 4 }
 0x1b5   : > { %v8410_v40 = vadd.f32 %v2940_v7, %v2217_v38 }
 0x1b6   : > { %6373 = vmatmul.msk.bf16.gmra.mxu1 %vm959_vm8, %v8322_v42  ;;  %6612 = vmatmul.msk.bf16.vlgmr.msra.gmra.mxu3 %vm959_vm8, %v8335_v63  ;;  %v8415_v42 = vld [vmem:[#allocation2 + $0x18] sm:$0xff]  ;;  %v4033_v63 = vrot.slane %v4031_v43, 5  ;;  %v6513_v43 = vld [vmem:[%s7151_s5 + $0x4c] sm:$0xf] }
 0x1b7   : > { %v8418_v32 = vld [vmem:[#allocation2 + $0x10] sm:$0xff]  ;;  %3586 = vst.msk [vmem:[#allocation2 + $0x18] sm:$0xf] %vm191_vm1, %v6394_v16  ;;  %v4767_v16 = vrot.slane %v4765_v28, 4 }
 0x1b8   : > { %4756 = vst.msk [vmem:[#allocation2 + $0x14] sm:$0xf] %vm191_vm1, %v4752_v0  ;;  %v4038_v23 = vor.u32 %v4037_v14, %v4033_v63  ;;  %v4034_v6 = vsel %vm7169_vm6, %v4029_v57, %v4033_v63 }
 0x1b9   : > { %v2162_v21 = vpop.f32.mrf.mxu3  ;;  %3587 = vst.msk [vmem:[#allocation2 + $0x1c] sm:$0xf] %vm191_vm1, %v6395_v13  ;;  %v4768_v13 = vrot.slane %v6642_v37, 5 }
 0x1ba   : > { %v1811_v55 = vpop.f32.mrf.mxu2  ;;  %v2218_v25 = vadd.f32 %v2162_v21, %v1865_v35  ;;  %v4039_v50 = vrot.slane %v4038_v23, 4  ;;  %v1287_v35 = vadd.f32 %v1286_v51, %v7864_v8  ;;  %4047 = vst.msk [vmem:[#allocation2 + $0x18] sm:$0xf] %vm191_vm1, %v4034_v6  ;;  %v6640_v51 = vld [vmem:[%s7151_s5 + $0x3c] sm:$0xe]  ;;  %v4062_v21 = vshll.u32 %v6513_v43, 16 }
 0x1bb   : > { %v1866_v18 = vadd.f32 %v1811_v55, %v1284_v60  ;;  %v1288_v27 = vpop.f32.mrf.mxu1  ;;  %v6643_v0 = vrot.slane %v6640_v51, 9  ;;  %v8447_v60 = vld [vmem:[#allocation2 + $0x20] sm:$0xff]  ;;  %v6397_v55 = vld [vmem:[%s7151_s5 + $0x4c] sm:$0xf]  ;;  %v4769_v63 = vsel %vm7179_vm7, %v4767_v16, %v4768_v13 }
 0x1bc   : > { %v2943_v54 = vpop.f32.mrf.mxu0  ;;  %v4044_v46 = vsel %vm7169_vm6, %v4039_v50, %v4043_v10  ;;  %v1289_v14 = vadd.f32 %v1288_v27, %v7892_v59  ;;  %3590 = vst.msk [vmem:[#allocation2 + $0x20] sm:$0xf] %vm191_vm1, %v6396_v41  ;;  %v4064_v57 = vrot.slane %v4062_v21, 5  ;;  %v6906_v27 = vld [vmem:[#allocation2 + $0x8] sm:$0xff] }
 0x1bd   : > { %v8426_v38 = vadd.f32 %v2943_v54, %v2218_v25  ;;  %v4766_v17 = vsel %vm7179_vm7, %v6643_v0, %v4765_v28  ;;  %3591 = vst.msk [vmem:[#allocation2 + $0x24] sm:$0xf] %vm191_vm1, %v6397_v55  ;;  %v6645_v13 = vld [vmem:[%s7151_s5 + $0x4c] sm:$0xf]  ;;  %v6644_v41 = vld [vmem:[%s7151_s5 + $0x48] sm:$0xe] }
 0x1be   : > { %v6646_v55 = vld [vmem:[%s7151_s5 + $0x50] sm:$0x1]  ;;  %v6647_v61 = vrot.slane %v6644_v41, 9 }
 0x1bf   : > { %6485 = vmatmul.msk.bf16.gmra.mxu2 %vm959_vm8, %v8347_v56  ;;  %6756 = vmatmul.msk.bf16.vlgmr.msra.gmra.mxu0 %vm959_vm8, %v6905_v19  ;;  %v6514_v19 = vld [vmem:[%s7151_s5 + $0x50] sm:$0x1] }
 0x1c0   : > { %v4072_v6 = vshll.u32 %v6514_v19, 16  ;;  %v6398_v19 = vld [vmem:[%s7151_s5 + $0x54] sm:$0xf] }
 0x1c1   : > { %v8435_v56 = vld [vmem:[#allocation2 + $0x18] sm:$0xff]  ;;  %v2164_v3 = vpop.f32.mrf.mxu3 }
 0x1c2   : > { %v1814_v31 = vpop.f32.mrf.mxu2  ;;  %4048 = vst.msk [vmem:[#allocation2 + $0x1c] sm:$0xf] %vm191_vm1, %v4044_v46  ;;  %v2219_v8 = vadd.f32 %v2164_v3, %v1866_v18  ;;  %v4066_v18 = vshrl.u32 %v6513_v43, 16 }
 0x1c3   : > { %v1867_v7 = vadd.f32 %v1814_v31, %v1287_v35  ;;  %v1291_v62 = vpop.f32.mrf.mxu1  ;;  %4772 = vst.msk [vmem:[#allocation2 + $0x18] sm:$0xf] %vm191_vm1, %v4766_v17  ;;  %v4074_v31 = vrot.slane %v4072_v6, 5  ;;  %v4782_v17 = vrot.slane %v6645_v13, 5  ;;  %v6907_v13 = vld [vmem:[#allocation2 + $0x10] sm:$0xff] }
 0x1c4   : > { %v2945_v39 = vpop.f32.mrf.mxu0  ;;  %v4068_v50 = vrot.slane %v4066_v18, 4  ;;  %v8473_v0 = vld [vmem:[#allocation2 + $0x20] sm:$0xff]  ;;  %v6515_v18 = vld [vmem:[%s7151_s5 + $0x54] sm:$0xf] }
 0x1c5   : > { %v8451_v11 = vadd.f32 %v2945_v39, %v2219_v8 }
 0x1c6   : > { %6374 = vmatmul.msk.bf16.gmra.mxu1 %vm959_vm8, %v8364_v30  ;;  %6613 = vmatmul.msk.bf16.gmra.mxu3 %vm959_vm8, %v8377_v29  ;;  %v4056_v30 = vshll.u32 %v6512_v20, 16  ;;  %v4069_v46 = vor.u32 %v4068_v50, %v4064_v57 }
 0x1c8   : > { %v4058_v29 = vrot.slane %v4056_v30, 5  ;;  %v4070_v28 = vrot.slane %v4069_v46, 4  ;;  %v4785_v30 = vrot.slane %v6646_v55, 5 }
 0x1c9   : > { %v2167_v23 = vpop.f32.mrf.mxu3 }
 0x1ca   : > { %v1816_v25 = vpop.f32.mrf.mxu2  ;;  %v8460_v4 = vld [vmem:[#allocation2 + $0x18] sm:$0xff]  ;;  %v2220_v35 = vadd.f32 %v2167_v23, %v1867_v7  ;;  %v4059_v59 = vor.u32 %v4058_v29, %v4055_v53  ;;  %v9169_v7 = vld [vmem:[#allocation10_spill] sm:$0xff]  ;;  %v4075_v16 = vsel %vm7169_vm6, %v4070_v28, %v4074_v31  ;;  %v4783_v53 = vsel %vm7179_vm7, %v6647_v61, %v4782_v17 }
 0x1cb   : > { %v1868_v10 = vadd.f32 %v1816_v25, %v1289_v14  ;;  %v1293_v54 = vpop.f32.mrf.mxu1  ;;  %4773 = vst.msk [vmem:[#allocation2 + $0x1c] sm:$0xf] %vm191_vm1, %v4769_v63  ;;  %v1292_v37 = vadd.f32 %v1291_v62, %v9169_v7  ;;  %v4784_v63 = vrot.slane %v4782_v17, 4  ;;  %v6516_v14 = vld [vmem:[%s7151_s5 + $0x58] sm:$0xf]  ;;  %v4084_v23 = vshrl.u32 %v6515_v18, 16 }
 0x1cc   : > { %v2948_v12 = vpop.f32.mrf.mxu0  ;;  %v4060_v3 = vrot.slane %v4059_v59, 4  ;;  %4079 = vst.msk [vmem:[#allocation2 + $0x24] sm:$0xf] %vm191_vm1, %v4075_v16  ;;  %v6399_v29 = vld [vmem:[%s7151_s5 + $0x58] sm:$0xf]  ;;  %v4093_v50 = vshll.u32 %v6516_v14, 16 }
 0x1cd   : > { %v8467_v8 = vadd.f32 %v2948_v12, %v2220_v35  ;;  %v4786_v25 = vsel %vm7179_vm7, %v4784_v63, %v4785_v30  ;;  %v4097_v6 = vshrl.u32 %v6516_v14, 16  ;;  %v9170_v35 = vld [vmem:[#allocation12_spill] sm:$0xff]  ;;  %v4086_v46 = vrot.slane %v4084_v23, 4  ;;  %v6517_v12 = vld [vmem:[%s7151_s5 + $0x5c] sm:$0x1] }
 0x1ce   : > { %v4065_v51 = vsel %vm7169_vm6, %v4060_v3, %v4064_v57  ;;  %v4087_v57 = vshll.u32 %v6515_v18, 16  ;;  %v1294_v59 = vadd.f32 %v1293_v54, %v9170_v35  ;;  %v4103_v16 = vshll.u32 %v6517_v12, 16  ;;  %v6649_v14 = vld [vmem:[%s7151_s5 + $0x58] sm:$0xf]  ;;  %v6648_v23 = vld [vmem:[%s7151_s5 + $0x54] sm:$0xe] }
 0x1cf   : > { %6486 = vmatmul.msk.bf16.gmra.mxu2 %vm959_vm8, %v8391_v15  ;;  %6757 = vmatmul.msk.bf16.gmra.mxu0 %vm959_vm8, %v6906_v27  ;;  %4078 = vst.msk [vmem:[#allocation2 + $0x20] sm:$0xf] %vm191_vm1, %v4065_v51 }
 0x1d0   : > { %4789 = vst.msk [vmem:[#allocation2 + $0x20] sm:$0xf] %vm191_vm1, %v4783_v53  ;;  %v4089_v3 = vrot.slane %v4087_v57, 5  ;;  %v4105_v17 = vrot.slane %v4103_v16, 5  ;;  %v6650_v57 = vld [vmem:[%s7151_s5 + $0x5c] sm:$0x1] }
 0x1d1   : > { %v2169_v39 = vpop.f32.mrf.mxu3  ;;  %v4802_v35 = vrot.slane %v6650_v57, 5 }
 0x1d2   : > { %v1819_v15 = vpop.f32.mrf.mxu2  ;;  %v2221_v62 = vadd.f32 %v2169_v39, %v1868_v10  ;;  %v4090_v54 = vor.u32 %v4089_v3, %v4086_v46  ;;  %v6518_v46 = vld [vmem:[%s7151_s5 + $0x60] sm:$0xf]  ;;  %v8529_v3 = vld [vmem:[#allocation2 + $0x30] sm:$0xff] }
 0x1d3   : > { %v1869_v20 = vadd.f32 %v1819_v15, %v1292_v37  ;;  %v1296_v43 = vpop.f32.mrf.mxu1  ;;  %v4099_v37 = vrot.slane %v4097_v6, 4 }
 0x1d4   : > { %v2950_v21 = vpop.f32.mrf.mxu0  ;;  %v4091_v41 = vrot.slane %v4090_v54, 4 }
 0x1d5   : > { %v8492_v10 = vadd.f32 %v2950_v21, %v2221_v62 }
 0x1d6   : > { %6375 = vmatmul.msk.bf16.gmra.mxu1 %vm959_vm8, %v8415_v42  ;;  %6614 = vmatmul.msk.bf16.gmra.mxu3 %vm959_vm8, %v8418_v32  ;;  %v8497_v42 = vld [vmem:[#allocation2 + $0x28] sm:$0xff]  ;;  %v4095_v32 = vrot.slane %v4093_v50, 5  ;;  %v6651_v50 = vrot.slane %v6648_v23, 9 }
 0x1d7   : > { %v8500_v27 = vld [vmem:[#allocation2 + $0x20] sm:$0xff]  ;;  %3594 = vst.msk [vmem:[#allocation2 + $0x28] sm:$0xf] %vm191_vm1, %v6398_v19 }
 0x1d8   : > { %4790 = vst.msk [vmem:[#allocation2 + $0x24] sm:$0xf] %vm191_vm1, %v4786_v25  ;;  %v4100_v39 = vor.u32 %v4099_v37, %v4095_v32  ;;  %v4096_v63 = vsel %vm7169_vm6, %v4091_v41, %v4095_v32  ;;  %v6400_v32 = vld [vmem:[%s7151_s5 + $0x60] sm:$0xf] }
 0x1d9   : > { %v2172_v28 = vpop.f32.mrf.mxu3  ;;  %3595 = vst.msk [vmem:[#allocation2 + $0x2c] sm:$0xf] %vm191_vm1, %v6399_v29  ;;  %v4799_v29 = vrot.slane %v6649_v14, 5 }
 0x1da   : > { %v1821_v31 = vpop.f32.mrf.mxu2  ;;  %v2222_v15 = vadd.f32 %v2172_v28, %v1869_v20  ;;  %v4101_v55 = vrot.slane %v4100_v39, 4  ;;  %v9171_v20 = vld [vmem:[#allocation14_spill] sm:$0xff]  ;;  %4109 = vst.msk [vmem:[#allocation2 + $0x28] sm:$0xf] %vm191_vm1, %v4096_v63 }
 0x1db   : > { %v1870_v51 = vadd.f32 %v1821_v31, %v1294_v59  ;;  %v1298_v7 = vpop.f32.mrf.mxu1  ;;  %v1297_v30 = vadd.f32 %v1296_v43, %v9171_v20  ;;  %v4801_v6 = vrot.slane %v4799_v29, 4  ;;  %v6519_v31 = vld [vmem:[%s7151_s5 + $0x64] sm:$0xf]  ;;  %v4800_v12 = vsel %vm7179_vm7, %v6651_v50, %v4799_v29  ;;  %3598 = vst.msk [vmem:[#allocation2 + $0x30] sm:$0xf] %vm191_vm1, %v6400_v32  ;;  %v6908_v29 = vld [vmem:[#allocation2 + $0x18] sm:$0xff] }
 0x1dc   : > { %v2953_v62 = vpop.f32.mrf.mxu0  ;;  %v4106_v21 = vsel %vm7169_vm6, %v4101_v55, %v4105_v17  ;;  %v6401_v28 = vld [vmem:[%s7151_s5 + $0x64] sm:$0xf]  ;;  %v4128_v54 = vshrl.u32 %v6519_v31, 16  ;;  %v6520_v55 = vld [vmem:[%s7151_s5 + $0x68] sm:$0x1] }
 0x1dd   : > { %v8508_v61 = vadd.f32 %v2953_v62, %v2222_v15  ;;  %v4803_v16 = vsel %vm7179_vm7, %v4801_v6, %v4802_v35  ;;  %v4124_v15 = vshll.u32 %v6519_v31, 16  ;;  %3599 = vst.msk [vmem:[#allocation2 + $0x34] sm:$0xf] %vm191_vm1, %v6401_v28  ;;  %v4134_v14 = vshll.u32 %v6520_v55, 16  ;;  %v6653_v32 = vld [vmem:[%s7151_s5 + $0x64] sm:$0xf] }
 0x1de   : > { %v6521_v55 = vld [vmem:[%s7151_s5 + $0x6c] sm:$0xf] }
 0x1df   : > { %6487 = vmatmul.msk.bf16.gmra.mxu2 %vm959_vm8, %v8435_v56  ;;  %6758 = vmatmul.msk.bf16.gmra.mxu0 %vm959_vm8, %v6907_v13  ;;  %v9172_v13 = vld [vmem:[#allocation15_spill] sm:$0xff]  ;;  %v4136_v23 = vrot.slane %v4134_v14, 5  ;;  %v4146_v14 = vshrl.u32 %v6521_v55, 16 }
 0x1e0   : > { %v1299_v39 = vadd.f32 %v1298_v7, %v9172_v13 }
 0x1e1   : > { %v8517_v56 = vld [vmem:[#allocation2 + $0x28] sm:$0xff]  ;;  %v2174_v53 = vpop.f32.mrf.mxu3 }
 0x1e2   : > { %v1824_v18 = vpop.f32.mrf.mxu2  ;;  %4110 = vst.msk [vmem:[#allocation2 + $0x2c] sm:$0xf] %vm191_vm1, %v4106_v21  ;;  %v2223_v43 = vadd.f32 %v2174_v53, %v1870_v51  ;;  %v4115_v51 = vshrl.u32 %v6518_v46, 16  ;;  %v4126_v21 = vrot.slane %v4124_v15, 5  ;;  %v6652_v15 = vld [vmem:[%s7151_s5 + $0x60] sm:$0xe] }
 0x1e3   : > { %v1871_v25 = vadd.f32 %v1824_v18, %v1297_v30  ;;  %v1301_v19 = vpop.f32.mrf.mxu1  ;;  %4806 = vst.msk [vmem:[#allocation2 + $0x28] sm:$0xf] %vm191_vm1, %v4800_v12  ;;  %v4130_v18 = vrot.slane %v4128_v54, 4  ;;  %v6654_v54 = vld [vmem:[%s7151_s5 + $0x68] sm:$0x1]  ;;  %v6655_v13 = vrot.slane %v6652_v15, 9 }
 0x1e4   : > { %v2955_v59 = vpop.f32.mrf.mxu0  ;;  %v4117_v17 = vrot.slane %v4115_v51, 4  ;;  %v8555_v31 = vld [vmem:[#allocation2 + $0x30] sm:$0xff]  ;;  %v6909_v15 = vld [vmem:[#allocation2 + $0x20] sm:$0xff] }
 0x1e5   : > { %v8533_v37 = vadd.f32 %v2955_v59, %v2223_v43  ;;  %v4131_v43 = vor.u32 %v4130_v18, %v4126_v21  ;;  %v6402_v18 = vld [vmem:[%s7151_s5 + $0x6c] sm:$0xf] }
 0x1e6   : > { %6376 = vmatmul.msk.bf16.gmra.mxu1 %vm959_vm8, %v8447_v60  ;;  %6615 = vmatmul.msk.bf16.gmra.mxu3 %vm959_vm8, %v8460_v4  ;;  %v4118_v60 = vshll.u32 %v6518_v46, 16 }
 0x1e7   : > { %v4132_v6 = vrot.slane %v4131_v43, 4 }
 0x1e8   : > { %v4120_v4 = vrot.slane %v4118_v60, 5  ;;  %v4816_v60 = vrot.slane %v6653_v32, 5 }
 0x1e9   : > { %v2177_v63 = vpop.f32.mrf.mxu3  ;;  %v4137_v12 = vsel %vm7169_vm6, %v4132_v6, %v4136_v23  ;;  %v9174_v23 = vld [vmem:[#allocation7_spill] sm:$0xff]  ;;  %v4148_v6 = vrot.slane %v4146_v14, 4 }
 0x1ea   : > { %v1826_v62 = vpop.f32.mrf.mxu2  ;;  %v8542_v41 = vld [vmem:[#allocation2 + $0x28] sm:$0xff]  ;;  %v2224_v53 = vadd.f32 %v2177_v63, %v1871_v25  ;;  %v4121_v7 = vor.u32 %v4120_v4, %v4117_v17  ;;  %v9173_v25 = vld [vmem:[#allocation6_spill] sm:$0xff]  ;;  %4141 = vst.msk [vmem:[#allocation2 + $0x34] sm:$0xf] %vm191_vm1, %v4137_v12  ;;  %v4819_v17 = vrot.slane %v6654_v54, 5  ;;  %v4817_v63 = vsel %vm7179_vm7, %v6655_v13, %v4816_v60 }
 0x1eb   : > { %v1872_v20 = vadd.f32 %v1826_v62, %v1299_v39  ;;  %v1303_v30 = vpop.f32.mrf.mxu1  ;;  %4807 = vst.msk [vmem:[#allocation2 + $0x2c] sm:$0xf] %vm191_vm1, %v4803_v16  ;;  %v1302_v46 = vadd.f32 %v1301_v19, %v9173_v25  ;;  %v4818_v39 = vrot.slane %v4816_v60, 4  ;;  %v6522_v4 = vld [vmem:[%s7151_s5 + $0x70] sm:$0xf] }
 0x1ec   : > { %v2958_v57 = vpop.f32.mrf.mxu0  ;;  %v4122_v50 = vrot.slane %v4121_v7, 4  ;;  %v4149_v7 = vshll.u32 %v6521_v55, 16  ;;  %v4159_v43 = vshrl.u32 %v6522_v4, 16  ;;  %v6523_v25 = vld [vmem:[%s7151_s5 + $0x74] sm:$0x1] }
 0x1ed   : > { %v8549_v35 = vadd.f32 %v2958_v57, %v2224_v53  ;;  %v1304_v57 = vadd.f32 %v1303_v30, %v9174_v23  ;;  %v4165_v60 = vshll.u32 %v6523_v25, 16  ;;  %v6656_v23 = vld [vmem:[%s7151_s5 + $0x6c] sm:$0xe] }
 0x1ee   : > { %v4127_v59 = vsel %vm7169_vm6, %v4122_v50, %v4126_v21  ;;  %v4820_v21 = vsel %vm7179_vm7, %v4818_v39, %v4819_v17 }
 0x1ef   : > { %6488 = vmatmul.msk.bf16.gmra.mxu2 %vm959_vm8, %v8473_v0  ;;  %6759 = vmatmul.msk.bf16.gmra.mxu0 %vm959_vm8, %v6908_v29  ;;  %4140 = vst.msk [vmem:[#allocation2 + $0x30] sm:$0xf] %vm191_vm1, %v4127_v59  ;;  %v4155_v29 = vshll.u32 %v6522_v4, 16  ;;  %v4167_v13 = vrot.slane %v4165_v60, 5  ;;  %v8611_v60 = vld [vmem:[#allocation2 + $0x40] sm:$0xff] }
 0x1f0   : > { %4823 = vst.msk [vmem:[#allocation2 + $0x30] sm:$0xf] %vm191_vm1, %v4817_v63 }
 0x1f1   : > { %v2179_v28 = vpop.f32.mrf.mxu3 }
 0x1f2   : > { %v1829_v0 = vpop.f32.mrf.mxu2  ;;  %v2225_v19 = vadd.f32 %v2179_v28, %v1872_v20  ;;  %v6403_v20 = vld [vmem:[%s7151_s5 + $0x70] sm:$0xf]  ;;  %v4161_v28 = vrot.slane %v4159_v43, 4 }
 0x1f3   : > { %v1873_v51 = vadd.f32 %v1829_v0, %v1302_v46  ;;  %v1306_v16 = vpop.f32.mrf.mxu1  ;;  %v4151_v46 = vrot.slane %v4149_v7, 5 }
 0x1f4   : > { %v2960_v62 = vpop.f32.mrf.mxu0 }
 0x1f5   : > { %v8574_v53 = vadd.f32 %v2960_v62, %v2225_v19  ;;  %v4152_v30 = vor.u32 %v4151_v46, %v4148_v6  ;;  %v6659_v6 = vrot.slane %v6656_v23, 9 }
 0x1f6   : > { %6377 = vmatmul.msk.bf16.gmra.mxu1 %vm959_vm8, %v8497_v42  ;;  %6616 = vmatmul.msk.bf16.gmra.mxu3 %vm959_vm8, %v8500_v27  ;;  %v8579_v42 = vld [vmem:[#allocation2 + $0x38] sm:$0xff]  ;;  %v4157_v27 = vrot.slane %v4155_v29, 5 }
 0x1f7   : > { %v8582_v50 = vld [vmem:[#allocation2 + $0x30] sm:$0xff]  ;;  %3602 = vst.msk [vmem:[#allocation2 + $0x38] sm:$0xf] %vm191_vm1, %v6402_v18  ;;  %v4153_v17 = vrot.slane %v4152_v30, 4  ;;  %v6405_v30 = vld [vmem:[%s7151_s5 + $0x7c] sm:$0xf] }
 0x1f8   : > { %4824 = vst.msk [vmem:[#allocation2 + $0x34] sm:$0xf] %vm191_vm1, %v4820_v21  ;;  %v4162_v54 = vor.u32 %v4161_v28, %v4157_v27 }
 0x1f9   : > { %v2182_v12 = vpop.f32.mrf.mxu3  ;;  %3603 = vst.msk [vmem:[#allocation2 + $0x3c] sm:$0xf] %vm191_vm1, %v6403_v20  ;;  %v4158_v4 = vsel %vm7169_vm6, %v4153_v17, %v4157_v27  ;;  %v6657_v20 = vld [vmem:[%s7151_s5 + $0x70] sm:$0xf]  ;;  %v6524_v27 = vld [vmem:[%s7151_s5 + $0x78] sm:$0xf] }
 0x1fa   : > { %v1831_v59 = vpop.f32.mrf.mxu2  ;;  %v2226_v19 = vadd.f32 %v2182_v12, %v1873_v51  ;;  %v4163_v62 = vrot.slane %v4162_v54, 4  ;;  %v9175_v51 = vld [vmem:[#allocation8_spill] sm:$0xff]  ;;  %4171 = vst.msk [vmem:[#allocation2 + $0x38] sm:$0xf] %vm191_vm1, %v4158_v4  ;;  %v4833_v43 = vrot.slane %v6657_v20, 5  ;;  %v9176_v17 = vld [vmem:[#allocation9_spill] sm:$0xff] }
 0x1fb   : > { %v1874_v0 = vadd.f32 %v1831_v59, %v1304_v57  ;;  %v1308_v32 = vpop.f32.mrf.mxu1  ;;  %v1307_v63 = vadd.f32 %v1306_v16, %v9175_v51  ;;  %v6658_v57 = vld [vmem:[%s7151_s5 + $0x74] sm:$0x1]  ;;  %v6525_v12 = vld [vmem:[%s7151_s5 + $0x7c] sm:$0xf]  ;;  %3607 = vst.msk [vmem:[#allocation2 + $0x44] sm:$0xf] %vm191_vm1, %v6405_v30 }
 0x1fc   : > { %v2963_v39 = vpop.f32.mrf.mxu0  ;;  %v4168_v21 = vsel %vm7169_vm6, %v4163_v62, %v4167_v13  ;;  %v4835_v59 = vrot.slane %v4833_v43, 4  ;;  %v4836_v25 = vrot.slane %v6658_v57, 5  ;;  %v4834_v28 = vsel %vm7179_vm7, %v6659_v6, %v4833_v43  ;;  %v6910_v6 = vld [vmem:[#allocation2 + $0x28] sm:$0xff] }
 0x1fd   : > { %v8590_v55 = vadd.f32 %v2963_v39, %v2226_v19  ;;  %v6404_v19 = vld [vmem:[%s7151_s5 + $0x78] sm:$0xf]  ;;  %v4186_v13 = vshll.u32 %v6525_v12, 16  ;;  %v4190_v39 = vshrl.u32 %v6525_v12, 16  ;;  %v1309_v62 = vadd.f32 %v1308_v32, %v9176_v17 }
 0x1fe   : > { %v4837_v54 = vsel %vm7179_vm7, %v4835_v59, %v4836_v25  ;;  %3606 = vst.msk [vmem:[#allocation2 + $0x40] sm:$0xf] %vm191_vm1, %v6404_v19 }
 0x1ff   : > { %6489 = vmatmul.msk.bf16.gmra.mxu2 %vm959_vm8, %v8517_v56  ;;  %6760 = vmatmul.msk.bf16.gmra.mxu0 %vm959_vm8, %v6909_v15  ;;  %v4188_v43 = vrot.slane %v4186_v13, 5 }
 0x201   : > { %v8599_v56 = vld [vmem:[#allocation2 + $0x38] sm:$0xff]  ;;  %v2184_v14 = vpop.f32.mrf.mxu3 }
 0x202   : > { %v1834_v18 = vpop.f32.mrf.mxu2  ;;  %4172 = vst.msk [vmem:[#allocation2 + $0x3c] sm:$0xf] %vm191_vm1, %v4168_v21  ;;  %v2227_v16 = vadd.f32 %v2184_v14, %v1874_v0  ;;  %v4177_v0 = vshrl.u32 %v6524_v27, 16  ;;  %v6526_v21 = vld [vmem:[%s7151_s5 + $0x80] sm:$0x1] }
 0x203   : > { %v1875_v7 = vadd.f32 %v1834_v18, %v1307_v63  ;;  %v1311_v29 = vpop.f32.mrf.mxu1  ;;  %4840 = vst.msk [vmem:[#allocation2 + $0x38] sm:$0xf] %vm191_vm1, %v4834_v28  ;;  %v4196_v23 = vshll.u32 %v6526_v21, 16 }
 0x204   : > { %v2965_v46 = vpop.f32.mrf.mxu0  ;;  %v4179_v4 = vrot.slane %v4177_v0, 4 }
 0x205   : > { %v8615_v15 = vadd.f32 %v2965_v46, %v2227_v16  ;;  %v4192_v16 = vrot.slane %v4190_v39, 4  ;;  %v4198_v25 = vrot.slane %v4196_v23, 5  ;;  %v8637_v0 = vld [vmem:[#allocation2 + $0x40] sm:$0xff]  ;;  %v6528_v23 = vld [vmem:[%s7151_s5 + $0x88] sm:$0xf] }
 0x206   : > { %6378 = vmatmul.msk.bf16.gmra.mxu1 %vm959_vm8, %v8529_v3  ;;  %6617 = vmatmul.msk.bf16.gmra.mxu3 %vm959_vm8, %v8542_v41  ;;  %v4180_v3 = vshll.u32 %v6524_v27, 16 }
 0x207   : > { %v4193_v59 = vor.u32 %v4192_v16, %v4188_v43  ;;  %v6527_v16 = vld [vmem:[%s7151_s5 + $0x84] sm:$0xf] }
 0x208   : > { %v4182_v41 = vrot.slane %v4180_v3, 5  ;;  %v6661_v3 = vld [vmem:[%s7151_s5 + $0x7c] sm:$0xf] }
 0x209   : > { %v2187_v18 = vpop.f32.mrf.mxu3  ;;  %v4194_v12 = vrot.slane %v4193_v59, 4  ;;  %v4208_v59 = vshrl.u32 %v6527_v16, 16 }
 0x20a   : > { %v1836_v51 = vpop.f32.mrf.mxu2  ;;  %v8624_v63 = vld [vmem:[#allocation2 + $0x38] sm:$0xff]  ;;  %v2228_v57 = vadd.f32 %v2187_v18, %v1875_v7  ;;  %v4183_v32 = vor.u32 %v4182_v41, %v4179_v4  ;;  %v9177_v7 = vld [vmem:[#allocation11_spill] sm:$0xff] }
 0x20b   : > { %v1876_v20 = vadd.f32 %v1836_v51, %v1309_v62  ;;  %v1313_v14 = vpop.f32.mrf.mxu1  ;;  %4841 = vst.msk [vmem:[#allocation2 + $0x3c] sm:$0xf] %vm191_vm1, %v4837_v54  ;;  %v1312_v30 = vadd.f32 %v1311_v29, %v9177_v7  ;;  %v4199_v54 = vsel %vm7169_vm6, %v4194_v12, %v4198_v25  ;;  %v4850_v62 = vrot.slane %v6661_v3, 5  ;;  %v6660_v4 = vld [vmem:[%s7151_s5 + $0x78] sm:$0xe] }
 0x20c   : > { %v2968_v46 = vpop.f32.mrf.mxu0  ;;  %v4184_v27 = vrot.slane %v4183_v32, 4  ;;  %4203 = vst.msk [vmem:[#allocation2 + $0x44] sm:$0xf] %vm191_vm1, %v4199_v54  ;;  %v6662_v51 = vld [vmem:[%s7151_s5 + $0x80] sm:$0x1]  ;;  %v6663_v21 = vrot.slane %v6660_v4, 9 }
 0x20d   : > { %v8631_v28 = vadd.f32 %v2968_v46, %v2228_v57  ;;  %v4852_v41 = vrot.slane %v4850_v62, 4  ;;  %v4853_v18 = vrot.slane %v6662_v51, 5  ;;  %v4211_v46 = vshll.u32 %v6527_v16, 16  ;;  %v6529_v3 = vld [vmem:[%s7151_s5 + $0x8c] sm:$0x1] }
 0x20e   : > { %v4189_v19 = vsel %vm7169_vm6, %v4184_v27, %v4188_v43  ;;  %v4851_v57 = vsel %vm7179_vm7, %v6663_v21, %v4850_v62  ;;  %v4217_v27 = vshll.u32 %v6528_v23, 16  ;;  %v4221_v12 = vshrl.u32 %v6528_v23, 16 }
 0x20f   : > { %6490 = vmatmul.msk.bf16.gmra.mxu2 %vm959_vm8, %v8555_v31  ;;  %6761 = vmatmul.msk.bf16.gmra.mxu0 %vm959_vm8, %v6910_v6  ;;  %4202 = vst.msk [vmem:[#allocation2 + $0x40] sm:$0xf] %vm191_vm1, %v4189_v19  ;;  %v4854_v32 = vsel %vm7179_vm7, %v4852_v41, %v4853_v18  ;;  %v6406_v6 = vld [vmem:[%s7151_s5 + $0x84] sm:$0xf]  ;;  %v9178_v19 = vld [vmem:[#allocation13_spill] sm:$0xff]  ;;  %v4210_v54 = vrot.slane %v4208_v59, 4 }
 0x210   : > { %4857 = vst.msk [vmem:[#allocation2 + $0x40] sm:$0xf] %vm191_vm1, %v4851_v57  ;;  %v1314_v7 = vadd.f32 %v1313_v14, %v9178_v19  ;;  %v4223_v51 = vrot.slane %v4221_v12, 4  ;;  %v4227_v21 = vshll.u32 %v6529_v3, 16  ;;  %v6911_v18 = vld [vmem:[#allocation2 + $0x30] sm:$0xff] }
 0x211   : > { %v2189_v13 = vpop.f32.mrf.mxu3  ;;  %v6665_v12 = vld [vmem:[%s7151_s5 + $0x88] sm:$0xf]  ;;  %v6664_v3 = vld [vmem:[%s7151_s5 + $0x84] sm:$0xe] }
 0x212   : > { %v1839_v31 = vpop.f32.mrf.mxu2  ;;  %v2229_v29 = vadd.f32 %v2189_v13, %v1876_v20  ;;  %v6407_v20 = vld [vmem:[%s7151_s5 + $0x88] sm:$0xf]  ;;  %v4213_v13 = vrot.slane %v4211_v46, 5  ;;  %v4229_v16 = vrot.slane %v4227_v21, 5 }
 0x213   : > { %v1877_v39 = vadd.f32 %v1839_v31, %v1312_v30  ;;  %v1316_v17 = vpop.f32.mrf.mxu1 }
 0x214   : > { %v2970_v43 = vpop.f32.mrf.mxu0  ;;  %v4214_v14 = vor.u32 %v4213_v13, %v4210_v54  ;;  %v6666_v13 = vld [vmem:[%s7151_s5 + $0x8c] sm:$0x1] }
 0x215   : > { %v8656_v25 = vadd.f32 %v2970_v43, %v2229_v29 }
 0x216   : > { %6379 = vmatmul.msk.bf16.gmra.mxu1 %vm959_vm8, %v8579_v42  ;;  %6618 = vmatmul.msk.bf16.gmra.mxu3 %vm959_vm8, %v8582_v50  ;;  %v8661_v42 = vld [vmem:[#allocation2 + $0x48] sm:$0xff]  ;;  %v4219_v50 = vrot.slane %v4217_v27, 5  ;;  %v4215_v57 = vrot.slane %v4214_v14, 4  ;;  %v6531_v14 = vld [vmem:[%s7151_s5 + $0x94] sm:$0xf] }
 0x217   : > { %v8664_v30 = vld [vmem:[#allocation2 + $0x40] sm:$0xff]  ;;  %3610 = vst.msk [vmem:[#allocation2 + $0x48] sm:$0xf] %vm191_vm1, %v6406_v6 }
 0x218   : > { %4858 = vst.msk [vmem:[#allocation2 + $0x44] sm:$0xf] %vm191_vm1, %v4854_v32  ;;  %v4224_v43 = vor.u32 %v4223_v51, %v4219_v50  ;;  %v4870_v51 = vrot.slane %v6666_v13, 5 }
 0x219   : > { %v2192_v62 = vpop.f32.mrf.mxu3  ;;  %3611 = vst.msk [vmem:[#allocation2 + $0x4c] sm:$0xf] %vm191_vm1, %v6407_v20  ;;  %v4220_v20 = vsel %vm7169_vm6, %v4215_v57, %v4219_v50  ;;  %v6667_v50 = vrot.slane %v6664_v3, 9 }
 0x21a   : > { %v1841_v31 = vpop.f32.mrf.mxu2  ;;  %v2230_v41 = vadd.f32 %v2192_v62, %v1877_v39  ;;  %v4225_v32 = vrot.slane %v4224_v43, 4  ;;  %v9179_v39 = vld [vmem:[#allocation16_spill] sm:$0xff]  ;;  %4233 = vst.msk [vmem:[#allocation2 + $0x48] sm:$0xf] %vm191_vm1, %v4220_v20  ;;  %v4248_v20 = vshll.u32 %v6531_v14, 16 }
 0x21b   : > { %v1878_v29 = vadd.f32 %v1841_v31, %v1314_v7  ;;  %v1318_v4 = vpop.f32.mrf.mxu1  ;;  %v1317_v59 = vadd.f32 %v1316_v17, %v9179_v39  ;;  %v4867_v17 = vrot.slane %v6665_v12, 5  ;;  %v8695_v43 = vld [vmem:[#allocation2 + $0x50] sm:$0xff]  ;;  %v4252_v39 = vshrl.u32 %v6531_v14, 16 }
 0x21c   : > { %v2973_v23 = vpop.f32.mrf.mxu0  ;;  %v4230_v46 = vsel %vm7169_vm6, %v4225_v32, %v4229_v16  ;;  %v6408_v16 = vld [vmem:[%s7151_s5 + $0x90] sm:$0xf]  ;;  %v4250_v13 = vrot.slane %v4248_v20, 5 }
 0x21d   : > { %v8672_v6 = vadd.f32 %v2973_v23, %v2230_v41  ;;  %v4869_v62 = vrot.slane %v4867_v17, 4  ;;  %v6530_v41 = vld [vmem:[%s7151_s5 + $0x90] sm:$0xf]  ;;  %v6409_v23 = vld [vmem:[%s7151_s5 + $0x94] sm:$0xf] }
 0x21e   : > { %3614 = vst.msk [vmem:[#allocation2 + $0x50] sm:$0xf] %vm191_vm1, %v6408_v16 }
 0x21f   : > { %6491 = vmatmul.msk.bf16.gmra.mxu2 %vm959_vm8, %v8599_v56  ;;  %6762 = vmatmul.msk.bf16.gmra.mxu0 %vm959_vm8, %v6911_v18  ;;  %v4868_v18 = vsel %vm7179_vm7, %v6667_v50, %v4867_v17  ;;  %v4871_v32 = vsel %vm7179_vm7, %v4869_v62, %v4870_v51  ;;  %3615 = vst.msk [vmem:[#allocation2 + $0x54] sm:$0xf] %vm191_vm1, %v6409_v23  ;;  %v4254_v50 = vrot.slane %v4252_v39, 4  ;;  %v6912_v51 = vld [vmem:[#allocation2 + $0x38] sm:$0xff] }
 0x221   : > { %v8681_v56 = vld [vmem:[#allocation2 + $0x48] sm:$0xff]  ;;  %v2194_v19 = vpop.f32.mrf.mxu3 }
 0x222   : > { %v1844_v27 = vpop.f32.mrf.mxu2  ;;  %4234 = vst.msk [vmem:[#allocation2 + $0x4c] sm:$0xf] %vm191_vm1, %v4230_v46  ;;  %v2231_v31 = vadd.f32 %v2194_v19, %v1878_v29  ;;  %v4239_v29 = vshrl.u32 %v6530_v41, 16  ;;  %v6532_v19 = vld [vmem:[%s7151_s5 + $0x98] sm:$0x1] }
 0x223   : > { %v1879_v7 = vadd.f32 %v1844_v27, %v1317_v59  ;;  %v8684_v54 = vpop.f32.mrf.mxu1  ;;  %4874 = vst.msk [vmem:[#allocation2 + $0x48] sm:$0xf] %vm191_vm1, %v4868_v18  ;;  %v1319_v59 = vadd.f32 %v1318_v4, %v8037_v5  ;;  %v4258_v62 = vshll.u32 %v6532_v19, 16  ;;  %v6670_v19 = vld [vmem:[%s7151_s5 + $0x98] sm:$0x1] }
 0x224   : > { %v2975_v21 = vpop.f32.mrf.mxu0  ;;  %v4241_v46 = vrot.slane %v4239_v29, 4 }
 0x225   : > { %v8699_v57 = vadd.f32 %v2975_v21, %v2231_v31  ;;  %v4255_v21 = vor.u32 %v4254_v50, %v4250_v13 }
 0x226   : > { %6380 = vmatmul.msk.bf16.gmra.mxu1 %vm959_vm8, %v8611_v60  ;;  %6619 = vmatmul.msk.bf16.gmra.mxu3 %vm959_vm8, %v8624_v63  ;;  %v4242_v60 = vshll.u32 %v6530_v41, 16  ;;  %v4260_v41 = vrot.slane %v4258_v62, 5  ;;  %v9181_v62 = vld [vmem:[#allocation17_spill] sm:$0xff] }
 0x227   : > { %v4256_v16 = vrot.slane %v4255_v21, 4 }
 0x228   : > { %v4244_v63 = vrot.slane %v4242_v60, 5 }
 0x229   : > { %v2197_v17 = vpop.f32.mrf.mxu3 }
 0x22a   : > { %v1846_v27 = vpop.f32.mrf.mxu2  ;;  %v8708_v12 = vld [vmem:[#allocation2 + $0x48] sm:$0xff]  ;;  %v2232_v5 = vadd.f32 %v2197_v17, %v1879_v7  ;;  %v4245_v4 = vor.u32 %v4244_v63, %v4241_v46  ;;  %v8722_v7 = vld [vmem:[#allocation2 + $0x50] sm:$0xff] }
 0x22b   : > { %v1880_v31 = vadd.f32 %v1846_v27, %v1319_v59  ;;  %v8712_v3 = vpop.f32.mrf.mxu1  ;;  %4875 = vst.msk [vmem:[#allocation2 + $0x4c] sm:$0xf] %vm191_vm1, %v4871_v32  ;;  %v4261_v32 = vsel %vm7169_vm6, %v4256_v16, %v4260_v41  ;;  %v6668_v27 = vld [vmem:[%s7151_s5 + $0x90] sm:$0xe]  ;;  %v6410_v41 = vld [vmem:[%s7151_s5 + $0x9c] sm:$0xf] }
 0x22c   : > { %v2978_v14 = vpop.f32.mrf.mxu0  ;;  %v4246_v18 = vrot.slane %v4245_v4, 4  ;;  %4265 = vst.msk [vmem:[#allocation2 + $0x54] sm:$0xf] %vm191_vm1, %v4261_v32  ;;  %v6671_v63 = vrot.slane %v6668_v27, 9  ;;  %v6533_v4 = vld [vmem:[%s7151_s5 + $0x9c] sm:$0xf] }
 0x22d   : > { %v8717_v23 = vadd.f32 %v2978_v14, %v2232_v5  ;;  %v3540_v5 = vadd.f32 %v8684_v54, %v9181_v62  ;;  %v6411_v14 = vld [vmem:[%s7151_s5 + $0xa0] sm:$0xf] }
 0x22e   : > { %v4251_v29 = vsel %vm7169_vm6, %v4246_v18, %v4250_v13  ;;  %v4887_v13 = vrot.slane %v6670_v19, 5  ;;  %v4270_v18 = vshrl.u32 %v6533_v4, 16 }
 0x22f   : > { %6492 = vmatmul.msk.bf16.gmra.mxu2 %vm959_vm8, %v8637_v0  ;;  %9180 = vst [vmem:[#allocation10_spill] sm:$0xff] %v8717_v23  ;;  %6763 = vmatmul.msk.bf16.gmra.mxu0 %vm959_vm8, %v6912_v51  ;;  %v6669_v0 = vld [vmem:[%s7151_s5 + $0x94] sm:$0xf]  ;;  %v6534_v51 = vld [vmem:[%s7151_s5 + $0xa0] sm:$0xf] }
 0x230   : > { %4264 = vst.msk [vmem:[#allocation2 + $0x50] sm:$0xf] %vm191_vm1, %v4251_v29  ;;  %v4884_v59 = vrot.slane %v6669_v0, 5  ;;  %v4273_v29 = vshll.u32 %v6533_v4, 16  ;;  %v4279_v32 = vshll.u32 %v6534_v51, 16  ;;  %v4283_v0 = vshrl.u32 %v6534_v51, 16 }
 0x231   : > { %v2199_v20 = vpop.f32.mrf.mxu3  ;;  %v8763_v4 = vld [vmem:[%s9149_s2] ss:$0 sm:$0xff] }
 0x232   : > { %v3813_v60 = vpop.f32.mrf.mxu2  ;;  %v2233_v46 = vadd.f32 %v2199_v20, %v1880_v31  ;;  %v4886_v17 = vrot.slane %v4884_v59, 4  ;;  %v4885_v21 = vsel %vm7179_vm7, %v6671_v63, %v4884_v59  ;;  %v4272_v59 = vrot.slane %v4270_v18, 4 }
 0x233   : > { %v8729_v39 = vpop.f32.mrf.mxu1  ;;  %v3893_v54 = vadd.f32 %v3813_v60, %v3540_v5  ;;  %4891 = vst.msk [vmem:[#allocation2 + $0x50] sm:$0xf] %vm191_vm1, %v4885_v21  ;;  %v4275_v19 = vrot.slane %v4273_v29, 5  ;;  %v6913_v5 = vld [vmem:[#allocation2 + $0x40] sm:$0xff] }
 0x234   : > { %v2980_v50 = vpop.f32.mrf.mxu0  ;;  %v4888_v31 = vsel %vm7179_vm7, %v4886_v17, %v4887_v13  ;;  %v4285_v17 = vrot.slane %v4283_v0, 4 }
 0x235   : > { %v8745_v16 = vadd.f32 %v2980_v50, %v2233_v46  ;;  %v6535_v46 = vld [vmem:[%s7151_s5 + $0xa4] sm:$0x1]  ;;  %v4276_v62 = vor.u32 %v4275_v19, %v4272_v59 }
 0x236   : > { %6381 = vmatmul.msk.bf16.gmra.mxu1 %vm959_vm8, %v8661_v42  ;;  %6620 = vmatmul.msk.bf16.gmra.mxu3 %vm959_vm8, %v8664_v30  ;;  %v8750_v42 = vld [vmem:[#allocation2 + $0x58] sm:$0xff]  ;;  %v4281_v30 = vrot.slane %v4279_v32, 5  ;;  %v4289_v13 = vshll.u32 %v6535_v46, 16 }
 0x237   : > { %9182 = vst [vmem:[#allocation12_spill] sm:$0xff] %v8745_v16  ;;  %v4277_v18 = vrot.slane %v4276_v62, 4 }
 0x238   : > { %3618 = vst.msk [vmem:[#allocation2 + $0x58] sm:$0xf] %vm191_vm1, %v6410_v41  ;;  %v4286_v51 = vor.u32 %v4285_v17, %v4281_v30  ;;  %v4291_v21 = vrot.slane %v4289_v13, 5  ;;  %v3541_v41 = vadd.f32 %v8712_v3, %v8093_v58  ;;  %v6673_v3 = vld [vmem:[%s7151_s5 + $0xa0] sm:$0xf]  ;;  %v3542_v17 = vadd.f32 %v8729_v39, %v8115_v47 }
 0x239   : > { %v4594_v60 = vpop.f32.mrf.mxu3  ;;  %3619 = vst.msk [vmem:[#allocation2 + $0x5c] sm:$0xf] %vm191_vm1, %v6411_v14  ;;  %v4282_v32 = vsel %vm7169_vm6, %v4277_v18, %v4281_v30  ;;  %v4901_v30 = vrot.slane %v6673_v3, 5  ;;  %v6672_v13 = vld [vmem:[%s7151_s5 + $0x9c] sm:$0xe] }
 0x23a   : > { %v8752_v20 = vld [vmem:[#allocation2 + $0x50] sm:$0xff]  ;;  %v3815_v27 = vpop.f32.mrf.mxu2  ;;  %v4674_v50 = vadd.f32 %v4594_v60, %v3893_v54  ;;  %v4287_v54 = vrot.slane %v4286_v51, 4  ;;  %4295 = vst.msk [vmem:[#allocation2 + $0x58] sm:$0xf] %vm191_vm1, %v4282_v32  ;;  %v6536_v18 = vld [vmem:[%s7151_s5 + $0xa8] sm:$0xf] }
 0x23b   : > { %4892 = vst.msk [vmem:[#allocation2 + $0x54] sm:$0xf] %vm191_vm1, %v4888_v31  ;;  %v8757_v63 = vpop.f32.mrf.mxu1  ;;  %v3894_v29 = vadd.f32 %v3815_v27, %v3541_v41  ;;  %v4903_v51 = vrot.slane %v4901_v30, 4  ;;  %v6412_v47 = vld [vmem:[%s7151_s5 + $0xa8] sm:$0xf]  ;;  %v4301_v39 = vshrl.u32 %v6536_v18, 16 }
 0x23c   : > { %v5151_v31 = vpop.f32.mrf.mxu0  ;;  %v4292_v59 = vsel %vm7169_vm6, %v4287_v54, %v4291_v21 }
 0x23d   : > { %v5231_v14 = vadd.f32 %v5151_v31, %v4674_v50  ;;  %v6674_v50 = vld [vmem:[%s7151_s5 + $0xa4] sm:$0x1] }
 0x23e   : > { %v4904_v21 = vrot.slane %v6674_v50, 5 }
 0x23f   : > { %6493 = vmatmul.msk.bf16.gmra.mxu2 %vm959_vm8, %v8681_v56  ;;  %6764 = vmatmul.msk.bf16.gmra.mxu0 %vm959_vm8, %v6913_v5  ;;  %v5267_v0 = vadd.f32 %v8763_v4, %v5231_v14  ;;  %v6675_v5 = vrot.slane %v6672_v13, 9  ;;  %v6537_v14 = vld [vmem:[%s7151_s5 + $0xac] sm:$0xf] }
 0x241   : > { %v8779_v56 = vld [vmem:[#allocation2 + $0x58] sm:$0xff]  ;;  %vm5299_vm9 = vcmp.ge.f32.partialorder %v5267_v0, 0.0  ;;  %v5331_v27 = vmul.f32 0.2, %v5267_v0  ;;  %v4596_v46 = vpop.f32.mrf.mxu3  ;;  %v4902_v32 = vsel %vm7179_vm7, %v6675_v5, %v4901_v30  ;;  %v4303_v30 = vrot.slane %v4301_v39, 4 }
 0x242   : > { %v3818_v58 = vpop.f32.mrf.mxu2  ;;  %4296 = vst.msk [vmem:[#allocation2 + $0x5c] sm:$0xf] %vm191_vm1, %v4292_v59  ;;  %v4675_v60 = vadd.f32 %v4596_v46, %v3894_v29  ;;  %v4310_v59 = vshll.u32 %v6537_v14, 16  ;;  %v6413_v46 = vld [vmem:[%s7151_s5 + $0xac] sm:$0xf]  ;;  %v3543_v39 = vadd.f32 %v8757_v63, %v8137_v34 }
 0x243   : > { %v8782_v19 = vpop.f32.mrf.mxu1  ;;  %v5363_v62 = vsel %vm5299_vm9, %v5267_v0, %v5331_v27  ;;  %v3895_v29 = vadd.f32 %v3818_v58, %v3542_v17  ;;  %v4304_v0 = vshll.u32 %v6536_v18, 16  ;;  %v4314_v58 = vshrl.u32 %v6537_v14, 16  ;;  %4908 = vst.msk [vmem:[#allocation2 + $0x58] sm:$0xf] %vm191_vm1, %v4902_v32  ;;  %v8806_v27 = vld [vmem:[#allocation2 + $0x60] sm:$0xff]  ;;  %v6914_v14 = vld [vmem:[#allocation2 + $0x48] sm:$0xff] }
 0x244   : > { %v5395_v31 = vpack.c.bf16 %v5363_v62, %v5363_v62  ;;  %v5153_v41 = vpop.f32.mrf.mxu0  ;;  %3622 = vst.msk [vmem:[#allocation2 + $0x60] sm:$0xf] %vm191_vm1, %v6412_v47 }
 0x245   : > { %v5232_v54 = vadd.f32 %v5153_v41, %v4675_v60  ;;  %v4306_v13 = vrot.slane %v4304_v0, 5  ;;  %3623 = vst.msk [vmem:[#allocation2 + $0x64] sm:$0xf] %vm191_vm1, %v6413_v46  ;;  %v4316_v41 = vrot.slane %v4314_v58, 4 }
 0x246   : > { %6382 = vmatmul.msk.bf16.gmra.mxu1 %vm959_vm8, %v8695_v43  ;;  %5428 = vst.msk [vmem:[%s8796_s10] sm:$0xf] %vm5427_vm10, %v5395_v31  ;;  %6621 = vmatmul.msk.bf16.gmra.mxu3 %vm959_vm8, %v8708_v12  ;;  %v4905_v43 = vsel %vm7179_vm7, %v4903_v51, %v4904_v21  ;;  %v6538_v12 = vld [vmem:[%s7151_s5 + $0xb0] sm:$0x1]  ;;  %v4312_v51 = vrot.slane %v4310_v59, 5 }
 0x247   : > { %v5268_v3 = vadd.f32 %v8763_v4, %v5232_v54  ;;  %v4307_v31 = vor.u32 %v4306_v13, %v4303_v30  ;;  %v4320_v54 = vshll.u32 %v6538_v12, 16 }
 0x248   : > { %v4317_v16 = vor.u32 %v4316_v41, %v4312_v51 }
 0x249   : > { %vm5300_vm11 = vcmp.ge.f32.partialorder %v5268_v3, 0.0  ;;  %v5332_v50 = vmul.f32 0.2, %v5268_v3  ;;  %v4599_v62 = vpop.f32.mrf.mxu3  ;;  %v4308_v0 = vrot.slane %v4307_v31, 4 }
 0x24a   : > { %v3820_v60 = vpop.f32.mrf.mxu2  ;;  %v8809_v17 = vld [vmem:[#allocation2 + $0x58] sm:$0xff]  ;;  %v4676_v21 = vadd.f32 %v4599_v62, %v3895_v29  ;;  %v4322_v29 = vrot.slane %v4320_v54, 5  ;;  %v4318_v58 = vrot.slane %v4317_v16, 4  ;;  %v6539_v54 = vld [vmem:[%s7151_s5 + $0xb4] sm:$0xf] }
 0x24b   : > { %v8813_v5 = vpop.f32.mrf.mxu1  ;;  %4909 = vst.msk [vmem:[#allocation2 + $0x5c] sm:$0xf] %vm191_vm1, %v4905_v43  ;;  %v5364_v18 = vsel %vm5300_vm11, %v5268_v3, %v5332_v50  ;;  %v3896_v43 = vadd.f32 %v3820_v60, %v3543_v39  ;;  %v4313_v59 = vsel %vm7169_vm6, %v4308_v0, %v4312_v51  ;;  %v6677_v3 = vld [vmem:[%s7151_s5 + $0xac] sm:$0xf]  ;;  %v6678_v50 = vld [vmem:[%s7151_s5 + $0xb0] sm:$0x1] }
 0x24c   : > { %v5396_v32 = vpack.c.bf16 %v5364_v18, %v5364_v18  ;;  %v5156_v47 = vpop.f32.mrf.mxu0  ;;  %4326 = vst.msk [vmem:[#allocation2 + $0x60] sm:$0xf] %vm191_vm1, %v4313_v59  ;;  %v4918_v12 = vrot.slane %v6677_v3, 5  ;;  %v4921_v31 = vrot.slane %v6678_v50, 5  ;;  %v6414_v0 = vld [vmem:[%s7151_s5 + $0xb4] sm:$0xf] }
 0x24d   : > { %v5233_v23 = vadd.f32 %v5156_v47, %v4676_v21 }
 0x24e   : > { %5429 = vst.msk [vmem:[%s8796_s10 + $0x4] sm:$0xf] %vm5427_vm10, %v5396_v32  ;;  %v4920_v21 = vrot.slane %v4918_v12, 4  ;;  %v6540_v32 = vld [vmem:[%s7151_s5 + $0xb8] sm:$0xf] }
 0x24f   : > { %6494 = vmatmul.msk.bf16.gmra.mxu2 %vm959_vm8, %v8722_v7  ;;  %6765 = vmatmul.msk.bf16.gmra.mxu0 %vm959_vm8, %v6914_v14  ;;  %v5269_v34 = vadd.f32 %v8763_v4, %v5233_v23  ;;  %v4323_v7 = vsel %vm7169_vm6, %v4318_v58, %v4322_v29  ;;  %v6676_v23 = vld [vmem:[%s7151_s5 + $0xa8] sm:$0xe]  ;;  %v3544_v14 = vadd.f32 %v8782_v19, %v8158_v48  ;;  %v6415_v29 = vld [vmem:[%s7151_s5 + $0xb8] sm:$0xf]  ;;  %v4335_v19 = vshll.u32 %v6539_v54, 16 }
 0x250   : > { %v6679_v51 = vrot.slane %v6676_v23, 9  ;;  %v8852_v48 = vld [vmem:[#allocation2 + $0x68] sm:$0xff]  ;;  %v4345_v58 = vshrl.u32 %v6540_v32, 16 }
 0x251   : > { %vm5301_vm12 = vcmp.ge.f32.partialorder %v5269_v34, 0.0  ;;  %v5333_v46 = vmul.f32 0.2, %v5269_v34  ;;  %v4601_v30 = vpop.f32.mrf.mxu3  ;;  %3626 = vst.msk [vmem:[#allocation2 + $0x68] sm:$0xf] %vm191_vm1, %v6414_v0 }
 0x252   : > { %v3823_v63 = vpop.f32.mrf.mxu2  ;;  %v4677_v13 = vadd.f32 %v4601_v30, %v3896_v43  ;;  %v4919_v39 = vsel %vm7179_vm7, %v6679_v51, %v4918_v12  ;;  %v4332_v43 = vshrl.u32 %v6539_v54, 16  ;;  %v6541_v30 = vld [vmem:[%s7151_s5 + $0xbc] sm:$0x1]  ;;  %v4337_v12 = vrot.slane %v4335_v19, 5  ;;  %3627 = vst.msk [vmem:[#allocation2 + $0x6c] sm:$0xf] %vm191_vm1, %v6415_v29 }
 0x253   : > { %v8831_v60 = vpop.f32.mrf.mxu1  ;;  %v8833_v16 = vld [vmem:[#allocation2 + $0x60] sm:$0xff]  ;;  %v5365_v62 = vsel %vm5301_vm12, %v5269_v34, %v5333_v46  ;;  %v3897_v59 = vadd.f32 %v3823_v63, %v3544_v14 }
 0x254   : > { %4327 = vst.msk [vmem:[#allocation2 + $0x64] sm:$0xf] %vm191_vm1, %v4323_v7  ;;  %v5397_v41 = vpack.c.bf16 %v5365_v62, %v5365_v62  ;;  %v5158_v18 = vpop.f32.mrf.mxu0  ;;  %v4922_v7 = vsel %vm7179_vm7, %v4920_v21, %v4921_v31  ;;  %v4334_v3 = vrot.slane %v4332_v43, 4  ;;  %v4347_v21 = vrot.slane %v4345_v58, 4  ;;  %v6681_v58 = vld [vmem:[%s7151_s5 + $0xb8] sm:$0xf] }
 0x255   : > { %v5234_v47 = vadd.f32 %v5158_v18, %v4677_v13  ;;  %4925 = vst.msk [vmem:[#allocation2 + $0x60] sm:$0xf] %vm191_vm1, %v4919_v39  ;;  %v4351_v18 = vshll.u32 %v6541_v30, 16  ;;  %v6680_v30 = vld [vmem:[%s7151_s5 + $0xb4] sm:$0xe] }
 0x256   : > { %6383 = vmatmul.msk.bf16.gmra.mxu1 %vm959_vm8, %v8750_v42  ;;  %5430 = vst.msk [vmem:[%s8796_s10 + $0x8] sm:$0xf] %vm5427_vm10, %v5397_v41  ;;  %6622 = vmatmul.msk.bf16.gmra.mxu3 %vm959_vm8, %v8752_v20  ;;  %v4341_v42 = vshll.u32 %v6540_v32, 16  ;;  %v4338_v51 = vor.u32 %v4337_v12, %v4334_v3  ;;  %v6915_v41 = vld [vmem:[#allocation2 + $0x50] sm:$0xff]  ;;  %v3545_v32 = vadd.f32 %v8813_v5, %v8179_v2  ;;  %v6682_v12 = vld [vmem:[%s7151_s5 + $0xbc] sm:$0x1] }
 0x257   : > { %v5270_v34 = vadd.f32 %v8763_v4, %v5234_v47  ;;  %v4353_v29 = vrot.slane %v4351_v18, 5  ;;  %v6542_v18 = vld [vmem:[%s7151_s5 + $0xc0] sm:$0xf] }
 0x258   : > { %v4343_v20 = vrot.slane %v4341_v42, 5  ;;  %v4339_v47 = vrot.slane %v4338_v51, 4  ;;  %v4938_v51 = vrot.slane %v6682_v12, 5 }
 0x259   : > { %vm5302_vm13 = vcmp.ge.f32.partialorder %v5270_v34, 0.0  ;;  %v5334_v63 = vmul.f32 0.2, %v5270_v34  ;;  %v4604_v13 = vpop.f32.mrf.mxu3 }
 0x25a   : > { %v3825_v46 = vpop.f32.mrf.mxu2  ;;  %v4678_v62 = vadd.f32 %v4604_v13, %v3897_v59  ;;  %v4348_v39 = vor.u32 %v4347_v21, %v4343_v20  ;;  %v4344_v59 = vsel %vm7169_vm6, %v4339_v47, %v4343_v20  ;;  %v4935_v20 = vrot.slane %v6681_v58, 5 }
 0x25b   : > { %v8860_v23 = vpop.f32.mrf.mxu1  ;;  %v5366_v31 = vsel %vm5302_vm13, %v5270_v34, %v5334_v63  ;;  %v3898_v43 = vadd.f32 %v3825_v46, %v3545_v32  ;;  %4357 = vst.msk [vmem:[#allocation2 + $0x68] sm:$0xf] %vm191_vm1, %v4344_v59  ;;  %v3546_v13 = vadd.f32 %v8831_v60, %v8199_v36  ;;  %v8904_v59 = vld [vmem:[#allocation2 + $0x70] sm:$0xff] }
 0x25c   : > { %v8862_v50 = vld [vmem:[#allocation2 + $0x60] sm:$0xff]  ;;  %v5398_v14 = vpack.c.bf16 %v5366_v31, %v5366_v31  ;;  %v5161_v54 = vpop.f32.mrf.mxu0  ;;  %v4349_v19 = vrot.slane %v4348_v39, 4 }
 0x25d   : > { %4926 = vst.msk [vmem:[#allocation2 + $0x64] sm:$0xf] %vm191_vm1, %v4922_v7  ;;  %v5235_v0 = vadd.f32 %v5161_v54, %v4678_v62  ;;  %v6683_v62 = vrot.slane %v6680_v30, 9  ;;  %v6416_v39 = vld [vmem:[%s7151_s5 + $0xc0] sm:$0xf] }
 0x25e   : > { %5431 = vst.msk [vmem:[%s8796_s10 + $0xc] sm:$0xf] %vm5427_vm10, %v5398_v14  ;;  %v6543_v14 = vld [vmem:[%s7151_s5 + $0xc4] sm:$0xf] }
 0x25f   : > { %6495 = vmatmul.msk.bf16.gmra.mxu2 %vm959_vm8, %v8779_v56  ;;  %6766 = vmatmul.msk.bf16.gmra.mxu0 %vm959_vm8, %v6915_v41  ;;  %v5271_v2 = vadd.f32 %v8763_v4, %v5235_v0  ;;  %v4354_v56 = vsel %vm7169_vm6, %v4349_v19, %v4353_v29  ;;  %v4937_v41 = vrot.slane %v4935_v20, 4  ;;  %v4936_v47 = vsel %vm7179_vm7, %v6683_v62, %v4935_v20  ;;  %v6417_v19 = vld [vmem:[%s7151_s5 + $0xc4] sm:$0xf]  ;;  %v6916_v62 = vld [vmem:[#allocation2 + $0x58] sm:$0xff] }
 0x260   : > { %v4363_v0 = vshrl.u32 %v6542_v18, 16  ;;  %v4372_v60 = vshll.u32 %v6543_v14, 16  ;;  %v4376_v29 = vshrl.u32 %v6543_v14, 16  ;;  %3630 = vst.msk [vmem:[#allocation2 + $0x70] sm:$0xf] %vm191_vm1, %v6416_v39 }
 0x261   : > { %vm5303_vm14 = vcmp.ge.f32.partialorder %v5271_v2, 0.0  ;;  %v5335_v34 = vmul.f32 0.2, %v5271_v2  ;;  %v4606_v7 = vpop.f32.mrf.mxu3  ;;  %v4939_v36 = vsel %vm7179_vm7, %v4937_v41, %v4938_v51  ;;  %3631 = vst.msk [vmem:[#allocation2 + $0x74] sm:$0xf] %vm191_vm1, %v6417_v19  ;;  %v3547_v41 = vadd.f32 %v8860_v23, %v8221_v52 }
 0x262   : > { %v3828_v5 = vpop.f32.mrf.mxu2  ;;  %v8877_v42 = vld [vmem:[#allocation2 + $0x68] sm:$0xff]  ;;  %v4679_v46 = vadd.f32 %v4606_v7, %v3898_v43  ;;  %v4374_v30 = vrot.slane %v4372_v60, 5 }
 0x263   : > { %v8882_v3 = vpop.f32.mrf.mxu1  ;;  %4358 = vst.msk [vmem:[#allocation2 + $0x6c] sm:$0xf] %vm191_vm1, %v4354_v56  ;;  %v5367_v63 = vsel %vm5303_vm14, %v5271_v2, %v5335_v34  ;;  %v3899_v32 = vadd.f32 %v3828_v5, %v3546_v13  ;;  %v4365_v2 = vrot.slane %v4363_v0, 4 }
 0x264   : > { %v5399_v21 = vpack.c.bf16 %v5367_v63, %v5367_v63  ;;  %v5163_v31 = vpop.f32.mrf.mxu0  ;;  %4942 = vst.msk [vmem:[#allocation2 + $0x68] sm:$0xf] %vm191_vm1, %v4936_v47  ;;  %v4378_v63 = vrot.slane %v4376_v29, 4 }
 0x265   : > { %v5236_v54 = vadd.f32 %v5163_v31, %v4679_v46 }
 0x266   : > { %6384 = vmatmul.msk.bf16.gmra.mxu1 %vm959_vm8, %v8806_v27  ;;  %5432 = vst.msk [vmem:[%s8796_s10 + $0x10] sm:$0xf] %vm5427_vm10, %v5399_v21  ;;  %6623 = vmatmul.msk.bf16.gmra.mxu3 %vm959_vm8, %v8809_v17  ;;  %v4366_v27 = vshll.u32 %v6542_v18, 16  ;;  %v6544_v17 = vld [vmem:[%s7151_s5 + $0xc8] sm:$0x1]  ;;  %v4379_v14 = vor.u32 %v4378_v63, %v4374_v30  ;;  %v3548_v63 = vadd.f32 %v8882_v3, %v8242_v22  ;;  %v8950_v22 = vld [vmem:[#allocation2 + $0x78] sm:$0xff] }
 0x267   : > { %v5272_v43 = vadd.f32 %v8763_v4, %v5236_v54  ;;  %v4382_v51 = vshll.u32 %v6544_v17, 16  ;;  %v6686_v17 = vld [vmem:[%s7151_s5 + $0xc8] sm:$0x1] }
 0x268   : > { %v4368_v58 = vrot.slane %v4366_v27, 5  ;;  %v4380_v0 = vrot.slane %v4379_v14, 4 }
 0x269   : > { %vm5304_vm15 = vcmp.ge.f32.partialorder %v5272_v43, 0.0  ;;  %v5336_v34 = vmul.f32 0.2, %v5272_v43  ;;  %v4609_v7 = vpop.f32.mrf.mxu3 }
 0x26a   : > { %v3830_v5 = vpop.f32.mrf.mxu2  ;;  %v4680_v12 = vadd.f32 %v4609_v7, %v3899_v32  ;;  %v4369_v20 = vor.u32 %v4368_v58, %v4365_v2  ;;  %v4384_v32 = vrot.slane %v4382_v51, 5 }
 0x26b   : > { %v8907_v56 = vld [vmem:[#allocation2 + $0x68] sm:$0xff]  ;;  %v8911_v46 = vpop.f32.mrf.mxu1  ;;  %v5368_v13 = vsel %vm5304_vm15, %v5272_v43, %v5336_v34  ;;  %v3900_v47 = vadd.f32 %v3830_v5, %v3547_v41  ;;  %v6684_v5 = vld [vmem:[%s7151_s5 + $0xc0] sm:$0xe]  ;;  %v6419_v41 = vld [vmem:[%s7151_s5 + $0xd0] sm:$0xf] }
 0x26c   : > { %4943 = vst.msk [vmem:[#allocation2 + $0x6c] sm:$0xf] %vm191_vm1, %v4939_v36  ;;  %v5400_v21 = vpack.c.bf16 %v5368_v13, %v5368_v13  ;;  %v5166_v31 = vpop.f32.mrf.mxu0  ;;  %v4370_v18 = vrot.slane %v4369_v20, 4  ;;  %v6685_v36 = vld [vmem:[%s7151_s5 + $0xc4] sm:$0xf]  ;;  %v6687_v34 = vrot.slane %v6684_v5, 9 }
 0x26d   : > { %v5237_v54 = vadd.f32 %v5166_v31, %v4680_v12  ;;  %v4952_v19 = vrot.slane %v6685_v36, 5  ;;  %v6545_v13 = vld [vmem:[%s7151_s5 + $0xcc] sm:$0xf]  ;;  %3639 = vst.msk [vmem:[#allocation2 + $0x7c] sm:$0xf] %vm191_vm1, %v6419_v41 }
 0x26e   : > { %5433 = vst.msk [vmem:[%s8796_s10 + $0x14] sm:$0xf] %vm5427_vm10, %v5400_v21  ;;  %v4375_v39 = vsel %vm7169_vm6, %v4370_v18, %v4374_v30  ;;  %v4955_v30 = vrot.slane %v6686_v17, 5  ;;  %v6418_v31 = vld [vmem:[%s7151_s5 + $0xcc] sm:$0xf]  ;;  %v4394_v18 = vshrl.u32 %v6545_v13, 16 }
 0x26f   : > { %6496 = vmatmul.msk.bf16.gmra.mxu2 %vm959_vm8, %v8833_v16  ;;  %6767 = vmatmul.msk.bf16.gmra.mxu0 %vm959_vm8, %v6916_v62  ;;  %v5273_v52 = vadd.f32 %v8763_v4, %v5237_v54  ;;  %4388 = vst.msk [vmem:[#allocation2 + $0x70] sm:$0xf] %vm191_vm1, %v4375_v39  ;;  %v4385_v16 = vsel %vm7169_vm6, %v4380_v0, %v4384_v32  ;;  %v4954_v7 = vrot.slane %v4952_v19, 4  ;;  %v6546_v62 = vld [vmem:[%s7151_s5 + $0xd0] sm:$0xf]  ;;  %v4397_v3 = vshll.u32 %v6545_v13, 16 }
 0x270   : > { %v4953_v21 = vsel %vm7179_vm7, %v6687_v34, %v4952_v19  ;;  %v4407_v54 = vshrl.u32 %v6546_v62, 16  ;;  %v4396_v39 = vrot.slane %v4394_v18, 4  ;;  %3638 = vst.msk [vmem:[#allocation2 + $0x78] sm:$0xf] %vm191_vm1, %v6418_v31  ;;  %v6689_v18 = vld [vmem:[%s7151_s5 + $0xd0] sm:$0xf] }
 0x271   : > { %vm5305_vm0 = vcmp.ge.f32.partialorder %v5273_v52, 0.0  ;;  %v5337_v27 = vmul.f32 0.2, %v5273_v52  ;;  %v4611_v60 = vpop.f32.mrf.mxu3 }
 0x272   : > { %v3833_v23 = vpop.f32.mrf.mxu2  ;;  %v4681_v2 = vadd.f32 %v4611_v60, %v3900_v47  ;;  %v4956_v47 = vsel %vm7179_vm7, %v4954_v7, %v4955_v30  ;;  %v4409_v5 = vrot.slane %v4407_v54, 4 }
 0x273   : > { %v8929_v29 = vpop.f32.mrf.mxu1  ;;  %v5369_v58 = vsel %vm5305_vm0, %v5273_v52, %v5337_v27  ;;  %v3901_v14 = vadd.f32 %v3833_v23, %v3548_v63  ;;  %v6547_v52 = vld [vmem:[%s7151_s5 + $0xd4] sm:$0x1] }
 0x274   : > { %v5401_v12 = vpack.c.bf16 %v5369_v58, %v5369_v58  ;;  %v5168_v20 = vpop.f32.mrf.mxu0  ;;  %v6917_v58 = vld [vmem:[#allocation2 + $0x60] sm:$0xff]  ;;  %v4413_v34 = vshll.u32 %v6547_v52, 16  ;;  %v3550_v26 = vadd.f32 %v8929_v29, %v8288_v49 }
 0x275   : > { %v5238_v51 = vadd.f32 %v5168_v20, %v4681_v2 }
 0x276   : > { %v8931_v43 = vld [vmem:[#allocation2 + $0x70] sm:$0xff]  ;;  %6385 = vmatmul.msk.bf16.gmra.mxu1 %vm959_vm8, %v8852_v48  ;;  %5434 = vst.msk [vmem:[%s8796_s10 + $0x18] sm:$0xf] %vm5427_vm10, %v5401_v12  ;;  %6624 = vmatmul.msk.bf16.gmra.mxu3 %vm959_vm8, %v8862_v50  ;;  %v4403_v48 = vshll.u32 %v6546_v62, 16  ;;  %v3549_v12 = vadd.f32 %v8911_v46, %v8273_v24  ;;  %v4415_v62 = vrot.slane %v4413_v34, 5 }
 0x277   : > { %4389 = vst.msk [vmem:[#allocation2 + $0x74] sm:$0xf] %vm191_vm1, %v4385_v16  ;;  %v5274_v32 = vadd.f32 %v8763_v4, %v5238_v51  ;;  %v4399_v16 = vrot.slane %v4397_v3, 5 }
 0x278   : > { %4959 = vst.msk [vmem:[#allocation2 + $0x70] sm:$0xf] %vm191_vm1, %v4953_v21  ;;  %v4405_v50 = vrot.slane %v4403_v48, 5 }
 0x279   : > { %vm5306_vm2 = vcmp.ge.f32.partialorder %v5274_v32, 0.0  ;;  %v5338_v23 = vmul.f32 0.2, %v5274_v32  ;;  %v4614_v36 = vpop.f32.mrf.mxu3  ;;  %v4400_v2 = vor.u32 %v4399_v16, %v4396_v39  ;;  %v4969_v39 = vrot.slane %v6689_v18, 5 }
 0x27a   : > { %v3835_v0 = vpop.f32.mrf.mxu2  ;;  %v4682_v19 = vadd.f32 %v4614_v36, %v3901_v14  ;;  %v4410_v63 = vor.u32 %v4409_v5, %v4405_v50 }
 0x27b   : > { %v8958_v27 = vpop.f32.mrf.mxu1  ;;  %v5370_v17 = vsel %vm5306_vm2, %v5274_v32, %v5338_v23  ;;  %v4401_v20 = vrot.slane %v4400_v2, 4  ;;  %v3902_v51 = vadd.f32 %v3835_v0, %v3549_v12  ;;  %v6688_v32 = vld [vmem:[%s7151_s5 + $0xcc] sm:$0xe]  ;;  %v4971_v36 = vrot.slane %v4969_v39, 4 }
 0x27c   : > { %v5402_v7 = vpack.c.bf16 %v5370_v17, %v5370_v17  ;;  %v5171_v30 = vpop.f32.mrf.mxu0  ;;  %v4411_v31 = vrot.slane %v4410_v63, 4  ;;  %v6691_v52 = vrot.slane %v6688_v32, 9  ;;  %v6918_v12 = vld [vmem:[#allocation2 + $0x68] sm:$0xff]  ;;  %v3551_v63 = vadd.f32 %v8958_v27, %v8325_v44 }
 0x27d   : > { %v5239_v13 = vadd.f32 %v5171_v30, %v4682_v19  ;;  %v4406_v21 = vsel %vm7169_vm6, %v4401_v20, %v4405_v50 }
 0x27e   : > { %5435 = vst.msk [vmem:[%s8796_s10 + $0x1c] sm:$0xf] %vm5427_vm10, %v5402_v7  ;;  %v4970_v2 = vsel %vm7179_vm7, %v6691_v52, %v4969_v39 }
 0x27f   : > { %v8960_v60 = vld [vmem:[#allocation2 + $0x70] sm:$0xff]  ;;  %6497 = vmatmul.msk.bf16.gmra.mxu2 %vm959_vm8, %v8877_v42  ;;  %6768 = vmatmul.msk.bf16.gmra.mxu0 %vm959_vm8, %v6917_v58  ;;  %v5275_v24 = vadd.f32 %v8763_v4, %v5239_v13  ;;  %4419 = vst.msk [vmem:[#allocation2 + $0x78] sm:$0xf] %vm191_vm1, %v4406_v21  ;;  %v4416_v42 = vsel %vm7169_vm6, %v4411_v31, %v4415_v62 }
 0x280   : > { %4960 = vst.msk [vmem:[#allocation2 + $0x74] sm:$0xf] %vm191_vm1, %v4956_v47  ;;  %v6690_v47 = vld [vmem:[%s7151_s5 + $0xd4] sm:$0x1] }
 0x281   : > { %vm5307_vm3 = vcmp.ge.f32.partialorder %v5275_v24, 0.0  ;;  %v5339_v14 = vmul.f32 0.2, %v5275_v24  ;;  %v4616_v3 = vpop.f32.mrf.mxu3  ;;  %v4972_v16 = vrot.slane %v6690_v47, 5 }
 0x282   : > { %v3838_v46 = vpop.f32.mrf.mxu2  ;;  %v4683_v54 = vadd.f32 %v4616_v3, %v3902_v51 }
 0x283   : > { %v3490_v48 = vpop.f32.mrf.mxu1  ;;  %v5371_v0 = vsel %vm5307_vm3, %v5275_v24, %v5339_v14  ;;  %v3903_v5 = vadd.f32 %v3838_v46, %v3550_v26  ;;  %v4973_v17 = vsel %vm7179_vm7, %v4971_v36, %v4972_v16 }
 0x284   : > { %v5403_v50 = vpack.c.bf16 %v5371_v0, %v5371_v0  ;;  %v5173_v23 = vpop.f32.mrf.mxu0  ;;  %v3552_v14 = vadd.f32 %v3490_v48, %v8342_v1 }
 0x285   : > { %v5240_v19 = vadd.f32 %v5173_v23, %v4683_v54 }
 0x286   : > { %v8975_v41 = vld [vmem:[#allocation2 + $0x78] sm:$0xff]  ;;  %6386 = vmatmul.msk.bf16.gmra.mxu1 %vm959_vm8, %v8904_v59  ;;  %5436 = vst.msk [vmem:[%s8796_s10 + $0x20] sm:$0xf] %vm5427_vm10, %v5403_v50  ;;  %6625 = vmatmul.msk.bf16.gmra.mxu3 %vm959_vm8, %v8907_v56 }
 0x287   : > { %4420 = vst.msk [vmem:[#allocation2 + $0x7c] sm:$0xf] %vm191_vm1, %v4416_v42  ;;  %v5276_v58 = vadd.f32 %v8763_v4, %v5240_v19  ;;  %v6919_v48 = vld [vmem:[#allocation2 + $0x70] sm:$0xff] }
 0x288   : > { %4976 = vst.msk [vmem:[#allocation2 + $0x78] sm:$0xf] %vm191_vm1, %v4970_v2 }
 0x289   : > { %vm5308_vm4 = vcmp.ge.f32.partialorder %v5276_v58, 0.0  ;;  %v5340_v29 = vmul.f32 0.2, %v5276_v58  ;;  %v4619_v34 = vpop.f32.mrf.mxu3 }
 0x28a   : > { %v3840_v49 = vpop.f32.mrf.mxu2  ;;  %v4684_v30 = vadd.f32 %v4619_v34, %v3903_v5 }
 0x28b   : > { %v3492_v7 = vpop.f32.mrf.mxu1  ;;  %v5372_v56 = vsel %vm5308_vm4, %v5276_v58, %v5340_v29  ;;  %v3904_v62 = vadd.f32 %v3840_v49, %v3551_v63 }
 0x28c   : > { %v5404_v20 = vpack.c.bf16 %v5372_v56, %v5372_v56  ;;  %v5176_v33 = vpop.f32.mrf.mxu0  ;;  %v3553_v50 = vadd.f32 %v3492_v7, %v8368_v9 }
 0x28d   : > { %v5241_v13 = vadd.f32 %v5176_v33, %v4684_v30 }
 0x28e   : > { %5437 = vst.msk [vmem:[%s8796_s10 + $0x24] sm:$0xf] %vm5427_vm10, %v5404_v20 }
 0x28f   : > { %v8997_v59 = vld [vmem:[#allocation2 + $0x78] sm:$0xff]  ;;  %6498 = vmatmul.msk.bf16.gmra.mxu2 %vm959_vm8, %v8931_v43  ;;  %6769 = vmatmul.msk.bf16.gmra.mxu0 %vm959_vm8, %v6918_v12  ;;  %v5277_v51 = vadd.f32 %v8763_v4, %v5241_v13 }
 0x290   : > { %4977 = vst.msk [vmem:[#allocation2 + $0x7c] sm:$0xf] %vm191_vm1, %v4973_v17 }
 0x291   : > { %vm5309_vm1 = vcmp.ge.f32.partialorder %v5277_v51, 0.0  ;;  %v5341_v31 = vmul.f32 0.2, %v5277_v51  ;;  %v4621_v24 = vpop.f32.mrf.mxu3 }
 0x292   : > { %v3843_v21 = vpop.f32.mrf.mxu2  ;;  %v4685_v42 = vadd.f32 %v4621_v24, %v3904_v62 }
 0x293   : > { %v3495_v46 = vpop.f32.mrf.mxu1  ;;  %v5373_v18 = vsel %vm5309_vm1, %v5277_v51, %v5341_v31  ;;  %v3905_v3 = vadd.f32 %v3843_v21, %v3552_v14 }
 0x294   : > { %v5405_v44 = vpack.c.bf16 %v5373_v18, %v5373_v18  ;;  %v5178_v27 = vpop.f32.mrf.mxu0  ;;  %v3554_v29 = vadd.f32 %v3495_v46, %v8384_v45 }
 0x295   : > { %v5242_v43 = vadd.f32 %v5178_v27, %v4685_v42 }
 0x296   : > { %6387 = vmatmul.msk.bf16.gmra.mxu1 %vm959_vm8, %v8950_v22  ;;  %5438 = vst.msk [vmem:[%s8796_s10 + $0x28] sm:$0xf] %vm5427_vm10, %v5405_v44  ;;  %6626 = vmatmul.msk.bf16.gmra.mxu3 %vm959_vm8, %v8960_v60 }
 0x297   : > { %v5278_v54 = vadd.f32 %v8763_v4, %v5242_v43  ;;  %v6920_v13 = vld [vmem:[#allocation2 + $0x78] sm:$0xff] }
 0x299   : > { %vm5310_vm5 = vcmp.ge.f32.partialorder %v5278_v54, 0.0  ;;  %v5342_v47 = vmul.f32 0.2, %v5278_v54  ;;  %v4624_v39 = vpop.f32.mrf.mxu3 }
 0x29a   : > { %v3845_v32 = vpop.f32.mrf.mxu2  ;;  %v4686_v52 = vadd.f32 %v4624_v39, %v3905_v3 }
 0x29b   : > { %v3497_v0 = vpop.f32.mrf.mxu1  ;;  %v5374_v1 = vsel %vm5310_vm5, %v5278_v54, %v5342_v47  ;;  %v3906_v60 = vadd.f32 %v3845_v32, %v3553_v50 }
 0x29c   : > { %v5406_v16 = vpack.c.bf16 %v5374_v1, %v5374_v1  ;;  %v5181_v22 = vpop.f32.mrf.mxu0  ;;  %v3555_v51 = vadd.f32 %v3497_v0, %v8410_v40 }
 0x29d   : > { %v5243_v23 = vadd.f32 %v5181_v22, %v4686_v52 }
 0x29e   : > { %5439 = vst.msk [vmem:[%s8796_s10 + $0x2c] sm:$0xf] %vm5427_vm10, %v5406_v16 }
 0x29f   : > { %6499 = vmatmul.msk.bf16.gmra.mxu2 %vm959_vm8, %v8975_v41  ;;  %6770 = vmatmul.msk.bf16.gmra.mxu0 %vm959_vm8, %v6919_v48  ;;  %v5279_v26 = vadd.f32 %v8763_v4, %v5243_v23 }
 0x2a1   : > { %vm5311_vm6 = vcmp.ge.f32.partialorder %v5279_v26, 0.0  ;;  %v5343_v19 = vmul.f32 0.2, %v5279_v26  ;;  %v4626_v2 = vpop.f32.mrf.mxu3 }
 0x2a2   : > { %v3848_v36 = vpop.f32.mrf.mxu2  ;;  %v4687_v17 = vadd.f32 %v4626_v2, %v3906_v60 }
 0x2a3   : > { %v3500_v5 = vpop.f32.mrf.mxu1  ;;  %v5375_v58 = vsel %vm5311_vm6, %v5279_v26, %v5343_v19  ;;  %v3907_v34 = vadd.f32 %v3848_v36, %v3554_v29 }
 0x2a4   : > { %v5407_v9 = vpack.c.bf16 %v5375_v58, %v5375_v58  ;;  %v5183_v49 = vpop.f32.mrf.mxu0  ;;  %v3556_v40 = vadd.f32 %v3500_v5, %v8426_v38 }
 0x2a5   : > { %v5244_v41 = vadd.f32 %v5183_v49, %v4687_v17 }
 0x2a6   : > { %5440 = vst.msk [vmem:[%s8796_s10 + $0x30] sm:$0xf] %vm5427_vm10, %v5407_v9  ;;  %6627 = vmatmul.msk.bf16.gmra.mxu3 %vm959_vm8, %v8997_v59 }
 0x2a7   : > { %v5280_v7 = vadd.f32 %v8763_v4, %v5244_v41 }
 0x2a9   : > { %vm5312_vm7 = vcmp.ge.f32.partialorder %v5280_v7, 0.0  ;;  %v5344_v56 = vmul.f32 0.2, %v5280_v7  ;;  %v4629_v12 = vpop.f32.mrf.mxu3 }
 0x2aa   : > { %v3850_v30 = vpop.f32.mrf.mxu2  ;;  %v4688_v33 = vadd.f32 %v4629_v12, %v3907_v34 }
 0x2ab   : > { %v3502_v20 = vpop.f32.mrf.mxu1  ;;  %v5376_v63 = vsel %vm5312_vm7, %v5280_v7, %v5344_v56  ;;  %v3908_v59 = vadd.f32 %v3850_v30, %v3555_v51 }
 0x2ac   : > { %v5408_v62 = vpack.c.bf16 %v5376_v63, %v5376_v63  ;;  %v5186_v45 = vpop.f32.mrf.mxu0  ;;  %v3557_v50 = vadd.f32 %v3502_v20, %v8451_v11 }
 0x2ad   : > { %v5245_v21 = vadd.f32 %v5186_v45, %v4688_v33 }
 0x2ae   : > { %5441 = vst.msk [vmem:[%s8796_s10 + $0x34] sm:$0xf] %vm5427_vm10, %v5408_v62 }
 0x2af   : > { %6771 = vmatmul.msk.bf16.gmra.mxu0 %vm959_vm8, %v6920_v13  ;;  %v5281_v31 = vadd.f32 %v8763_v4, %v5245_v21 }
 0x2b1   : > { %vm5313_vm9 = vcmp.ge.f32.partialorder %v5281_v31, 0.0  ;;  %v5345_v46 = vmul.f32 0.2, %v5281_v31  ;;  %v4631_v42 = vpop.f32.mrf.mxu3 }
 0x2b2   : > { %v3853_v24 = vpop.f32.mrf.mxu2  ;;  %v4689_v44 = vadd.f32 %v4631_v42, %v3908_v59 }
 0x2b3   : > { %v3505_v18 = vpop.f32.mrf.mxu1  ;;  %v5377_v27 = vsel %vm5313_vm9, %v5281_v31, %v5345_v46  ;;  %v3909_v54 = vadd.f32 %v3853_v24, %v3556_v40 }
 0x2b4   : > { %v5409_v14 = vpack.c.bf16 %v5377_v27, %v5377_v27  ;;  %v5188_v43 = vpop.f32.mrf.mxu0  ;;  %v3558_v49 = vadd.f32 %v3505_v18, %v8467_v8 }
 0x2b5   : > { %v5246_v3 = vadd.f32 %v5188_v43, %v4689_v44 }
 0x2b6   : > { %5442 = vst.msk [vmem:[%s8796_s10 + $0x38] sm:$0xf] %vm5427_vm10, %v5409_v14 }
 0x2b7   : > { %v5282_v32 = vadd.f32 %v8763_v4, %v5246_v3 }
 0x2b9   : > { %vm5314_vm8 = vcmp.ge.f32.partialorder %v5282_v32, 0.0  ;;  %v5346_v39 = vmul.f32 0.2, %v5282_v32  ;;  %v4634_v0 = vpop.f32.mrf.mxu3 }
 0x2ba   : > { %v3855_v47 = vpop.f32.mrf.mxu2  ;;  %v4690_v1 = vadd.f32 %v4634_v0, %v3909_v54 }
 0x2bb   : > { %v3507_v52 = vpop.f32.mrf.mxu1  ;;  %v5378_v48 = vsel %vm5314_vm8, %v5282_v32, %v5346_v39  ;;  %v3910_v23 = vadd.f32 %v3855_v47, %v3557_v50 }
 0x2bc   : > { %v5410_v16 = vpack.c.bf16 %v5378_v48, %v5378_v48  ;;  %v5191_v22 = vpop.f32.mrf.mxu0  ;;  %v3559_v13 = vadd.f32 %v3507_v52, %v8492_v10 }
 0x2bd   : > { %v5247_v38 = vadd.f32 %v5191_v22, %v4690_v1 }
 0x2be   : > { %5443 = vst.msk [vmem:[%s8796_s10 + $0x3c] sm:$0xf] %vm5427_vm10, %v5410_v16 }
 0x2bf   : > { %v5283_v60 = vadd.f32 %v8763_v4, %v5247_v38 }
 0x2c1   : > { %vm5315_vm11 = vcmp.ge.f32.partialorder %v5283_v60, 0.0  ;;  %v5347_v36 = vmul.f32 0.2, %v5283_v60  ;;  %v4636_v19 = vpop.f32.mrf.mxu3 }
 0x2c2   : > { %v3858_v26 = vpop.f32.mrf.mxu2  ;;  %v4691_v5 = vadd.f32 %v4636_v19, %v3910_v23 }
 0x2c3   : > { %v3510_v2 = vpop.f32.mrf.mxu1  ;;  %v5379_v17 = vsel %vm5315_vm11, %v5283_v60, %v5347_v36  ;;  %v3911_v29 = vadd.f32 %v3858_v26, %v3558_v49 }
 0x2c4   : > { %v5411_v58 = vpack.c.bf16 %v5379_v17, %v5379_v17  ;;  %v5193_v9 = vpop.f32.mrf.mxu0  ;;  %v3560_v44 = vadd.f32 %v3510_v2, %v8508_v61 }
 0x2c5   : > { %v5248_v11 = vadd.f32 %v5193_v9, %v4691_v5 }
 0x2c6   : > { %5444 = vst.msk [vmem:[%s8796_s10 + $0x40] sm:$0xf] %vm5427_vm10, %v5411_v58 }
 0x2c7   : > { %v5284_v41 = vadd.f32 %v8763_v4, %v5248_v11 }
 0x2c9   : > { %vm5316_vm12 = vcmp.ge.f32.partialorder %v5284_v41, 0.0  ;;  %v5348_v7 = vmul.f32 0.2, %v5284_v41  ;;  %v4639_v30 = vpop.f32.mrf.mxu3 }
 0x2ca   : > { %v3860_v34 = vpop.f32.mrf.mxu2  ;;  %v4692_v12 = vadd.f32 %v4639_v30, %v3911_v29 }
 0x2cb   : > { %v3512_v56 = vpop.f32.mrf.mxu1  ;;  %v5380_v20 = vsel %vm5316_vm12, %v5284_v41, %v5348_v7  ;;  %v3912_v62 = vadd.f32 %v3860_v34, %v3559_v13 }
 0x2cc   : > { %v5412_v33 = vpack.c.bf16 %v5380_v20, %v5380_v20  ;;  %v5196_v63 = vpop.f32.mrf.mxu0  ;;  %v3561_v52 = vadd.f32 %v3512_v56, %v8533_v37 }
 0x2cd   : > { %v5249_v8 = vadd.f32 %v5196_v63, %v4692_v12 }
 0x2ce   : > { %5445 = vst.msk [vmem:[%s8796_s10 + $0x44] sm:$0xf] %vm5427_vm10, %v5412_v33 }
 0x2cf   : > { %v5285_v45 = vadd.f32 %v8763_v4, %v5249_v8 }
 0x2d1   : > { %vm5317_vm13 = vcmp.ge.f32.partialorder %v5285_v45, 0.0  ;;  %v5349_v21 = vmul.f32 0.2, %v5285_v45  ;;  %v4641_v59 = vpop.f32.mrf.mxu3 }
 0x2d2   : > { %v3863_v51 = vpop.f32.mrf.mxu2  ;;  %v4693_v24 = vadd.f32 %v4641_v59, %v3912_v62 }
 0x2d3   : > { %v3515_v31 = vpop.f32.mrf.mxu1  ;;  %v5381_v46 = vsel %vm5317_vm13, %v5285_v45, %v5349_v21  ;;  %v3913_v27 = vadd.f32 %v3863_v51, %v3560_v44 }
 0x2d4   : > { %v5413_v42 = vpack.c.bf16 %v5381_v46, %v5381_v46  ;;  %v5198_v18 = vpop.f32.mrf.mxu0  ;;  %v3562_v19 = vadd.f32 %v3515_v31, %v8549_v35 }
 0x2d5   : > { %v5250_v10 = vadd.f32 %v5198_v18, %v4693_v24 }
 0x2d6   : > { %5446 = vst.msk [vmem:[%s8796_s10 + $0x48] sm:$0xf] %vm5427_vm10, %v5413_v42 }
 0x2d7   : > { %v5286_v14 = vadd.f32 %v8763_v4, %v5250_v10 }
 0x2d9   : > { %vm5318_vm14 = vcmp.ge.f32.partialorder %v5286_v14, 0.0  ;;  %v5350_v40 = vmul.f32 0.2, %v5286_v14  ;;  %v4644_v3 = vpop.f32.mrf.mxu3 }
 0x2da   : > { %v3865_v43 = vpop.f32.mrf.mxu2  ;;  %v4694_v32 = vadd.f32 %v4644_v3, %v3913_v27 }
 0x2db   : > { %v3517_v54 = vpop.f32.mrf.mxu1  ;;  %v5382_v47 = vsel %vm5318_vm14, %v5286_v14, %v5350_v40  ;;  %v3914_v1 = vadd.f32 %v3865_v43, %v3561_v52 }
 0x2dc   : > { %v5414_v39 = vpack.c.bf16 %v5382_v47, %v5382_v47  ;;  %v5201_v0 = vpop.f32.mrf.mxu0  ;;  %v3563_v41 = vadd.f32 %v3517_v54, %v8574_v53 }
 0x2dd   : > { %v5251_v61 = vadd.f32 %v5201_v0, %v4694_v32 }
 0x2de   : > { %5447 = vst.msk [vmem:[%s8796_s10 + $0x4c] sm:$0xf] %vm5427_vm10, %v5414_v39 }
 0x2df   : > { %v5287_v48 = vadd.f32 %v8763_v4, %v5251_v61  ;;  %v9064_v4 = vld [vmem:[%s9149_s2] ss:$0 sm:$0xff] }
 0x2e1   : > { %vm5319_vm15 = vcmp.ge.f32.partialorder %v5287_v48, 0.0  ;;  %v5351_v22 = vmul.f32 0.2, %v5287_v48  ;;  %v4646_v50 = vpop.f32.mrf.mxu3 }
 0x2e2   : > { %v3868_v16 = vpop.f32.mrf.mxu2  ;;  %v4695_v38 = vadd.f32 %v4646_v50, %v3914_v1 }
 0x2e3   : > { %v5383_v23 = vsel %vm5319_vm15, %v5287_v48, %v5351_v22  ;;  %v3520_v60 = vpop.f32.mrf.mxu1  ;;  %v3915_v37 = vadd.f32 %v3868_v16, %v3562_v19 }
 0x2e4   : > { %v5415_v26 = vpack.c.bf16 %v5383_v23, %v5383_v23  ;;  %v5203_v36 = vpop.f32.mrf.mxu0  ;;  %v3564_v45 = vadd.f32 %v3520_v60, %v8590_v55 }
 0x2e5   : > { %v5252_v2 = vadd.f32 %v5203_v36, %v4695_v38 }
 0x2e6   : > { %5448 = vst.msk [vmem:[%s8796_s10 + $0x50] sm:$0xf] %vm5427_vm10, %v5415_v26 }
 0x2e7   : > { %v5288_v5 = vadd.f32 %v9064_v4, %v5252_v2 }
 0x2e9   : > { %vm5320_vm0 = vcmp.ge.f32.partialorder %v5288_v5, 0.0  ;;  %v5352_v58 = vmul.f32 0.2, %v5288_v5  ;;  %v4649_v9 = vpop.f32.mrf.mxu3 }
 0x2ea   : > { %v3870_v17 = vpop.f32.mrf.mxu2  ;;  %v4696_v49 = vadd.f32 %v4649_v9, %v3915_v37 }
 0x2eb   : > { %v5384_v11 = vsel %vm5320_vm0, %v5288_v5, %v5352_v58  ;;  %v3522_v7 = vpop.f32.mrf.mxu1  ;;  %v3916_v30 = vadd.f32 %v3870_v17, %v3563_v41 }
 0x2ec   : > { %v5416_v29 = vpack.c.bf16 %v5384_v11, %v5384_v11  ;;  %v5206_v35 = vpop.f32.mrf.mxu0  ;;  %v3565_v27 = vadd.f32 %v3522_v7, %v8615_v15 }
 0x2ed   : > { %v5253_v34 = vadd.f32 %v5206_v35, %v4696_v49 }
 0x2ee   : > { %5449 = vst.msk [vmem:[%s8796_s10 + $0x54] sm:$0xf] %vm5427_vm10, %v5416_v29 }
 0x2ef   : > { %v5289_v56 = vadd.f32 %v9064_v4, %v5253_v34 }
 0x2f1   : > { %vm5321_vm2 = vcmp.ge.f32.partialorder %v5289_v56, 0.0  ;;  %v5353_v20 = vmul.f32 0.2, %v5289_v56  ;;  %v4651_v33 = vpop.f32.mrf.mxu3 }
 0x2f2   : > { %v3873_v12 = vpop.f32.mrf.mxu2  ;;  %v4697_v63 = vadd.f32 %v4651_v33, %v3916_v30 }
 0x2f3   : > { %v5385_v13 = vsel %vm5321_vm2, %v5289_v56, %v5353_v20  ;;  %v3917_v51 = vadd.f32 %v3873_v12, %v3564_v45  ;;  %v3525_v59 = vpop.f32.mrf.mxu1 }
 0x2f4   : > { %v5417_v8 = vpack.c.bf16 %v5385_v13, %v5385_v13  ;;  %v5208_v62 = vpop.f32.mrf.mxu0  ;;  %v3566_v61 = vadd.f32 %v3525_v59, %v8631_v28 }
 0x2f5   : > { %v5254_v53 = vadd.f32 %v5208_v62, %v4697_v63 }
 0x2f6   : > { %5450 = vst.msk [vmem:[%s8796_s10 + $0x58] sm:$0xf] %vm5427_vm10, %v5417_v8 }
 0x2f7   : > { %v5290_v21 = vadd.f32 %v9064_v4, %v5254_v53 }
 0x2f9   : > { %vm5322_vm3 = vcmp.ge.f32.partialorder %v5290_v21, 0.0  ;;  %v5354_v24 = vmul.f32 0.2, %v5290_v21  ;;  %v4654_v46 = vpop.f32.mrf.mxu3 }
 0x2fa   : > { %v3875_v31 = vpop.f32.mrf.mxu2  ;;  %v4698_v42 = vadd.f32 %v4654_v46, %v3917_v51 }
 0x2fb   : > { %v5386_v18 = vsel %vm5322_vm3, %v5290_v21, %v5354_v24  ;;  %v3918_v14 = vadd.f32 %v3875_v31, %v3565_v27  ;;  %v3527_v32 = vpop.f32.mrf.mxu1 }
 0x2fc   : > { %v5418_v44 = vpack.c.bf16 %v5386_v18, %v5386_v18  ;;  %v5211_v10 = vpop.f32.mrf.mxu0  ;;  %v3567_v19 = vadd.f32 %v3527_v32, %v8656_v25  ;;  %v9183_v18 = vld [vmem:[#allocation10_spill] sm:$0xff] }
 0x2fd   : > { %v5255_v55 = vadd.f32 %v5211_v10, %v4698_v42 }
 0x2fe   : > { %5451 = vst.msk [vmem:[%s8796_s10 + $0x5c] sm:$0xf] %vm5427_vm10, %v5418_v44 }
 0x2ff   : > { %v5291_v43 = vadd.f32 %v9064_v4, %v5255_v55 }
 0x301   : > { %vm5323_vm4 = vcmp.ge.f32.partialorder %v5291_v43, 0.0  ;;  %v5355_v3 = vmul.f32 0.2, %v5291_v43  ;;  %v4656_v54 = vpop.f32.mrf.mxu3 }
 0x302   : > { %v3878_v40 = vpop.f32.mrf.mxu2  ;;  %v4699_v47 = vadd.f32 %v4656_v54, %v3918_v14 }
 0x303   : > { %v5387_v39 = vsel %vm5323_vm4, %v5291_v43, %v5355_v3  ;;  %v3919_v1 = vadd.f32 %v3878_v40, %v3566_v61  ;;  %v3530_v60 = vpop.f32.mrf.mxu1 }
 0x304   : > { %v5419_v0 = vpack.c.bf16 %v5387_v39, %v5387_v39  ;;  %v5213_v52 = vpop.f32.mrf.mxu0  ;;  %v3568_v35 = vadd.f32 %v3530_v60, %v8672_v6  ;;  %v9184_v39 = vld [vmem:[#allocation12_spill] sm:$0xff] }
 0x305   : > { %v5256_v15 = vadd.f32 %v5213_v52, %v4699_v47 }
 0x306   : > { %5452 = vst.msk [vmem:[%s8796_s10 + $0x60] sm:$0xf] %vm5427_vm10, %v5419_v0 }
 0x307   : > { %v5292_v48 = vadd.f32 %v9064_v4, %v5256_v15 }
 0x309   : > { %vm5324_vm1 = vcmp.ge.f32.partialorder %v5292_v48, 0.0  ;;  %v5356_v22 = vmul.f32 0.2, %v5292_v48  ;;  %v4659_v50 = vpop.f32.mrf.mxu3 }
 0x30a   : > { %v3880_v16 = vpop.f32.mrf.mxu2  ;;  %v4700_v38 = vadd.f32 %v4659_v50, %v3919_v1 }
 0x30b   : > { %v5388_v23 = vsel %vm5324_vm1, %v5292_v48, %v5356_v22  ;;  %v3920_v2 = vadd.f32 %v3880_v16, %v3567_v19  ;;  %v3532_v25 = vpop.f32.mrf.mxu1 }
 0x30c   : > { %v5420_v26 = vpack.c.bf16 %v5388_v23, %v5388_v23  ;;  %v5216_v36 = vpop.f32.mrf.mxu0  ;;  %v3569_v8 = vadd.f32 %v3532_v25, %v8699_v57 }
 0x30d   : > { %v5257_v28 = vadd.f32 %v5216_v36, %v4700_v38 }
 0x30e   : > { %5453 = vst.msk [vmem:[%s8796_s10 + $0x64] sm:$0xf] %vm5427_vm10, %v5420_v26 }
 0x30f   : > { %v5293_v37 = vadd.f32 %v9064_v4, %v5257_v28 }
 0x311   : > { %vm5325_vm5 = vcmp.ge.f32.partialorder %v5293_v37, 0.0  ;;  %v5357_v17 = vmul.f32 0.2, %v5293_v37  ;;  %v4661_v58 = vpop.f32.mrf.mxu3 }
 0x312   : > { %v3883_v5 = vpop.f32.mrf.mxu2  ;;  %v4701_v9 = vadd.f32 %v4661_v58, %v3920_v2 }
 0x313   : > { %v5389_v49 = vsel %vm5325_vm5, %v5293_v37, %v5357_v17  ;;  %v3921_v34 = vadd.f32 %v3883_v5, %v3568_v35  ;;  %v3535_v53 = vpop.f32.mrf.mxu1 }
 0x314   : > { %v5421_v11 = vpack.c.bf16 %v5389_v49, %v5389_v49  ;;  %v5218_v29 = vpop.f32.mrf.mxu0  ;;  %v3570_v44 = vadd.f32 %v3535_v53, %v9183_v18 }
 0x315   : > { %v5258_v41 = vadd.f32 %v5218_v29, %v4701_v9 }
 0x316   : > { %5454 = vst.msk [vmem:[%s8796_s10 + $0x68] sm:$0xf] %vm5427_vm10, %v5421_v11 }
 0x317   : > { %v5294_v7 = vadd.f32 %v9064_v4, %v5258_v41 }
 0x319   : > { %vm5326_vm6 = vcmp.ge.f32.partialorder %v5294_v7, 0.0  ;;  %v5358_v56 = vmul.f32 0.2, %v5294_v7  ;;  %v4664_v12 = vpop.f32.mrf.mxu3 }
 0x31a   : > { %v3885_v30 = vpop.f32.mrf.mxu2  ;;  %v4702_v20 = vadd.f32 %v4664_v12, %v3921_v34 }
 0x31b   : > { %v5390_v33 = vsel %vm5326_vm6, %v5294_v7, %v5358_v56  ;;  %v3922_v62 = vadd.f32 %v3885_v30, %v3569_v8  ;;  %v3537_v43 = vpop.f32.mrf.mxu1 }
 0x31c   : > { %v5422_v63 = vpack.c.bf16 %v5390_v33, %v5390_v33  ;;  %v5221_v13 = vpop.f32.mrf.mxu0  ;;  %v3571_v0 = vadd.f32 %v3537_v43, %v9184_v39 }
 0x31d   : > { %v5259_v6 = vadd.f32 %v5221_v13, %v4702_v20 }
 0x31e   : > { %5455 = vst.msk [vmem:[%s8796_s10 + $0x6c] sm:$0xf] %vm5427_vm10, %v5422_v63 }
 0x31f   : > { %v5295_v45 = vadd.f32 %v9064_v4, %v5259_v6 }
 0x321   : > { %vm5327_vm7 = vcmp.ge.f32.partialorder %v5295_v45, 0.0  ;;  %v5359_v51 = vmul.f32 0.2, %v5295_v45  ;;  %v4666_v21 = vpop.f32.mrf.mxu3 }
 0x322   : > { %v3888_v59 = vpop.f32.mrf.mxu2  ;;  %v4703_v31 = vadd.f32 %v4666_v21, %v3922_v62 }
 0x323   : > { %v5391_v24 = vsel %vm5327_vm7, %v5295_v45, %v5359_v51  ;;  %v3923_v10 = vadd.f32 %v3888_v59, %v3570_v44 }
 0x324   : > { %v5423_v46 = vpack.c.bf16 %v5391_v24, %v5391_v24  ;;  %v5223_v42 = vpop.f32.mrf.mxu0 }
 0x325   : > { %v5260_v57 = vadd.f32 %v5223_v42, %v4703_v31 }
 0x326   : > { %5456 = vst.msk [vmem:[%s8796_s10 + $0x70] sm:$0xf] %vm5427_vm10, %v5423_v46 }
 0x327   : > { %v5296_v27 = vadd.f32 %v9064_v4, %v5260_v57 }
 0x329   : > { %vm5328_vm9 = vcmp.ge.f32.partialorder %v5296_v27, 0.0  ;;  %v5360_v55 = vmul.f32 0.2, %v5296_v27  ;;  %v4669_v14 = vpop.f32.mrf.mxu3 }
 0x32a   : > { %v4704_v40 = vadd.f32 %v4669_v14, %v3923_v10  ;;  %v3890_v54 = vpop.f32.mrf.mxu2 }
 0x32b   : > { %v5392_v3 = vsel %vm5328_vm9, %v5296_v27, %v5360_v55  ;;  %v3924_v61 = vadd.f32 %v3890_v54, %v3571_v0 }
 0x32c   : > { %v5424_v32 = vpack.c.bf16 %v5392_v3, %v5392_v3  ;;  %v5226_v47 = vpop.f32.mrf.mxu0 }
 0x32d   : > { %v5261_v52 = vadd.f32 %v5226_v47, %v4704_v40 }
 0x32e   : > { %5457 = vst.msk [vmem:[%s8796_s10 + $0x74] sm:$0xf] %vm5427_vm10, %v5424_v32 }
 0x32f   : > { %v5297_v15 = vadd.f32 %v9064_v4, %v5261_v52 }
 0x331   : > { %vm5329_vm8 = vcmp.ge.f32.partialorder %v5297_v15, 0.0  ;;  %v5361_v1 = vmul.f32 0.2, %v5297_v15  ;;  %v4671_v48 = vpop.f32.mrf.mxu3 }
 0x332   : > { %v4705_v16 = vadd.f32 %v4671_v48, %v3924_v61 }
 0x333   : > { %v5393_v22 = vsel %vm5329_vm8, %v5297_v15, %v5361_v1 }
 0x334   : > { %v5425_v50 = vpack.c.bf16 %v5393_v22, %v5393_v22  ;;  %v5228_v38 = vpop.f32.mrf.mxu0 }
 0x335   : > { %v5262_v23 = vadd.f32 %v5228_v38, %v4705_v16 }
 0x336   : > { %5458 = vst.msk [vmem:[%s8796_s10 + $0x78] sm:$0xf] %vm5427_vm10, %v5425_v50 }
 0x337   : > { %v5298_v60 = vadd.f32 %v9064_v4, %v5262_v23 }
 0x339   : > { %vm5330_vm11 = vcmp.ge.f32.partialorder %v5298_v60, 0.0  ;;  %v5362_v26 = vmul.f32 0.2, %v5298_v60 }
 0x33b   : > { %v5394_v36 = vsel %vm5330_vm11, %v5298_v60, %v5362_v26 }
 0x33c   : > { %v5426_v19 = vpack.c.bf16 %v5394_v36, %v5394_v36 }
 0x33e   : > { %5459 = vst.msk [vmem:[%s8796_s10 + $0x7c] sm:$0xf] %vm5427_vm10, %v5426_v19 }
 0x33f   : > { %7012 = shalt.err (!%p7009_p5)
}
 0x340   : > { %s7065_s8 = smov 64   ;;  %s7066_s10 = smov 4  }
 0x341   : > { %6926 = dma.vmem_to_hbm [thread:$0]  (%p7127_p4), %s5476_s26, 2048, %s5478_s27, %s5461_s15, %s7065_s8, %s7065_s8, %s7066_s10  }
 0x342 PF: > { %p6932_p6 = scmp.ge.s32.totalorder %s7063_s17, 2  ;;  %s5492_s5 = sand.u32 1, %s7043_s12  }
 0x343   : > { %s5493_s11 = scalar_lea.sflag [#allocation4], %s5492_s5 }
 0x344   : > { %p6929_p7 = pnand %p6932_p6, %p7134_p8 }
 0x346   : > { %p6930_p9 = pneg %p6929_p7 }
 0x348   : > { %7038 = dma.done.wait (%p6930_p9), %s5493_s11, 2048  }
 0x349   : > { %7040 = vsyncadd (%p6930_p9), %s5493_s11, 4294965248  ;;  %s16_s17 = sadd.s32 1, %s7063_s17   ;;  %s9185_s12 = smov %s7047_s13 }
 0x34a   : > { %p13_p10 = scmp.ge.s32.totalorder %s16_s17, 4   ;;  %s9186_s13 = smov %s7051_s14 }
 0x34b   : > { %s9187_s14 = smov %s7140_s25  ;;  %s9188_s15 = smov %s7059_s16 }
 0x34c   : > { %s9189_s16 = smov %s9191_s20  ;;  %15 = sbr.rel (!%p13_p10) target bundleno = 4 (0x4), region = 85 }
 0x351   :  { %5499 = vsyncpa [#allocation4], 1 }
 0x352   :  { %5501 = vsyncpa [#allocation4 + $0x1], 1 }

</bundles_post_ra>
